<compile_context>
chip_gen: v7x
topology: tpu7x:2x2x1
jax: 0.10.0
libtpu: 0.0.40
codegen_flags: <defaults>
</compile_context>

<pallas_src>
import functools

import jax
import jax.numpy as jnp
from jax import lax
from jax.experimental import pallas as pl
from jax.experimental.pallas import tpu as pltpu

CHANNELS = 32
FREQ_BANDS = 8            # freqs = 2**linspace(0, 7, 8) -> exact powers of two
LN_EPS = 1e-5


# ----------------------------- small helpers -----------------------------

def _tree_reduce(parts, op):
    parts = list(parts)
    while len(parts) > 1:
        nxt = [op(parts[i], parts[i + 1]) for i in range(0, len(parts) - 1, 2)]
        if len(parts) % 2:
            nxt.append(parts[-1])
        parts = nxt
    return parts[0]


def _slice_reduce(row, k, tn, op):
    # row: (r, k*tn) with lane index = neighbor*tn + point  ->  (r, tn)
    # every slice starts at a multiple of tn (itself a multiple of 128) -> aligned lane slices.
    return _tree_reduce([row[:, j * tn:(j + 1) * tn] for j in range(k)], op)


def _acos(t):
    # Abramowitz & Stegun 4.4.45 polynomial (|err| < 2e-8); elementwise only.
    a = jnp.abs(t)
    poly = (1.5707963050 + a * (-0.2145988016 + a * (0.0889789874 + a * (
        -0.0501743046 + a * (0.0308918810 + a * (-0.0170881256 + a * (
            0.0066700901 + a * (-0.0012624911))))))))
    v = jnp.sqrt(jnp.maximum(1.0 - a, 0.0)) * poly
    return jnp.where(t < 0.0, jnp.pi - v, v)


def _layer_norm_relu(h, gamma, beta):
    # LayerNorm over the channel axis (axis 0 = sublanes), then ReLU.
    mu = jnp.mean(h, axis=0, keepdims=True)
    var = jnp.mean((h - mu) ** 2, axis=0, keepdims=True)
    h = (h - mu) * lax.rsqrt(var + LN_EPS) * gamma + beta
    return jnp.maximum(h, 0.0)


# ------------------------------- the kernel -------------------------------

def _pos_enc_kernel(rel_ref, w1r_ref, vecr_ref, w2r_ref,
                    w1s_ref, vecs_ref, w2s_ref, out_ref, *, k):
    ch2 = out_ref.shape[0] // 2
    tn = out_ref.shape[1]                 # points in this tile (multiple of 128)
    inv_k = 1.0 / float(k)
    inv_km1 = 1.0 / float(k - 1)

    rows3 = rel_ref[...]                  # (3, k*tn) f32, lane index = neighbor*tn + point
    xr = rows3[0:1, :]
    yr = rows3[1:2, :]
    zr = rows3[2:3, :]

    # ---------------- relative positional-encoding branch ----------------
    d2 = xr * xr + yr * yr + zr * zr                      # (1, k*tn)
    inv_d = lax.rsqrt(d2 + 1e-16)                         # ~= 1 / (|r| + 1e-8), single EUP pass
    dist = d2 * inv_d                                     # (1, k*tn)
    diffn = rows3 * inv_d                                 # (3, k*tn) eps-guarded unit directions

    # frequency encoding via angle doubling: only ONE sin and ONE cos evaluation.
    s = jnp.sin(rows3)                                    # (3, k*tn), freq = 1
    c = jnp.cos(rows3)
    pieces = [dist, diffn]
    for b in range(FREQ_BANDS):
        pieces.append(s)
        pieces.append(c)
        if b + 1 < FREQ_BANDS:
            s, c = 2.0 * s * c, c * c - s * s             # freq -> 2*freq
    feats = jnp.concatenate(pieces, axis=0)               # (4 + 6*FREQ_BANDS, k*tn)

    b1r = vecr_ref[:, 0:1]
    g1r = vecr_ref[:, 1:2]
    bt1r = vecr_ref[:, 2:3]
    b2r = vecr_ref[:, 3:4]
    h = jnp.dot(w1r_ref[...], feats, preferred_element_type=jnp.float32) + b1r
    h = _layer_norm_relu(h, g1r, bt1r)                    # (ch2, k*tn)

    # neighbor mean hoisted above W2r (linear layer commutes with the mean);
    # the 1/k factor is folded into w2r in the wrapper, so this is a plain sum.
    rel_sum = _slice_reduce(h, k, tn, jnp.add)            # (ch2, tn)
    rel_out = jnp.dot(w2r_ref[...], rel_sum, preferred_element_type=jnp.float32) + b2r

    # ---------------- structure-aware encoding branch ----------------
    add = jnp.add
    sum3 = _slice_reduce(rows3, k, tn, add)               # (3, tn)  sum_j r_j
    mx = sum3[0:1, :] * inv_k
    my = sum3[1:2, :] * inv_k
    mz = sum3[2:3, :] * inv_k

    # (uncentered) covariance entries, matching torch.bmm(rel^T, rel)/(k-1)
    cxx = _slice_reduce(xr * xr, k, tn, add) * inv_km1
    cxy = _slice_reduce(xr * yr, k, tn, add) * inv_km1
    cxz = _slice_reduce(xr * zr, k, tn, add) * inv_km1
    cyy = _slice_reduce(yr * yr, k, tn, add) * inv_km1
    cyz = _slice_reduce(yr * zr, k, tn, add) * inv_km1
    czz = _slice_reduce(zr * zr, k, tn, add) * inv_km1

    # closed-form eigenvalues of the symmetric 3x3 covariance (ascending, like eigh).
    q = (cxx + cyy + czz) * (1.0 / 3.0)
    p1 = cxy * cxy + cxz * cxz + cyz * cyz
    p2 = (cxx - q) ** 2 + (cyy - q) ** 2 + (czz - q) ** 2 + 2.0 * p1
    deg = p2 <= 1e-20
    p = jnp.sqrt(jnp.maximum(p2, 0.0) / 6.0)
    inv_p = 1.0 / jnp.where(deg, 1.0, p)
    b00 = (cxx - q) * inv_p
    b01 = cxy * inv_p
    b02 = cxz * inv_p
    b11 = (cyy - q) * inv_p
    b12 = cyz * inv_p
    b22 = (czz - q) * inv_p
    detB = (b00 * (b11 * b22 - b12 * b12)
            - b01 * (b01 * b22 - b12 * b02)
            + b02 * (b01 * b12 - b11 * b02))
    r = jnp.clip(0.5 * detB, -1.0, 1.0)
    phi = _acos(r) * (1.0 / 3.0)
    two_pi_3 = 2.0943951023931953
    e_big = q + 2.0 * p * jnp.cos(phi)
    e_small = q + 2.0 * p * jnp.cos(phi + two_pi_3)
    e_mid = 3.0 * q - e_big - e_small
    ev0 = jnp.where(deg, q, e_small)      # smallest (eigenvalues[..., 0])
    ev1 = jnp.where(deg, q, e_mid)
    ev2 = jnp.where(deg, q, e_big)        # largest
    inv_den = 1.0 / (ev0 + 1e-8)          # exact reciprocal (small (1, tn) tensor)
    anis = (ev0 - ev2) * inv_den
    plan = (ev1 - ev2) * inv_den
    spher = ev2 * inv_den

    # geometric features: distances to the local centroid via |r-m|^2 = |r|^2 - 2 r.m + |m|^2
    mm = mx * mx + my * my + mz * mz
    dd2 = []
    for j in range(k):
        lo, hi = j * tn, (j + 1) * tn
        rm = xr[:, lo:hi] * mx + yr[:, lo:hi] * my + zr[:, lo:hi] * mz
        dd2.append(d2[:, lo:hi] - 2.0 * rm + mm)
    dd2_max = _tree_reduce(dd2, jnp.maximum)
    dd2_min = _tree_reduce(dd2, jnp.minimum)
    radius = jnp.sqrt(jnp.maximum(dd2_max, 0.0))
    dmin = jnp.sqrt(jnp.maximum(dd2_min, 0.0))
    density = float(k) / (radius + 1e-8)
    # mean of consecutive diffs of sorted distances == (max - min) / (k - 1)
    mean_curv = (radius - dmin) * inv_km1

    # mean_{i,j} d_i . d_j == |sum_i d_i|^2 / k^2  (reuses the eps-guarded unit dirs)
    usum = _slice_reduce(diffn, k, tn, add)               # (3, tn)
    dir_cons = jnp.sum(usum * usum, axis=0, keepdims=True) * (inv_k * inv_k)

    # unbiased std via sum-of-squares identity: var = cxx - k/(k-1) * mean^2
    kk = float(k) * inv_km1
    stdx = jnp.sqrt(jnp.maximum(cxx - kk * mx * mx, 0.0))
    stdy = jnp.sqrt(jnp.maximum(cyy - kk * my * my, 0.0))
    stdz = jnp.sqrt(jnp.maximum(czz - kk * mz * mz, 0.0))

    # 19 lane-dense feature rows (symmetric covariance duplicates folded into W1s).
    sfeat = jnp.concatenate(
        [cxx, cxy, cxz, cyy, cyz, czz,
         anis, plan, spher,
         radius, density, mean_curv, dir_cons,
         mx, my, mz, stdx, stdy, stdz], axis=0)           # (19, tn)

    b1s = vecs_ref[:, 0:1]
    g1s = vecs_ref[:, 1:2]
    bt1s = vecs_ref[:, 2:3]
    b2s = vecs_ref[:, 3:4]
    sh = jnp.dot(w1s_ref[...], sfeat, preferred_element_type=jnp.float32) + b1s
    sh = _layer_norm_relu(sh, g1s, bt1s)
    s_out = jnp.dot(w2s_ref[...], sh, preferred_element_type=jnp.float32) + b2s

    # write the two halves directly (no final concat); lane-dense unmasked stores.
    out_ref[0:ch2, :] = rel_out.astype(out_ref.dtype)
    out_ref[ch2:2 * ch2, :] = s_out.astype(out_ref.dtype)


# ------------------------------- parameters -------------------------------

def make_params(channels=CHANNELS, freq_bands=FREQ_BANDS, key=None):
    """Parameters in torch-like layout: Linear weights (out, in), biases (out,)."""
    if key is None:
        key = jax.random.PRNGKey(1)
    ch2 = channels // 2
    nf = 6 * freq_bands + 4
    ks = jax.random.split(key, 4)

    def lin(kk, fan_in, fan_out):
        kw, kb = jax.random.split(kk)
        w = jax.random.normal(kw, (fan_out, fan_in), jnp.float32) * 0.1
        b = jax.random.normal(kb, (fan_out,), jnp.float32) * 0.01
        return w, b

    w1r, b1r = lin(ks[0], nf, ch2)
    w2r, b2r = lin(ks[1], ch2, ch2)
    w1s, b1s = lin(ks[2], 22, ch2)
    w2s, b2s = lin(ks[3], ch2, ch2)
    ones = jnp.ones((ch2,), jnp.float32)      # LayerNorm default init
    zeros = jnp.zeros((ch2,), jnp.float32)
    return dict(w1r=w1r, b1r=b1r, g1r=ones, bt1r=zeros, w2r=w2r, b2r=b2r,
                w1s=w1s, b1s=b1s, g1s=ones, bt1s=zeros, w2s=w2s, b2s=b2s)


def _prep_kernel_params(params, k):
    """Reorder / fold torch-layout params into the kernel's layout (zero in-kernel cost)."""
    fb = FREQ_BANDS
    # kernel feature-row order: [dist, diffn(3), band0 sin(3)+cos(3), band1, ...]
    # torch column order:       [band0 sin(3)+cos(3), ..., band7, dist, diffn(3)]
    perm = jnp.asarray([6 * fb, 6 * fb + 1, 6 * fb + 2, 6 * fb + 3] + list(range(6 * fb)),
                       dtype=jnp.int32)
    w1r_k = params['w1r'][:, perm]                                   # (16, 52)
    vec_r = jnp.stack([params['b1r'], params['g1r'],
                       params['bt1r'], params['b2r']], axis=1)       # (16, 4)
    w2r_k = params['w2r'] * (1.0 / float(k))                         # fold neighbor mean
    w = params['w1s']                                                # (16, 22)
    # fold symmetric covariance duplicates: cov flat = [xx,xy,xz, yx,yy,yz, zx,zy,zz]
    w1s_k = jnp.concatenate(
        [w[:, 0:1],
         w[:, 1:2] + w[:, 3:4],    # cxy
         w[:, 2:3] + w[:, 6:7],    # cxz
         w[:, 4:5],
         w[:, 5:6] + w[:, 7:8],    # cyz
         w[:, 8:9],
         w[:, 9:22]], axis=1)                                        # (16, 19)
    vec_s = jnp.stack([params['b1s'], params['g1s'],
                       params['bt1s'], params['b2s']], axis=1)       # (16, 4)
    return w1r_k, vec_r, w2r_k, w1s_k, vec_s, params['w2s']


# --------------------------------- wrapper ---------------------------------

def enhanced_positional_encoding(xyz, params, k_neighbors=16, tile_n=512):
    B, N, _ = xyz.shape
    k = min(k_neighbors, N)
    xyz = xyz.astype(jnp.float32)

    # ---- kNN gather stays in plain JAX glue (data-dependent gather). ----
    # TODO(synk): torch.cdist + topk + index gather done in JAX, not in-kernel.
    sq = jnp.sum(xyz * xyz, axis=-1)
    d2 = sq[:, :, None] + sq[:, None, :] - 2.0 * jnp.einsum('bnd,bmd->bnm', xyz, xyz)
    _, idx = jax.lax.top_k(-d2, k)                        # k nearest (incl. self)
    idx_flat = (idx + jnp.arange(B)[:, None, None] * N).reshape(-1)
    neighbors = xyz.reshape(B * N, 3)[idx_flat].reshape(B, N, k, 3)
    rel_pos = neighbors - xyz[:, :, None, :]              # (B, N, k, 3)

    BN = B * N
    bn_128 = ((BN + 127) // 128) * 128
    tn = max(128, min(int(tile_n), bn_128))
    tn = (tn // 128) * 128                                # points per tile: multiple of 128
    ntiles = -(-BN // tn)
    ntiles = ntiles + (ntiles % 2)                        # even tile count (v7x: 2 TCs balanced)
    bn_pad = ntiles * tn

    relA = rel_pos.reshape(BN, k, 3)
    if bn_pad != BN:
        relA = jnp.pad(relA, ((0, bn_pad - BN), (0, 0), (0, 0)))
    # single input slab per tile: (3, k*tn), lane index = neighbor*tn + point
    rel_nm = relA.reshape(ntiles, tn, k, 3).transpose(0, 3, 2, 1).reshape(ntiles, 3, k * tn)

    w1r_k, vec_r, w2r_k, w1s_k, vec_s, w2s = _prep_kernel_params(params, k)

    def const2d(arr):
        return pl.BlockSpec(arr.shape, lambda i: (0, 0))

    out = pl.pallas_call(
        functools.partial(_pos_enc_kernel, k=k),
        out_shape=jax.ShapeDtypeStruct((CHANNELS, bn_pad), jnp.float32),
        grid=(ntiles,),
        in_specs=[
            pl.BlockSpec((None, 3, k * tn), lambda i: (i, 0, 0)),   # rel slab (tile dim squeezed)
            const2d(w1r_k), const2d(vec_r), const2d(w2r_k),
            const2d(w1s_k), const2d(vec_s), const2d(w2s),
        ],
        out_specs=pl.BlockSpec((CHANNELS, tn), lambda i: (0, i)),
        compiler_params=pltpu.CompilerParams(
            dimension_semantics=("parallel",),
            vmem_limit_bytes=32 * 1024 * 1024),
    )(rel_nm, w1r_k, vec_r, w2r_k, w1s_k, vec_s, w2s)

    out = out[:, :BN].reshape(CHANNELS, B, N)             # (C, B, N)
    return jnp.transpose(out, (1, 0, 2))                  # (B, channels, N)


if __name__ == "__main__":
    key = jax.random.PRNGKey(0)
    xyz = jax.random.normal(key, (2, 64, 3), dtype=jnp.float32)   # (B, N, 3)
    params = make_params()
    out = enhanced_positional_encoding(xyz, params, k_neighbors=16)
    out = jax.block_until_ready(out)
    assert out.shape == (2, CHANNELS, 64)
    assert bool(jnp.all(jnp.isfinite(out)))
    print("KERNEL_OK")
</pallas_src>

<mosaic_0001>
module attributes {stable_mosaic.version = 11 : i64} {
  func.func @_pos_enc_kernel(%arg0: i32, %arg1: memref<1x3x2048xf32, #tpu.memory_space<vmem>>, %arg2: memref<16x52xf32, #tpu.memory_space<vmem>>, %arg3: memref<16x4xf32, #tpu.memory_space<vmem>>, %arg4: memref<16x16xf32, #tpu.memory_space<vmem>>, %arg5: memref<16x19xf32, #tpu.memory_space<vmem>>, %arg6: memref<16x4xf32, #tpu.memory_space<vmem>>, %arg7: memref<16x16xf32, #tpu.memory_space<vmem>>, %arg8: memref<32x128xf32, #tpu.memory_space<vmem>>) attributes {dimension_semantics = [#tpu.dimension_semantics<parallel>], iteration_bounds = array<i64: 2>, scalar_prefetch = 0 : i64, scratch_operands = 0 : i64, tpu.core_type = #tpu.core_type<tc>, window_params = [{transform_indices = @transform_0, window_bounds = array<i64: 1, 3, 2048>}, {pipeline_mode = #tpu.pipeline_mode<synchronous>, transform_indices = @transform_1, window_bounds = array<i64: 16, 52>}, {pipeline_mode = #tpu.pipeline_mode<synchronous>, transform_indices = @transform_2, window_bounds = array<i64: 16, 4>}, {pipeline_mode = #tpu.pipeline_mode<synchronous>, transform_indices = @transform_3, window_bounds = array<i64: 16, 16>}, {pipeline_mode = #tpu.pipeline_mode<synchronous>, transform_indices = @transform_4, window_bounds = array<i64: 16, 19>}, {pipeline_mode = #tpu.pipeline_mode<synchronous>, transform_indices = @transform_5, window_bounds = array<i64: 16, 4>}, {pipeline_mode = #tpu.pipeline_mode<synchronous>, transform_indices = @transform_6, window_bounds = array<i64: 16, 16>}, {transform_indices = @transform_7, window_bounds = array<i64: 32, 128>}]} {
    %c0 = arith.constant 0 : index
    %c0_0 = arith.constant 0 : index
    %c0_1 = arith.constant 0 : index
    %0 = vector.load %arg1[%c0, %c0_0, %c0_1] : memref<1x3x2048xf32, #tpu.memory_space<vmem>>, vector<1x3x2048xf32>
    %1 = vector.shape_cast %0 : vector<1x3x2048xf32> to vector<3x2048xf32>
    %2 = vector.extract_strided_slice %1 {offsets = [0, 0], sizes = [1, 2048], strides = [1, 1]} : vector<3x2048xf32> to vector<1x2048xf32>
    %3 = vector.extract_strided_slice %1 {offsets = [1, 0], sizes = [1, 2048], strides = [1, 1]} : vector<3x2048xf32> to vector<1x2048xf32>
    %4 = vector.extract_strided_slice %1 {offsets = [2, 0], sizes = [1, 2048], strides = [1, 1]} : vector<3x2048xf32> to vector<1x2048xf32>
    %5 = arith.mulf %2, %2 : vector<1x2048xf32>
    %6 = arith.mulf %3, %3 : vector<1x2048xf32>
    %7 = arith.addf %5, %6 : vector<1x2048xf32>
    %8 = arith.mulf %4, %4 : vector<1x2048xf32>
    %9 = arith.addf %7, %8 : vector<1x2048xf32>
    %cst = arith.constant 1.000000e-16 : f32
    %10 = vector.broadcast %cst : f32 to vector<1x2048xf32>
    %11 = arith.addf %9, %10 : vector<1x2048xf32>
    %12 = math.rsqrt %11 : vector<1x2048xf32>
    %13 = arith.mulf %9, %12 : vector<1x2048xf32>
    %14 = vector.broadcast %12 : vector<1x2048xf32> to vector<3x2048xf32>
    %15 = arith.mulf %1, %14 : vector<3x2048xf32>
    %16 = math.sin %1 : vector<3x2048xf32>
    %17 = math.cos %1 : vector<3x2048xf32>
    %cst_2 = arith.constant 2.000000e+00 : f32
    %18 = vector.broadcast %cst_2 : f32 to vector<3x2048xf32>
    %19 = arith.mulf %18, %16 : vector<3x2048xf32>
    %20 = arith.mulf %19, %17 : vector<3x2048xf32>
    %21 = arith.mulf %17, %17 : vector<3x2048xf32>
    %22 = arith.mulf %16, %16 : vector<3x2048xf32>
    %23 = arith.subf %21, %22 : vector<3x2048xf32>
    %cst_3 = arith.constant 2.000000e+00 : f32
    %24 = vector.broadcast %cst_3 : f32 to vector<3x2048xf32>
    %25 = arith.mulf %24, %20 : vector<3x2048xf32>
    %26 = arith.mulf %25, %23 : vector<3x2048xf32>
    %27 = arith.mulf %23, %23 : vector<3x2048xf32>
    %28 = arith.mulf %20, %20 : vector<3x2048xf32>
    %29 = arith.subf %27, %28 : vector<3x2048xf32>
    %cst_4 = arith.constant 2.000000e+00 : f32
    %30 = vector.broadcast %cst_4 : f32 to vector<3x2048xf32>
    %31 = arith.mulf %30, %26 : vector<3x2048xf32>
    %32 = arith.mulf %31, %29 : vector<3x2048xf32>
    %33 = arith.mulf %29, %29 : vector<3x2048xf32>
    %34 = arith.mulf %26, %26 : vector<3x2048xf32>
    %35 = arith.subf %33, %34 : vector<3x2048xf32>
    %cst_5 = arith.constant 2.000000e+00 : f32
    %36 = vector.broadcast %cst_5 : f32 to vector<3x2048xf32>
    %37 = arith.mulf %36, %32 : vector<3x2048xf32>
    %38 = arith.mulf %37, %35 : vector<3x2048xf32>
    %39 = arith.mulf %35, %35 : vector<3x2048xf32>
    %40 = arith.mulf %32, %32 : vector<3x2048xf32>
    %41 = arith.subf %39, %40 : vector<3x2048xf32>
    %cst_6 = arith.constant 2.000000e+00 : f32
    %42 = vector.broadcast %cst_6 : f32 to vector<3x2048xf32>
    %43 = arith.mulf %42, %38 : vector<3x2048xf32>
    %44 = arith.mulf %43, %41 : vector<3x2048xf32>
    %45 = arith.mulf %41, %41 : vector<3x2048xf32>
    %46 = arith.mulf %38, %38 : vector<3x2048xf32>
    %47 = arith.subf %45, %46 : vector<3x2048xf32>
    %cst_7 = arith.constant 2.000000e+00 : f32
    %48 = vector.broadcast %cst_7 : f32 to vector<3x2048xf32>
    %49 = arith.mulf %48, %44 : vector<3x2048xf32>
    %50 = arith.mulf %49, %47 : vector<3x2048xf32>
    %51 = arith.mulf %47, %47 : vector<3x2048xf32>
    %52 = arith.mulf %44, %44 : vector<3x2048xf32>
    %53 = arith.subf %51, %52 : vector<3x2048xf32>
    %cst_8 = arith.constant 2.000000e+00 : f32
    %54 = vector.broadcast %cst_8 : f32 to vector<3x2048xf32>
    %55 = arith.mulf %54, %50 : vector<3x2048xf32>
    %56 = arith.mulf %55, %53 : vector<3x2048xf32>
    %57 = arith.mulf %53, %53 : vector<3x2048xf32>
    %58 = arith.mulf %50, %50 : vector<3x2048xf32>
    %59 = arith.subf %57, %58 : vector<3x2048xf32>
    %60 = tpu.concatenate %13, %15, %16, %17, %20, %23, %26, %29, %32, %35, %38, %41, %44, %47, %50, %53 in 0 : vector<1x2048xf32>, vector<3x2048xf32>, vector<3x2048xf32>, vector<3x2048xf32>, vector<3x2048xf32>, vector<3x2048xf32>, vector<3x2048xf32>, vector<3x2048xf32>, vector<3x2048xf32>, vector<3x2048xf32>, vector<3x2048xf32>, vector<3x2048xf32>, vector<3x2048xf32>, vector<3x2048xf32>, vector<3x2048xf32>, vector<3x2048xf32> -> vector<46x2048xf32>
    %61 = tpu.concatenate %56, %59 in 0 : vector<3x2048xf32>, vector<3x2048xf32> -> vector<6x2048xf32>
    %62 = tpu.concatenate %60, %61 in 0 : vector<46x2048xf32>, vector<6x2048xf32> -> vector<52x2048xf32>
    %c0_9 = arith.constant 0 : index
    %c0_10 = arith.constant 0 : index
    %63 = vector.load %arg3[%c0_9, %c0_10] : memref<16x4xf32, #tpu.memory_space<vmem>>, vector<16x1xf32>
    %c0_11 = arith.constant 0 : index
    %c1 = arith.constant 1 : index
    %64 = vector.load %arg3[%c0_11, %c1] : memref<16x4xf32, #tpu.memory_space<vmem>>, vector<16x1xf32>
    %c0_12 = arith.constant 0 : index
    %c2 = arith.constant 2 : index
    %65 = vector.load %arg3[%c0_12, %c2] : memref<16x4xf32, #tpu.memory_space<vmem>>, vector<16x1xf32>
    %c0_13 = arith.constant 0 : index
    %c3 = arith.constant 3 : index
    %66 = vector.load %arg3[%c0_13, %c3] : memref<16x4xf32, #tpu.memory_space<vmem>>, vector<16x1xf32>
    %c0_14 = arith.constant 0 : index
    %c0_15 = arith.constant 0 : index
    %67 = vector.load %arg2[%c0_14, %c0_15] : memref<16x52xf32, #tpu.memory_space<vmem>>, vector<16x52xf32>
    %cst_16 = arith.constant dense<0.000000e+00> : vector<16x2048xf32>
    %68 = tpu.matmul %67, %62, %cst_16 {dimension_numbers = #tpu.dot_dimension_numbers<[1], [0], [0], [1], [0, 0, 1, 1], [], []>} : vector<16x52xf32>, vector<52x2048xf32>, vector<16x2048xf32> -> vector<16x2048xf32>
    %69 = vector.broadcast %63 : vector<16x1xf32> to vector<16x2048xf32>
    %70 = arith.addf %68, %69 : vector<16x2048xf32>
    %cst_17 = arith.constant dense<0.000000e+00> : vector<2048xf32>
    %71 = vector.multi_reduction <add>, %70, %cst_17 [0] : vector<16x2048xf32> to vector<2048xf32>
    %72 = vector.shape_cast %71 : vector<2048xf32> to vector<1x2048xf32>
    %cst_18 = arith.constant 1.600000e+01 : f32
    %73 = vector.broadcast %cst_18 : f32 to vector<1x2048xf32>
    %74 = arith.divf %72, %73 : vector<1x2048xf32>
    %75 = vector.broadcast %74 : vector<1x2048xf32> to vector<16x2048xf32>
    %76 = arith.subf %70, %75 : vector<16x2048xf32>
    %77 = arith.mulf %76, %76 : vector<16x2048xf32>
    %cst_19 = arith.constant dense<0.000000e+00> : vector<2048xf32>
    %78 = vector.multi_reduction <add>, %77, %cst_19 [0] : vector<16x2048xf32> to vector<2048xf32>
    %79 = vector.shape_cast %78 : vector<2048xf32> to vector<1x2048xf32>
    %cst_20 = arith.constant 1.600000e+01 : f32
    %80 = vector.broadcast %cst_20 : f32 to vector<1x2048xf32>
    %81 = arith.divf %79, %80 : vector<1x2048xf32>
    %82 = vector.broadcast %74 : vector<1x2048xf32> to vector<16x2048xf32>
    %83 = arith.subf %70, %82 : vector<16x2048xf32>
    %cst_21 = arith.constant 9.99999974E-6 : f32
    %84 = vector.broadcast %cst_21 : f32 to vector<1x2048xf32>
    %85 = arith.addf %81, %84 : vector<1x2048xf32>
    %86 = math.rsqrt %85 : vector<1x2048xf32>
    %87 = vector.broadcast %86 : vector<1x2048xf32> to vector<16x2048xf32>
    %88 = arith.mulf %83, %87 : vector<16x2048xf32>
    %89 = vector.broadcast %64 : vector<16x1xf32> to vector<16x2048xf32>
    %90 = arith.mulf %88, %89 : vector<16x2048xf32>
    %91 = vector.broadcast %65 : vector<16x1xf32> to vector<16x2048xf32>
    %92 = arith.addf %90, %91 : vector<16x2048xf32>
    %cst_22 = arith.constant 0.000000e+00 : f32
    %93 = vector.broadcast %cst_22 : f32 to vector<16x2048xf32>
    %94 = arith.maximumf %92, %93 : vector<16x2048xf32>
    %95 = vector.extract_strided_slice %94 {offsets = [0, 0], sizes = [16, 128], strides = [1, 1]} : vector<16x2048xf32> to vector<16x128xf32>
    %96 = vector.extract_strided_slice %94 {offsets = [0, 128], sizes = [16, 128], strides = [1, 1]} : vector<16x2048xf32> to vector<16x128xf32>
    %97 = vector.extract_strided_slice %94 {offsets = [0, 256], sizes = [16, 128], strides = [1, 1]} : vector<16x2048xf32> to vector<16x128xf32>
    %98 = vector.extract_strided_slice %94 {offsets = [0, 384], sizes = [16, 128], strides = [1, 1]} : vector<16x2048xf32> to vector<16x128xf32>
    %99 = vector.extract_strided_slice %94 {offsets = [0, 512], sizes = [16, 128], strides = [1, 1]} : vector<16x2048xf32> to vector<16x128xf32>
    %100 = vector.extract_strided_slice %94 {offsets = [0, 640], sizes = [16, 128], strides = [1, 1]} : vector<16x2048xf32> to vector<16x128xf32>
    %101 = vector.extract_strided_slice %94 {offsets = [0, 768], sizes = [16, 128], strides = [1, 1]} : vector<16x2048xf32> to vector<16x128xf32>
    %102 = vector.extract_strided_slice %94 {offsets = [0, 896], sizes = [16, 128], strides = [1, 1]} : vector<16x2048xf32> to vector<16x128xf32>
    %103 = vector.extract_strided_slice %94 {offsets = [0, 1024], sizes = [16, 128], strides = [1, 1]} : vector<16x2048xf32> to vector<16x128xf32>
    %104 = vector.extract_strided_slice %94 {offsets = [0, 1152], sizes = [16, 128], strides = [1, 1]} : vector<16x2048xf32> to vector<16x128xf32>
    %105 = vector.extract_strided_slice %94 {offsets = [0, 1280], sizes = [16, 128], strides = [1, 1]} : vector<16x2048xf32> to vector<16x128xf32>
    %106 = vector.extract_strided_slice %94 {offsets = [0, 1408], sizes = [16, 128], strides = [1, 1]} : vector<16x2048xf32> to vector<16x128xf32>
    %107 = vector.extract_strided_slice %94 {offsets = [0, 1536], sizes = [16, 128], strides = [1, 1]} : vector<16x2048xf32> to vector<16x128xf32>
    %108 = vector.extract_strided_slice %94 {offsets = [0, 1664], sizes = [16, 128], strides = [1, 1]} : vector<16x2048xf32> to vector<16x128xf32>
    %109 = vector.extract_strided_slice %94 {offsets = [0, 1792], sizes = [16, 128], strides = [1, 1]} : vector<16x2048xf32> to vector<16x128xf32>
    %110 = vector.extract_strided_slice %94 {offsets = [0, 1920], sizes = [16, 128], strides = [1, 1]} : vector<16x2048xf32> to vector<16x128xf32>
    %111 = arith.addf %95, %96 : vector<16x128xf32>
    %112 = arith.addf %97, %98 : vector<16x128xf32>
    %113 = arith.addf %99, %100 : vector<16x128xf32>
    %114 = arith.addf %101, %102 : vector<16x128xf32>
    %115 = arith.addf %103, %104 : vector<16x128xf32>
    %116 = arith.addf %105, %106 : vector<16x128xf32>
    %117 = arith.addf %107, %108 : vector<16x128xf32>
    %118 = arith.addf %109, %110 : vector<16x128xf32>
    %119 = arith.addf %111, %112 : vector<16x128xf32>
    %120 = arith.addf %113, %114 : vector<16x128xf32>
    %121 = arith.addf %115, %116 : vector<16x128xf32>
    %122 = arith.addf %117, %118 : vector<16x128xf32>
    %123 = arith.addf %119, %120 : vector<16x128xf32>
    %124 = arith.addf %121, %122 : vector<16x128xf32>
    %125 = arith.addf %123, %124 : vector<16x128xf32>
    %c0_23 = arith.constant 0 : index
    %c0_24 = arith.constant 0 : index
    %126 = vector.load %arg4[%c0_23, %c0_24] : memref<16x16xf32, #tpu.memory_space<vmem>>, vector<16x16xf32>
    %cst_25 = arith.constant dense<0.000000e+00> : vector<16x128xf32>
    %127 = tpu.matmul %126, %125, %cst_25 {dimension_numbers = #tpu.dot_dimension_numbers<[1], [0], [0], [1], [0, 0, 1, 1], [], []>} : vector<16x16xf32>, vector<16x128xf32>, vector<16x128xf32> -> vector<16x128xf32>
    %128 = vector.broadcast %66 : vector<16x1xf32> to vector<16x128xf32>
    %129 = arith.addf %127, %128 : vector<16x128xf32>
    %130 = vector.extract_strided_slice %1 {offsets = [0, 0], sizes = [3, 128], strides = [1, 1]} : vector<3x2048xf32> to vector<3x128xf32>
    %131 = vector.extract_strided_slice %1 {offsets = [0, 128], sizes = [3, 128], strides = [1, 1]} : vector<3x2048xf32> to vector<3x128xf32>
    %132 = vector.extract_strided_slice %1 {offsets = [0, 256], sizes = [3, 128], strides = [1, 1]} : vector<3x2048xf32> to vector<3x128xf32>
    %133 = vector.extract_strided_slice %1 {offsets = [0, 384], sizes = [3, 128], strides = [1, 1]} : vector<3x2048xf32> to vector<3x128xf32>
    %134 = vector.extract_strided_slice %1 {offsets = [0, 512], sizes = [3, 128], strides = [1, 1]} : vector<3x2048xf32> to vector<3x128xf32>
    %135 = vector.extract_strided_slice %1 {offsets = [0, 640], sizes = [3, 128], strides = [1, 1]} : vector<3x2048xf32> to vector<3x128xf32>
    %136 = vector.extract_strided_slice %1 {offsets = [0, 768], sizes = [3, 128], strides = [1, 1]} : vector<3x2048xf32> to vector<3x128xf32>
    %137 = vector.extract_strided_slice %1 {offsets = [0, 896], sizes = [3, 128], strides = [1, 1]} : vector<3x2048xf32> to vector<3x128xf32>
    %138 = vector.extract_strided_slice %1 {offsets = [0, 1024], sizes = [3, 128], strides = [1, 1]} : vector<3x2048xf32> to vector<3x128xf32>
    %139 = vector.extract_strided_slice %1 {offsets = [0, 1152], sizes = [3, 128], strides = [1, 1]} : vector<3x2048xf32> to vector<3x128xf32>
    %140 = vector.extract_strided_slice %1 {offsets = [0, 1280], sizes = [3, 128], strides = [1, 1]} : vector<3x2048xf32> to vector<3x128xf32>
    %141 = vector.extract_strided_slice %1 {offsets = [0, 1408], sizes = [3, 128], strides = [1, 1]} : vector<3x2048xf32> to vector<3x128xf32>
    %142 = vector.extract_strided_slice %1 {offsets = [0, 1536], sizes = [3, 128], strides = [1, 1]} : vector<3x2048xf32> to vector<3x128xf32>
    %143 = vector.extract_strided_slice %1 {offsets = [0, 1664], sizes = [3, 128], strides = [1, 1]} : vector<3x2048xf32> to vector<3x128xf32>
    %144 = vector.extract_strided_slice %1 {offsets = [0, 1792], sizes = [3, 128], strides = [1, 1]} : vector<3x2048xf32> to vector<3x128xf32>
    %145 = vector.extract_strided_slice %1 {offsets = [0, 1920], sizes = [3, 128], strides = [1, 1]} : vector<3x2048xf32> to vector<3x128xf32>
    %146 = arith.addf %130, %131 : vector<3x128xf32>
    %147 = arith.addf %132, %133 : vector<3x128xf32>
    %148 = arith.addf %134, %135 : vector<3x128xf32>
    %149 = arith.addf %136, %137 : vector<3x128xf32>
    %150 = arith.addf %138, %139 : vector<3x128xf32>
    %151 = arith.addf %140, %141 : vector<3x128xf32>
    %152 = arith.addf %142, %143 : vector<3x128xf32>
    %153 = arith.addf %144, %145 : vector<3x128xf32>
    %154 = arith.addf %146, %147 : vector<3x128xf32>
    %155 = arith.addf %148, %149 : vector<3x128xf32>
    %156 = arith.addf %150, %151 : vector<3x128xf32>
    %157 = arith.addf %152, %153 : vector<3x128xf32>
    %158 = arith.addf %154, %155 : vector<3x128xf32>
    %159 = arith.addf %156, %157 : vector<3x128xf32>
    %160 = arith.addf %158, %159 : vector<3x128xf32>
    %161 = vector.extract_strided_slice %160 {offsets = [0, 0], sizes = [1, 128], strides = [1, 1]} : vector<3x128xf32> to vector<1x128xf32>
    %cst_26 = arith.constant 6.250000e-02 : f32
    %162 = vector.broadcast %cst_26 : f32 to vector<1x128xf32>
    %163 = arith.mulf %161, %162 : vector<1x128xf32>
    %164 = vector.extract_strided_slice %160 {offsets = [1, 0], sizes = [1, 128], strides = [1, 1]} : vector<3x128xf32> to vector<1x128xf32>
    %cst_27 = arith.constant 6.250000e-02 : f32
    %165 = vector.broadcast %cst_27 : f32 to vector<1x128xf32>
    %166 = arith.mulf %164, %165 : vector<1x128xf32>
    %167 = vector.extract_strided_slice %160 {offsets = [2, 0], sizes = [1, 128], strides = [1, 1]} : vector<3x128xf32> to vector<1x128xf32>
    %cst_28 = arith.constant 6.250000e-02 : f32
    %168 = vector.broadcast %cst_28 : f32 to vector<1x128xf32>
    %169 = arith.mulf %167, %168 : vector<1x128xf32>
    %170 = arith.mulf %2, %2 : vector<1x2048xf32>
    %171 = vector.extract_strided_slice %170 {offsets = [0, 0], sizes = [1, 128], strides = [1, 1]} : vector<1x2048xf32> to vector<1x128xf32>
    %172 = vector.extract_strided_slice %170 {offsets = [0, 128], sizes = [1, 128], strides = [1, 1]} : vector<1x2048xf32> to vector<1x128xf32>
    %173 = vector.extract_strided_slice %170 {offsets = [0, 256], sizes = [1, 128], strides = [1, 1]} : vector<1x2048xf32> to vector<1x128xf32>
    %174 = vector.extract_strided_slice %170 {offsets = [0, 384], sizes = [1, 128], strides = [1, 1]} : vector<1x2048xf32> to vector<1x128xf32>
    %175 = vector.extract_strided_slice %170 {offsets = [0, 512], sizes = [1, 128], strides = [1, 1]} : vector<1x2048xf32> to vector<1x128xf32>
    %176 = vector.extract_strided_slice %170 {offsets = [0, 640], sizes = [1, 128], strides = [1, 1]} : vector<1x2048xf32> to vector<1x128xf32>
    %177 = vector.extract_strided_slice %170 {offsets = [0, 768], sizes = [1, 128], strides = [1, 1]} : vector<1x2048xf32> to vector<1x128xf32>
    %178 = vector.extract_strided_slice %170 {offsets = [0, 896], sizes = [1, 128], strides = [1, 1]} : vector<1x2048xf32> to vector<1x128xf32>
    %179 = vector.extract_strided_slice %170 {offsets = [0, 1024], sizes = [1, 128], strides = [1, 1]} : vector<1x2048xf32> to vector<1x128xf32>
    %180 = vector.extract_strided_slice %170 {offsets = [0, 1152], sizes = [1, 128], strides = [1, 1]} : vector<1x2048xf32> to vector<1x128xf32>
    %181 = vector.extract_strided_slice %170 {offsets = [0, 1280], sizes = [1, 128], strides = [1, 1]} : vector<1x2048xf32> to vector<1x128xf32>
    %182 = vector.extract_strided_slice %170 {offsets = [0, 1408], sizes = [1, 128], strides = [1, 1]} : vector<1x2048xf32> to vector<1x128xf32>
    %183 = vector.extract_strided_slice %170 {offsets = [0, 1536], sizes = [1, 128], strides = [1, 1]} : vector<1x2048xf32> to vector<1x128xf32>
    %184 = vector.extract_strided_slice %170 {offsets = [0, 1664], sizes = [1, 128], strides = [1, 1]} : vector<1x2048xf32> to vector<1x128xf32>
    %185 = vector.extract_strided_slice %170 {offsets = [0, 1792], sizes = [1, 128], strides = [1, 1]} : vector<1x2048xf32> to vector<1x128xf32>
    %186 = vector.extract_strided_slice %170 {offsets = [0, 1920], sizes = [1, 128], strides = [1, 1]} : vector<1x2048xf32> to vector<1x128xf32>
    %187 = arith.addf %171, %172 : vector<1x128xf32>
    %188 = arith.addf %173, %174 : vector<1x128xf32>
    %189 = arith.addf %175, %176 : vector<1x128xf32>
    %190 = arith.addf %177, %178 : vector<1x128xf32>
    %191 = arith.addf %179, %180 : vector<1x128xf32>
    %192 = arith.addf %181, %182 : vector<1x128xf32>
    %193 = arith.addf %183, %184 : vector<1x128xf32>
    %194 = arith.addf %185, %186 : vector<1x128xf32>
    %195 = arith.addf %187, %188 : vector<1x128xf32>
    %196 = arith.addf %189, %190 : vector<1x128xf32>
    %197 = arith.addf %191, %192 : vector<1x128xf32>
    %198 = arith.addf %193, %194 : vector<1x128xf32>
    %199 = arith.addf %195, %196 : vector<1x128xf32>
    %200 = arith.addf %197, %198 : vector<1x128xf32>
    %201 = arith.addf %199, %200 : vector<1x128xf32>
    %cst_29 = arith.constant 0.0666666701 : f32
    %202 = vector.broadcast %cst_29 : f32 to vector<1x128xf32>
    %203 = arith.mulf %201, %202 : vector<1x128xf32>
    %204 = arith.mulf %2, %3 : vector<1x2048xf32>
    %205 = vector.extract_strided_slice %204 {offsets = [0, 0], sizes = [1, 128], strides = [1, 1]} : vector<1x2048xf32> to vector<1x128xf32>
    %206 = vector.extract_strided_slice %204 {offsets = [0, 128], sizes = [1, 128], strides = [1, 1]} : vector<1x2048xf32> to vector<1x128xf32>
    %207 = vector.extract_strided_slice %204 {offsets = [0, 256], sizes = [1, 128], strides = [1, 1]} : vector<1x2048xf32> to vector<1x128xf32>
    %208 = vector.extract_strided_slice %204 {offsets = [0, 384], sizes = [1, 128], strides = [1, 1]} : vector<1x2048xf32> to vector<1x128xf32>
    %209 = vector.extract_strided_slice %204 {offsets = [0, 512], sizes = [1, 128], strides = [1, 1]} : vector<1x2048xf32> to vector<1x128xf32>
    %210 = vector.extract_strided_slice %204 {offsets = [0, 640], sizes = [1, 128], strides = [1, 1]} : vector<1x2048xf32> to vector<1x128xf32>
    %211 = vector.extract_strided_slice %204 {offsets = [0, 768], sizes = [1, 128], strides = [1, 1]} : vector<1x2048xf32> to vector<1x128xf32>
    %212 = vector.extract_strided_slice %204 {offsets = [0, 896], sizes = [1, 128], strides = [1, 1]} : vector<1x2048xf32> to vector<1x128xf32>
    %213 = vector.extract_strided_slice %204 {offsets = [0, 1024], sizes = [1, 128], strides = [1, 1]} : vector<1x2048xf32> to vector<1x128xf32>
    %214 = vector.extract_strided_slice %204 {offsets = [0, 1152], sizes = [1, 128], strides = [1, 1]} : vector<1x2048xf32> to vector<1x128xf32>
    %215 = vector.extract_strided_slice %204 {offsets = [0, 1280], sizes = [1, 128], strides = [1, 1]} : vector<1x2048xf32> to vector<1x128xf32>
    %216 = vector.extract_strided_slice %204 {offsets = [0, 1408], sizes = [1, 128], strides = [1, 1]} : vector<1x2048xf32> to vector<1x128xf32>
    %217 = vector.extract_strided_slice %204 {offsets = [0, 1536], sizes = [1, 128], strides = [1, 1]} : vector<1x2048xf32> to vector<1x128xf32>
    %218 = vector.extract_strided_slice %204 {offsets = [0, 1664], sizes = [1, 128], strides = [1, 1]} : vector<1x2048xf32> to vector<1x128xf32>
    %219 = vector.extract_strided_slice %204 {offsets = [0, 1792], sizes = [1, 128], strides = [1, 1]} : vector<1x2048xf32> to vector<1x128xf32>
    %220 = vector.extract_strided_slice %204 {offsets = [0, 1920], sizes = [1, 128], strides = [1, 1]} : vector<1x2048xf32> to vector<1x128xf32>
    %221 = arith.addf %205, %206 : vector<1x128xf32>
    %222 = arith.addf %207, %208 : vector<1x128xf32>
    %223 = arith.addf %209, %210 : vector<1x128xf32>
    %224 = arith.addf %211, %212 : vector<1x128xf32>
    %225 = arith.addf %213, %214 : vector<1x128xf32>
    %226 = arith.addf %215, %216 : vector<1x128xf32>
    %227 = arith.addf %217, %218 : vector<1x128xf32>
    %228 = arith.addf %219, %220 : vector<1x128xf32>
    %229 = arith.addf %221, %222 : vector<1x128xf32>
    %230 = arith.addf %223, %224 : vector<1x128xf32>
    %231 = arith.addf %225, %226 : vector<1x128xf32>
    %232 = arith.addf %227, %228 : vector<1x128xf32>
    %233 = arith.addf %229, %230 : vector<1x128xf32>
    %234 = arith.addf %231, %232 : vector<1x128xf32>
    %235 = arith.addf %233, %234 : vector<1x128xf32>
    %cst_30 = arith.constant 0.0666666701 : f32
    %236 = vector.broadcast %cst_30 : f32 to vector<1x128xf32>
    %237 = arith.mulf %235, %236 : vector<1x128xf32>
    %238 = arith.mulf %2, %4 : vector<1x2048xf32>
    %239 = vector.extract_strided_slice %238 {offsets = [0, 0], sizes = [1, 128], strides = [1, 1]} : vector<1x2048xf32> to vector<1x128xf32>
    %240 = vector.extract_strided_slice %238 {offsets = [0, 128], sizes = [1, 128], strides = [1, 1]} : vector<1x2048xf32> to vector<1x128xf32>
    %241 = vector.extract_strided_slice %238 {offsets = [0, 256], sizes = [1, 128], strides = [1, 1]} : vector<1x2048xf32> to vector<1x128xf32>
    %242 = vector.extract_strided_slice %238 {offsets = [0, 384], sizes = [1, 128], strides = [1, 1]} : vector<1x2048xf32> to vector<1x128xf32>
    %243 = vector.extract_strided_slice %238 {offsets = [0, 512], sizes = [1, 128], strides = [1, 1]} : vector<1x2048xf32> to vector<1x128xf32>
    %244 = vector.extract_strided_slice %238 {offsets = [0, 640], sizes = [1, 128], strides = [1, 1]} : vector<1x2048xf32> to vector<1x128xf32>
    %245 = vector.extract_strided_slice %238 {offsets = [0, 768], sizes = [1, 128], strides = [1, 1]} : vector<1x2048xf32> to vector<1x128xf32>
    %246 = vector.extract_strided_slice %238 {offsets = [0, 896], sizes = [1, 128], strides = [1, 1]} : vector<1x2048xf32> to vector<1x128xf32>
    %247 = vector.extract_strided_slice %238 {offsets = [0, 1024], sizes = [1, 128], strides = [1, 1]} : vector<1x2048xf32> to vector<1x128xf32>
    %248 = vector.extract_strided_slice %238 {offsets = [0, 1152], sizes = [1, 128], strides = [1, 1]} : vector<1x2048xf32> to vector<1x128xf32>
    %249 = vector.extract_strided_slice %238 {offsets = [0, 1280], sizes = [1, 128], strides = [1, 1]} : vector<1x2048xf32> to vector<1x128xf32>
    %250 = vector.extract_strided_slice %238 {offsets = [0, 1408], sizes = [1, 128], strides = [1, 1]} : vector<1x2048xf32> to vector<1x128xf32>
    %251 = vector.extract_strided_slice %238 {offsets = [0, 1536], sizes = [1, 128], strides = [1, 1]} : vector<1x2048xf32> to vector<1x128xf32>
    %252 = vector.extract_strided_slice %238 {offsets = [0, 1664], sizes = [1, 128], strides = [1, 1]} : vector<1x2048xf32> to vector<1x128xf32>
    %253 = vector.extract_strided_slice %238 {offsets = [0, 1792], sizes = [1, 128], strides = [1, 1]} : vector<1x2048xf32> to vector<1x128xf32>
    %254 = vector.extract_strided_slice %238 {offsets = [0, 1920], sizes = [1, 128], strides = [1, 1]} : vector<1x2048xf32> to vector<1x128xf32>
    %255 = arith.addf %239, %240 : vector<1x128xf32>
    %256 = arith.addf %241, %242 : vector<1x128xf32>
    %257 = arith.addf %243, %244 : vector<1x128xf32>
    %258 = arith.addf %245, %246 : vector<1x128xf32>
    %259 = arith.addf %247, %248 : vector<1x128xf32>
    %260 = arith.addf %249, %250 : vector<1x128xf32>
    %261 = arith.addf %251, %252 : vector<1x128xf32>
    %262 = arith.addf %253, %254 : vector<1x128xf32>
    %263 = arith.addf %255, %256 : vector<1x128xf32>
    %264 = arith.addf %257, %258 : vector<1x128xf32>
    %265 = arith.addf %259, %260 : vector<1x128xf32>
    %266 = arith.addf %261, %262 : vector<1x128xf32>
    %267 = arith.addf %263, %264 : vector<1x128xf32>
    %268 = arith.addf %265, %266 : vector<1x128xf32>
    %269 = arith.addf %267, %268 : vector<1x128xf32>
    %cst_31 = arith.constant 0.0666666701 : f32
    %270 = vector.broadcast %cst_31 : f32 to vector<1x128xf32>
    %271 = arith.mulf %269, %270 : vector<1x128xf32>
    %272 = arith.mulf %3, %3 : vector<1x2048xf32>
    %273 = vector.extract_strided_slice %272 {offsets = [0, 0], sizes = [1, 128], strides = [1, 1]} : vector<1x2048xf32> to vector<1x128xf32>
    %274 = vector.extract_strided_slice %272 {offsets = [0, 128], sizes = [1, 128], strides = [1, 1]} : vector<1x2048xf32> to vector<1x128xf32>
    %275 = vector.extract_strided_slice %272 {offsets = [0, 256], sizes = [1, 128], strides = [1, 1]} : vector<1x2048xf32> to vector<1x128xf32>
    %276 = vector.extract_strided_slice %272 {offsets = [0, 384], sizes = [1, 128], strides = [1, 1]} : vector<1x2048xf32> to vector<1x128xf32>
    %277 = vector.extract_strided_slice %272 {offsets = [0, 512], sizes = [1, 128], strides = [1, 1]} : vector<1x2048xf32> to vector<1x128xf32>
    %278 = vector.extract_strided_slice %272 {offsets = [0, 640], sizes = [1, 128], strides = [1, 1]} : vector<1x2048xf32> to vector<1x128xf32>
    %279 = vector.extract_strided_slice %272 {offsets = [0, 768], sizes = [1, 128], strides = [1, 1]} : vector<1x2048xf32> to vector<1x128xf32>
    %280 = vector.extract_strided_slice %272 {offsets = [0, 896], sizes = [1, 128], strides = [1, 1]} : vector<1x2048xf32> to vector<1x128xf32>
    %281 = vector.extract_strided_slice %272 {offsets = [0, 1024], sizes = [1, 128], strides = [1, 1]} : vector<1x2048xf32> to vector<1x128xf32>
    %282 = vector.extract_strided_slice %272 {offsets = [0, 1152], sizes = [1, 128], strides = [1, 1]} : vector<1x2048xf32> to vector<1x128xf32>
    %283 = vector.extract_strided_slice %272 {offsets = [0, 1280], sizes = [1, 128], strides = [1, 1]} : vector<1x2048xf32> to vector<1x128xf32>
    %284 = vector.extract_strided_slice %272 {offsets = [0, 1408], sizes = [1, 128], strides = [1, 1]} : vector<1x2048xf32> to vector<1x128xf32>
    %285 = vector.extract_strided_slice %272 {offsets = [0, 1536], sizes = [1, 128], strides = [1, 1]} : vector<1x2048xf32> to vector<1x128xf32>
    %286 = vector.extract_strided_slice %272 {offsets = [0, 1664], sizes = [1, 128], strides = [1, 1]} : vector<1x2048xf32> to vector<1x128xf32>
    %287 = vector.extract_strided_slice %272 {offsets = [0, 1792], sizes = [1, 128], strides = [1, 1]} : vector<1x2048xf32> to vector<1x128xf32>
    %288 = vector.extract_strided_slice %272 {offsets = [0, 1920], sizes = [1, 128], strides = [1, 1]} : vector<1x2048xf32> to vector<1x128xf32>
    %289 = arith.addf %273, %274 : vector<1x128xf32>
    %290 = arith.addf %275, %276 : vector<1x128xf32>
    %291 = arith.addf %277, %278 : vector<1x128xf32>
    %292 = arith.addf %279, %280 : vector<1x128xf32>
    %293 = arith.addf %281, %282 : vector<1x128xf32>
    %294 = arith.addf %283, %284 : vector<1x128xf32>
    %295 = arith.addf %285, %286 : vector<1x128xf32>
    %296 = arith.addf %287, %288 : vector<1x128xf32>
    %297 = arith.addf %289, %290 : vector<1x128xf32>
    %298 = arith.addf %291, %292 : vector<1x128xf32>
    %299 = arith.addf %293, %294 : vector<1x128xf32>
    %300 = arith.addf %295, %296 : vector<1x128xf32>
    %301 = arith.addf %297, %298 : vector<1x128xf32>
    %302 = arith.addf %299, %300 : vector<1x128xf32>
    %303 = arith.addf %301, %302 : vector<1x128xf32>
    %cst_32 = arith.constant 0.0666666701 : f32
    %304 = vector.broadcast %cst_32 : f32 to vector<1x128xf32>
    %305 = arith.mulf %303, %304 : vector<1x128xf32>
    %306 = arith.mulf %3, %4 : vector<1x2048xf32>
    %307 = vector.extract_strided_slice %306 {offsets = [0, 0], sizes = [1, 128], strides = [1, 1]} : vector<1x2048xf32> to vector<1x128xf32>
    %308 = vector.extract_strided_slice %306 {offsets = [0, 128], sizes = [1, 128], strides = [1, 1]} : vector<1x2048xf32> to vector<1x128xf32>
    %309 = vector.extract_strided_slice %306 {offsets = [0, 256], sizes = [1, 128], strides = [1, 1]} : vector<1x2048xf32> to vector<1x128xf32>
    %310 = vector.extract_strided_slice %306 {offsets = [0, 384], sizes = [1, 128], strides = [1, 1]} : vector<1x2048xf32> to vector<1x128xf32>
    %311 = vector.extract_strided_slice %306 {offsets = [0, 512], sizes = [1, 128], strides = [1, 1]} : vector<1x2048xf32> to vector<1x128xf32>
    %312 = vector.extract_strided_slice %306 {offsets = [0, 640], sizes = [1, 128], strides = [1, 1]} : vector<1x2048xf32> to vector<1x128xf32>
    %313 = vector.extract_strided_slice %306 {offsets = [0, 768], sizes = [1, 128], strides = [1, 1]} : vector<1x2048xf32> to vector<1x128xf32>
    %314 = vector.extract_strided_slice %306 {offsets = [0, 896], sizes = [1, 128], strides = [1, 1]} : vector<1x2048xf32> to vector<1x128xf32>
    %315 = vector.extract_strided_slice %306 {offsets = [0, 1024], sizes = [1, 128], strides = [1, 1]} : vector<1x2048xf32> to vector<1x128xf32>
    %316 = vector.extract_strided_slice %306 {offsets = [0, 1152], sizes = [1, 128], strides = [1, 1]} : vector<1x2048xf32> to vector<1x128xf32>
    %317 = vector.extract_strided_slice %306 {offsets = [0, 1280], sizes = [1, 128], strides = [1, 1]} : vector<1x2048xf32> to vector<1x128xf32>
    %318 = vector.extract_strided_slice %306 {offsets = [0, 1408], sizes = [1, 128], strides = [1, 1]} : vector<1x2048xf32> to vector<1x128xf32>
    %319 = vector.extract_strided_slice %306 {offsets = [0, 1536], sizes = [1, 128], strides = [1, 1]} : vector<1x2048xf32> to vector<1x128xf32>
    %320 = vector.extract_strided_slice %306 {offsets = [0, 1664], sizes = [1, 128], strides = [1, 1]} : vector<1x2048xf32> to vector<1x128xf32>
    %321 = vector.extract_strided_slice %306 {offsets = [0, 1792], sizes = [1, 128], strides = [1, 1]} : vector<1x2048xf32> to vector<1x128xf32>
    %322 = vector.extract_strided_slice %306 {offsets = [0, 1920], sizes = [1, 128], strides = [1, 1]} : vector<1x2048xf32> to vector<1x128xf32>
    %323 = arith.addf %307, %308 : vector<1x128xf32>
    %324 = arith.addf %309, %310 : vector<1x128xf32>
    %325 = arith.addf %311, %312 : vector<1x128xf32>
    %326 = arith.addf %313, %314 : vector<1x128xf32>
    %327 = arith.addf %315, %316 : vector<1x128xf32>
    %328 = arith.addf %317, %318 : vector<1x128xf32>
    %329 = arith.addf %319, %320 : vector<1x128xf32>
    %330 = arith.addf %321, %322 : vector<1x128xf32>
    %331 = arith.addf %323, %324 : vector<1x128xf32>
    %332 = arith.addf %325, %326 : vector<1x128xf32>
    %333 = arith.addf %327, %328 : vector<1x128xf32>
    %334 = arith.addf %329, %330 : vector<1x128xf32>
    %335 = arith.addf %331, %332 : vector<1x128xf32>
    %336 = arith.addf %333, %334 : vector<1x128xf32>
    %337 = arith.addf %335, %336 : vector<1x128xf32>
    %cst_33 = arith.constant 0.0666666701 : f32
    %338 = vector.broadcast %cst_33 : f32 to vector<1x128xf32>
    %339 = arith.mulf %337, %338 : vector<1x128xf32>
    %340 = arith.mulf %4, %4 : vector<1x2048xf32>
    %341 = vector.extract_strided_slice %340 {offsets = [0, 0], sizes = [1, 128], strides = [1, 1]} : vector<1x2048xf32> to vector<1x128xf32>
    %342 = vector.extract_strided_slice %340 {offsets = [0, 128], sizes = [1, 128], strides = [1, 1]} : vector<1x2048xf32> to vector<1x128xf32>
    %343 = vector.extract_strided_slice %340 {offsets = [0, 256], sizes = [1, 128], strides = [1, 1]} : vector<1x2048xf32> to vector<1x128xf32>
    %344 = vector.extract_strided_slice %340 {offsets = [0, 384], sizes = [1, 128], strides = [1, 1]} : vector<1x2048xf32> to vector<1x128xf32>
    %345 = vector.extract_strided_slice %340 {offsets = [0, 512], sizes = [1, 128], strides = [1, 1]} : vector<1x2048xf32> to vector<1x128xf32>
    %346 = vector.extract_strided_slice %340 {offsets = [0, 640], sizes = [1, 128], strides = [1, 1]} : vector<1x2048xf32> to vector<1x128xf32>
    %347 = vector.extract_strided_slice %340 {offsets = [0, 768], sizes = [1, 128], strides = [1, 1]} : vector<1x2048xf32> to vector<1x128xf32>
    %348 = vector.extract_strided_slice %340 {offsets = [0, 896], sizes = [1, 128], strides = [1, 1]} : vector<1x2048xf32> to vector<1x128xf32>
    %349 = vector.extract_strided_slice %340 {offsets = [0, 1024], sizes = [1, 128], strides = [1, 1]} : vector<1x2048xf32> to vector<1x128xf32>
    %350 = vector.extract_strided_slice %340 {offsets = [0, 1152], sizes = [1, 128], strides = [1, 1]} : vector<1x2048xf32> to vector<1x128xf32>
    %351 = vector.extract_strided_slice %340 {offsets = [0, 1280], sizes = [1, 128], strides = [1, 1]} : vector<1x2048xf32> to vector<1x128xf32>
    %352 = vector.extract_strided_slice %340 {offsets = [0, 1408], sizes = [1, 128], strides = [1, 1]} : vector<1x2048xf32> to vector<1x128xf32>
    %353 = vector.extract_strided_slice %340 {offsets = [0, 1536], sizes = [1, 128], strides = [1, 1]} : vector<1x2048xf32> to vector<1x128xf32>
    %354 = vector.extract_strided_slice %340 {offsets = [0, 1664], sizes = [1, 128], strides = [1, 1]} : vector<1x2048xf32> to vector<1x128xf32>
    %355 = vector.extract_strided_slice %340 {offsets = [0, 1792], sizes = [1, 128], strides = [1, 1]} : vector<1x2048xf32> to vector<1x128xf32>
    %356 = vector.extract_strided_slice %340 {offsets = [0, 1920], sizes = [1, 128], strides = [1, 1]} : vector<1x2048xf32> to vector<1x128xf32>
    %357 = arith.addf %341, %342 : vector<1x128xf32>
    %358 = arith.addf %343, %344 : vector<1x128xf32>
    %359 = arith.addf %345, %346 : vector<1x128xf32>
    %360 = arith.addf %347, %348 : vector<1x128xf32>
    %361 = arith.addf %349, %350 : vector<1x128xf32>
    %362 = arith.addf %351, %352 : vector<1x128xf32>
    %363 = arith.addf %353, %354 : vector<1x128xf32>
    %364 = arith.addf %355, %356 : vector<1x128xf32>
    %365 = arith.addf %357, %358 : vector<1x128xf32>
    %366 = arith.addf %359, %360 : vector<1x128xf32>
    %367 = arith.addf %361, %362 : vector<1x128xf32>
    %368 = arith.addf %363, %364 : vector<1x128xf32>
    %369 = arith.addf %365, %366 : vector<1x128xf32>
    %370 = arith.addf %367, %368 : vector<1x128xf32>
    %371 = arith.addf %369, %370 : vector<1x128xf32>
    %cst_34 = arith.constant 0.0666666701 : f32
    %372 = vector.broadcast %cst_34 : f32 to vector<1x128xf32>
    %373 = arith.mulf %371, %372 : vector<1x128xf32>
    %374 = arith.addf %203, %305 : vector<1x128xf32>
    %375 = arith.addf %374, %373 : vector<1x128xf32>
    %cst_35 = arith.constant 0.333333343 : f32
    %376 = vector.broadcast %cst_35 : f32 to vector<1x128xf32>
    %377 = arith.mulf %375, %376 : vector<1x128xf32>
    %378 = arith.mulf %237, %237 : vector<1x128xf32>
    %379 = arith.mulf %271, %271 : vector<1x128xf32>
    %380 = arith.addf %378, %379 : vector<1x128xf32>
    %381 = arith.mulf %339, %339 : vector<1x128xf32>
    %382 = arith.addf %380, %381 : vector<1x128xf32>
    %383 = arith.subf %203, %377 : vector<1x128xf32>
    %384 = arith.mulf %383, %383 : vector<1x128xf32>
    %385 = arith.subf %305, %377 : vector<1x128xf32>
    %386 = arith.mulf %385, %385 : vector<1x128xf32>
    %387 = arith.addf %384, %386 : vector<1x128xf32>
    %388 = arith.subf %373, %377 : vector<1x128xf32>
    %389 = arith.mulf %388, %388 : vector<1x128xf32>
    %390 = arith.addf %387, %389 : vector<1x128xf32>
    %cst_36 = arith.constant 2.000000e+00 : f32
    %391 = vector.broadcast %cst_36 : f32 to vector<1x128xf32>
    %392 = arith.mulf %391, %382 : vector<1x128xf32>
    %393 = arith.addf %390, %392 : vector<1x128xf32>
    %cst_37 = arith.constant 9.99999968E-21 : f32
    %394 = vector.broadcast %cst_37 : f32 to vector<1x128xf32>
    %395 = arith.cmpf ole, %393, %394 : vector<1x128xf32>
    %cst_38 = arith.constant 0.000000e+00 : f32
    %396 = vector.broadcast %cst_38 : f32 to vector<1x128xf32>
    %397 = arith.maximumf %393, %396 : vector<1x128xf32>
    %cst_39 = arith.constant 6.000000e+00 : f32
    %398 = vector.broadcast %cst_39 : f32 to vector<1x128xf32>
    %399 = arith.divf %397, %398 : vector<1x128xf32>
    %400 = math.sqrt %399 : vector<1x128xf32>
    %cst_40 = arith.constant 1.000000e+00 : f32
    %401 = vector.broadcast %cst_40 : f32 to vector<1x128xf32>
    %402 = arith.select %395, %401, %400 : vector<1x128xi1>, vector<1x128xf32>
    %cst_41 = arith.constant 1.000000e+00 : f32
    %403 = vector.broadcast %cst_41 : f32 to vector<1x128xf32>
    %404 = arith.divf %403, %402 : vector<1x128xf32>
    %405 = arith.subf %203, %377 : vector<1x128xf32>
    %406 = arith.mulf %405, %404 : vector<1x128xf32>
    %407 = arith.mulf %237, %404 : vector<1x128xf32>
    %408 = arith.mulf %271, %404 : vector<1x128xf32>
    %409 = arith.subf %305, %377 : vector<1x128xf32>
    %410 = arith.mulf %409, %404 : vector<1x128xf32>
    %411 = arith.mulf %339, %404 : vector<1x128xf32>
    %412 = arith.subf %373, %377 : vector<1x128xf32>
    %413 = arith.mulf %412, %404 : vector<1x128xf32>
    %414 = arith.mulf %410, %413 : vector<1x128xf32>
    %415 = arith.mulf %411, %411 : vector<1x128xf32>
    %416 = arith.subf %414, %415 : vector<1x128xf32>
    %417 = arith.mulf %406, %416 : vector<1x128xf32>
    %418 = arith.mulf %407, %413 : vector<1x128xf32>
    %419 = arith.mulf %411, %408 : vector<1x128xf32>
    %420 = arith.subf %418, %419 : vector<1x128xf32>
    %421 = arith.mulf %407, %420 : vector<1x128xf32>
    %422 = arith.subf %417, %421 : vector<1x128xf32>
    %423 = arith.mulf %407, %411 : vector<1x128xf32>
    %424 = arith.mulf %410, %408 : vector<1x128xf32>
    %425 = arith.subf %423, %424 : vector<1x128xf32>
    %426 = arith.mulf %408, %425 : vector<1x128xf32>
    %427 = arith.addf %422, %426 : vector<1x128xf32>
    %cst_42 = arith.constant 5.000000e-01 : f32
    %428 = vector.broadcast %cst_42 : f32 to vector<1x128xf32>
    %429 = arith.mulf %428, %427 : vector<1x128xf32>
    %cst_43 = arith.constant -1.000000e+00 : f32
    %cst_44 = arith.constant 1.000000e+00 : f32
    %430 = vector.broadcast %cst_43 : f32 to vector<1x128xf32>
    %431 = arith.maximumf %430, %429 : vector<1x128xf32>
    %432 = vector.broadcast %cst_44 : f32 to vector<1x128xf32>
    %433 = arith.minimumf %432, %431 : vector<1x128xf32>
    %434 = math.absf %433 : vector<1x128xf32>
    %cst_45 = arith.constant -0.0012624911 : f32
    %435 = vector.broadcast %cst_45 : f32 to vector<1x128xf32>
    %436 = arith.mulf %434, %435 : vector<1x128xf32>
    %cst_46 = arith.constant 6.670090e-03 : f32
    %437 = vector.broadcast %cst_46 : f32 to vector<1x128xf32>
    %438 = arith.addf %437, %436 : vector<1x128xf32>
    %439 = arith.mulf %434, %438 : vector<1x128xf32>
    %cst_47 = arith.constant -0.0170881264 : f32
    %440 = vector.broadcast %cst_47 : f32 to vector<1x128xf32>
    %441 = arith.addf %440, %439 : vector<1x128xf32>
    %442 = arith.mulf %434, %441 : vector<1x128xf32>
    %cst_48 = arith.constant 0.0308918804 : f32
    %443 = vector.broadcast %cst_48 : f32 to vector<1x128xf32>
    %444 = arith.addf %443, %442 : vector<1x128xf32>
    %445 = arith.mulf %434, %444 : vector<1x128xf32>
    %cst_49 = arith.constant -0.0501743034 : f32
    %446 = vector.broadcast %cst_49 : f32 to vector<1x128xf32>
    %447 = arith.addf %446, %445 : vector<1x128xf32>
    %448 = arith.mulf %434, %447 : vector<1x128xf32>
    %cst_50 = arith.constant 0.0889789909 : f32
    %449 = vector.broadcast %cst_50 : f32 to vector<1x128xf32>
    %450 = arith.addf %449, %448 : vector<1x128xf32>
    %451 = arith.mulf %434, %450 : vector<1x128xf32>
    %cst_51 = arith.constant -0.214598805 : f32
    %452 = vector.broadcast %cst_51 : f32 to vector<1x128xf32>
    %453 = arith.addf %452, %451 : vector<1x128xf32>
    %454 = arith.mulf %434, %453 : vector<1x128xf32>
    %cst_52 = arith.constant 1.57079625 : f32
    %455 = vector.broadcast %cst_52 : f32 to vector<1x128xf32>
    %456 = arith.addf %455, %454 : vector<1x128xf32>
    %cst_53 = arith.constant 1.000000e+00 : f32
    %457 = vector.broadcast %cst_53 : f32 to vector<1x128xf32>
    %458 = arith.subf %457, %434 : vector<1x128xf32>
    %cst_54 = arith.constant 0.000000e+00 : f32
    %459 = vector.broadcast %cst_54 : f32 to vector<1x128xf32>
    %460 = arith.maximumf %458, %459 : vector<1x128xf32>
    %461 = math.sqrt %460 : vector<1x128xf32>
    %462 = arith.mulf %461, %456 : vector<1x128xf32>
    %cst_55 = arith.constant 0.000000e+00 : f32
    %463 = vector.broadcast %cst_55 : f32 to vector<1x128xf32>
    %464 = arith.cmpf olt, %433, %463 : vector<1x128xf32>
    %cst_56 = arith.constant 3.14159274 : f32
    %465 = vector.broadcast %cst_56 : f32 to vector<1x128xf32>
    %466 = arith.subf %465, %462 : vector<1x128xf32>
    %467 = arith.select %464, %466, %462 : vector<1x128xi1>, vector<1x128xf32>
    %cst_57 = arith.constant 0.333333343 : f32
    %468 = vector.broadcast %cst_57 : f32 to vector<1x128xf32>
    %469 = arith.mulf %467, %468 : vector<1x128xf32>
    %cst_58 = arith.constant 2.000000e+00 : f32
    %470 = vector.broadcast %cst_58 : f32 to vector<1x128xf32>
    %471 = arith.mulf %470, %400 : vector<1x128xf32>
    %472 = math.cos %469 : vector<1x128xf32>
    %473 = arith.mulf %471, %472 : vector<1x128xf32>
    %474 = arith.addf %377, %473 : vector<1x128xf32>
    %cst_59 = arith.constant 2.000000e+00 : f32
    %475 = vector.broadcast %cst_59 : f32 to vector<1x128xf32>
    %476 = arith.mulf %475, %400 : vector<1x128xf32>
    %cst_60 = arith.constant 2.09439516 : f32
    %477 = vector.broadcast %cst_60 : f32 to vector<1x128xf32>
    %478 = arith.addf %469, %477 : vector<1x128xf32>
    %479 = math.cos %478 : vector<1x128xf32>
    %480 = arith.mulf %476, %479 : vector<1x128xf32>
    %481 = arith.addf %377, %480 : vector<1x128xf32>
    %cst_61 = arith.constant 3.000000e+00 : f32
    %482 = vector.broadcast %cst_61 : f32 to vector<1x128xf32>
    %483 = arith.mulf %482, %377 : vector<1x128xf32>
    %484 = arith.subf %483, %474 : vector<1x128xf32>
    %485 = arith.subf %484, %481 : vector<1x128xf32>
    %486 = arith.select %395, %377, %481 : vector<1x128xi1>, vector<1x128xf32>
    %487 = arith.select %395, %377, %485 : vector<1x128xi1>, vector<1x128xf32>
    %488 = arith.select %395, %377, %474 : vector<1x128xi1>, vector<1x128xf32>
    %cst_62 = arith.constant 9.99999993E-9 : f32
    %489 = vector.broadcast %cst_62 : f32 to vector<1x128xf32>
    %490 = arith.addf %486, %489 : vector<1x128xf32>
    %cst_63 = arith.constant 1.000000e+00 : f32
    %491 = vector.broadcast %cst_63 : f32 to vector<1x128xf32>
    %492 = arith.divf %491, %490 : vector<1x128xf32>
    %493 = arith.subf %486, %488 : vector<1x128xf32>
    %494 = arith.mulf %493, %492 : vector<1x128xf32>
    %495 = arith.subf %487, %488 : vector<1x128xf32>
    %496 = arith.mulf %495, %492 : vector<1x128xf32>
    %497 = arith.mulf %488, %492 : vector<1x128xf32>
    %498 = arith.mulf %163, %163 : vector<1x128xf32>
    %499 = arith.mulf %166, %166 : vector<1x128xf32>
    %500 = arith.addf %498, %499 : vector<1x128xf32>
    %501 = arith.mulf %169, %169 : vector<1x128xf32>
    %502 = arith.addf %500, %501 : vector<1x128xf32>
    %503 = vector.extract_strided_slice %2 {offsets = [0, 0], sizes = [1, 128], strides = [1, 1]} : vector<1x2048xf32> to vector<1x128xf32>
    %504 = arith.mulf %503, %163 : vector<1x128xf32>
    %505 = vector.extract_strided_slice %3 {offsets = [0, 0], sizes = [1, 128], strides = [1, 1]} : vector<1x2048xf32> to vector<1x128xf32>
    %506 = arith.mulf %505, %166 : vector<1x128xf32>
    %507 = arith.addf %504, %506 : vector<1x128xf32>
    %508 = vector.extract_strided_slice %4 {offsets = [0, 0], sizes = [1, 128], strides = [1, 1]} : vector<1x2048xf32> to vector<1x128xf32>
    %509 = arith.mulf %508, %169 : vector<1x128xf32>
    %510 = arith.addf %507, %509 : vector<1x128xf32>
    %511 = vector.extract_strided_slice %9 {offsets = [0, 0], sizes = [1, 128], strides = [1, 1]} : vector<1x2048xf32> to vector<1x128xf32>
    %cst_64 = arith.constant 2.000000e+00 : f32
    %512 = vector.broadcast %cst_64 : f32 to vector<1x128xf32>
    %513 = arith.mulf %512, %510 : vector<1x128xf32>
    %514 = arith.subf %511, %513 : vector<1x128xf32>
    %515 = arith.addf %514, %502 : vector<1x128xf32>
    %516 = vector.extract_strided_slice %2 {offsets = [0, 128], sizes = [1, 128], strides = [1, 1]} : vector<1x2048xf32> to vector<1x128xf32>
    %517 = arith.mulf %516, %163 : vector<1x128xf32>
    %518 = vector.extract_strided_slice %3 {offsets = [0, 128], sizes = [1, 128], strides = [1, 1]} : vector<1x2048xf32> to vector<1x128xf32>
    %519 = arith.mulf %518, %166 : vector<1x128xf32>
    %520 = arith.addf %517, %519 : vector<1x128xf32>
    %521 = vector.extract_strided_slice %4 {offsets = [0, 128], sizes = [1, 128], strides = [1, 1]} : vector<1x2048xf32> to vector<1x128xf32>
    %522 = arith.mulf %521, %169 : vector<1x128xf32>
    %523 = arith.addf %520, %522 : vector<1x128xf32>
    %524 = vector.extract_strided_slice %9 {offsets = [0, 128], sizes = [1, 128], strides = [1, 1]} : vector<1x2048xf32> to vector<1x128xf32>
    %cst_65 = arith.constant 2.000000e+00 : f32
    %525 = vector.broadcast %cst_65 : f32 to vector<1x128xf32>
    %526 = arith.mulf %525, %523 : vector<1x128xf32>
    %527 = arith.subf %524, %526 : vector<1x128xf32>
    %528 = arith.addf %527, %502 : vector<1x128xf32>
    %529 = vector.extract_strided_slice %2 {offsets = [0, 256], sizes = [1, 128], strides = [1, 1]} : vector<1x2048xf32> to vector<1x128xf32>
    %530 = arith.mulf %529, %163 : vector<1x128xf32>
    %531 = vector.extract_strided_slice %3 {offsets = [0, 256], sizes = [1, 128], strides = [1, 1]} : vector<1x2048xf32> to vector<1x128xf32>
    %532 = arith.mulf %531, %166 : vector<1x128xf32>
    %533 = arith.addf %530, %532 : vector<1x128xf32>
    %534 = vector.extract_strided_slice %4 {offsets = [0, 256], sizes = [1, 128], strides = [1, 1]} : vector<1x2048xf32> to vector<1x128xf32>
    %535 = arith.mulf %534, %169 : vector<1x128xf32>
    %536 = arith.addf %533, %535 : vector<1x128xf32>
    %537 = vector.extract_strided_slice %9 {offsets = [0, 256], sizes = [1, 128], strides = [1, 1]} : vector<1x2048xf32> to vector<1x128xf32>
    %cst_66 = arith.constant 2.000000e+00 : f32
    %538 = vector.broadcast %cst_66 : f32 to vector<1x128xf32>
    %539 = arith.mulf %538, %536 : vector<1x128xf32>
    %540 = arith.subf %537, %539 : vector<1x128xf32>
    %541 = arith.addf %540, %502 : vector<1x128xf32>
    %542 = vector.extract_strided_slice %2 {offsets = [0, 384], sizes = [1, 128], strides = [1, 1]} : vector<1x2048xf32> to vector<1x128xf32>
    %543 = arith.mulf %542, %163 : vector<1x128xf32>
    %544 = vector.extract_strided_slice %3 {offsets = [0, 384], sizes = [1, 128], strides = [1, 1]} : vector<1x2048xf32> to vector<1x128xf32>
    %545 = arith.mulf %544, %166 : vector<1x128xf32>
    %546 = arith.addf %543, %545 : vector<1x128xf32>
    %547 = vector.extract_strided_slice %4 {offsets = [0, 384], sizes = [1, 128], strides = [1, 1]} : vector<1x2048xf32> to vector<1x128xf32>
    %548 = arith.mulf %547, %169 : vector<1x128xf32>
    %549 = arith.addf %546, %548 : vector<1x128xf32>
    %550 = vector.extract_strided_slice %9 {offsets = [0, 384], sizes = [1, 128], strides = [1, 1]} : vector<1x2048xf32> to vector<1x128xf32>
    %cst_67 = arith.constant 2.000000e+00 : f32
    %551 = vector.broadcast %cst_67 : f32 to vector<1x128xf32>
    %552 = arith.mulf %551, %549 : vector<1x128xf32>
    %553 = arith.subf %550, %552 : vector<1x128xf32>
    %554 = arith.addf %553, %502 : vector<1x128xf32>
    %555 = vector.extract_strided_slice %2 {offsets = [0, 512], sizes = [1, 128], strides = [1, 1]} : vector<1x2048xf32> to vector<1x128xf32>
    %556 = arith.mulf %555, %163 : vector<1x128xf32>
    %557 = vector.extract_strided_slice %3 {offsets = [0, 512], sizes = [1, 128], strides = [1, 1]} : vector<1x2048xf32> to vector<1x128xf32>
    %558 = arith.mulf %557, %166 : vector<1x128xf32>
    %559 = arith.addf %556, %558 : vector<1x128xf32>
    %560 = vector.extract_strided_slice %4 {offsets = [0, 512], sizes = [1, 128], strides = [1, 1]} : vector<1x2048xf32> to vector<1x128xf32>
    %561 = arith.mulf %560, %169 : vector<1x128xf32>
    %562 = arith.addf %559, %561 : vector<1x128xf32>
    %563 = vector.extract_strided_slice %9 {offsets = [0, 512], sizes = [1, 128], strides = [1, 1]} : vector<1x2048xf32> to vector<1x128xf32>
    %cst_68 = arith.constant 2.000000e+00 : f32
    %564 = vector.broadcast %cst_68 : f32 to vector<1x128xf32>
    %565 = arith.mulf %564, %562 : vector<1x128xf32>
    %566 = arith.subf %563, %565 : vector<1x128xf32>
    %567 = arith.addf %566, %502 : vector<1x128xf32>
    %568 = vector.extract_strided_slice %2 {offsets = [0, 640], sizes = [1, 128], strides = [1, 1]} : vector<1x2048xf32> to vector<1x128xf32>
    %569 = arith.mulf %568, %163 : vector<1x128xf32>
    %570 = vector.extract_strided_slice %3 {offsets = [0, 640], sizes = [1, 128], strides = [1, 1]} : vector<1x2048xf32> to vector<1x128xf32>
    %571 = arith.mulf %570, %166 : vector<1x128xf32>
    %572 = arith.addf %569, %571 : vector<1x128xf32>
    %573 = vector.extract_strided_slice %4 {offsets = [0, 640], sizes = [1, 128], strides = [1, 1]} : vector<1x2048xf32> to vector<1x128xf32>
    %574 = arith.mulf %573, %169 : vector<1x128xf32>
    %575 = arith.addf %572, %574 : vector<1x128xf32>
    %576 = vector.extract_strided_slice %9 {offsets = [0, 640], sizes = [1, 128], strides = [1, 1]} : vector<1x2048xf32> to vector<1x128xf32>
    %cst_69 = arith.constant 2.000000e+00 : f32
    %577 = vector.broadcast %cst_69 : f32 to vector<1x128xf32>
    %578 = arith.mulf %577, %575 : vector<1x128xf32>
    %579 = arith.subf %576, %578 : vector<1x128xf32>
    %580 = arith.addf %579, %502 : vector<1x128xf32>
    %581 = vector.extract_strided_slice %2 {offsets = [0, 768], sizes = [1, 128], strides = [1, 1]} : vector<1x2048xf32> to vector<1x128xf32>
    %582 = arith.mulf %581, %163 : vector<1x128xf32>
    %583 = vector.extract_strided_slice %3 {offsets = [0, 768], sizes = [1, 128], strides = [1, 1]} : vector<1x2048xf32> to vector<1x128xf32>
    %584 = arith.mulf %583, %166 : vector<1x128xf32>
    %585 = arith.addf %582, %584 : vector<1x128xf32>
    %586 = vector.extract_strided_slice %4 {offsets = [0, 768], sizes = [1, 128], strides = [1, 1]} : vector<1x2048xf32> to vector<1x128xf32>
    %587 = arith.mulf %586, %169 : vector<1x128xf32>
    %588 = arith.addf %585, %587 : vector<1x128xf32>
    %589 = vector.extract_strided_slice %9 {offsets = [0, 768], sizes = [1, 128], strides = [1, 1]} : vector<1x2048xf32> to vector<1x128xf32>
    %cst_70 = arith.constant 2.000000e+00 : f32
    %590 = vector.broadcast %cst_70 : f32 to vector<1x128xf32>
    %591 = arith.mulf %590, %588 : vector<1x128xf32>
    %592 = arith.subf %589, %591 : vector<1x128xf32>
    %593 = arith.addf %592, %502 : vector<1x128xf32>
    %594 = vector.extract_strided_slice %2 {offsets = [0, 896], sizes = [1, 128], strides = [1, 1]} : vector<1x2048xf32> to vector<1x128xf32>
    %595 = arith.mulf %594, %163 : vector<1x128xf32>
    %596 = vector.extract_strided_slice %3 {offsets = [0, 896], sizes = [1, 128], strides = [1, 1]} : vector<1x2048xf32> to vector<1x128xf32>
    %597 = arith.mulf %596, %166 : vector<1x128xf32>
    %598 = arith.addf %595, %597 : vector<1x128xf32>
    %599 = vector.extract_strided_slice %4 {offsets = [0, 896], sizes = [1, 128], strides = [1, 1]} : vector<1x2048xf32> to vector<1x128xf32>
    %600 = arith.mulf %599, %169 : vector<1x128xf32>
    %601 = arith.addf %598, %600 : vector<1x128xf32>
    %602 = vector.extract_strided_slice %9 {offsets = [0, 896], sizes = [1, 128], strides = [1, 1]} : vector<1x2048xf32> to vector<1x128xf32>
    %cst_71 = arith.constant 2.000000e+00 : f32
    %603 = vector.broadcast %cst_71 : f32 to vector<1x128xf32>
    %604 = arith.mulf %603, %601 : vector<1x128xf32>
    %605 = arith.subf %602, %604 : vector<1x128xf32>
    %606 = arith.addf %605, %502 : vector<1x128xf32>
    %607 = vector.extract_strided_slice %2 {offsets = [0, 1024], sizes = [1, 128], strides = [1, 1]} : vector<1x2048xf32> to vector<1x128xf32>
    %608 = arith.mulf %607, %163 : vector<1x128xf32>
    %609 = vector.extract_strided_slice %3 {offsets = [0, 1024], sizes = [1, 128], strides = [1, 1]} : vector<1x2048xf32> to vector<1x128xf32>
    %610 = arith.mulf %609, %166 : vector<1x128xf32>
    %611 = arith.addf %608, %610 : vector<1x128xf32>
    %612 = vector.extract_strided_slice %4 {offsets = [0, 1024], sizes = [1, 128], strides = [1, 1]} : vector<1x2048xf32> to vector<1x128xf32>
    %613 = arith.mulf %612, %169 : vector<1x128xf32>
    %614 = arith.addf %611, %613 : vector<1x128xf32>
    %615 = vector.extract_strided_slice %9 {offsets = [0, 1024], sizes = [1, 128], strides = [1, 1]} : vector<1x2048xf32> to vector<1x128xf32>
    %cst_72 = arith.constant 2.000000e+00 : f32
    %616 = vector.broadcast %cst_72 : f32 to vector<1x128xf32>
    %617 = arith.mulf %616, %614 : vector<1x128xf32>
    %618 = arith.subf %615, %617 : vector<1x128xf32>
    %619 = arith.addf %618, %502 : vector<1x128xf32>
    %620 = vector.extract_strided_slice %2 {offsets = [0, 1152], sizes = [1, 128], strides = [1, 1]} : vector<1x2048xf32> to vector<1x128xf32>
    %621 = arith.mulf %620, %163 : vector<1x128xf32>
    %622 = vector.extract_strided_slice %3 {offsets = [0, 1152], sizes = [1, 128], strides = [1, 1]} : vector<1x2048xf32> to vector<1x128xf32>
    %623 = arith.mulf %622, %166 : vector<1x128xf32>
    %624 = arith.addf %621, %623 : vector<1x128xf32>
    %625 = vector.extract_strided_slice %4 {offsets = [0, 1152], sizes = [1, 128], strides = [1, 1]} : vector<1x2048xf32> to vector<1x128xf32>
    %626 = arith.mulf %625, %169 : vector<1x128xf32>
    %627 = arith.addf %624, %626 : vector<1x128xf32>
    %628 = vector.extract_strided_slice %9 {offsets = [0, 1152], sizes = [1, 128], strides = [1, 1]} : vector<1x2048xf32> to vector<1x128xf32>
    %cst_73 = arith.constant 2.000000e+00 : f32
    %629 = vector.broadcast %cst_73 : f32 to vector<1x128xf32>
    %630 = arith.mulf %629, %627 : vector<1x128xf32>
    %631 = arith.subf %628, %630 : vector<1x128xf32>
    %632 = arith.addf %631, %502 : vector<1x128xf32>
    %633 = vector.extract_strided_slice %2 {offsets = [0, 1280], sizes = [1, 128], strides = [1, 1]} : vector<1x2048xf32> to vector<1x128xf32>
    %634 = arith.mulf %633, %163 : vector<1x128xf32>
    %635 = vector.extract_strided_slice %3 {offsets = [0, 1280], sizes = [1, 128], strides = [1, 1]} : vector<1x2048xf32> to vector<1x128xf32>
    %636 = arith.mulf %635, %166 : vector<1x128xf32>
    %637 = arith.addf %634, %636 : vector<1x128xf32>
    %638 = vector.extract_strided_slice %4 {offsets = [0, 1280], sizes = [1, 128], strides = [1, 1]} : vector<1x2048xf32> to vector<1x128xf32>
    %639 = arith.mulf %638, %169 : vector<1x128xf32>
    %640 = arith.addf %637, %639 : vector<1x128xf32>
    %641 = vector.extract_strided_slice %9 {offsets = [0, 1280], sizes = [1, 128], strides = [1, 1]} : vector<1x2048xf32> to vector<1x128xf32>
    %cst_74 = arith.constant 2.000000e+00 : f32
    %642 = vector.broadcast %cst_74 : f32 to vector<1x128xf32>
    %643 = arith.mulf %642, %640 : vector<1x128xf32>
    %644 = arith.subf %641, %643 : vector<1x128xf32>
    %645 = arith.addf %644, %502 : vector<1x128xf32>
    %646 = vector.extract_strided_slice %2 {offsets = [0, 1408], sizes = [1, 128], strides = [1, 1]} : vector<1x2048xf32> to vector<1x128xf32>
    %647 = arith.mulf %646, %163 : vector<1x128xf32>
    %648 = vector.extract_strided_slice %3 {offsets = [0, 1408], sizes = [1, 128], strides = [1, 1]} : vector<1x2048xf32> to vector<1x128xf32>
    %649 = arith.mulf %648, %166 : vector<1x128xf32>
    %650 = arith.addf %647, %649 : vector<1x128xf32>
    %651 = vector.extract_strided_slice %4 {offsets = [0, 1408], sizes = [1, 128], strides = [1, 1]} : vector<1x2048xf32> to vector<1x128xf32>
    %652 = arith.mulf %651, %169 : vector<1x128xf32>
    %653 = arith.addf %650, %652 : vector<1x128xf32>
    %654 = vector.extract_strided_slice %9 {offsets = [0, 1408], sizes = [1, 128], strides = [1, 1]} : vector<1x2048xf32> to vector<1x128xf32>
    %cst_75 = arith.constant 2.000000e+00 : f32
    %655 = vector.broadcast %cst_75 : f32 to vector<1x128xf32>
    %656 = arith.mulf %655, %653 : vector<1x128xf32>
    %657 = arith.subf %654, %656 : vector<1x128xf32>
    %658 = arith.addf %657, %502 : vector<1x128xf32>
    %659 = vector.extract_strided_slice %2 {offsets = [0, 1536], sizes = [1, 128], strides = [1, 1]} : vector<1x2048xf32> to vector<1x128xf32>
    %660 = arith.mulf %659, %163 : vector<1x128xf32>
    %661 = vector.extract_strided_slice %3 {offsets = [0, 1536], sizes = [1, 128], strides = [1, 1]} : vector<1x2048xf32> to vector<1x128xf32>
    %662 = arith.mulf %661, %166 : vector<1x128xf32>
    %663 = arith.addf %660, %662 : vector<1x128xf32>
    %664 = vector.extract_strided_slice %4 {offsets = [0, 1536], sizes = [1, 128], strides = [1, 1]} : vector<1x2048xf32> to vector<1x128xf32>
    %665 = arith.mulf %664, %169 : vector<1x128xf32>
    %666 = arith.addf %663, %665 : vector<1x128xf32>
    %667 = vector.extract_strided_slice %9 {offsets = [0, 1536], sizes = [1, 128], strides = [1, 1]} : vector<1x2048xf32> to vector<1x128xf32>
    %cst_76 = arith.constant 2.000000e+00 : f32
    %668 = vector.broadcast %cst_76 : f32 to vector<1x128xf32>
    %669 = arith.mulf %668, %666 : vector<1x128xf32>
    %670 = arith.subf %667, %669 : vector<1x128xf32>
    %671 = arith.addf %670, %502 : vector<1x128xf32>
    %672 = vector.extract_strided_slice %2 {offsets = [0, 1664], sizes = [1, 128], strides = [1, 1]} : vector<1x2048xf32> to vector<1x128xf32>
    %673 = arith.mulf %672, %163 : vector<1x128xf32>
    %674 = vector.extract_strided_slice %3 {offsets = [0, 1664], sizes = [1, 128], strides = [1, 1]} : vector<1x2048xf32> to vector<1x128xf32>
    %675 = arith.mulf %674, %166 : vector<1x128xf32>
    %676 = arith.addf %673, %675 : vector<1x128xf32>
    %677 = vector.extract_strided_slice %4 {offsets = [0, 1664], sizes = [1, 128], strides = [1, 1]} : vector<1x2048xf32> to vector<1x128xf32>
    %678 = arith.mulf %677, %169 : vector<1x128xf32>
    %679 = arith.addf %676, %678 : vector<1x128xf32>
    %680 = vector.extract_strided_slice %9 {offsets = [0, 1664], sizes = [1, 128], strides = [1, 1]} : vector<1x2048xf32> to vector<1x128xf32>
    %cst_77 = arith.constant 2.000000e+00 : f32
    %681 = vector.broadcast %cst_77 : f32 to vector<1x128xf32>
    %682 = arith.mulf %681, %679 : vector<1x128xf32>
    %683 = arith.subf %680, %682 : vector<1x128xf32>
    %684 = arith.addf %683, %502 : vector<1x128xf32>
    %685 = vector.extract_strided_slice %2 {offsets = [0, 1792], sizes = [1, 128], strides = [1, 1]} : vector<1x2048xf32> to vector<1x128xf32>
    %686 = arith.mulf %685, %163 : vector<1x128xf32>
    %687 = vector.extract_strided_slice %3 {offsets = [0, 1792], sizes = [1, 128], strides = [1, 1]} : vector<1x2048xf32> to vector<1x128xf32>
    %688 = arith.mulf %687, %166 : vector<1x128xf32>
    %689 = arith.addf %686, %688 : vector<1x128xf32>
    %690 = vector.extract_strided_slice %4 {offsets = [0, 1792], sizes = [1, 128], strides = [1, 1]} : vector<1x2048xf32> to vector<1x128xf32>
    %691 = arith.mulf %690, %169 : vector<1x128xf32>
    %692 = arith.addf %689, %691 : vector<1x128xf32>
    %693 = vector.extract_strided_slice %9 {offsets = [0, 1792], sizes = [1, 128], strides = [1, 1]} : vector<1x2048xf32> to vector<1x128xf32>
    %cst_78 = arith.constant 2.000000e+00 : f32
    %694 = vector.broadcast %cst_78 : f32 to vector<1x128xf32>
    %695 = arith.mulf %694, %692 : vector<1x128xf32>
    %696 = arith.subf %693, %695 : vector<1x128xf32>
    %697 = arith.addf %696, %502 : vector<1x128xf32>
    %698 = vector.extract_strided_slice %2 {offsets = [0, 1920], sizes = [1, 128], strides = [1, 1]} : vector<1x2048xf32> to vector<1x128xf32>
    %699 = arith.mulf %698, %163 : vector<1x128xf32>
    %700 = vector.extract_strided_slice %3 {offsets = [0, 1920], sizes = [1, 128], strides = [1, 1]} : vector<1x2048xf32> to vector<1x128xf32>
    %701 = arith.mulf %700, %166 : vector<1x128xf32>
    %702 = arith.addf %699, %701 : vector<1x128xf32>
    %703 = vector.extract_strided_slice %4 {offsets = [0, 1920], sizes = [1, 128], strides = [1, 1]} : vector<1x2048xf32> to vector<1x128xf32>
    %704 = arith.mulf %703, %169 : vector<1x128xf32>
    %705 = arith.addf %702, %704 : vector<1x128xf32>
    %706 = vector.extract_strided_slice %9 {offsets = [0, 1920], sizes = [1, 128], strides = [1, 1]} : vector<1x2048xf32> to vector<1x128xf32>
    %cst_79 = arith.constant 2.000000e+00 : f32
    %707 = vector.broadcast %cst_79 : f32 to vector<1x128xf32>
    %708 = arith.mulf %707, %705 : vector<1x128xf32>
    %709 = arith.subf %706, %708 : vector<1x128xf32>
    %710 = arith.addf %709, %502 : vector<1x128xf32>
    %711 = arith.maximumf %515, %528 : vector<1x128xf32>
    %712 = arith.maximumf %541, %554 : vector<1x128xf32>
    %713 = arith.maximumf %567, %580 : vector<1x128xf32>
    %714 = arith.maximumf %593, %606 : vector<1x128xf32>
    %715 = arith.maximumf %619, %632 : vector<1x128xf32>
    %716 = arith.maximumf %645, %658 : vector<1x128xf32>
    %717 = arith.maximumf %671, %684 : vector<1x128xf32>
    %718 = arith.maximumf %697, %710 : vector<1x128xf32>
    %719 = arith.maximumf %711, %712 : vector<1x128xf32>
    %720 = arith.maximumf %713, %714 : vector<1x128xf32>
    %721 = arith.maximumf %715, %716 : vector<1x128xf32>
    %722 = arith.maximumf %717, %718 : vector<1x128xf32>
    %723 = arith.maximumf %719, %720 : vector<1x128xf32>
    %724 = arith.maximumf %721, %722 : vector<1x128xf32>
    %725 = arith.maximumf %723, %724 : vector<1x128xf32>
    %726 = arith.minimumf %515, %528 : vector<1x128xf32>
    %727 = arith.minimumf %541, %554 : vector<1x128xf32>
    %728 = arith.minimumf %567, %580 : vector<1x128xf32>
    %729 = arith.minimumf %593, %606 : vector<1x128xf32>
    %730 = arith.minimumf %619, %632 : vector<1x128xf32>
    %731 = arith.minimumf %645, %658 : vector<1x128xf32>
    %732 = arith.minimumf %671, %684 : vector<1x128xf32>
    %733 = arith.minimumf %697, %710 : vector<1x128xf32>
    %734 = arith.minimumf %726, %727 : vector<1x128xf32>
    %735 = arith.minimumf %728, %729 : vector<1x128xf32>
    %736 = arith.minimumf %730, %731 : vector<1x128xf32>
    %737 = arith.minimumf %732, %733 : vector<1x128xf32>
    %738 = arith.minimumf %734, %735 : vector<1x128xf32>
    %739 = arith.minimumf %736, %737 : vector<1x128xf32>
    %740 = arith.minimumf %738, %739 : vector<1x128xf32>
    %cst_80 = arith.constant 0.000000e+00 : f32
    %741 = vector.broadcast %cst_80 : f32 to vector<1x128xf32>
    %742 = arith.maximumf %725, %741 : vector<1x128xf32>
    %743 = math.sqrt %742 : vector<1x128xf32>
    %cst_81 = arith.constant 0.000000e+00 : f32
    %744 = vector.broadcast %cst_81 : f32 to vector<1x128xf32>
    %745 = arith.maximumf %740, %744 : vector<1x128xf32>
    %746 = math.sqrt %745 : vector<1x128xf32>
    %cst_82 = arith.constant 9.99999993E-9 : f32
    %747 = vector.broadcast %cst_82 : f32 to vector<1x128xf32>
    %748 = arith.addf %743, %747 : vector<1x128xf32>
    %cst_83 = arith.constant 1.600000e+01 : f32
    %749 = vector.broadcast %cst_83 : f32 to vector<1x128xf32>
    %750 = arith.divf %749, %748 : vector<1x128xf32>
    %751 = arith.subf %743, %746 : vector<1x128xf32>
    %cst_84 = arith.constant 0.0666666701 : f32
    %752 = vector.broadcast %cst_84 : f32 to vector<1x128xf32>
    %753 = arith.mulf %751, %752 : vector<1x128xf32>
    %754 = vector.extract_strided_slice %15 {offsets = [0, 0], sizes = [3, 128], strides = [1, 1]} : vector<3x2048xf32> to vector<3x128xf32>
    %755 = vector.extract_strided_slice %15 {offsets = [0, 128], sizes = [3, 128], strides = [1, 1]} : vector<3x2048xf32> to vector<3x128xf32>
    %756 = vector.extract_strided_slice %15 {offsets = [0, 256], sizes = [3, 128], strides = [1, 1]} : vector<3x2048xf32> to vector<3x128xf32>
    %757 = vector.extract_strided_slice %15 {offsets = [0, 384], sizes = [3, 128], strides = [1, 1]} : vector<3x2048xf32> to vector<3x128xf32>
    %758 = vector.extract_strided_slice %15 {offsets = [0, 512], sizes = [3, 128], strides = [1, 1]} : vector<3x2048xf32> to vector<3x128xf32>
    %759 = vector.extract_strided_slice %15 {offsets = [0, 640], sizes = [3, 128], strides = [1, 1]} : vector<3x2048xf32> to vector<3x128xf32>
    %760 = vector.extract_strided_slice %15 {offsets = [0, 768], sizes = [3, 128], strides = [1, 1]} : vector<3x2048xf32> to vector<3x128xf32>
    %761 = vector.extract_strided_slice %15 {offsets = [0, 896], sizes = [3, 128], strides = [1, 1]} : vector<3x2048xf32> to vector<3x128xf32>
    %762 = vector.extract_strided_slice %15 {offsets = [0, 1024], sizes = [3, 128], strides = [1, 1]} : vector<3x2048xf32> to vector<3x128xf32>
    %763 = vector.extract_strided_slice %15 {offsets = [0, 1152], sizes = [3, 128], strides = [1, 1]} : vector<3x2048xf32> to vector<3x128xf32>
    %764 = vector.extract_strided_slice %15 {offsets = [0, 1280], sizes = [3, 128], strides = [1, 1]} : vector<3x2048xf32> to vector<3x128xf32>
    %765 = vector.extract_strided_slice %15 {offsets = [0, 1408], sizes = [3, 128], strides = [1, 1]} : vector<3x2048xf32> to vector<3x128xf32>
    %766 = vector.extract_strided_slice %15 {offsets = [0, 1536], sizes = [3, 128], strides = [1, 1]} : vector<3x2048xf32> to vector<3x128xf32>
    %767 = vector.extract_strided_slice %15 {offsets = [0, 1664], sizes = [3, 128], strides = [1, 1]} : vector<3x2048xf32> to vector<3x128xf32>
    %768 = vector.extract_strided_slice %15 {offsets = [0, 1792], sizes = [3, 128], strides = [1, 1]} : vector<3x2048xf32> to vector<3x128xf32>
    %769 = vector.extract_strided_slice %15 {offsets = [0, 1920], sizes = [3, 128], strides = [1, 1]} : vector<3x2048xf32> to vector<3x128xf32>
    %770 = arith.addf %754, %755 : vector<3x128xf32>
    %771 = arith.addf %756, %757 : vector<3x128xf32>
    %772 = arith.addf %758, %759 : vector<3x128xf32>
    %773 = arith.addf %760, %761 : vector<3x128xf32>
    %774 = arith.addf %762, %763 : vector<3x128xf32>
    %775 = arith.addf %764, %765 : vector<3x128xf32>
    %776 = arith.addf %766, %767 : vector<3x128xf32>
    %777 = arith.addf %768, %769 : vector<3x128xf32>
    %778 = arith.addf %770, %771 : vector<3x128xf32>
    %779 = arith.addf %772, %773 : vector<3x128xf32>
    %780 = arith.addf %774, %775 : vector<3x128xf32>
    %781 = arith.addf %776, %777 : vector<3x128xf32>
    %782 = arith.addf %778, %779 : vector<3x128xf32>
    %783 = arith.addf %780, %781 : vector<3x128xf32>
    %784 = arith.addf %782, %783 : vector<3x128xf32>
    %785 = arith.mulf %784, %784 : vector<3x128xf32>
    %cst_85 = arith.constant dense<0.000000e+00> : vector<128xf32>
    %786 = vector.multi_reduction <add>, %785, %cst_85 [0] : vector<3x128xf32> to vector<128xf32>
    %787 = vector.shape_cast %786 : vector<128xf32> to vector<1x128xf32>
    %cst_86 = arith.constant 3.906250e-03 : f32
    %788 = vector.broadcast %cst_86 : f32 to vector<1x128xf32>
    %789 = arith.mulf %787, %788 : vector<1x128xf32>
    %cst_87 = arith.constant 1.06666672 : f32
    %790 = vector.broadcast %cst_87 : f32 to vector<1x128xf32>
    %791 = arith.mulf %790, %163 : vector<1x128xf32>
    %792 = arith.mulf %791, %163 : vector<1x128xf32>
    %793 = arith.subf %203, %792 : vector<1x128xf32>
    %cst_88 = arith.constant 0.000000e+00 : f32
    %794 = vector.broadcast %cst_88 : f32 to vector<1x128xf32>
    %795 = arith.maximumf %793, %794 : vector<1x128xf32>
    %796 = math.sqrt %795 : vector<1x128xf32>
    %cst_89 = arith.constant 1.06666672 : f32
    %797 = vector.broadcast %cst_89 : f32 to vector<1x128xf32>
    %798 = arith.mulf %797, %166 : vector<1x128xf32>
    %799 = arith.mulf %798, %166 : vector<1x128xf32>
    %800 = arith.subf %305, %799 : vector<1x128xf32>
    %cst_90 = arith.constant 0.000000e+00 : f32
    %801 = vector.broadcast %cst_90 : f32 to vector<1x128xf32>
    %802 = arith.maximumf %800, %801 : vector<1x128xf32>
    %803 = math.sqrt %802 : vector<1x128xf32>
    %cst_91 = arith.constant 1.06666672 : f32
    %804 = vector.broadcast %cst_91 : f32 to vector<1x128xf32>
    %805 = arith.mulf %804, %169 : vector<1x128xf32>
    %806 = arith.mulf %805, %169 : vector<1x128xf32>
    %807 = arith.subf %373, %806 : vector<1x128xf32>
    %cst_92 = arith.constant 0.000000e+00 : f32
    %808 = vector.broadcast %cst_92 : f32 to vector<1x128xf32>
    %809 = arith.maximumf %807, %808 : vector<1x128xf32>
    %810 = math.sqrt %809 : vector<1x128xf32>
    %811 = tpu.concatenate %203, %237, %271, %305, %339, %373, %494, %496, %497, %743, %750, %753, %789, %163, %166, %169 in 0 : vector<1x128xf32>, vector<1x128xf32>, vector<1x128xf32>, vector<1x128xf32>, vector<1x128xf32>, vector<1x128xf32>, vector<1x128xf32>, vector<1x128xf32>, vector<1x128xf32>, vector<1x128xf32>, vector<1x128xf32>, vector<1x128xf32>, vector<1x128xf32>, vector<1x128xf32>, vector<1x128xf32>, vector<1x128xf32> -> vector<16x128xf32>
    %812 = tpu.concatenate %796, %803, %810 in 0 : vector<1x128xf32>, vector<1x128xf32>, vector<1x128xf32> -> vector<3x128xf32>
    %813 = tpu.concatenate %811, %812 in 0 : vector<16x128xf32>, vector<3x128xf32> -> vector<19x128xf32>
    %c0_93 = arith.constant 0 : index
    %c0_94 = arith.constant 0 : index
    %814 = vector.load %arg6[%c0_93, %c0_94] : memref<16x4xf32, #tpu.memory_space<vmem>>, vector<16x1xf32>
    %c0_95 = arith.constant 0 : index
    %c1_96 = arith.constant 1 : index
    %815 = vector.load %arg6[%c0_95, %c1_96] : memref<16x4xf32, #tpu.memory_space<vmem>>, vector<16x1xf32>
    %c0_97 = arith.constant 0 : index
    %c2_98 = arith.constant 2 : index
    %816 = vector.load %arg6[%c0_97, %c2_98] : memref<16x4xf32, #tpu.memory_space<vmem>>, vector<16x1xf32>
    %c0_99 = arith.constant 0 : index
    %c3_100 = arith.constant 3 : index
    %817 = vector.load %arg6[%c0_99, %c3_100] : memref<16x4xf32, #tpu.memory_space<vmem>>, vector<16x1xf32>
    %c0_101 = arith.constant 0 : index
    %c0_102 = arith.constant 0 : index
    %818 = vector.load %arg5[%c0_101, %c0_102] : memref<16x19xf32, #tpu.memory_space<vmem>>, vector<16x19xf32>
    %cst_103 = arith.constant dense<0.000000e+00> : vector<16x128xf32>
    %819 = tpu.matmul %818, %813, %cst_103 {dimension_numbers = #tpu.dot_dimension_numbers<[1], [0], [0], [1], [0, 0, 1, 1], [], []>} : vector<16x19xf32>, vector<19x128xf32>, vector<16x128xf32> -> vector<16x128xf32>
    %820 = vector.broadcast %814 : vector<16x1xf32> to vector<16x128xf32>
    %821 = arith.addf %819, %820 : vector<16x128xf32>
    %cst_104 = arith.constant dense<0.000000e+00> : vector<128xf32>
    %822 = vector.multi_reduction <add>, %821, %cst_104 [0] : vector<16x128xf32> to vector<128xf32>
    %823 = vector.shape_cast %822 : vector<128xf32> to vector<1x128xf32>
    %cst_105 = arith.constant 1.600000e+01 : f32
    %824 = vector.broadcast %cst_105 : f32 to vector<1x128xf32>
    %825 = arith.divf %823, %824 : vector<1x128xf32>
    %826 = vector.broadcast %825 : vector<1x128xf32> to vector<16x128xf32>
    %827 = arith.subf %821, %826 : vector<16x128xf32>
    %828 = arith.mulf %827, %827 : vector<16x128xf32>
    %cst_106 = arith.constant dense<0.000000e+00> : vector<128xf32>
    %829 = vector.multi_reduction <add>, %828, %cst_106 [0] : vector<16x128xf32> to vector<128xf32>
    %830 = vector.shape_cast %829 : vector<128xf32> to vector<1x128xf32>
    %cst_107 = arith.constant 1.600000e+01 : f32
    %831 = vector.broadcast %cst_107 : f32 to vector<1x128xf32>
    %832 = arith.divf %830, %831 : vector<1x128xf32>
    %833 = vector.broadcast %825 : vector<1x128xf32> to vector<16x128xf32>
    %834 = arith.subf %821, %833 : vector<16x128xf32>
    %cst_108 = arith.constant 9.99999974E-6 : f32
    %835 = vector.broadcast %cst_108 : f32 to vector<1x128xf32>
    %836 = arith.addf %832, %835 : vector<1x128xf32>
    %837 = math.rsqrt %836 : vector<1x128xf32>
    %838 = vector.broadcast %837 : vector<1x128xf32> to vector<16x128xf32>
    %839 = arith.mulf %834, %838 : vector<16x128xf32>
    %840 = vector.broadcast %815 : vector<16x1xf32> to vector<16x128xf32>
    %841 = arith.mulf %839, %840 : vector<16x128xf32>
    %842 = vector.broadcast %816 : vector<16x1xf32> to vector<16x128xf32>
    %843 = arith.addf %841, %842 : vector<16x128xf32>
    %cst_109 = arith.constant 0.000000e+00 : f32
    %844 = vector.broadcast %cst_109 : f32 to vector<16x128xf32>
    %845 = arith.maximumf %843, %844 : vector<16x128xf32>
    %c0_110 = arith.constant 0 : index
    %c0_111 = arith.constant 0 : index
    %846 = vector.load %arg7[%c0_110, %c0_111] : memref<16x16xf32, #tpu.memory_space<vmem>>, vector<16x16xf32>
    %cst_112 = arith.constant dense<0.000000e+00> : vector<16x128xf32>
    %847 = tpu.matmul %846, %845, %cst_112 {dimension_numbers = #tpu.dot_dimension_numbers<[1], [0], [0], [1], [0, 0, 1, 1], [], []>} : vector<16x16xf32>, vector<16x128xf32>, vector<16x128xf32> -> vector<16x128xf32>
    %848 = vector.broadcast %817 : vector<16x1xf32> to vector<16x128xf32>
    %849 = arith.addf %847, %848 : vector<16x128xf32>
    %c0_113 = arith.constant 0 : index
    %c0_114 = arith.constant 0 : index
    %850 = vector.load %arg8[%c0_113, %c0_114] : memref<32x128xf32, #tpu.memory_space<vmem>>, vector<16x128xf32>
    tpu.vector_store %arg8[%c0_113, %c0_114], %129 {strides = array<i32>} : memref<32x128xf32, #tpu.memory_space<vmem>>, vector<16x128xf32>,
    %c16 = arith.constant 16 : index
    %c0_115 = arith.constant 0 : index
    %851 = vector.load %arg8[%c16, %c0_115] : memref<32x128xf32, #tpu.memory_space<vmem>>, vector<16x128xf32>
    tpu.vector_store %arg8[%c16, %c0_115], %849 {strides = array<i32>} : memref<32x128xf32, #tpu.memory_space<vmem>>, vector<16x128xf32>,
    return
  }
  func.func @transform_0(%arg0: i32) -> (i32, i32, i32) {
    %c0_i32 = arith.constant 0 : i32
    %c0_i32_0 = arith.constant 0 : i32
    %c0_i32_1 = arith.constant 0 : i32
    return %arg0, %c0_i32, %c0_i32_0 : i32, i32, i32
  }
  func.func @transform_1(%arg0: i32) -> (i32, i32) {
    %c0_i32 = arith.constant 0 : i32
    %c0_i32_0 = arith.constant 0 : i32
    %c0_i32_1 = arith.constant 0 : i32
    return %c0_i32, %c0_i32_0 : i32, i32
  }
  func.func @transform_2(%arg0: i32) -> (i32, i32) {
    %c0_i32 = arith.constant 0 : i32
    %c0_i32_0 = arith.constant 0 : i32
    %c0_i32_1 = arith.constant 0 : i32
    return %c0_i32, %c0_i32_0 : i32, i32
  }
  func.func @transform_3(%arg0: i32) -> (i32, i32) {
    %c0_i32 = arith.constant 0 : i32
    %c0_i32_0 = arith.constant 0 : i32
    %c0_i32_1 = arith.constant 0 : i32
    return %c0_i32, %c0_i32_0 : i32, i32
  }
  func.func @transform_4(%arg0: i32) -> (i32, i32) {
    %c0_i32 = arith.constant 0 : i32
    %c0_i32_0 = arith.constant 0 : i32
    %c0_i32_1 = arith.constant 0 : i32
    return %c0_i32, %c0_i32_0 : i32, i32
  }
  func.func @transform_5(%arg0: i32) -> (i32, i32) {
    %c0_i32 = arith.constant 0 : i32
    %c0_i32_0 = arith.constant 0 : i32
    %c0_i32_1 = arith.constant 0 : i32
    return %c0_i32, %c0_i32_0 : i32, i32
  }
  func.func @transform_6(%arg0: i32) -> (i32, i32) {
    %c0_i32 = arith.constant 0 : i32
    %c0_i32_0 = arith.constant 0 : i32
    %c0_i32_1 = arith.constant 0 : i32
    return %c0_i32, %c0_i32_0 : i32, i32
  }
  func.func @transform_7(%arg0: i32) -> (i32, i32) {
    %c0_i32 = arith.constant 0 : i32
    %c0_i32_0 = arith.constant 0 : i32
    return %c0_i32, %arg0 : i32, i32
  }
}

</mosaic_0001>

<bundles_post_ra>
// kernel: tpu_custom_call.1
= control target key start
LH: loop header
LB: loop body
LE: loop exit
PB: predicated region body
PF: predicated region fallthrough
CT: control target
= control target key end

     0   :  { %12 = vsyncpa [#allocation3], 0  ;;  %s10113_s0 = inlined_call_operand.vmem [shape: f32[2,3,2048], index: 0, kind: input, shape index: {}]   ;;  %s10114_s1 = inlined_call_operand.vmem [shape: f32[16,52], index: 1, kind: input, shape index: {}]   ;;  %s10115_s2 = inlined_call_operand.vmem [shape: f32[16,4], index: 2, kind: input, shape index: {}]   ;;  %s10116_s3 = inlined_call_operand.vmem [shape: f32[16,16], index: 3, kind: input, shape index: {}]   ;;  %s10117_s4 = inlined_call_operand.vmem [shape: f32[16,19], index: 4, kind: input, shape index: {}]   ;;  %s10118_s5 = inlined_call_operand.vmem [shape: f32[16,4], index: 5, kind: input, shape index: {}]   ;;  %s10119_s6 = inlined_call_operand.vmem [shape: f32[16,16], index: 6, kind: input, shape index: {}]   ;;  %s10120_s7 = inlined_call_operand.hbm [shape: f32[32,256], index: 7, kind: output, shape index: {}]  }
   0x1   :  { %14 = vsyncpa [#allocation3 + $0x1], 0  ;;  %s6910_s24 = smov 0   ;;  %s6912_s25 = smov 0  }
   0x2   :  { %s6914_s26 = smov 0   ;;  %s6916_s27 = smov 0  }
   0x3 LB: > { %s6931_s28 = sadd.s32 4294967295, %s6853_s27   ;;  %s6211_s29 = sadd.s32 4294967294, %s6853_s27   ;;  %s6853_s27 = sphi %s6916_s27, %s10353_s27   ;;  %s6849_s26 = sphi %s6914_s26, %s10352_s26   ;;  %s6845_s25 = sphi %s6912_s25, %s10351_s25   ;;  %s6841_s24 = sphi %s6910_s24, %s10350_s24  }
   0x4   : > { %s6935_s30 = sadd.s32 1, %s6853_s27   ;;  %s179_s8 = sadd.s32 1, %s6849_s26 }
   0x5   : > { %s176_s9 = ssub.s32 %s6853_s27, %s6935_s30  ;;  %p189_p0 = scmp.ne.s32.totalorder %s6849_s26, %s6845_s25 }
   0x6   : > { %p177_p1 = scmp.eq.s32.totalorder %s176_s9, 0  ;;  %p190_p2 = scmp.eq.s32.totalorder %s6931_s28, 1 }
   0x7   : > { %p195_p3 = scmp.ne.s32.totalorder %s6845_s25, %s6841_s24  ;;  %p196_p4 = scmp.eq.s32.totalorder %s6211_s29, 1 }
   0x8   : > { %s6946_s10 = scalar_select %p177_p1, %s6849_s26, %s179_s8  }
   0x9   : > { %p6948_p5 = por %p190_p2, %p189_p0  ;;  %p6952_p6 = por %p196_p4, %p195_p3 }
   0xa   : > { %p6214_p7 = scmp.ge.s32.totalorder %s6853_s27, 1  ;;  %p240_p8 = scmp.lt.s32.totalorder %s6853_s27, 3 }
   0xc   : > { %p241_p9 = pnand %p6214_p7, %p240_p8 }
   0xe   : > { %244 = sbr.rel (%p241_p9) target bundleno = 1338 (0x53a), region = 48 }
  0x15   : > { %p272_p10 = scmp.lt.s32.totalorder %s6931_s28, 1  ;;  %v397_v34 = vlaneseq  ;;  %v10136_v45 = vmov 683565275   ;;  %v10134_v47 = vmov 2475754826   ;;  %vm3229_vm14 = vcmask 1040384  }
  0x16   : > { %v10132_v49 = vmov 2131351028   ;;  %v10140_v52 = vmov 2102212464   ;;  %v10138_v54 = vmov 920167782  }
  0x17   : > { %s273_s13 = scalar_select %p272_p10, %s6931_s28, 1  ;;  %v10127_v61 = vmov 1326507024  }
  0x18   : > { %s6408_s29 = sshll.u32 %s6931_s28, 7  ;;  %s6866_s15 = smov [#allocation2]  }
  0x19   : > { %s6411_s14 = sshll.u32 %s273_s13, 6  ;;  %s10070_s13 = scalar_lea.hbm %s10120_s7, %s6408_s29 }
  0x1a   : > { %s6963_s17 = scalar_lea.vmem %s10113_s0, %s6411_s14  ;;  %s6795_s16 = sshll.u32 %s6866_s15, 4  ;;  %s6796_s16 = int_to_ptr.vmem [resolvable:$false] %s6795_s16 }
  0x1b   : > { %v6966_v0 = vld [vmem:[%s6963_s17] sm:$0x77]  ;;  %v6973_v2 = vld [vmem:[%s6963_s17 + $0x8] sm:$0x77]  ;;  %v6978_v5 = vld [vmem:[%s6963_s17 + $0x10] sm:$0x77] }
  0x1c   : > { %v6970_v1 = vmul.f32 %v6966_v0, %v6966_v0  ;;  %v584_v4 = vand.u32 2139095040, %v6966_v0  ;;  %v6981_v6 = vld [vmem:[%s6963_s17 + $0x18] sm:$0x77]  ;;  %v4885_v7 = vrot.slane %v6966_v0, 4  ;;  %v4889_v8 = vrot.slane %v6973_v2, 4  ;;  %s6797_s18 = scalar_lea.vmem %s6796_s16, 1024 }
  0x1d   : > { %v6986_v9 = vld [vmem:[%s6963_s17 + $0x20] sm:$0x77]  ;;  %v10126_v13 = vrot.slane %v6978_v5, 4  ;;  %v6992_v14 = vld [vmem:[%s6963_s17 + $0x28] sm:$0x77]  ;;  %v10125_v15 = vrot.slane %v6981_v6, 4  ;;  %v7042_v56 = vmul.f32 %v6973_v2, %v6973_v2 }
  0x1e   : > { %v6218_v3 = vrot.slane %v6970_v1, 9  ;;  %v6226_v11 = vrot.slane %v6970_v1, 10  ;;  %v585_v12 = vshrl.u32 %v584_v4, 23  ;;  %v10124_v16 = vrot.slane %v6986_v9, 4  ;;  %v6997_v17 = vld [vmem:[%s6963_s17 + $0x30] sm:$0x77] }
  0x1f   : > { %v581_v18 = vand.u32 2147483647, %v6966_v0  ;;  %v7001_v20 = vld [vmem:[%s6963_s17 + $0x38] sm:$0x77]  ;;  %v4887_v21 = vadd.f32 %v4885_v7, %v6966_v0  ;;  %v4891_v22 = vadd.f32 %v4889_v8, %v6973_v2  ;;  %v10123_v23 = vrot.slane %v6992_v14, 4 }
  0x20   : > { %v325_v10 = vadd.f32 %v6218_v3, %v6970_v1  ;;  %v6234_v19 = vadd.s32 4294967169, %v585_v12  ;;  %10193 = vst [vmem:[#allocation5_spill] sm:$0xff] %v7001_v20  ;;  %v10122_v24 = vrot.slane %v6997_v17, 4  ;;  %v4895_v27 = vadd.f32 %v10126_v13, %v6978_v5 }
  0x21   : > { %v10121_v28 = vrot.slane %v7001_v20, 4  ;;  %v4899_v29 = vadd.f32 %v10125_v15, %v6981_v6  ;;  %v4903_v30 = vadd.f32 %v10124_v16, %v6986_v9  ;;  %v4907_v31 = vadd.f32 %v10123_v23, %v6992_v14 }
  0x22   : > { %v7011_v25 = vadd.f32 %v6226_v11, %v325_v10  ;;  %v591_v26 = vadd.s32 1, %v6234_v19  ;;  %v4911_v32 = vadd.f32 %v10122_v24, %v6997_v17  ;;  %v588_v35 = vand.u32 8388607, %v581_v18 }
  0x23   : > { %v4915_v33 = vadd.f32 %v10121_v28, %v7001_v20  ;;  %v4916_v39 = vadd.f32 %v4891_v22, %v4887_v21  ;;  %v4917_v41 = vadd.f32 %v4899_v29, %v4895_v27  ;;  %v4918_v42 = vadd.f32 %v4907_v31, %v4903_v30 }
  0x24   : > { %vm592_vm0 = vcmp.gt.s32.totalorder %v591_v26, 0  ;;  %v365_v37 = vadd.f32 1e-16, %v7011_v25  ;;  %v589_v51 = vor.u32 8388608, %v588_v35  ;;  %v7050_v22 = vshrl.u32 %v397_v34, 7 }
  0x25   : > { %v593_v36 = vsel %vm592_vm0, %v591_v26, 0  ;;  %v4919_v43 = vadd.f32 %v4915_v33, %v4911_v32  ;;  %v4920_v63 = vadd.f32 %v4917_v41, %v4916_v39  ;;  %v6219_v31 = vrot.slane %v7042_v56, 9 }
  0x26   : > { %v595_v38 = vand.u32 31, %v593_v36  ;;  %v594_v40 = vshrl.u32 %v593_v36, 5  ;;  %6659 = vrsqrt.f32 %v365_v37  ;;  %10194 = vst [vmem:[#allocation6_spill] sm:$0xff] %v7050_v22  ;;  %v629_v27 = vshll.u32 %v589_v51, 8 }
  0x27   : > { %v4921_v11 = vadd.f32 %v4919_v43, %v4918_v42  ;;  %v688_v36 = vand.u32 2139095040, %v6973_v2  ;;  %v7058_v41 = vsub.s32 0, %v7050_v22  ;;  %v326_v51 = vadd.f32 %v6219_v31, %v7042_v56 }
  0x28   : > { %v596_v44 = vsub.s32 32, %v595_v38  ;;  %v598_v46 = vshll.u32 %v10136_v45, %v595_v38  ;;  %v601_v48 = vshll.u32 %v10134_v47, %v595_v38  ;;  %v604_v50 = vshll.u32 %v10132_v49, %v595_v38 }
  0x29   : > { %v607_v53 = vshll.u32 %v10140_v52, %v595_v38  ;;  %v610_v55 = vshll.u32 %v10138_v54, %v595_v38  ;;  %vm613_vm1 = vcmp.lt.s32.totalorder %v594_v40, 1  ;;  %vm616_vm2 = vcmp.lt.s32.totalorder %v594_v40, 4  ;;  %10195 = vst [vmem:[#allocation7_spill] sm:$0xff] %v7058_v41 }
  0x2a   : > { %v599_v57 = vshrl.u32 %v10134_v47, %v596_v44  ;;  %v602_v58 = vshrl.u32 %v10132_v49, %v596_v44  ;;  %v605_v59 = vshrl.u32 %v10140_v52, %v596_v44  ;;  %v608_v60 = vshrl.u32 %v10138_v54, %v596_v44 }
  0x2b   : > { %v611_v62 = vshrl.u32 %v10127_v61, %v596_v44  ;;  %v597_v12 = vshrl.u32 %v10136_v45, %v596_v44  ;;  %vm615_vm3 = vcmp.lt.s32.totalorder %v594_v40, 3  ;;  %vm614_vm4 = vcmp.lt.s32.totalorder %v594_v40, 2 }
  0x2c   : > { %v600_v3 = vor.u32 %v599_v57, %v598_v46  ;;  %v603_v4 = vor.u32 %v602_v58, %v601_v48  ;;  %v606_v10 = vor.u32 %v605_v59, %v604_v50  ;;  %v609_v19 = vor.u32 %v608_v60, %v607_v53 }
  0x2d   : > { %v612_v21 = vor.u32 %v611_v62, %v610_v55  ;;  %v4922_v35 = vadd.f32 %v4921_v11, %v4920_v63  ;;  %v6227_v44 = vrot.slane %v7042_v56, 10  ;;  %v689_v59 = vshrl.u32 %v688_v36, 23 }
  0x2e   : > { %v618_v26 = vsel %vm616_vm2, %v606_v10, 2102212464  ;;  %v621_v29 = vsel %vm613_vm1, %v600_v3, %v603_v4  ;;  %v625_v30 = vsel %vm613_vm1, %v603_v4, %v606_v10  ;;  %v622_v32 = vsel %vm616_vm2, %v609_v19, 920167782 }
  0x2f   : > { %v626_v33 = vsel %vm616_vm2, %v612_v21, 1326507024  ;;  %v617_v37 = vsel %vm613_vm1, %v597_v12, %v600_v3  ;;  %v619_v38 = vsel %vm615_vm3, %v603_v4, %v618_v26  ;;  %v623_v34 = vsel %vm615_vm3, %v606_v10, %v622_v32 }
  0x30   : > { %v627_v39 = vsel %vm615_vm3, %v609_v19, %v626_v33  ;;  %v624_v42 = vsel %vm614_vm4, %v621_v29, %v623_v34  ;;  %v7066_v50 = vmul.f32 0.0625, %v4922_v35  ;;  %v6660_v53 = vpop.eup %6659  ;;  %v620_v55 = vsel %vm614_vm4, %v617_v37, %v619_v38 }
  0x31   : > { %v628_v43 = vsel %vm614_vm4, %v625_v30, %v627_v39  ;;  %v7070_v57 = vmul.u32.u64.low %v629_v27, %v624_v42  ;;  %v7071_v58 = vmul.u32.u64.high %v629_v27, %v624_v42, %v7070_v57  ;;  %v7074_v60 = vsub.s32 4, %v7050_v22 }
  0x32   : > { %v7063_v46 = vmul.u32.u64.low %v629_v27, %v628_v43  ;;  %v7064_v48 = vmul.u32.u64.high %v629_v27, %v628_v43, %v7063_v46  ;;  %10196 = vst [vmem:[#allocation8_spill] sm:$0xff] %v7066_v50  ;;  %v5474_v62 = vmul.f32 %v7066_v50, %v6966_v0  ;;  %v636_v63 = vmul.u32 %v629_v27, %v620_v55 }
  0x33   : > { %v4924_v3 = vrot.slane %v6970_v1, 4  ;;  %v7080_v4 = vadd.f32 %v6227_v44, %v326_v51  ;;  %v400_v40 = vrot.slane %v6660_v53, %v7058_v41  ;;  %v639_v10 = vadd.s32 1, %v7071_v58 }
  0x34   : > { %vm638_vm5 = vc.u32 %v7064_v48, %v7070_v57  ;;  %v5487_v11 = vmul.f32 %v7066_v50, %v4885_v7  ;;  %v6238_v12 = vadd.s32 4294967169, %v689_v59  ;;  %v404_v19 = vrot.slane %v6660_v53, %v7074_v60 }
  0x35   : > { %v685_v21 = vand.u32 2147483647, %v6973_v2  ;;  %v4927_v26 = vrot.slane %v7042_v56, 4  ;;  %v640_v27 = vsel %vm638_vm5, %v639_v10, %v7071_v58  ;;  %v5464_v29 = vmul.f32 %v7066_v50, %v7066_v50 }
  0x36   : > { %v6370_v30 = vrot.slane %v5474_v62, 9  ;;  %v641_v31 = vadd.s32 %v640_v27, %v636_v63  ;;  %v4926_v32 = vadd.f32 %v4924_v3, %v6970_v1  ;;  %v366_v33 = vadd.f32 1e-16, %v7080_v4 }
  0x37   : > { %v480_v7 = vrot.slane %v400_v40, %v7058_v41  ;;  %v6372_v35 = vrot.slane %v5487_v11, 9  ;;  %v695_v36 = vadd.s32 1, %v6238_v12  ;;  %v484_v37 = vrot.slane %v404_v19, %v7058_v41 }
  0x38   : > { %v642_v38 = vadd.s32 536870912, %v641_v31  ;;  %v692_v34 = vand.u32 8388607, %v685_v21  ;;  %v4929_v39 = vadd.f32 %v4927_v26, %v7042_v56  ;;  %v6368_v42 = vrot.slane %v5464_v29, 9 }
  0x39   : > { %v5479_v43 = vadd.f32 %v6370_v30, %v5474_v62  ;;  %v6371_v44 = vrot.slane %v5474_v62, 10  ;;  %vm696_vm6 = vcmp.gt.s32.totalorder %v695_v36, 0  ;;  %6661 = vrsqrt.f32 %v366_v33 }
  0x3a   : > { %v7100_v46 = vshrl.u32 %v642_v38, 30  ;;  %v697_v1 = vsel %vm696_vm6, %v695_v36, 0  ;;  %v7102_v51 = vadd.f32 %v4929_v39, %v4926_v32  ;;  %v7105_v55 = vmul.f32 %v6660_v53, %v7011_v25 }
  0x3b   : > { %v5492_v58 = vadd.f32 %v6372_v35, %v5487_v11  ;;  %v6373_v59 = vrot.slane %v5487_v11, 10  ;;  %v699_v63 = vand.u32 31, %v697_v1  ;;  %v557_v3 = vcombine.low %v480_v7, %v484_v37 }
  0x3c   : > { %v644_v40 = vshll.u32 %v7100_v46, 30  ;;  %v6369_v56 = vrot.slane %v5464_v29, 10  ;;  %v7110_v62 = vmul.f32 %v6978_v5, %v6978_v5  ;;  %v5469_v19 = vadd.f32 %v6368_v42, %v5464_v29 }
  0x3d   : > { %v700_v10 = vsub.s32 32, %v699_v63  ;;  %v5483_v26 = vadd.f32 %v6371_v44, %v5479_v43  ;;  %v693_v27 = vor.u32 8388608, %v692_v34  ;;  %v2532_v53 = vrot.slane %v7105_v55, %v7074_v60 }
  0x3e   : > { %v7112_v12 = vsub.s32 %v641_v31, %v644_v40  ;;  %v5496_v30 = vadd.f32 %v6373_v59, %v5492_v58  ;;  %v5499_v11 = vrot.slane %v7011_v25, 4  ;;  %v7119_v32 = vmul.f32 %v6981_v6, %v6981_v6 }
  0x3f   : > { %v7122_v33 = vmul.f32 %v557_v3, %v6966_v0  ;;  %v637_v7 = vadd.s32 %v7070_v57, %v7064_v48  ;;  %v7128_v29 = vmul.f32 %v7066_v50, %v6973_v2  ;;  %v702_v35 = vshll.u32 %v10136_v45, %v699_v63 }
  0x40   : > { %v647_v31 = vsub.s32 0, %v7112_v12  ;;  %v703_v36 = vshrl.u32 %v10134_v47, %v700_v10  ;;  %v705_v37 = vshll.u32 %v10134_v47, %v699_v63  ;;  %v706_v38 = vshrl.u32 %v10132_v49, %v700_v10 }
  0x41   : > { %10197 = vst [vmem:[#allocation9_spill] sm:$0xff] %v7122_v33  ;;  %v7135_v39 = vadd.f32 %v6369_v56, %v5469_v19  ;;  %v7137_v42 = vmul.f32 2.0, %v5483_v26  ;;  %v7139_v48 = vshll.u32 %v693_v27, 8  ;;  %v7141_v57 = vmul.f32 2.0, %v5496_v30 }
  0x42   : > { %v6235_v34 = vmin.u32 %v647_v31, %v7112_v12  ;;  %v698_v43 = vshrl.u32 %v697_v1, 5  ;;  %v708_v44 = vshll.u32 %v10132_v49, %v699_v63  ;;  %v7147_v58 = vmul.f32 %v7066_v50, %v4889_v8 }
  0x43   : > { %v7149_v59 = vpop.eup %6661  ;;  %v667_v40 = vsub.s32 4, %v7100_v46  ;;  %v701_v56 = vshrl.u32 %v10136_v45, %v700_v10  ;;  %v6374_v19 = vrot.slane %v7128_v29, 9  ;;  %v704_v26 = vor.u32 %v703_v36, %v702_v35 }
  0x44   : > { %v649_v3 = vclz %v6235_v34  ;;  %v707_v27 = vor.u32 %v706_v38, %v705_v37  ;;  %v709_v1 = vshrl.u32 %v10140_v52, %v700_v10  ;;  %v711_v30 = vshll.u32 %v10140_v52, %v699_v63 }
  0x45   : > { %v712_v28 = vshrl.u32 %v10138_v54, %v700_v10  ;;  %v714_v8 = vshll.u32 %v10138_v54, %v699_v63  ;;  %v715_v24 = vshrl.u32 %v10127_v61, %v700_v10  ;;  %v408_v34 = vrot.slane %v7149_v59, %v7058_v41 }
  0x46   : > { %v6236_v31 = vadd.s32 4294967294, %v649_v3  ;;  %v710_v23 = vor.u32 %v709_v1, %v708_v44  ;;  %vm717_vm7 = vcmp.lt.s32.totalorder %v698_v43, 1  ;;  %vm718_vm8 = vcmp.lt.s32.totalorder %v698_v43, 2 }
  0x47   : > { %vm583_vm9 = vcmp.lt.s32.totalorder %v6966_v0, 0  ;;  %v713_v35 = vor.u32 %v712_v28, %v711_v30  ;;  %v716_v36 = vor.u32 %v715_v24, %v714_v8  ;;  %vm719_vm11 = vcmp.lt.s32.totalorder %v698_v43, 3 }
  0x48   : > { %vm6237_vm10 = vcmp.lt.s32.totalorder %v6236_v31, 0  ;;  %vm720_vm12 = vcmp.lt.s32.totalorder %v698_v43, 4  ;;  %v721_v38 = vsel %vm717_vm7, %v701_v56, %v704_v26  ;;  %v725_v63 = vsel %vm717_vm7, %v704_v26, %v707_v27 }
  0x49   : > { %v652_v37 = vsel %vm6237_vm10, 0, %v6236_v31  ;;  %v722_v15 = vsel %vm720_vm12, %v710_v23, 2102212464  ;;  %vm7167_vm13 = vcmp.le.f32.partialorder %v581_v18, 0.7853982  ;;  %v729_v1 = vsel %vm717_vm7, %v707_v27, %v710_v23 }
  0x4a   : > { %v653_v3 = vsub.s32 32, %v652_v37  ;;  %v654_v10 = vshll.u32 %v7112_v12, %v652_v37  ;;  %v657_v16 = vsub.s32 4294967266, %v652_v37  ;;  %v723_v24 = vsel %vm719_vm11, %v707_v27, %v722_v15 }
  0x4b   : > { %v726_v28 = vsel %vm720_vm12, %v713_v35, 920167782  ;;  %v730_v30 = vsel %vm720_vm12, %v716_v36, 1326507024  ;;  %v412_v26 = vrot.slane %v7149_v59, %v7074_v60  ;;  %v488_v8 = vrot.slane %v408_v34, %v7058_v41 }
  0x4c   : > { %v655_v56 = vshrl.u32 %v637_v7, %v653_v3  ;;  %v658_v31 = vadd.s32 127, %v657_v16  ;;  %v727_v12 = vsel %vm719_vm11, %v710_v23, %v726_v28  ;;  %v731_v37 = vsel %vm719_vm11, %v713_v35, %v730_v30 }
  0x4d   : > { %v728_v18 = vsel %vm718_vm8, %v725_v63, %v727_v12  ;;  %v6375_v13 = vrot.slane %v7128_v29, 10  ;;  %v724_v27 = vsel %vm718_vm8, %v721_v38, %v723_v24  ;;  %v732_v7 = vsel %vm718_vm8, %v729_v1, %v731_v37 }
  0x4e   : > { %v656_v15 = vor.u32 %v655_v56, %v654_v10  ;;  %v659_v61 = vshll.u32 %v658_v31, 23  ;;  %v7183_v16 = vmul.u32.u64.low %v7139_v48, %v732_v7  ;;  %v7184_v36 = vmul.u32.u64.high %v7139_v48, %v732_v7, %v7183_v16 }
  0x4f   : > { %v7187_v23 = vmul.u32.u64.low %v7139_v48, %v728_v18  ;;  %v7188_v3 = vmul.u32.u64.high %v7139_v48, %v728_v18, %v7187_v23  ;;  %v492_v35 = vrot.slane %v412_v26, %v7058_v41  ;;  %v5508_v10 = vadd.f32 %v6374_v19, %v7128_v29 }
  0x50   : > { %v660_v34 = vor.u32 4788187, %v659_v61  ;;  %v663_v63 = vcvt.s32.f32 %v656_v15  ;;  %v668_v43 = vsel %vm583_vm9, %v667_v40, %v7100_v46  ;;  %v5485_v38 = vsub.f32 %v7011_v25, %v7137_v42 }
  0x51   : > { %v6376_v24 = vrot.slane %v7147_v58, 9  ;;  %v6377_v28 = vrot.slane %v7147_v58, 10  ;;  %v5501_v61 = vsub.f32 %v5499_v11, %v7141_v57  ;;  %v740_v30 = vmul.u32 %v7139_v48, %v724_v27 }
  0x52   : > { %v661_v1 = vand.u32 2147483647, %v660_v34  ;;  %v5512_v56 = vadd.f32 %v6375_v13, %v5508_v10  ;;  %v2613_v29 = vcombine.high %v7122_v33, %v7122_v33  ;;  %vm742_vm15 = vc.u32 %v7184_v36, %v7187_v23 }
  0x53   : > { %v743_v46 = vadd.s32 1, %v7188_v3  ;;  %v5521_v42 = vadd.f32 %v6376_v24, %v7147_v58  ;;  %v670_v19 = vsel %vm7167_vm13, 0, %v668_v43  ;;  %v558_v25 = vcombine.low %v488_v8, %v492_v35 }
  0x54   : > { %v664_v40 = vmul.f32 %v663_v63, %v661_v1  ;;  %v5513_v11 = vmul.f32 2.0, %v5512_v56  ;;  %v5486_v48 = vadd.f32 %v5485_v38, %v7135_v39  ;;  %v5528_v31 = vrot.slane %v7080_v4, 4 }
  0x55   : > { %v744_v13 = vsel %vm742_vm15, %v743_v46, %v7188_v3  ;;  %v5525_v57 = vadd.f32 %v6377_v28, %v5521_v42  ;;  %v5502_v12 = vadd.f32 %v5501_v61, %v7135_v39  ;;  %v674_v58 = vadd.s32 3, %v670_v19 }
  0x56   : > { %v665_v26 = vxor.u32 2147483648, %v664_v40  ;;  %v745_v18 = vadd.s32 %v744_v13, %v740_v30  ;;  %v5514_v37 = vsub.f32 %v7080_v4, %v5513_v11  ;;  %v7217_v15 = vand.u32 3, %v670_v19 }
  0x57   : > { %v2622_v27 = vrot.slane %v2613_v29, 7  ;;  %v5526_v7 = vmul.f32 2.0, %v5525_v57  ;;  %v7222_v16 = vmul.f32 %v558_v25, %v6973_v2  ;;  %vm687_vm0 = vcmp.lt.s32.totalorder %v6973_v2, 0 }
  0x58   : > { %v666_v8 = vsel %vm583_vm9, %v665_v26, %v664_v40  ;;  %v746_v3 = vadd.s32 536870912, %v745_v18  ;;  %v5515_v63 = vadd.f32 %v5514_v37, %v7135_v39  ;;  %v10129_v10 = vmov 0.0  }
  0x59   : > { %10200 = vst [vmem:[#allocation10_spill] sm:$0xff] %v7222_v16  ;;  %v669_v34 = vsel %vm7167_vm13, %v6966_v0, %v666_v8  ;;  %v5530_v35 = vsub.f32 %v5528_v31, %v5526_v7  ;;  %3713 = vmatprep.mubr.f32.mxu0 %v10129_v10  ;;  %3790 = vmatprep.mubr.f32.mxu1 %v10129_v10  ;;  %v6220_v43 = vrot.slane %v7110_v62, 9  ;;  %vm7236_vm1 = vcmp.le.f32.partialorder %v685_v21, 0.7853982 }
  0x5a   : > { %6663 = vcosq.f32 %v669_v34  ;;  %v5706_v38 = vmax.f32 %v5486_v48, %v5502_v12  ;;  %v5721_v24 = vmin.f32 %v5486_v48, %v5502_v12  ;;  %v747_v28 = vshrl.u32 %v746_v3, 30 }
  0x5b   : > { %6665 = vsinq.f32 %v669_v34  ;;  %v382_v1 = vmul.f32 %v7149_v59, %v7080_v4  ;;  %v5531_v61 = vadd.f32 %v5530_v35, %v7135_v39  ;;  %v792_v30 = vand.u32 2139095040, %v6978_v5 }
  0x5c   : > { %v748_v56 = vshll.u32 %v747_v28, 30  ;;  %v2614_v29 = vcombine.high %v7222_v16, %v7222_v16  ;;  %v327_v46 = vadd.f32 %v6220_v43, %v7110_v62  ;;  %v6228_v42 = vrot.slane %v7110_v62, 10 }
  0x5d   : > { %v771_v40 = vsub.s32 4, %v747_v28  ;;  %v5707_v4 = vmax.f32 %v5515_v63, %v5531_v61  ;;  %v5722_v59 = vmin.f32 %v5515_v63, %v5531_v61  ;;  %v793_v19 = vshrl.u32 %v792_v30, 23 }
  0x5e   : > { %v675_v21 = vand.u32 3, %v674_v58  ;;  %v7250_v25 = vsel %vm3229_vm14, %v2532_v53, %v2622_v27  ;;  %v7252_v11 = vsub.s32 %v745_v18, %v748_v56  ;;  %v10131_v48 = vand.u32 2147483647, %v6978_v5 }
  0x5f   : > { %vm673_vm2 = vweird.f32 %v6966_v0  ;;  %vm1507_vm3 = vcmp.lt.s32.totalorder %v7217_v15, 2  ;;  %vm1508_vm4 = vcmp.eq.s32.totalorder %v7217_v15, 0  ;;  %v7258_v13 = vmax.f32 %v5706_v38, %v5707_v4 }
  0x60   : > { %v7260_v57 = vmin.f32 %v5721_v24, %v5722_v59  ;;  %v751_v31 = vsub.s32 0, %v7252_v11  ;;  %v2540_v26 = vrot.slane %v382_v1, %v7074_v60  ;;  %v2624_v53 = vrot.slane %v2614_v29, 7 }
  0x61   : > { %10203 = vst [vmem:[#allocation11_spill] sm:$0xff] %v7258_v13  ;;  %v7264_v12 = vadd.f32 %v6228_v42, %v327_v46  ;;  %vm3246_vm5 = vcmask 1043456   ;;  %v772_v18 = vsel %vm687_vm0, %v771_v40, %v747_v28  ;;  %v2528_v37 = vrot.slane %v7105_v55, %v7058_v41 }
  0x62   : > { %10204 = vst [vmem:[#allocation12_spill] sm:$0xff] %v7260_v57  ;;  %v2621_v58 = vrot.slane %v7122_v33, 7  ;;  %v6242_v27 = vadd.s32 4294967169, %v793_v19  ;;  %v6239_v7 = vmin.u32 %v751_v31, %v7252_v11  ;;  %v2536_v8 = vrot.slane %v382_v1, %v7058_v41 }
  0x63   : > { %v2623_v3 = vrot.slane %v7222_v16, 7  ;;  %v7276_v34 = vand.u32 8388607, %v10131_v48  ;;  %vm676_vm6 = vcmp.lt.s32.totalorder %v675_v21, 2  ;;  %vm677_vm7 = vcmp.eq.s32.totalorder %v675_v21, 0 }
  0x64   : > { %vm680_vm8 = vcmp.eq.s32.totalorder %v675_v21, 2  ;;  %vm1511_vm9 = vcmp.eq.s32.totalorder %v7217_v15, 2  ;;  %v6664_v63 = vpop.eup %6663  ;;  %v753_v55 = vclz %v6239_v7  ;;  %v774_v35 = vsel %vm7236_vm1, 0, %v772_v18 }
  0x65   : > { %v7282_v43 = vsel %vm3229_vm14, %v2540_v26, %v2624_v53  ;;  %v367_v38 = vadd.f32 1e-16, %v7264_v12  ;;  %v6666_v24 = vpop.eup %6665  ;;  %v681_v28 = vxor.u32 2147483648, %v6664_v63  ;;  %vm3263_vm10 = vcmask 1046528  }
  0x66   : > { %v741_v1 = vadd.s32 %v7187_v23, %v7184_v36  ;;  %v3230_v61 = vsel %vm3229_vm14, %v2528_v37, %v2621_v58  ;;  %v799_v30 = vadd.s32 1, %v6242_v27  ;;  %v678_v56 = vxor.u32 2147483648, %v6666_v24 }
  0x67   : > { %v6240_v29 = vadd.s32 4294967294, %v753_v55  ;;  %v7289_v46 = vsel %vm3229_vm14, %v2536_v8, %v2623_v3  ;;  %v797_v42 = vor.u32 8388608, %v7276_v34  ;;  %v682_v40 = vsel %vm680_vm8, %v681_v28, %v6666_v24 }
  0x68   : > { %v1513_v4 = vsel %vm1511_vm9, %v681_v28, %v6666_v24  ;;  %v7295_v59 = vadd.s32 3, %v774_v35  ;;  %v7297_v19 = vand.u32 3, %v774_v35  ;;  %v679_v36 = vsel %vm677_vm7, %v6664_v63, %v678_v56 }
  0x69   : > { %v1510_v23 = vsel %vm1508_vm4, %v6664_v63, %v678_v56  ;;  %vm3280_vm11 = vcmask 1041408   ;;  %vm6241_vm12 = vcmp.lt.s32.totalorder %v6240_v29, 0  ;;  %6667 = vrsqrt.f32 %v367_v38 }
  0x6a   : > { %v683_v31 = vsel %vm676_vm6, %v679_v36, %v682_v40  ;;  %v1514_v26 = vsel %vm1507_vm3, %v1510_v23, %v1513_v4  ;;  %vm3297_vm13 = vcmask 1044480   ;;  %v756_v53 = vsel %vm6241_vm12, 0, %v6240_v29 }
  0x6b   : > { %vm800_vm15 = vcmp.gt.s32.totalorder %v799_v30, 0  ;;  %v684_v18 = vsel %vm673_vm2, nan, %v683_v31  ;;  %v1515_v37 = vsel %vm673_vm2, nan, %v1514_v26  ;;  %v757_v58 = vsub.s32 32, %v756_v53 }
  0x6c   : > { %v758_v27 = vshll.u32 %v7252_v11, %v756_v53  ;;  %v2237_v7 = vmul.f32 2.0, %v684_v18  ;;  %v2253_v8 = vmul.f32 %v1515_v37, %v1515_v37  ;;  %v2261_v3 = vmul.f32 %v684_v18, %v684_v18 }
  0x6d   : > { %v2685_v21 = vcombine.high %v1515_v37, %v1515_v37  ;;  %v3248_v15 = vsel %vm3246_vm5, %v7250_v25, %v684_v18  ;;  %v759_v34 = vshrl.u32 %v741_v1, %v757_v58  ;;  %v761_v63 = vsub.s32 4294967266, %v756_v53 }
  0x6e   : > { %v2661_v55 = vcombine.low %v684_v18, %v684_v18  ;;  %v2245_v35 = vmul.f32 %v2237_v7, %v1515_v37  ;;  %v2269_v38 = vsub.f32 %v2253_v8, %v2261_v3  ;;  %v2693_v28 = vrot.slane %v1515_v37, 1 }
  0x6f   : > { %v2694_v24 = vrot.slane %v2685_v21, 1  ;;  %v760_v56 = vor.u32 %v759_v34, %v758_v27  ;;  %v762_v0 = vadd.s32 127, %v761_v63  ;;  %v7314_v11 = vsel %vm800_vm15, %v799_v30, 0 }
  0x70   : > { %v3247_v29 = vsel %vm3246_vm5, %v3230_v61, %v2661_v55  ;;  %v2277_v40 = vmul.f32 2.0, %v2245_v35  ;;  %v2293_v4 = vmul.f32 %v2269_v38, %v2269_v38  ;;  %v2301_v36 = vmul.f32 %v2245_v35, %v2245_v35 }
  0x71   : > { %v2733_v23 = vcombine.high %v2245_v35, %v2245_v35  ;;  %vm3314_vm2 = vcmask 1042432   ;;  %v2781_v25 = vcombine.high %v2269_v38, %v2269_v38  ;;  %v3265_v1 = vsel %vm3263_vm10, %v3248_v15, %v2694_v24 }
  0x72   : > { %v763_v31 = vshll.u32 %v762_v0, 23  ;;  %v767_v26 = vcvt.s32.f32 %v760_v56  ;;  %v2741_v18 = vrot.slane %v2245_v35, 6  ;;  %v2789_v37 = vrot.slane %v2269_v38, 3 }
  0x73   : > { %v2742_v53 = vrot.slane %v2733_v23, 6  ;;  %v3264_v58 = vsel %vm3263_vm10, %v3247_v29, %v2693_v28  ;;  %v7318_v27 = vpop.eup %6667  ;;  %v2790_v61 = vrot.slane %v2781_v25, 3  ;;  %v2285_v7 = vmul.f32 %v2277_v40, %v2269_v38 }
  0x74   : > { %v764_v30 = vor.u32 4788187, %v763_v31  ;;  %v2309_v8 = vsub.f32 %v2293_v4, %v2301_v36  ;;  %vm10144_vm3 = vcmask 1045504   ;;  %v3281_v21 = vsel %vm3280_vm11, %v2693_v28, %v2741_v18 }
  0x75   : > { %v3282_v3 = vsel %vm3280_vm11, %v2694_v24, %v2742_v53  ;;  %v7323_v15 = vand.u32 31, %v7314_v11  ;;  %v7325_v34 = vshll.u32 %v797_v42, 8  ;;  %v3298_v35 = vsel %vm3297_vm13, %v3281_v21, %v2789_v37 }
  0x76   : > { %v3299_v63 = vsel %vm3297_vm13, %v3282_v3, %v2790_v61  ;;  %v765_v55 = vand.u32 2147483647, %v764_v30  ;;  %v2317_v56 = vmul.f32 2.0, %v2285_v7  ;;  %v6450_v29 = vpack.c.bf16 %v3298_v35, %v3264_v58 }
  0x77   : > { %v6448_v0 = vpack.c.bf16 %v3299_v63, %v3265_v1  ;;  %v2333_v38 = vmul.f32 %v2309_v8, %v2309_v8  ;;  %v2341_v40 = vmul.f32 %v2285_v7, %v2285_v7  ;;  %v2829_v24 = vcombine.high %v2285_v7, %v2285_v7 }
  0x78   : > { %v768_v4 = vmul.f32 %v767_v26, %v765_v55  ;;  %v2325_v36 = vmul.f32 %v2317_v56, %v2309_v8  ;;  %v2853_v23 = vcombine.high %v2309_v8, %v2309_v8  ;;  %v7330_v28 = vand.u32 3, %v7295_v59 }
  0x79   : > { %6449 = vmatprep.subr.bf16.mxu0 %v6448_v0  ;;  %v2349_v42 = vsub.f32 %v2333_v38, %v2341_v40  ;;  %v2861_v25 = vrot.slane %v2309_v8, 5  ;;  %v7333_v31 = vsub.s32 32, %v7323_v15  ;;  %vm1611_vm4 = vcmp.eq.s32.totalorder %v7297_v19, 0 }
  0x7a   : > { %v769_v53 = vxor.u32 2147483648, %v768_v4  ;;  %6451 = vmatpush1.bf16.msra.mxu0 %v6450_v29  ;;  %v2357_v18 = vmul.f32 2.0, %v2325_v36  ;;  %v2381_v1 = vmul.f32 %v2325_v36, %v2325_v36  ;;  %v2862_v37 = vrot.slane %v2853_v23, 5 }
  0x7b   : > { %v2373_v58 = vmul.f32 %v2349_v42, %v2349_v42  ;;  %v2901_v61 = vcombine.high %v2325_v36, %v2325_v36  ;;  %v2949_v26 = vcombine.high %v2349_v42, %v2349_v42  ;;  %v2909_v30 = vrot.slane %v2325_v36, 2 }
  0x7c   : > { %v770_v3 = vsel %vm687_vm0, %v769_v53, %v768_v4  ;;  %v2365_v21 = vmul.f32 %v2357_v18, %v2349_v42  ;;  %v3316_v59 = vsel %vm3314_vm2, %v2829_v24, %v2862_v37  ;;  %v2957_v63 = vrot.slane %v2349_v42, 7 }
  0x7d   : > { %v773_v8 = vsel %vm7236_vm1, %v6973_v2, %v770_v3  ;;  %v2389_v55 = vsub.f32 %v2373_v58, %v2381_v1  ;;  %v2910_v35 = vrot.slane %v2901_v61, 2  ;;  %v2958_v56 = vrot.slane %v2949_v26, 7 }
  0x7e   : > { %6669 = vcosq.f32 %v773_v8  ;;  %v2997_v0 = vcombine.low %v2365_v21, %v2365_v21  ;;  %v3315_v29 = vsel %vm3314_vm2, %v2285_v7, %v2861_v25  ;;  %v3348_v38 = vsel %vm3229_vm14, %v2909_v30, %v2957_v63 }
  0x7f   : > { %6671 = vsinq.f32 %v773_v8  ;;  %v3021_v40 = vcombine.high %v2389_v55, %v2389_v55  ;;  %v3333_v4 = vsel %vm10144_vm3, %v3316_v59, %v2910_v35  ;;  %v3349_v36 = vsel %vm3229_vm14, %v2910_v35, %v2958_v56 }
  0x80   : > { %vm1614_vm0 = vcmp.eq.s32.totalorder %v7297_v19, 2  ;;  %v3365_v44 = vsel %vm3246_vm5, %v3349_v36, %v2365_v21  ;;  %v3029_v24 = vrot.slane %v2389_v55, 1  ;;  %v3332_v23 = vsel %vm10144_vm3, %v3315_v29, %v2909_v30 }
  0x81   : > { %v3364_v42 = vsel %vm3246_vm5, %v3348_v38, %v2997_v0  ;;  %vm781_vm1 = vcmp.eq.s32.totalorder %v7330_v28, 0  ;;  %v3030_v7 = vrot.slane %v3021_v40, 1  ;;  %v2397_v25 = vmul.f32 2.0, %v2365_v21 }
  0x82   : > { %v2413_v53 = vmul.f32 %v2389_v55, %v2389_v55  ;;  %v2421_v18 = vmul.f32 %v2365_v21, %v2365_v21  ;;  %vm780_vm6 = vcmp.lt.s32.totalorder %v7330_v28, 2  ;;  %vm784_vm7 = vcmp.eq.s32.totalorder %v7330_v28, 2 }
  0x83   : > { %vm1610_vm8 = vcmp.lt.s32.totalorder %v7297_v19, 2  ;;  %v3380_v1 = vsel %vm3263_vm10, %v3364_v42, %v3029_v24  ;;  %v7356_v37 = vshrl.u32 %v7314_v11, 5  ;;  %vm777_vm9 = vweird.f32 %v6973_v2 }
  0x84   : > { %v3381_v61 = vsel %vm3263_vm10, %v3365_v44, %v3030_v7  ;;  %v6454_v26 = vpack.c.bf16 %v3380_v1, %v3332_v23  ;;  %v2405_v30 = vmul.f32 %v2397_v25, %v2389_v55  ;;  %v7361_v3 = vsub.f32 %v2413_v53, %v2421_v18 }
  0x85   : > { %v6452_v21 = vpack.c.bf16 %v3381_v61, %v3333_v4  ;;  %v806_v63 = vshll.u32 %v10136_v45, %v7323_v15  ;;  %v807_v11 = vshrl.u32 %v10134_v47, %v7333_v31  ;;  %v7375_v38 = vshrl.u32 %v10136_v45, %v7333_v31 }
  0x86   : > { %v2437_v8 = vmul.f32 2.0, %v2405_v30  ;;  %v2453_v35 = vmul.f32 %v7361_v3, %v7361_v3  ;;  %v2461_v56 = vmul.f32 %v2405_v30, %v2405_v30  ;;  %v3069_v0 = vcombine.high %v2405_v30, %v2405_v30 }
  0x87   : > { %6453 = vmatprep.subr.bf16.mxu0 %v6452_v21  ;;  %v3117_v55 = vcombine.high %v7361_v3, %v7361_v3  ;;  %v3077_v29 = vrot.slane %v2405_v30, 6  ;;  %v7379_v40 = vshll.u32 %v10134_v47, %v7323_v15  ;;  %v3125_v23 = vrot.slane %v7361_v3, 3 }
  0x88   : > { %6455 = vmatpush1.bf16.msra.mxu0 %v6454_v26  ;;  %v7382_v4 = vmul.f32 %v2437_v8, %v7361_v3  ;;  %v7384_v36 = vsub.f32 %v2453_v35, %v2461_v56  ;;  %v3078_v44 = vrot.slane %v3069_v0, 6  ;;  %v6670_v42 = vpop.eup %6669  ;;  %v7388_v18 = vor.u32 %v807_v11, %v806_v63 }
  0x89   : > { %v3126_v25 = vrot.slane %v3117_v55, 3  ;;  %v3396_v53 = vsel %vm3280_vm11, %v3029_v24, %v3077_v29  ;;  %v7392_v1 = vshrl.u32 %v10132_v49, %v7333_v31  ;;  %v6672_v61 = vpop.eup %6671  ;;  %v785_v26 = vxor.u32 2147483648, %v6670_v42 }
  0x8a   : > { %v2477_v30 = vmul.f32 2.0, %v7382_v4  ;;  %v2493_v21 = vmul.f32 %v7384_v36, %v7384_v36  ;;  %v2501_v3 = vmul.f32 %v7382_v4, %v7382_v4  ;;  %v782_v8 = vxor.u32 2147483648, %v6672_v61 }
  0x8b   : > { %v3189_v24 = vcombine.high %v7384_v36, %v7384_v36  ;;  %v3397_v63 = vsel %vm3280_vm11, %v3030_v7, %v3078_v44  ;;  %v7404_v11 = vshll.u32 %v10132_v49, %v7323_v15  ;;  %v786_v35 = vsel %vm784_vm7, %v785_v26, %v6672_v61 }
  0x8c   : > { %v1616_v56 = vsel %vm1614_vm0, %v785_v26, %v6672_v61  ;;  %v2485_v0 = vmul.f32 %v2477_v30, %v7384_v36  ;;  %v2509_v55 = vsub.f32 %v2493_v21, %v2501_v3  ;;  %v783_v29 = vsel %vm781_vm1, %v6670_v42, %v782_v8 }
  0x8d   : > { %v1613_v10 = vsel %vm1611_vm4, %v6670_v42, %v782_v8  ;;  %v3165_v7 = vcombine.high %v7382_v4, %v7382_v4  ;;  %v3198_v44 = vrot.slane %v3189_v24, 5  ;;  %v787_v48 = vsel %vm780_vm6, %v783_v29, %v786_v35 }
  0x8e   : > { %v1617_v49 = vsel %vm1610_vm8, %v1613_v10, %v1616_v56  ;;  %v3476_v61 = vcombine.high %v2509_v55, %v2509_v55  ;;  %v7423_v26 = vshrl.u32 %v10140_v52, %v7333_v31  ;;  %v788_v30 = vsel %vm777_vm9, nan, %v787_v48 }
  0x8f   : > { %v1618_v42 = vsel %vm777_vm9, nan, %v1617_v49  ;;  %v7430_v21 = vsel %vm3297_vm13, %v3397_v63, %v3126_v25  ;;  %v3452_v3 = vcombine.high %v2485_v0, %v2485_v0  ;;  %v2238_v28 = vmul.f32 2.0, %v788_v30 }
  0x90   : > { %v2254_v8 = vmul.f32 %v1618_v42, %v1618_v42  ;;  %v2262_v24 = vmul.f32 %v788_v30, %v788_v30  ;;  %v2686_v19 = vcombine.high %v1618_v42, %v1618_v42  ;;  %v2662_v10 = vcombine.low %v788_v30, %v788_v30 }
  0x91   : > { %v3429_v35 = vsel %vm3314_vm2, %v3165_v7, %v3198_v44  ;;  %v3485_v56 = vrot.slane %v3476_v61, 5  ;;  %v3197_v29 = vrot.slane %v7384_v36, 5  ;;  %v2246_v47 = vmul.f32 %v2238_v28, %v1618_v42 }
  0x92   : > { %v2270_v45 = vsub.f32 %v2254_v8, %v2262_v24  ;;  %v3250_v2 = vsel %vm3246_vm5, %v7282_v43, %v788_v30  ;;  %v2695_v49 = vrot.slane %v1618_v42, 1  ;;  %v2696_v48 = vrot.slane %v2686_v19, 1 }
  0x93   : > { %v3249_v25 = vsel %vm3246_vm5, %v7289_v46, %v2662_v10  ;;  %v7439_v63 = vsel %vm3314_vm2, %v3452_v3, %v3485_v56  ;;  %v7442_v59 = vsel %vm3297_vm13, %v3396_v53, %v3125_v23  ;;  %v2278_v7 = vmul.f32 2.0, %v2246_v47 }
  0x94   : > { %v2294_v44 = vmul.f32 %v2270_v45, %v2270_v45  ;;  %v2302_v61 = vmul.f32 %v2246_v47, %v2246_v47  ;;  %v2734_v36 = vcombine.high %v2246_v47, %v2246_v47  ;;  %v2782_v28 = vcombine.high %v2270_v45, %v2270_v45 }
  0x95   : > { %v2743_v8 = vrot.slane %v2246_v47, 6  ;;  %v2791_v24 = vrot.slane %v2270_v45, 3  ;;  %v3484_v58 = vrot.slane %v2509_v55, 5  ;;  %v3266_v30 = vsel %vm3263_vm10, %v3249_v25, %v2695_v49 }
  0x96   : > { %v2744_v43 = vrot.slane %v2734_v36, 6  ;;  %v2286_v42 = vmul.f32 %v2278_v7, %v2270_v45  ;;  %v2310_v19 = vsub.f32 %v2294_v44, %v2302_v61  ;;  %v2792_v46 = vrot.slane %v2782_v28, 3 }
  0x97   : > { %v3267_v3 = vsel %vm3263_vm10, %v3250_v2, %v2696_v48  ;;  %v3283_v10 = vsel %vm3280_vm11, %v2695_v49, %v2743_v8  ;;  %v3549_v23 = vrot.slane %v7439_v63, 2  ;;  %v3428_v45 = vsel %vm3314_vm2, %v7382_v4, %v3197_v29 }
  0x98   : > { %v3284_v53 = vsel %vm3280_vm11, %v2696_v48, %v2744_v43  ;;  %v3300_v56 = vsel %vm3297_vm13, %v3283_v10, %v2791_v24  ;;  %v2318_v54 = vmul.f32 2.0, %v2286_v42  ;;  %v2334_v47 = vmul.f32 %v2310_v19, %v2310_v19 }
  0x99   : > { %v3301_v55 = vsel %vm3297_vm13, %v3284_v53, %v2792_v46  ;;  %v6462_v36 = vpack.c.bf16 %v3300_v56, %v3266_v30  ;;  %v2342_v52 = vmul.f32 %v2286_v42, %v2286_v42  ;;  %v2854_v2 = vcombine.high %v2310_v19, %v2310_v19 }
  0x9a   : > { %v6460_v25 = vpack.c.bf16 %v3301_v55, %v3267_v3  ;;  %v2326_v7 = vmul.f32 %v2318_v54, %v2310_v19  ;;  %v2863_v44 = vrot.slane %v2310_v19, 5  ;;  %v2830_v61 = vcombine.high %v2286_v42, %v2286_v42 }
  0x9b   : > { %v2350_v49 = vsub.f32 %v2334_v47, %v2342_v52  ;;  %v3581_v48 = vsel %vm10144_vm3, %v3429_v35, %v3549_v23  ;;  %v7457_v28 = vsel %vm3314_vm2, %v2485_v0, %v3484_v58  ;;  %v2864_v43 = vrot.slane %v2854_v2, 5 }
  0x9c   : > { %6461 = vmatprep.subr.bf16.mxu1 %v6460_v25  ;;  %v2358_v8 = vmul.f32 2.0, %v2326_v7  ;;  %v2382_v24 = vmul.f32 %v2326_v7, %v2326_v7  ;;  %v2902_v30 = vcombine.high %v2326_v7, %v2326_v7  ;;  %v2911_v54 = vrot.slane %v2326_v7, 2 }
  0x9d   : > { %6463 = vmatpush1.bf16.msra.mxu1 %v6462_v36  ;;  %v2374_v4 = vmul.f32 %v2350_v49, %v2350_v49  ;;  %v2950_v29 = vcombine.high %v2350_v49, %v2350_v49  ;;  %v2959_v46 = vrot.slane %v2350_v49, 7  ;;  %v3317_v3 = vsel %vm3314_vm2, %v2286_v42, %v2863_v44 }
  0x9e   : > { %v2366_v19 = vmul.f32 %v2358_v8, %v2350_v49  ;;  %v2912_v52 = vrot.slane %v2902_v30, 2  ;;  %v3548_v10 = vrot.slane %v7457_v28, 2  ;;  %v3318_v58 = vsel %vm3314_vm2, %v2830_v61, %v2864_v43 }
  0x9f   : > { %v2390_v35 = vsub.f32 %v2374_v4, %v2382_v24  ;;  %v2960_v53 = vrot.slane %v2950_v29, 7  ;;  %v3350_v0 = vsel %vm3229_vm14, %v2911_v54, %v2959_v46  ;;  %v3334_v47 = vsel %vm10144_vm3, %v3317_v3, %v2911_v54 }
  0xa0   : > { %v2998_v56 = vcombine.low %v2366_v19, %v2366_v19  ;;  %v6456_v55 = vpack.c.bf16 %v3581_v48, %v7430_v21  ;;  %v2398_v36 = vmul.f32 2.0, %v2366_v19  ;;  %v2422_v61 = vmul.f32 %v2366_v19, %v2366_v19 }
  0xa1   : > { %v3022_v25 = vcombine.high %v2390_v35, %v2390_v35  ;;  %v3351_v7 = vsel %vm3229_vm14, %v2912_v52, %v2960_v53  ;;  %v3031_v2 = vrot.slane %v2390_v35, 1  ;;  %v2414_v49 = vmul.f32 %v2390_v35, %v2390_v35 }
  0xa2   : > { %v3367_v42 = vsel %vm3246_vm5, %v3351_v7, %v2366_v19  ;;  %v3366_v44 = vsel %vm3246_vm5, %v3350_v0, %v2998_v56  ;;  %6457 = vmatprep.subr.bf16.mxu0 %v6456_v55  ;;  %v2406_v28 = vmul.f32 %v2398_v36, %v2390_v35  ;;  %v3335_v24 = vsel %vm10144_vm3, %v3318_v58, %v2912_v52 }
  0xa3   : > { %v3032_v8 = vrot.slane %v3022_v25, 1  ;;  %v3382_v43 = vsel %vm3263_vm10, %v3366_v44, %v3031_v2  ;;  %v3580_v21 = vsel %vm10144_vm3, %v3428_v45, %v3548_v10  ;;  %v2430_v30 = vsub.f32 %v2414_v49, %v2422_v61 }
  0xa4   : > { %v6466_v48 = vpack.c.bf16 %v3382_v43, %v3334_v47  ;;  %v2438_v4 = vmul.f32 2.0, %v2406_v28  ;;  %v2462_v29 = vmul.f32 %v2406_v28, %v2406_v28  ;;  %v3070_v46 = vcombine.high %v2406_v28, %v2406_v28 }
  0xa5   : > { %v3383_v54 = vsel %vm3263_vm10, %v3367_v42, %v3032_v8  ;;  %v6458_v3 = vpack.c.bf16 %v3580_v21, %v7442_v59  ;;  %v3079_v53 = vrot.slane %v2406_v28, 6  ;;  %v2454_v19 = vmul.f32 %v2430_v30, %v2430_v30 }
  0xa6   : > { %v6464_v0 = vpack.c.bf16 %v3383_v54, %v3335_v24  ;;  %v2446_v35 = vmul.f32 %v2438_v4, %v2430_v30  ;;  %v3118_v56 = vcombine.high %v2430_v30, %v2430_v30  ;;  %v3080_v55 = vrot.slane %v3070_v46, 6 }
  0xa7   : > { %6459 = vmatpush1.bf16.msra.mxu0 %v6458_v3  ;;  %v811_v52 = vor.u32 %v7392_v1, %v7379_v40  ;;  %v814_v45 = vor.u32 %v7423_v26, %v7404_v11  ;;  %v10205_v58 = vmov 2102212464   ;;  %v2470_v36 = vsub.f32 %v2454_v19, %v2462_v29 }
  0xa8   : > { %v815_v47 = vshll.u32 %v10205_v58, %v7323_v15  ;;  %6465 = vmatprep.subr.bf16.mxu1 %v6464_v0  ;;  %v2478_v25 = vmul.f32 2.0, %v2446_v35  ;;  %v2502_v59 = vmul.f32 %v2446_v35, %v2446_v35  ;;  %v3127_v7 = vrot.slane %v2430_v30, 3  ;;  %6298 = vmatprep.subr.msk.mxu0 %vm3246_vm5, %v3549_v23 }
  0xa9   : > { %6467 = vmatpush1.bf16.msra.mxu1 %v6466_v48  ;;  %v3128_v49 = vrot.slane %v3118_v56, 3  ;;  %v3166_v42 = vcombine.high %v2446_v35, %v2446_v35  ;;  %v3398_v40 = vsel %vm3280_vm11, %v3031_v2, %v3079_v53  ;;  %v10206_v1 = vmov 920167782  }
  0xaa   : > { %v816_v11 = vshrl.u32 %v10206_v1, %v7333_v31  ;;  %v2486_v26 = vmul.f32 %v2478_v25, %v2470_v36  ;;  %v2494_v44 = vmul.f32 %v2470_v36, %v2470_v36  ;;  %v3190_v28 = vcombine.high %v2470_v36, %v2470_v36 }
  0xab   : > { %v3399_v61 = vsel %vm3280_vm11, %v3032_v8, %v3080_v55  ;;  %v3199_v24 = vrot.slane %v2470_v36, 5  ;;  %6299 = vmatpush1.msk.msra.mxu0 %vm3246_vm5, %v3548_v10  ;;  %v818_v63 = vshll.u32 %v10206_v1, %v7323_v15  ;;  %v10207_v23 = vmov 1326507024  }
  0xac   : > { %v817_v43 = vor.u32 %v816_v11, %v815_v47  ;;  %v819_v21 = vshrl.u32 %v10207_v23, %v7333_v31  ;;  %v2510_v48 = vsub.f32 %v2494_v44, %v2502_v59  ;;  %v3200_v2 = vrot.slane %v3190_v28, 5 }
  0xad   : > { %v3414_v30 = vsel %vm3297_vm13, %v3398_v40, %v3127_v7  ;;  %vm821_vm12 = vcmp.lt.s32.totalorder %v7356_v37, 1  ;;  %v3453_v4 = vcombine.high %v2486_v26, %v2486_v26  ;;  %v3430_v29 = vsel %vm3314_vm2, %v2446_v35, %v3199_v24  ;;  %v7536_v24 = vld [vmem:[%s6963_s17 + $0x10] sm:$0x77] }
  0xae   : > { %v820_v8 = vor.u32 %v819_v21, %v818_v63  ;;  %vm823_vm15 = vcmp.lt.s32.totalorder %v7356_v37, 3  ;;  %v3477_v10 = vcombine.high %v2510_v48, %v2510_v48  ;;  %v3486_v54 = vrot.slane %v2510_v48, 5 }
  0xaf   : > { %vm822_vm0 = vcmp.lt.s32.totalorder %v7356_v37, 2  ;;  %vm824_vm1 = vcmp.lt.s32.totalorder %v7356_v37, 4  ;;  %v3431_v15 = vsel %vm3314_vm2, %v3166_v42, %v3200_v2  ;;  %v829_v46 = vsel %vm821_vm12, %v7388_v18, %v811_v52  ;;  %v7545_v37 = vld [vmem:[%s6963_s17 + $0x18] sm:$0x77] }
  0xb0   : > { %v826_v31 = vsel %vm824_vm1, %v814_v45, 2102212464  ;;  %v830_v3 = vsel %vm824_vm1, %v817_v43, 920167782  ;;  %v3487_v53 = vrot.slane %v3477_v10, 5  ;;  %v3518_v0 = vsel %vm3314_vm2, %v2486_v26, %v3486_v54 }
  0xb1   : > { %v825_v35 = vsel %vm821_vm12, %v7375_v38, %v7388_v18  ;;  %v831_v19 = vsel %vm823_vm15, %v814_v45, %v830_v3  ;;  %v3550_v56 = vrot.slane %v3518_v0, 2  ;;  %v827_v55 = vsel %vm823_vm15, %v811_v52, %v826_v31 }
  0xb2   : > { %v832_v47 = vsel %vm822_vm0, %v829_v46, %v831_v19  ;;  %v833_v36 = vsel %vm821_vm12, %v811_v52, %v814_v45  ;;  %v3519_v25 = vsel %vm3314_vm2, %v3453_v4, %v3487_v53  ;;  %v834_v59 = vsel %vm824_vm1, %v820_v8, 1326507024 }
  0xb3   : > { %v7516_v7 = vmul.u32.u64.low %v7325_v34, %v832_v47  ;;  %v7517_v38 = vmul.u32.u64.high %v7325_v34, %v832_v47, %v7516_v7  ;;  %v3415_v18 = vsel %vm3297_vm13, %v3399_v61, %v3128_v49  ;;  %v3551_v42 = vrot.slane %v3519_v25, 2 }
  0xb4   : > { %v3582_v40 = vsel %vm10144_vm3, %v3430_v29, %v3550_v56  ;;  %v835_v11 = vsel %vm823_vm15, %v817_v43, %v834_v59  ;;  %v420_v52 = vrot.slane %v7318_v27, %v7074_v60  ;;  %v828_v45 = vsel %vm822_vm0, %v825_v35, %v827_v55 }
  0xb5   : > { %v6470_v26 = vpack.c.bf16 %v3582_v40, %v3414_v30  ;;  %v836_v44 = vsel %vm822_vm0, %v833_v36, %v835_v11  ;;  %v3583_v28 = vsel %vm10144_vm3, %v3431_v15, %v3551_v42  ;;  %v5532_v43 = vmul.f32 %v7536_v24, %v7066_v50 }
  0xb6   : > { %v7532_v49 = vmul.u32.u64.low %v7325_v34, %v836_v44  ;;  %v7533_v61 = vmul.u32.u64.high %v7325_v34, %v836_v44, %v7532_v49  ;;  %v6468_v63 = vpack.c.bf16 %v3583_v28, %v3415_v18  ;;  %v847_v21 = vadd.s32 1, %v7517_v38 }
  0xb7   : > { %v10208_v48 = vrot.slane %v6978_v5, 4  ;;  %v896_v30 = vand.u32 2139095040, %v7545_v37  ;;  %v844_v4 = vmul.u32 %v7325_v34, %v828_v45  ;;  %v6378_v29 = vrot.slane %v5532_v43, 9 }
  0xb8   : > { %6469 = vmatprep.subr.bf16.mxu1 %v6468_v63  ;;  %v4930_v8 = vrot.slane %v7110_v62, 4  ;;  %v10209_v54 = vrot.slane %v7119_v32, 9  ;;  %v10142_v31 = vand.u32 2147483647, %v7545_v37  ;;  %v10210_v46 = vrot.slane %v7318_v27, %v7058_v41 }
  0xb9   : > { %v5545_v2 = vmul.f32 %v7066_v50, %v10208_v48  ;;  %6471 = vmatpush1.bf16.msra.mxu1 %v6470_v26  ;;  %v500_v53 = vrot.slane %v420_v52, %v7058_v41  ;;  %vm846_vm4 = vc.u32 %v7533_v61, %v7516_v7  ;;  %v6229_v34 = vrot.slane %v7119_v32, 10 }
  0xba   : > { %v328_v15 = vadd.f32 %v10209_v54, %v7119_v32  ;;  %v496_v3 = vrot.slane %v10210_v46, %v7058_v41  ;;  %6302 = vmatprep.subr.msk.mxu1 %vm3246_vm5, %v3551_v42  ;;  %v848_v0 = vsel %vm846_vm4, %v847_v21, %v7517_v38  ;;  %v5537_v35 = vadd.f32 %v6378_v29, %v5532_v43 }
  0xbb   : > { %v6380_v10 = vrot.slane %v5545_v2, 9  ;;  %v6379_v19 = vrot.slane %v5532_v43, 10  ;;  %v897_v55 = vshrl.u32 %v896_v30, 23  ;;  %v849_v47 = vadd.s32 %v848_v0, %v844_v4 }
  0xbc   : > { %v6381_v25 = vrot.slane %v5545_v2, 10  ;;  %v7564_v59 = vadd.f32 %v6229_v34, %v328_v15  ;;  %v4932_v18 = vadd.f32 %v4930_v8, %v7110_v62  ;;  %v4933_v11 = vrot.slane %v7119_v32, 4 }
  0xbd   : > { %v5550_v36 = vadd.f32 %v6380_v10, %v5545_v2  ;;  %v6246_v40 = vadd.s32 4294967169, %v897_v55  ;;  %6303 = vmatpush1.msk.msra.mxu1 %vm3246_vm5, %v3550_v56  ;;  %v559_v26 = vcombine.low %v496_v3, %v500_v53  ;;  %v850_v52 = vadd.s32 536870912, %v849_v47 }
  0xbe   : > { %v368_v42 = vadd.f32 1e-16, %v7564_v59  ;;  %v5541_v38 = vadd.f32 %v6379_v19, %v5537_v35  ;;  %v900_v45 = vand.u32 8388607, %v10142_v31  ;;  %v4935_v28 = vadd.f32 %v4933_v11, %v7119_v32 }
  0xbf   : > { %v903_v44 = vadd.s32 1, %v6246_v40  ;;  %v7573_v49 = vshrl.u32 %v850_v52, 30  ;;  %v5554_v43 = vadd.f32 %v6381_v25, %v5550_v36  ;;  %v7576_v63 = vmul.f32 %v7536_v24, %v559_v26 }
  0xc0   : > { %6673 = vrsqrt.f32 %v368_v42  ;;  %v4949_v62 = vadd.f32 %v4935_v28, %v4932_v18  ;;  %v7581_v48 = vmul.f32 %v7545_v37, %v7066_v50  ;;  %v7583_v2 = vmul.f32 2.0, %v5541_v38 }
  0xc1   : > { %vm904_vm6 = vcmp.gt.s32.totalorder %v903_v44, 0  ;;  %10211 = vst [vmem:[#allocation13_spill] sm:$0xff] %v7576_v63  ;;  %v852_v56 = vshll.u32 %v7573_v49, 30  ;;  %v901_v30 = vor.u32 8388608, %v900_v45  ;;  %v5555_v8 = vmul.f32 2.0, %v5554_v43 }
  0xc2   : > { %v905_v21 = vsel %vm904_vm6, %v903_v44, 0  ;;  %v7586_v4 = vadd.f32 %v4949_v62, %v7102_v51  ;;  %v5557_v10 = vrot.slane %v7264_v12, 4  ;;  %v7593_v15 = vmul.f32 %v7318_v27, %v7264_v12 }
  0xc3   : > { %v907_v32 = vand.u32 31, %v905_v21  ;;  %v7588_v29 = vsub.s32 %v849_v47, %v852_v56  ;;  %v6382_v3 = vrot.slane %v7581_v48, 9  ;;  %v10212_v53 = vrot.slane %v6981_v6, 4 }
  0xc4   : > { %v845_v51 = vadd.s32 %v7516_v7, %v7533_v61  ;;  %v7608_v27 = vshll.u32 %v901_v30, 8  ;;  %v5559_v47 = vsub.f32 %v5557_v10, %v5555_v8  ;;  %v6383_v6 = vrot.slane %v7581_v48, 10 }
  0xc5   : > { %v908_v54 = vsub.s32 32, %v907_v32  ;;  %v855_v46 = vsub.s32 0, %v7588_v29  ;;  %v7600_v34 = vmul.f32 %v7066_v50, %v10212_v53  ;;  %v10213_v36 = vmov 683565275  }
  0xc6   : > { %v910_v25 = vshll.u32 %v10213_v36, %v907_v32  ;;  %v10214_v18 = vmov 2475754826   ;;  %v10215_v61 = vmov 2131351028   ;;  %v906_v42 = vshrl.u32 %v905_v21, 5 }
  0xc7   : > { %v6243_v19 = vmin.u32 %v855_v46, %v7588_v29  ;;  %v911_v40 = vshrl.u32 %v10214_v18, %v908_v54  ;;  %v913_v7 = vshll.u32 %v10214_v18, %v907_v32  ;;  %v914_v11 = vshrl.u32 %v10215_v61, %v908_v54 }
  0xc8   : > { %v5566_v38 = vadd.f32 %v6382_v3, %v7581_v48  ;;  %v6384_v45 = vrot.slane %v7600_v34, 9  ;;  %v909_v28 = vshrl.u32 %v10213_v36, %v908_v54  ;;  %v916_v43 = vshll.u32 %v10215_v61, %v907_v32 }
  0xc9   : > { %v857_v52 = vclz %v6243_v19  ;;  %v917_v62 = vshrl.u32 %v10205_v58, %v908_v54  ;;  %v919_v30 = vshll.u32 %v10205_v58, %v907_v32  ;;  %v920_v8 = vshrl.u32 %v10206_v1, %v908_v54 }
  0xca   : > { %v7617_v26 = vpop.eup %6673  ;;  %v922_v21 = vshll.u32 %v10206_v1, %v907_v32  ;;  %v912_v10 = vor.u32 %v911_v40, %v910_v25  ;;  %v915_v46 = vor.u32 %v914_v11, %v913_v7  ;;  %v923_v3 = vshrl.u32 %v10207_v23, %v908_v54 }
  0xcb   : > { %v424_v44 = vrot.slane %v7617_v26, %v7058_v41  ;;  %v6244_v56 = vadd.s32 4294967294, %v857_v52  ;;  %v428_v48 = vrot.slane %v7617_v26, %v7074_v60  ;;  %v921_v19 = vor.u32 %v920_v8, %v919_v30 }
  0xcc   : > { %vm925_vm8 = vcmp.lt.s32.totalorder %v906_v42, 1  ;;  %vm791_vm9 = vcmp.lt.s32.totalorder %v7536_v24, 0  ;;  %v918_v31 = vor.u32 %v917_v62, %v916_v43  ;;  %v924_v0 = vor.u32 %v923_v3, %v922_v21 }
  0xcd   : > { %vm6245_vm7 = vcmp.lt.s32.totalorder %v6244_v56, 0  ;;  %v7633_v53 = vrot.slane %v424_v44, %v7058_v41  ;;  %vm927_vm12 = vcmp.lt.s32.totalorder %v906_v42, 3  ;;  %vm928_vm15 = vcmp.lt.s32.totalorder %v906_v42, 4 }
  0xce   : > { %v860_v52 = vsel %vm6245_vm7, 0, %v6244_v56  ;;  %vm926_vm0 = vcmp.lt.s32.totalorder %v906_v42, 2  ;;  %v929_v54 = vsel %vm925_vm8, %v909_v28, %v912_v10  ;;  %v930_v25 = vsel %vm928_vm15, %v918_v31, 2102212464 }
  0xcf   : > { %v861_v32 = vsub.s32 32, %v860_v52  ;;  %v862_v55 = vshll.u32 %v7588_v29, %v860_v52  ;;  %v865_v35 = vsub.s32 4294967266, %v860_v52  ;;  %v933_v40 = vsel %vm925_vm8, %v912_v10, %v915_v46 }
  0xd0   : > { %v931_v44 = vsel %vm927_vm12, %v915_v46, %v930_v25  ;;  %v934_v30 = vsel %vm928_vm15, %v921_v19, 920167782  ;;  %v10216_v43 = vand.u32 2147483647, %v6978_v5  ;;  %v508_v29 = vrot.slane %v428_v48, %v7058_v41 }
  0xd1   : > { %v863_v7 = vshrl.u32 %v845_v51, %v861_v32  ;;  %v866_v11 = vadd.s32 127, %v865_v35  ;;  %v935_v56 = vsel %vm927_vm12, %v918_v31, %v934_v30  ;;  %v937_v28 = vsel %vm925_vm8, %v915_v46, %v918_v31 }
  0xd2   : > { %vm7642_vm1 = vcmp.le.f32.partialorder %v10216_v43, 0.7853982  ;;  %v938_v8 = vsel %vm928_vm15, %v924_v0, 1326507024  ;;  %v936_v51 = vsel %vm926_vm0, %v933_v40, %v935_v56  ;;  %v932_v3 = vsel %vm926_vm0, %v929_v54, %v931_v44  ;;  %v7675_v40 = vld [vmem:[%s10114_s1] sm:$0xff]  ;;  %v7703_v56 = vld [vmem:[%s10114_s1 + $0x8] sm:$0xff] }
  0xd3   : > { %v864_v21 = vor.u32 %v863_v7, %v862_v55  ;;  %v867_v10 = vshll.u32 %v866_v11, 23  ;;  %v939_v35 = vsel %vm927_vm12, %v921_v19, %v938_v8  ;;  %v10219_v55 = vsub.f32 %v7264_v12, %v7583_v2 }
  0xd4   : > { %v940_v5 = vsel %vm926_vm0, %v937_v28, %v939_v35  ;;  %v7654_v52 = vmul.u32.u64.low %v7608_v27, %v936_v51  ;;  %v7655_v32 = vmul.u32.u64.high %v7608_v27, %v936_v51, %v7654_v52  ;;  %v7669_v42 = vadd.f32 %v5559_v47, %v7135_v39 }
  0xd5   : > { %v868_v48 = vor.u32 4788187, %v867_v10  ;;  %v871_v25 = vcvt.s32.f32 %v864_v21  ;;  %v7659_v31 = vmul.u32.u64.low %v7608_v27, %v940_v5  ;;  %v7660_v0 = vmul.u32.u64.high %v7608_v27, %v940_v5, %v7659_v31 }
  0xd6   : > { %v7666_v46 = vadd.f32 %v10219_v55, %v7135_v39  ;;  %v5570_v19 = vadd.f32 %v6383_v6, %v5566_v38  ;;  %v5579_v54 = vadd.f32 %v6384_v45, %v7600_v34  ;;  %v10220_v11 = vsub.s32 4, %v7573_v49 }
  0xd7   : > { %v869_v7 = vand.u32 2147483647, %v868_v48  ;;  %v948_v2 = vmul.u32 %v7608_v27, %v932_v3  ;;  %v6385_v47 = vrot.slane %v7600_v34, 10  ;;  %v560_v6 = vcombine.low %v7633_v53, %v508_v29 }
  0xd8   : > { %v876_v12 = vsel %vm791_vm9, %v10220_v11, %v7573_v49  ;;  %v951_v38 = vadd.s32 1, %v7655_v32  ;;  %v5571_v45 = vmul.f32 2.0, %v5570_v19  ;;  %vm10143_vm4 = vcmask 424960  }
  0xd9   : > { %v872_v44 = vmul.f32 %v871_v25, %v869_v7  ;;  %vm950_vm6 = vc.u32 %v7660_v0, %v7654_v52  ;;  %v5583_v30 = vadd.f32 %v6385_v47, %v5579_v54  ;;  %v5586_v43 = vrot.slane %v7564_v59, 4  ;;  %6300 = vmatmul.mubr.msk.f32.vlgmr.msra.gmra.mrb[0].mxu0 %vm10143_vm4, %v7675_v40  ;;  %6304 = vmatmul.mubr.msk.f32.vlgmr.msra.gmra.mrb[0].mxu1 %vm10143_vm4, %v7675_v40 }
  0xda   : > { %v2548_v49 = vrot.slane %v7593_v15, %v7074_v60  ;;  %v10221_v34 = vcombine.high %v7576_v63, %v7576_v63  ;;  %v952_v53 = vsel %vm950_vm6, %v951_v38, %v7655_v32  ;;  %v5572_v29 = vsub.f32 %v7564_v59, %v5571_v45  ;;  %v7717_v32 = vld [vmem:[%s6963_s17 + $0x20] sm:$0x77] }
  0xdb   : > { %v873_v28 = vxor.u32 2147483648, %v872_v44  ;;  %v878_v8 = vsel %vm7642_vm1, 0, %v876_v12  ;;  %v953_v21 = vadd.s32 %v952_v53, %v948_v2  ;;  %v5584_v10 = vmul.f32 2.0, %v5583_v30 }
  0xdc   : > { %v2626_v27 = vrot.slane %v10221_v34, 7  ;;  %v10222_v51 = vmov 0.0   ;;  %v5708_v35 = vmax.f32 %v7666_v46, %v7669_v42  ;;  %v5723_v3 = vmin.f32 %v7666_v46, %v7669_v42 }
  0xdd   : > { %3719 = vmatprep.mubr.f32.mxu0 %v10222_v51  ;;  %3796 = vmatprep.mubr.f32.mxu1 %v10222_v51  ;;  %v7714_v5 = vmul.f32 %v7545_v37, %v560_v6  ;;  %v7721_v48 = vmul.f32 %v7717_v32, %v7717_v32  ;;  %v874_v25 = vsel %vm791_vm9, %v873_v28, %v872_v44  ;;  %vm895_vm7 = vcmp.lt.s32.totalorder %v7545_v37, 0 }
  0xde   : > { %v954_v31 = vadd.s32 536870912, %v953_v21  ;;  %v5573_v55 = vadd.f32 %v5572_v29, %v7135_v39  ;;  %v5588_v19 = vsub.f32 %v5586_v43, %v5584_v10  ;;  %6301 = vmatmul.mubr.msk.f32.gmra.mrb[2].mxu0 %vm10143_vm4, %v7703_v56  ;;  %v877_v46 = vsel %vm7642_vm1, %v7536_v24, %v874_v25  ;;  %6305 = vmatmul.mubr.msk.f32.gmra.mrb[2].mxu1 %vm10143_vm4, %v7703_v56 }
  0xdf   : > { %10223 = vst [vmem:[#allocation14_spill] sm:$0xff] %v7714_v5  ;;  %v882_v42 = vadd.s32 3, %v878_v8  ;;  %v7732_v54 = vand.u32 3, %v878_v8  ;;  %3867 = vmatprep.mubr.f32.mxu0 %v10222_v51  ;;  %v6222_v7 = vrot.slane %v7721_v48, 9  ;;  %6675 = vcosq.f32 %v877_v46  ;;  %3944 = vmatprep.mubr.f32.mxu1 %v10222_v51 }
  0xe0   : > { %v384_v11 = vmul.f32 %v7617_v26, %v7564_v59  ;;  %v955_v12 = vshrl.u32 %v954_v31, 30  ;;  %v5589_v2 = vadd.f32 %v5588_v19, %v7135_v39  ;;  %6677 = vsinq.f32 %v877_v46 }
  0xe1   : > { %v10224_v62 = vand.u32 2147483647, %v7545_v37  ;;  %v2616_v6 = vcombine.high %v7714_v5, %v7714_v5  ;;  %v6230_v38 = vrot.slane %v7721_v48, 10  ;;  %v1000_v45 = vand.u32 2139095040, %v7717_v32 }
  0xe2   : > { %v956_v59 = vshll.u32 %v955_v12, 30  ;;  %v5709_v26 = vmax.f32 %v5573_v55, %v5589_v2  ;;  %v5724_v44 = vmin.f32 %v5573_v55, %v5589_v2  ;;  %v329_v30 = vadd.f32 %v6222_v7, %v7721_v48 }
  0xe3   : > { %vm7744_vm8 = vcmp.le.f32.partialorder %v10224_v62, 0.7853982  ;;  %v883_v43 = vand.u32 3, %v882_v42  ;;  %v7754_v34 = vsel %vm3229_vm14, %v2548_v49, %v2626_v27  ;;  %v979_v53 = vsub.s32 4, %v955_v12 }
  0xe4   : > { %v1001_v29 = vshrl.u32 %v1000_v45, 23  ;;  %v7756_v28 = vsub.s32 %v953_v21, %v956_v59  ;;  %v7758_v8 = vmax.f32 %v5708_v35, %v5709_v26  ;;  %v7760_v10 = vmin.f32 %v5723_v3, %v5724_v44 }
  0xe5   : > { %v10145_v25 = vand.u32 2147483647, %v7717_v32  ;;  %vm881_vm9 = vweird.f32 %v7536_v24  ;;  %vm1713_vm12 = vcmp.lt.s32.totalorder %v7732_v54, 2  ;;  %vm1714_vm15 = vcmp.eq.s32.totalorder %v7732_v54, 0 }
  0xe6   : > { %10227 = vst [vmem:[#allocation15_spill] sm:$0xff] %v7758_v8  ;;  %10228 = vst [vmem:[#allocation16_spill] sm:$0xff] %v7760_v10  ;;  %v2556_v31 = vrot.slane %v384_v11, %v7074_v60  ;;  %v2628_v49 = vrot.slane %v2616_v6, 7  ;;  %v959_v27 = vsub.s32 0, %v7756_v28  ;;  %v2544_v35 = vrot.slane %v7593_v15, %v7058_v41 }
  0xe7   : > { %v7772_v3 = vadd.f32 %v6230_v38, %v329_v30  ;;  %v980_v55 = vsel %vm895_vm7, %v979_v53, %v955_v12  ;;  %v2625_v46 = vrot.slane %v7576_v63, 7  ;;  %v6250_v42 = vadd.s32 4294967169, %v1001_v29 }
  0xe8   : > { %v6247_v7 = vmin.u32 %v959_v27, %v7756_v28  ;;  %v2552_v2 = vrot.slane %v384_v11, %v7058_v41  ;;  %v2627_v62 = vrot.slane %v7714_v5, 7  ;;  %v7784_v15 = vand.u32 8388607, %v10145_v25 }
  0xe9   : > { %vm884_vm0 = vcmp.lt.s32.totalorder %v883_v43, 2  ;;  %vm885_vm1 = vcmp.eq.s32.totalorder %v883_v43, 0  ;;  %vm888_vm6 = vcmp.eq.s32.totalorder %v883_v43, 2  ;;  %vm1717_vm4 = vcmp.eq.s32.totalorder %v7732_v54, 2  ;;  %v6676_v12 = vpop.eup %6675 }
  0xea   : > { %v949_v6 = vadd.s32 %v7654_v52, %v7660_v0  ;;  %v961_v38 = vclz %v6247_v7  ;;  %v982_v45 = vsel %vm7744_vm8, 0, %v980_v55  ;;  %v369_v11 = vadd.f32 1e-16, %v7772_v3  ;;  %v6678_v59 = vpop.eup %6677 }
  0xeb   : > { %v889_v26 = vxor.u32 2147483648, %v6676_v12  ;;  %v7793_v44 = vsel %vm3229_vm14, %v2556_v31, %v2628_v49  ;;  %v3234_v30 = vsel %vm3229_vm14, %v2544_v35, %v2625_v46  ;;  %v1007_v53 = vadd.s32 1, %v6250_v42 }
  0xec   : > { %v886_v29 = vxor.u32 2147483648, %v6678_v59  ;;  %v6248_v27 = vadd.s32 4294967294, %v961_v38  ;;  %v7797_v19 = vsel %vm3229_vm14, %v2552_v2, %v2627_v62  ;;  %v1005_v52 = vor.u32 8388608, %v7784_v15 }
  0xed   : > { %v890_v0 = vsel %vm888_vm6, %v889_v26, %v6678_v59  ;;  %v1719_v55 = vsel %vm1717_vm4, %v889_v26, %v6678_v59  ;;  %v986_v7 = vadd.s32 3, %v982_v45  ;;  %v7803_v21 = vand.u32 3, %v982_v45 }
  0xee   : > { %v887_v31 = vsel %vm885_vm1, %v6676_v12, %v886_v29  ;;  %v1716_v49 = vsel %vm1714_vm15, %v6676_v12, %v886_v29  ;;  %vm6249_vm3 = vcmp.lt.s32.totalorder %v6248_v27, 0  ;;  %6679 = vrsqrt.f32 %v369_v11 }
  0xef   : > { %v891_v35 = vsel %vm884_vm0, %v887_v31, %v890_v0  ;;  %v1720_v46 = vsel %vm1713_vm12, %v1716_v49, %v1719_v55  ;;  %v964_v42 = vsel %vm6249_vm3, 0, %v6248_v27  ;;  %vm1008_vm6 = vcmp.gt.s32.totalorder %v1007_v53, 0 }
  0xf0   : > { %v892_v2 = vsel %vm881_vm9, nan, %v891_v35  ;;  %v1721_v62 = vsel %vm881_vm9, nan, %v1720_v46  ;;  %v965_v15 = vsub.s32 32, %v964_v42  ;;  %v966_v38 = vshll.u32 %v7756_v28, %v964_v42 }
  0xf1   : > { %v2239_v45 = vmul.f32 2.0, %v892_v2  ;;  %v2255_v12 = vmul.f32 %v1721_v62, %v1721_v62  ;;  %v2263_v59 = vmul.f32 %v892_v2, %v892_v2  ;;  %v2687_v11 = vcombine.high %v1721_v62, %v1721_v62 }
  0xf2   : > { %v3252_v43 = vsel %vm3246_vm5, %v7754_v34, %v892_v2  ;;  %v967_v54 = vshrl.u32 %v949_v6, %v965_v15  ;;  %v969_v26 = vsub.s32 4294967266, %v964_v42  ;;  %v2663_v29 = vcombine.low %v892_v2, %v892_v2 }
  0xf3   : > { %v2247_v27 = vmul.f32 %v2239_v45, %v1721_v62  ;;  %v2271_v0 = vsub.f32 %v2255_v12, %v2263_v59  ;;  %v2698_v55 = vrot.slane %v2687_v11, 1  ;;  %v2697_v31 = vrot.slane %v1721_v62, 1 }
  0xf4   : > { %v968_v49 = vor.u32 %v967_v54, %v966_v38  ;;  %v970_v24 = vadd.s32 127, %v969_v26  ;;  %v3251_v35 = vsel %vm3246_vm5, %v3234_v30, %v2663_v29  ;;  %v1009_v28 = vsel %vm1008_vm6, %v1007_v53, 0 }
  0xf5   : > { %v2735_v46 = vcombine.high %v2247_v27, %v2247_v27  ;;  %v2783_v25 = vcombine.high %v2271_v0, %v2271_v0  ;;  %v3269_v22 = vsel %vm3263_vm10, %v3252_v43, %v2698_v55  ;;  %v2745_v5 = vrot.slane %v2247_v27, 6 }
  0xf6   : > { %v971_v63 = vshll.u32 %v970_v24, 23  ;;  %v975_v34 = vcvt.s32.f32 %v968_v49  ;;  %v2793_v6 = vrot.slane %v2271_v0, 3  ;;  %v3268_v42 = vsel %vm3263_vm10, %v3251_v35, %v2697_v31 }
  0xf7   : > { %v2746_v2 = vrot.slane %v2735_v46, 6  ;;  %v2794_v15 = vrot.slane %v2783_v25, 3  ;;  %v3285_v62 = vsel %vm3280_vm11, %v2697_v31, %v2745_v5  ;;  %v2279_v38 = vmul.f32 2.0, %v2247_v27 }
  0xf8   : > { %v7823_v45 = vpop.eup %6679  ;;  %v972_v30 = vor.u32 4788187, %v971_v63  ;;  %v3302_v53 = vsel %vm3297_vm13, %v3285_v62, %v2793_v6  ;;  %v2295_v12 = vmul.f32 %v2271_v0, %v2271_v0  ;;  %v2303_v59 = vmul.f32 %v2247_v27, %v2247_v27 }
  0xf9   : > { %v3286_v11 = vsel %vm3280_vm11, %v2698_v55, %v2746_v2  ;;  %v2287_v43 = vmul.f32 %v2279_v38, %v2271_v0  ;;  %v7827_v54 = vand.u32 31, %v1009_v28  ;;  %v7829_v26 = vshll.u32 %v1005_v52, 8 }
  0xfa   : > { %v3303_v29 = vsel %vm3297_vm13, %v3286_v11, %v2794_v15  ;;  %v973_v25 = vand.u32 2147483647, %v972_v30  ;;  %v6474_v5 = vpack.c.bf16 %v3302_v53, %v3268_v42  ;;  %v2311_v31 = vsub.f32 %v2295_v12, %v2303_v59  ;;  %v7840_v15 = vld [vmem:[%s6963_s17 + $0x28] sm:$0x77] }
  0xfb   : > { %v6472_v49 = vpack.c.bf16 %v3303_v29, %v3269_v22  ;;  %v7832_v24 = vand.u32 3, %v986_v7  ;;  %v2319_v63 = vmul.f32 2.0, %v2287_v43  ;;  %v2343_v35 = vmul.f32 %v2287_v43, %v2287_v43 }
  0xfc   : > { %v976_v46 = vmul.f32 %v975_v34, %v973_v25  ;;  %v2335_v27 = vmul.f32 %v2311_v31, %v2311_v31  ;;  %v2855_v6 = vcombine.high %v2311_v31, %v2311_v31  ;;  %v2865_v55 = vrot.slane %v2311_v31, 5 }
  0xfd   : > { %6473 = vmatprep.subr.bf16.mxu0 %v6472_v49  ;;  %v2327_v0 = vmul.f32 %v2319_v63, %v2311_v31  ;;  %v7834_v2 = vshrl.u32 %v1009_v28, 5  ;;  %v7837_v52 = vsub.s32 32, %v7827_v54  ;;  %v7844_v22 = vmul.f32 %v7840_v15, %v7840_v15 }
  0xfe   : > { %v977_v7 = vxor.u32 2147483648, %v976_v46  ;;  %6475 = vmatpush1.bf16.msra.mxu0 %v6474_v5  ;;  %v2351_v42 = vsub.f32 %v2335_v27, %v2343_v35  ;;  %v2831_v34 = vcombine.high %v2287_v43, %v2287_v43  ;;  %v2866_v62 = vrot.slane %v2855_v6, 5 }
  0xff   : > { %v2359_v38 = vmul.f32 2.0, %v2327_v0  ;;  %v2383_v30 = vmul.f32 %v2327_v0, %v2327_v0  ;;  %v2903_v53 = vcombine.high %v2327_v0, %v2327_v0  ;;  %v2913_v12 = vrot.slane %v2327_v0, 2 }
 0x100   : > { %v978_v28 = vsel %vm895_vm7, %v977_v7, %v976_v46  ;;  %v2375_v59 = vmul.f32 %v2351_v42, %v2351_v42  ;;  %v2951_v11 = vcombine.high %v2351_v42, %v2351_v42  ;;  %v3319_v29 = vsel %vm3314_vm2, %v2287_v43, %v2865_v55 }
 0x101   : > { %v981_v25 = vsel %vm7744_vm8, %v7545_v37, %v978_v28  ;;  %v2367_v31 = vmul.f32 %v2359_v38, %v2351_v42  ;;  %v2914_v5 = vrot.slane %v2903_v53, 2  ;;  %v2961_v49 = vrot.slane %v2351_v42, 7 }
 0x102   : > { %6681 = vcosq.f32 %v981_v25  ;;  %v2391_v63 = vsub.f32 %v2375_v59, %v2383_v30  ;;  %v2962_v35 = vrot.slane %v2951_v11, 7  ;;  %v3320_v27 = vsel %vm3314_vm2, %v2831_v34, %v2866_v62 }
 0x103   : > { %6683 = vsinq.f32 %v981_v25  ;;  %v2999_v6 = vcombine.low %v2367_v31, %v2367_v31  ;;  %vm10229_vm3 = vcmask 1045504   ;;  %v3352_v0 = vsel %vm3229_vm14, %v2913_v12, %v2961_v49 }
 0x104   : > { %v3336_v46 = vsel %vm10229_vm3, %v3319_v29, %v2913_v12  ;;  %vm992_vm4 = vcmp.eq.s32.totalorder %v7832_v24, 2  ;;  %vm1820_vm7 = vcmp.eq.s32.totalorder %v7803_v21, 2  ;;  %v3023_v47 = vcombine.high %v2391_v63, %v2391_v63  ;;  %vm10230_vm0 = vmmov %vm10229_vm3 }
 0x105   : > { %v3353_v43 = vsel %vm3229_vm14, %v2914_v5, %v2962_v35  ;;  %v3033_v55 = vrot.slane %v2391_v63, 1  ;;  %v2399_v7 = vmul.f32 2.0, %v2367_v31  ;;  %vm989_vm8 = vcmp.eq.s32.totalorder %v7832_v24, 0  ;;  %vm10231_vm6 = vmmov %vm10230_vm0 }
 0x106   : > { %vm1817_vm9 = vcmp.eq.s32.totalorder %v7803_v21, 0  ;;  %v3369_v42 = vsel %vm3246_vm5, %v3353_v43, %v2367_v31  ;;  %v3368_v34 = vsel %vm3246_vm5, %v3352_v0, %v2999_v6  ;;  %v2415_v62 = vmul.f32 %v2391_v63, %v2391_v63  ;;  %vm10232_vm3 = vmmov %vm10230_vm0 }
 0x107   : > { %v2423_v38 = vmul.f32 %v2367_v31, %v2367_v31  ;;  %vm988_vm12 = vcmp.lt.s32.totalorder %v7832_v24, 2  ;;  %vm1816_vm15 = vcmp.lt.s32.totalorder %v7803_v21, 2  ;;  %v3034_v30 = vrot.slane %v3023_v47, 1 }
 0x108   : > { %v3337_v53 = vsel %vm10230_vm0, %v3320_v27, %v2914_v5  ;;  %v3384_v12 = vsel %vm3263_vm10, %v3368_v34, %v3033_v55  ;;  %v2407_v28 = vmul.f32 %v2399_v7, %v2391_v63  ;;  %vm985_vm1 = vweird.f32 %v7545_v37 }
 0x109   : > { %v6478_v59 = vpack.c.bf16 %v3384_v12, %v3336_v46  ;;  %v2431_v11 = vsub.f32 %v2415_v62, %v2423_v38  ;;  %v1014_v29 = vshll.u32 %v10213_v36, %v7827_v54  ;;  %v1015_v25 = vshrl.u32 %v10214_v18, %v7837_v52 }
 0x10a   : > { %v3385_v31 = vsel %vm3263_vm10, %v3369_v42, %v3034_v30  ;;  %v2439_v49 = vmul.f32 2.0, %v2407_v28  ;;  %v2463_v35 = vmul.f32 %v2407_v28, %v2407_v28  ;;  %v3071_v6 = vcombine.high %v2407_v28, %v2407_v28 }
 0x10b   : > { %v6476_v0 = vpack.c.bf16 %v3385_v31, %v3337_v53  ;;  %v2455_v5 = vmul.f32 %v2431_v11, %v2431_v11  ;;  %v3119_v27 = vcombine.high %v2431_v11, %v2431_v11  ;;  %v3081_v47 = vrot.slane %v2407_v28, 6 }
 0x10c   : > { %v2447_v63 = vmul.f32 %v2439_v49, %v2431_v11  ;;  %v3082_v43 = vrot.slane %v3071_v6, 6  ;;  %v7874_v46 = vshrl.u32 %v10213_v36, %v7837_v52  ;;  %v7878_v7 = vshll.u32 %v10214_v18, %v7827_v54  ;;  %v6682_v53 = vpop.eup %6681 }
 0x10d   : > { %6477 = vmatprep.subr.bf16.mxu0 %v6476_v0  ;;  %v2471_v34 = vsub.f32 %v2455_v5, %v2463_v35  ;;  %v3130_v42 = vrot.slane %v3119_v27, 3  ;;  %v3129_v62 = vrot.slane %v2431_v11, 3  ;;  %v3400_v38 = vsel %vm3280_vm11, %v3033_v55, %v3081_v47  ;;  %v6684_v6 = vpop.eup %6683 }
 0x10e   : > { %6479 = vmatpush1.bf16.msra.mxu0 %v6478_v59  ;;  %v2479_v12 = vmul.f32 2.0, %v2447_v63  ;;  %v2503_v28 = vmul.f32 %v2447_v63, %v2447_v63  ;;  %v3401_v31 = vsel %vm3280_vm11, %v3034_v30, %v3082_v43  ;;  %v7882_v49 = vor.u32 %v1015_v25, %v1014_v29 }
 0x10f   : > { %v993_v16 = vxor.u32 2147483648, %v6682_v53  ;;  %v2495_v33 = vmul.f32 %v2471_v34, %v2471_v34  ;;  %v3167_v10 = vcombine.high %v2447_v63, %v2447_v63  ;;  %v3191_v57 = vcombine.high %v2471_v34, %v2471_v34 }
 0x110   : > { %v990_v8 = vxor.u32 2147483648, %v6684_v6  ;;  %v2487_v0 = vmul.f32 %v2479_v12, %v2471_v34  ;;  %v7885_v35 = vsel %vm3297_vm13, %v3401_v31, %v3130_v42  ;;  %v3201_v11 = vrot.slane %v2471_v34, 5 }
 0x111   : > { %v994_v55 = vsel %vm992_vm4, %v993_v16, %v6684_v6  ;;  %v1822_v59 = vsel %vm1820_vm7, %v993_v16, %v6684_v6  ;;  %v2511_v30 = vsub.f32 %v2495_v33, %v2503_v28  ;;  %v3202_v29 = vrot.slane %v3191_v57, 5  ;;  %vm10233_vm4 = vmmov %vm10230_vm0 }
 0x112   : > { %v991_v25 = vsel %vm989_vm8, %v6682_v53, %v990_v8  ;;  %v1819_v5 = vsel %vm1817_vm9, %v6682_v53, %v990_v8  ;;  %v3454_v27 = vcombine.high %v2487_v0, %v2487_v0  ;;  %v7896_v47 = vsel %vm3297_vm13, %v3400_v38, %v3129_v62  ;;  %vm10234_vm7 = vmmov %vm10230_vm0 }
 0x113   : > { %v995_v43 = vsel %vm988_vm12, %v991_v25, %v994_v55  ;;  %v1823_v34 = vsel %vm1816_vm15, %v1819_v5, %v1822_v59  ;;  %v3478_v42 = vcombine.high %v2511_v30, %v2511_v30  ;;  %v3432_v33 = vsel %vm3314_vm2, %v2447_v63, %v3201_v11 }
 0x114   : > { %v996_v16 = vsel %vm985_vm1, nan, %v995_v43  ;;  %v1824_v57 = vsel %vm985_vm1, nan, %v1823_v34  ;;  %v3433_v8 = vsel %vm3314_vm2, %v3167_v10, %v3202_v29  ;;  %v3488_v53 = vrot.slane %v2511_v30, 5 }
 0x115   : > { %v2240_v62 = vmul.f32 2.0, %v996_v16  ;;  %v2256_v38 = vmul.f32 %v1824_v57, %v1824_v57  ;;  %v2264_v12 = vmul.f32 %v996_v16, %v996_v16  ;;  %v2688_v24 = vcombine.high %v1824_v57, %v1824_v57 }
 0x116   : > { %v3254_v21 = vsel %vm3246_vm5, %v7793_v44, %v996_v16  ;;  %v2664_v28 = vcombine.low %v996_v16, %v996_v16  ;;  %v2699_v31 = vrot.slane %v1824_v57, 1  ;;  %v3489_v6 = vrot.slane %v3478_v42, 5 }
 0x117   : > { %v2248_v63 = vmul.f32 %v2240_v62, %v1824_v57  ;;  %v2272_v11 = vsub.f32 %v2256_v38, %v2264_v12  ;;  %v2700_v55 = vrot.slane %v2688_v24, 1  ;;  %v7911_v59 = vsel %vm3314_vm2, %v2487_v0, %v3488_v53 }
 0x118   : > { %v3253_v37 = vsel %vm3246_vm5, %v7797_v19, %v2664_v28  ;;  %v3521_v10 = vsel %vm3314_vm2, %v3454_v27, %v3489_v6  ;;  %v3552_v30 = vrot.slane %v7911_v59, 2  ;;  %v1018_v29 = vshrl.u32 %v10215_v61, %v7837_v52 }
 0x119   : > { %v2736_v44 = vcombine.high %v2248_v63, %v2248_v63  ;;  %v2784_v25 = vcombine.high %v2272_v11, %v2272_v11  ;;  %v3271_v5 = vsel %vm3263_vm10, %v3254_v21, %v2700_v55  ;;  %v2747_v43 = vrot.slane %v2248_v63, 6 }
 0x11a   : > { %v2795_v34 = vrot.slane %v2272_v11, 3  ;;  %v3270_v42 = vsel %vm3263_vm10, %v3253_v37, %v2699_v31  ;;  %v2280_v0 = vmul.f32 2.0, %v2248_v63  ;;  %v2296_v16 = vmul.f32 %v2272_v11, %v2272_v11 }
 0x11b   : > { %v2748_v57 = vrot.slane %v2736_v44, 6  ;;  %v2796_v53 = vrot.slane %v2784_v25, 3  ;;  %v3287_v19 = vsel %vm3280_vm11, %v2699_v31, %v2747_v43  ;;  %v2304_v27 = vmul.f32 %v2248_v63, %v2248_v63 }
 0x11c   : > { %v3304_v62 = vsel %vm3297_vm13, %v3287_v19, %v2795_v34  ;;  %v2288_v38 = vmul.f32 %v2280_v0, %v2272_v11  ;;  %v3553_v12 = vrot.slane %v3521_v10, 2  ;;  %v3584_v24 = vsel %vm10231_vm6, %v3432_v33, %v3552_v30  ;;  %vm10237_vm6 = vmmov %vm10232_vm3 }
 0x11d   : > { %v3288_v21 = vsel %vm3280_vm11, %v2700_v55, %v2748_v57  ;;  %v6486_v28 = vpack.c.bf16 %v3304_v62, %v3270_v42  ;;  %v2312_v6 = vsub.f32 %v2296_v16, %v2304_v27  ;;  %v6482_v37 = vpack.c.bf16 %v3584_v24, %v7896_v47 }
 0x11e   : > { %v3305_v44 = vsel %vm3297_vm13, %v3288_v21, %v2796_v53  ;;  %v2320_v25 = vmul.f32 2.0, %v2288_v38  ;;  %v2344_v13 = vmul.f32 %v2288_v38, %v2288_v38  ;;  %v2832_v31 = vcombine.high %v2288_v38, %v2288_v38 }
 0x11f   : > { %v6484_v63 = vpack.c.bf16 %v3305_v44, %v3271_v5  ;;  %v2336_v43 = vmul.f32 %v2312_v6, %v2312_v6  ;;  %v2856_v34 = vcombine.high %v2312_v6, %v2312_v6  ;;  %v2867_v11 = vrot.slane %v2312_v6, 5 }
 0x120   : > { %v2328_v10 = vmul.f32 %v2320_v25, %v2312_v6  ;;  %v3585_v0 = vsel %vm10232_vm3, %v3433_v8, %v3553_v12  ;;  %v1020_v33 = vshll.u32 %v10215_v61, %v7827_v54  ;;  %v1021_v55 = vshrl.u32 %v10205_v58, %v7837_v52 }
 0x121   : > { %6485 = vmatprep.subr.bf16.mxu1 %v6484_v63  ;;  %v2352_v47 = vsub.f32 %v2336_v43, %v2344_v13  ;;  %v2868_v42 = vrot.slane %v2856_v34, 5  ;;  %v3321_v16 = vsel %vm3314_vm2, %v2288_v38, %v2867_v11  ;;  %v6480_v57 = vpack.c.bf16 %v3585_v0, %v7885_v35 }
 0x122   : > { %6487 = vmatpush1.bf16.msra.mxu1 %v6486_v28  ;;  %v2360_v5 = vmul.f32 2.0, %v2328_v10  ;;  %v2384_v53 = vmul.f32 %v2328_v10, %v2328_v10  ;;  %v2904_v19 = vcombine.high %v2328_v10, %v2328_v10  ;;  %v2915_v27 = vrot.slane %v2328_v10, 2 }
 0x123   : > { %v2376_v62 = vmul.f32 %v2352_v47, %v2352_v47  ;;  %v2952_v8 = vcombine.high %v2352_v47, %v2352_v47  ;;  %v2963_v24 = vrot.slane %v2352_v47, 7  ;;  %6481 = vmatprep.subr.bf16.mxu0 %v6480_v57  ;;  %v7937_v21 = vor.u32 %v1018_v29, %v7878_v7 }
 0x124   : > { %v2368_v6 = vmul.f32 %v2360_v5, %v2352_v47  ;;  %v2916_v44 = vrot.slane %v2904_v19, 2  ;;  %v3322_v13 = vsel %vm3314_vm2, %v2832_v31, %v2868_v42  ;;  %v3338_v38 = vsel %vm10233_vm4, %v3321_v16, %v2915_v27  ;;  %6483 = vmatpush1.bf16.msra.mxu0 %v6482_v37 }
 0x125   : > { %v2392_v35 = vsub.f32 %v2376_v62, %v2384_v53  ;;  %v2964_v28 = vrot.slane %v2952_v8, 7  ;;  %v3354_v25 = vsel %vm3229_vm14, %v2915_v27, %v2963_v24  ;;  %6306 = vmatprep.subr.msk.mxu0 %vm3246_vm5, %v3553_v12  ;;  %v7943_v63 = vor.u32 %v1021_v55, %v1020_v33 }
 0x126   : > { %v3000_v43 = vcombine.low %v2368_v6, %v2368_v6  ;;  %v2400_v34 = vmul.f32 2.0, %v2368_v6  ;;  %v2424_v11 = vmul.f32 %v2368_v6, %v2368_v6  ;;  %v1023_v7 = vshll.u32 %v10205_v58, %v7827_v54 }
 0x127   : > { %v3024_v29 = vcombine.high %v2392_v35, %v2392_v35  ;;  %v3355_v31 = vsel %vm3229_vm14, %v2916_v44, %v2964_v28  ;;  %v3035_v10 = vrot.slane %v2392_v35, 1  ;;  %v2416_v0 = vmul.f32 %v2392_v35, %v2392_v35 }
 0x128   : > { %v3339_v37 = vsel %vm10234_vm7, %v3322_v13, %v2916_v44  ;;  %v3371_v47 = vsel %vm3246_vm5, %v3355_v31, %v2368_v6  ;;  %v3370_v42 = vsel %vm3246_vm5, %v3354_v25, %v3000_v43  ;;  %v2408_v12 = vmul.f32 %v2400_v34, %v2392_v35  ;;  %6307 = vmatpush1.msk.msra.mxu0 %vm3246_vm5, %v3552_v30 }
 0x129   : > { %v3036_v33 = vrot.slane %v3024_v29, 1  ;;  %v3386_v55 = vsel %vm3263_vm10, %v3370_v42, %v3035_v10  ;;  %v2432_v16 = vsub.f32 %v2416_v0, %v2424_v11  ;;  %vm10235_vm8 = vcmask 424960  }
 0x12a   : > { %6308 = vmatmul.mubr.msk.f32.vlgmr.msra.gmra.mrb[4].mxu0 %vm10235_vm8, %v7675_v40  ;;  %v1024_v57 = vshrl.u32 %v10206_v1, %v7837_v52  ;;  %v6490_v5 = vpack.c.bf16 %v3386_v55, %v3338_v38  ;;  %v2440_v53 = vmul.f32 2.0, %v2408_v12  ;;  %v2464_v19 = vmul.f32 %v2408_v12, %v2408_v12  ;;  %vm10236_vm9 = vmmov %vm10235_vm8 }
 0x12b   : > { %v3072_v27 = vcombine.high %v2408_v12, %v2408_v12  ;;  %3873 = vmatprep.mubr.f32.mxu0 %v10222_v51  ;;  %v3387_v59 = vsel %vm3263_vm10, %v3371_v47, %v3036_v33  ;;  %v2456_v62 = vmul.f32 %v2432_v16, %v2432_v16  ;;  %v3120_v30 = vcombine.high %v2432_v16, %v2432_v16  ;;  %vm10239_vm7 = vmmov %vm10235_vm8 }
 0x12c   : > { %v3083_v8 = vrot.slane %v2408_v12, 6  ;;  %v6488_v24 = vpack.c.bf16 %v3387_v59, %v3339_v37  ;;  %v2448_v6 = vmul.f32 %v2440_v53, %v2432_v16  ;;  %v3131_v13 = vrot.slane %v2432_v16, 3 }
 0x12d   : > { %v3084_v44 = vrot.slane %v3072_v27, 6  ;;  %v2472_v35 = vsub.f32 %v2456_v62, %v2464_v19  ;;  %v3132_v28 = vrot.slane %v3120_v30, 3  ;;  %v1026_v38 = vshll.u32 %v10206_v1, %v7827_v54 }
 0x12e   : > { %v3402_v25 = vsel %vm3280_vm11, %v3035_v10, %v3083_v8  ;;  %6309 = vmatmul.mubr.msk.f32.gmra.mrb[6].mxu0 %vm10236_vm9, %v7703_v56  ;;  %6489 = vmatprep.subr.bf16.mxu1 %v6488_v24  ;;  %v2480_v43 = vmul.f32 2.0, %v2448_v6  ;;  %v2504_v34 = vmul.f32 %v2448_v6, %v2448_v6  ;;  %v1025_v29 = vor.u32 %v1024_v57, %v1023_v7  ;;  %vm10241_vm9 = vmmov %vm10239_vm7 }
 0x12f   : > { %v3403_v11 = vsel %vm3280_vm11, %v3036_v33, %v3084_v44  ;;  %4021 = vmatprep.mubr.f32.mxu0 %v10222_v51  ;;  %6491 = vmatpush1.bf16.msra.mxu1 %v6490_v5  ;;  %v2496_v31 = vmul.f32 %v2472_v35, %v2472_v35  ;;  %v3168_v0 = vcombine.high %v2448_v6, %v2448_v6  ;;  %v3203_v47 = vrot.slane %v2472_v35, 5 }
 0x130   : > { %v3192_v37 = vcombine.high %v2472_v35, %v2472_v35  ;;  %v2488_v10 = vmul.f32 %v2480_v43, %v2472_v35  ;;  %v3419_v42 = vsel %vm3297_vm13, %v3403_v11, %v3132_v28  ;;  %v3418_v54 = vsel %vm3297_vm13, %v3402_v25, %v3131_v13 }
 0x131   : > { %v1027_v12 = vshrl.u32 %v10207_v23, %v7837_v52  ;;  %v2512_v55 = vsub.f32 %v2496_v31, %v2504_v34  ;;  %v3434_v33 = vsel %vm3314_vm2, %v2448_v6, %v3203_v47  ;;  %vm1029_vm12 = vcmp.lt.s32.totalorder %v7834_v2, 1 }
 0x132   : > { %v3204_v16 = vrot.slane %v3192_v37, 5  ;;  %vm1030_vm15 = vcmp.lt.s32.totalorder %v7834_v2, 2  ;;  %vm1031_vm0 = vcmp.lt.s32.totalorder %v7834_v2, 3  ;;  %vm1032_vm1 = vcmp.lt.s32.totalorder %v7834_v2, 4 }
 0x133   : > { %v1028_v7 = vor.u32 %v1027_v12, %v1026_v38  ;;  %v3455_v57 = vcombine.high %v2488_v10, %v2488_v10  ;;  %v3479_v5 = vcombine.high %v2512_v55, %v2512_v55  ;;  %v3490_v53 = vrot.slane %v2512_v55, 5 }
 0x134   : > { %v1033_v19 = vsel %vm1029_vm12, %v7874_v46, %v7882_v49  ;;  %v1034_v52 = vsel %vm1032_vm1, %v7943_v63, 2102212464  ;;  %v1037_v27 = vsel %vm1029_vm12, %v7882_v49, %v7937_v21  ;;  %v1038_v59 = vsel %vm1032_vm1, %v1025_v29, 920167782 }
 0x135   : > { %v1041_v62 = vsel %vm1029_vm12, %v7937_v21, %v7943_v63  ;;  %v3491_v30 = vrot.slane %v3479_v5, 5  ;;  %v3522_v8 = vsel %vm3314_vm2, %v2488_v10, %v3490_v53  ;;  %v1035_v46 = vsel %vm1031_vm0, %v7937_v21, %v1034_v52 }
 0x136   : > { %v1039_v24 = vsel %vm1031_vm0, %v7943_v63, %v1038_v59  ;;  %v3435_v6 = vsel %vm3314_vm2, %v3168_v0, %v3204_v16  ;;  %v3554_v49 = vrot.slane %v3522_v8, 2  ;;  %v1042_v13 = vsel %vm1032_vm1, %v1028_v7, 1326507024 }
 0x137   : > { %v1040_v44 = vsel %vm1030_vm15, %v1037_v27, %v1039_v24  ;;  %v3523_v35 = vsel %vm3314_vm2, %v3455_v57, %v3491_v30  ;;  %v1043_v28 = vsel %vm1031_vm0, %v1025_v29, %v1042_v13  ;;  %v1036_v43 = vsel %vm1030_vm15, %v1033_v19, %v1035_v46 }
 0x138   : > { %v8004_v21 = vmul.u32.u64.low %v7829_v26, %v1040_v44  ;;  %v8005_v25 = vmul.u32.u64.high %v7829_v26, %v1040_v44, %v8004_v21  ;;  %v3555_v63 = vrot.slane %v3523_v35, 2  ;;  %v3586_v38 = vsel %vm10237_vm6, %v3434_v33, %v3554_v49 }
 0x139   : > { %v1044_v34 = vsel %vm1030_vm15, %v1041_v62, %v1043_v28  ;;  %v432_v11 = vrot.slane %v7823_v45, %v7058_v41  ;;  %v6223_v0 = vrot.slane %v7844_v22, 9  ;;  %v6494_v47 = vpack.c.bf16 %v3586_v38, %v3418_v54 }
 0x13a   : > { %v8016_v31 = vmul.u32.u64.low %v7829_v26, %v1044_v34  ;;  %v8017_v29 = vmul.u32.u64.high %v7829_v26, %v1044_v34, %v8016_v31  ;;  %v3587_v37 = vsel %vm10232_vm3, %v3435_v6, %v3555_v63  ;;  %v5590_v10 = vmul.f32 %v7717_v32, %v7066_v50 }
 0x13b   : > { %v10238_v12 = vrot.slane %v6986_v9, 4  ;;  %v6492_v55 = vpack.c.bf16 %v3587_v37, %v3419_v42  ;;  %v436_v16 = vrot.slane %v7823_v45, %v7074_v60  ;;  %v1052_v33 = vmul.u32 %v7829_v26, %v1036_v43 }
 0x13c   : > { %v1055_v7 = vadd.s32 1, %v8005_v25  ;;  %v6386_v57 = vrot.slane %v5590_v10, 9  ;;  %vm1054_vm4 = vc.u32 %v8017_v29, %v8004_v21  ;;  %v330_v54 = vadd.f32 %v6223_v0, %v7844_v22 }
 0x13d   : > { %v5603_v2 = vmul.f32 %v7066_v50, %v10238_v12  ;;  %6493 = vmatprep.subr.bf16.mxu1 %v6492_v55  ;;  %v512_v9 = vrot.slane %v432_v11, %v7058_v41  ;;  %v516_v53 = vrot.slane %v436_v16, %v7058_v41  ;;  %v6387_v19 = vrot.slane %v5590_v10, 10 }
 0x13e   : > { %6495 = vmatpush1.bf16.msra.mxu1 %v6494_v47  ;;  %v1056_v42 = vsel %vm1054_vm4, %v1055_v7, %v8005_v25  ;;  %v6231_v52 = vrot.slane %v7844_v22, 10  ;;  %v5595_v27 = vadd.f32 %v6386_v57, %v5590_v10  ;;  %v1104_v30 = vand.u32 2139095040, %v7840_v15 }
 0x13f   : > { %v6388_v5 = vrot.slane %v5603_v2, 9  ;;  %6310 = vmatprep.subr.msk.mxu1 %vm3246_vm5, %v3555_v63  ;;  %v1057_v26 = vadd.s32 %v1056_v42, %v1052_v33  ;;  %v6389_v62 = vrot.slane %v5603_v2, 10  ;;  %v10160_v24 = vand.u32 2147483647, %v7840_v15 }
 0x140   : > { %v8039_v46 = vadd.f32 %v6231_v52, %v330_v54  ;;  %v1105_v6 = vshrl.u32 %v1104_v30, 23  ;;  %v561_v44 = vcombine.low %v512_v9, %v516_v53  ;;  %v5599_v28 = vadd.f32 %v6387_v19, %v5595_v27 }
 0x141   : > { %v5608_v59 = vadd.f32 %v6388_v5, %v5603_v2  ;;  %v1058_v8 = vadd.s32 536870912, %v1057_v26  ;;  %v1108_v43 = vand.u32 8388607, %v10160_v24  ;;  %vm999_vm8 = vcmp.lt.s32.totalorder %v7717_v32, 0 }
 0x142   : > { %6311 = vmatpush1.msk.msra.mxu1 %vm3246_vm5, %v3554_v49  ;;  %v370_v35 = vadd.f32 1e-16, %v8039_v46  ;;  %v6254_v63 = vadd.s32 4294967169, %v1105_v6  ;;  %v8051_v49 = vmul.f32 %v7823_v45, %v7772_v3  ;;  %v8055_v11 = vmul.f32 %v7717_v32, %v561_v44 }
 0x143   : > { %6312 = vmatmul.mubr.msk.f32.vlgmr.msra.gmra.mrb[4].mxu1 %vm10239_vm7, %v7675_v40  ;;  %v1059_v13 = vshrl.u32 %v1058_v8, 30  ;;  %v5612_v25 = vadd.f32 %v6389_v62, %v5608_v59  ;;  %v4936_v40 = vrot.slane %v7721_v48, 4  ;;  %v8062_v0 = vmul.f32 2.0, %v5599_v28 }
 0x144   : > { %3950 = vmatprep.mubr.f32.mxu1 %v10222_v51  ;;  %6685 = vrsqrt.f32 %v370_v35  ;;  %v1111_v34 = vadd.s32 1, %v6254_v63  ;;  %10240 = vst [vmem:[#allocation17_spill] sm:$0xff] %v8055_v11  ;;  %v5615_v47 = vrot.slane %v7772_v3, 4  ;;  %v1109_v10 = vor.u32 8388608, %v1108_v43 }
 0x145   : > { %v1060_v38 = vshll.u32 %v1059_v13, 30  ;;  %v5613_v37 = vmul.f32 2.0, %v5612_v25  ;;  %v8069_v2 = vmul.f32 %v7840_v15, %v7066_v50  ;;  %v1083_v55 = vsub.s32 4, %v1059_v13 }
 0x146   : > { %vm1112_vm12 = vcmp.gt.s32.totalorder %v1111_v34, 0  ;;  %v8074_v16 = vadd.f32 %v4936_v40, %v7721_v48  ;;  %v1053_v7 = vadd.s32 %v8004_v21, %v8017_v29  ;;  %v2617_v5 = vcombine.high %v8055_v11, %v8055_v11 }
 0x147   : > { %v8058_v31 = vsub.s32 %v1057_v26, %v1060_v38  ;;  %6313 = vmatmul.mubr.msk.f32.gmra.mrb[6].mxu1 %vm10241_vm9, %v7703_v56  ;;  %v1113_v12 = vsel %vm1112_vm12, %v1111_v34, 0  ;;  %v2564_v56 = vrot.slane %v8051_v49, %v7074_v60  ;;  %v4939_v54 = vrot.slane %v7844_v22, 4 }
 0x148   : > { %4098 = vmatprep.mubr.f32.mxu1 %v10222_v51  ;;  %v1115_v33 = vand.u32 31, %v1113_v12  ;;  %v5601_v9 = vsub.f32 %v7772_v3, %v8062_v0  ;;  %v8084_v42 = vsub.f32 %v5615_v47, %v5613_v37  ;;  %v10242_v48 = vrot.slane %v6992_v14, 4 }
 0x149   : > { %v1063_v45 = vsub.s32 0, %v8058_v31  ;;  %v8092_v29 = vshll.u32 %v1109_v10, 8  ;;  %v6390_v52 = vrot.slane %v8069_v2, 9  ;;  %v1084_v27 = vsel %vm999_vm8, %v1083_v55, %v1059_v13 }
 0x14a   : > { %v1116_v53 = vsub.s32 32, %v1115_v33  ;;  %v8089_v26 = vmul.f32 %v7066_v50, %v10242_v48  ;;  %v1118_v21 = vshll.u32 %v10213_v36, %v1115_v33  ;;  %v1121_v62 = vshll.u32 %v10214_v18, %v1115_v33 }
 0x14b   : > { %v6251_v57 = vmin.u32 %v1063_v45, %v8058_v31  ;;  %v1114_v6 = vshrl.u32 %v1113_v12, 5  ;;  %v1127_v44 = vshll.u32 %v10205_v58, %v1115_v33  ;;  %v1124_v25 = vshll.u32 %v10215_v61, %v1115_v33 }
 0x14c   : > { %v1119_v59 = vshrl.u32 %v10214_v18, %v1116_v53  ;;  %v1122_v30 = vshrl.u32 %v10215_v61, %v1116_v53  ;;  %v1128_v35 = vshrl.u32 %v10206_v1, %v1116_v53  ;;  %v1125_v13 = vshrl.u32 %v10205_v58, %v1116_v53 }
 0x14d   : > { %v1065_v19 = vclz %v6251_v57  ;;  %v6392_v63 = vrot.slane %v8089_v26, 9  ;;  %v1117_v43 = vshrl.u32 %v10213_v36, %v1116_v53  ;;  %v1130_v45 = vshll.u32 %v10206_v1, %v1115_v33 }
 0x14e   : > { %v8100_v14 = vpop.eup %6685  ;;  %v1120_v40 = vor.u32 %v1119_v59, %v1118_v21  ;;  %v1123_v37 = vor.u32 %v1122_v30, %v1121_v62  ;;  %v1129_v47 = vor.u32 %v1128_v35, %v1127_v44  ;;  %v1131_v57 = vshrl.u32 %v10207_v23, %v1116_v53 }
 0x14f   : > { %v6252_v8 = vadd.s32 4294967294, %v1065_v19  ;;  %v440_v28 = vrot.slane %v8100_v14, %v7058_v41  ;;  %v444_v38 = vrot.slane %v8100_v14, %v7074_v60  ;;  %v10243_v48 = vand.u32 2147483647, %v7717_v32 }
 0x150   : > { %v1126_v21 = vor.u32 %v1125_v13, %v1124_v25  ;;  %vm1133_vm1 = vcmp.lt.s32.totalorder %v1114_v6, 1  ;;  %vm1135_vm6 = vcmp.lt.s32.totalorder %v1114_v6, 3  ;;  %v1132_v33 = vor.u32 %v1131_v57, %v1130_v45 }
 0x151   : > { %vm6253_vm15 = vcmp.lt.s32.totalorder %v6252_v8, 0  ;;  %vm8117_vm0 = vcmp.le.f32.partialorder %v10243_v48, 0.7853982  ;;  %v520_v24 = vrot.slane %v440_v28, %v7058_v41  ;;  %vm1136_vm3 = vcmp.lt.s32.totalorder %v1114_v6, 4 }
 0x152   : > { %v1068_v34 = vsel %vm6253_vm15, 0, %v6252_v8  ;;  %vm1134_vm4 = vcmp.lt.s32.totalorder %v1114_v6, 2  ;;  %v1138_v30 = vsel %vm1136_vm3, %v1126_v21, 2102212464  ;;  %v1141_v53 = vsel %vm1133_vm1, %v1120_v40, %v1123_v37 }
 0x153   : > { %v1069_v10 = vsub.s32 32, %v1068_v34  ;;  %v1070_v12 = vshll.u32 %v8058_v31, %v1068_v34  ;;  %v1073_v55 = vsub.s32 4294967266, %v1068_v34  ;;  %v1137_v31 = vsel %vm1133_vm1, %v1117_v43, %v1120_v40 }
 0x154   : > { %v1139_v35 = vsel %vm1135_vm6, %v1123_v37, %v1138_v30  ;;  %v1142_v34 = vsel %vm1136_vm3, %v1129_v47, 920167782  ;;  %v524_v28 = vrot.slane %v444_v38, %v7058_v41  ;;  %v1146_v13 = vsel %vm1136_vm3, %v1132_v33, 1326507024 }
 0x155   : > { %v1071_v59 = vshrl.u32 %v1053_v7, %v1069_v10  ;;  %v1074_v62 = vadd.s32 127, %v1073_v55  ;;  %v1143_v25 = vsel %vm1135_vm6, %v1126_v21, %v1142_v34  ;;  %v1145_v7 = vsel %vm1133_vm1, %v1123_v37, %v1126_v21 }
 0x156   : > { %v1144_v55 = vsel %vm1134_vm4, %v1141_v53, %v1143_v25  ;;  %v1147_v43 = vsel %vm1135_vm6, %v1129_v47, %v1146_v13  ;;  %v1140_v40 = vsel %vm1134_vm4, %v1137_v31, %v1139_v35  ;;  %v2630_v37 = vrot.slane %v2617_v5, 7 }
 0x157   : > { %v1072_v8 = vor.u32 %v1071_v59, %v1070_v12  ;;  %v1075_v44 = vshll.u32 %v1074_v62, 23  ;;  %v1148_v12 = vsel %vm1134_vm4, %v1145_v7, %v1147_v43  ;;  %v8148_v6 = vadd.f32 %v5601_v9, %v7135_v39 }
 0x158   : > { %v8133_v57 = vmul.u32.u64.low %v8092_v29, %v1144_v55  ;;  %v8134_v48 = vmul.u32.u64.high %v8092_v29, %v1144_v55, %v8133_v57  ;;  %v8141_v21 = vmul.u32.u64.low %v8092_v29, %v1148_v12  ;;  %v8142_v59 = vmul.u32.u64.high %v8092_v29, %v1148_v12, %v8141_v21 }
 0x159   : > { %v1076_v45 = vor.u32 4788187, %v1075_v44  ;;  %v1079_v10 = vcvt.s32.f32 %v1072_v8  ;;  %v8152_v47 = vadd.f32 %v8084_v42, %v7135_v39  ;;  %v4941_v62 = vadd.f32 %v4939_v54, %v7844_v22 }
 0x15a   : > { %v6391_v5 = vrot.slane %v8069_v2, 10  ;;  %v1086_v31 = vsel %vm8117_vm0, 0, %v1084_v27  ;;  %v562_v30 = vcombine.low %v520_v24, %v524_v28  ;;  %v1156_v3 = vmul.u32 %v8092_v29, %v1140_v40  ;;  %v8196_v28 = vld [vmem:[%s6963_s17 + $0x30] sm:$0x77] }
 0x15b   : > { %v1077_v38 = vand.u32 2147483647, %v1076_v45  ;;  %v1159_v0 = vadd.s32 1, %v8134_v48  ;;  %v5624_v9 = vadd.f32 %v6390_v52, %v8069_v2  ;;  %v5637_v42 = vadd.f32 %v6392_v63, %v8089_v26  ;;  %v8185_v63 = vld [vmem:[%s6963_s17 + $0x20] sm:$0x77] }
 0x15c   : > { %v6393_v22 = vrot.slane %v8089_v26, 10  ;;  %vm1158_vm7 = vc.u32 %v8142_v59, %v8133_v57  ;;  %v1090_v53 = vadd.s32 3, %v1086_v31  ;;  %v8173_v24 = vsel %vm3229_vm14, %v2564_v56, %v2630_v37 }
 0x15d   : > { %v1080_v33 = vmul.f32 %v1079_v10, %v1077_v38  ;;  %v1160_v29 = vsel %vm1158_vm7, %v1159_v0, %v8134_v48  ;;  %v8179_v52 = vmul.f32 %v7840_v15, %v562_v30  ;;  %v8182_v27 = vadd.f32 %v4941_v62, %v8074_v16 }
 0x15e   : > { %v1161_v26 = vadd.s32 %v1160_v29, %v1156_v3  ;;  %v5628_v44 = vadd.f32 %v6391_v5, %v5624_v9  ;;  %v5641_v35 = vadd.f32 %v6393_v22, %v5637_v42  ;;  %v8192_v32 = vand.u32 3, %v1086_v31 }
 0x15f   : > { %v1081_v54 = vxor.u32 2147483648, %v1080_v33  ;;  %10246 = vst [vmem:[#allocation18_spill] sm:$0xff] %v8179_v52  ;;  %v8200_v16 = vmul.f32 %v8196_v28, %v8196_v28  ;;  %v8202_v19 = vand.u32 3, %v1090_v53  ;;  %v386_v25 = vmul.f32 %v8100_v14, %v8039_v46 }
 0x160   : > { %v1162_v34 = vadd.s32 536870912, %v1161_v26  ;;  %v10161_v7 = vand.u32 2147483647, %v8196_v28  ;;  %v2618_v45 = vcombine.high %v8179_v52, %v8179_v52  ;;  %v5644_v10 = vrot.slane %v8039_v46, 4 }
 0x161   : > { %v1082_v2 = vsel %vm999_vm8, %v1081_v54, %v1080_v33  ;;  %vm1103_vm8 = vcmp.lt.s32.totalorder %v7840_v15, 0  ;;  %v6224_v55 = vrot.slane %v8200_v16, 9  ;;  %v10247_v43 = vand.u32 2147483647, %v7840_v15 }
 0x162   : > { %v1085_v8 = vsel %vm8117_vm0, %v8185_v63, %v1082_v2  ;;  %v1163_v13 = vshrl.u32 %v1162_v34, 30  ;;  %v5629_v12 = vmul.f32 2.0, %v5628_v44  ;;  %v5642_v48 = vmul.f32 2.0, %v5641_v35 }
 0x163   : > { %6687 = vcosq.f32 %v1085_v8  ;;  %vm8213_vm9 = vcmp.le.f32.partialorder %v10247_v43, 0.7853982  ;;  %v6232_v14 = vrot.slane %v8200_v16, 10  ;;  %v1208_v38 = vand.u32 2139095040, %v8196_v28 }
 0x164   : > { %6689 = vsinq.f32 %v1085_v8  ;;  %vm1919_vm12 = vcmp.lt.s32.totalorder %v8192_v32, 2  ;;  %vm1920_vm15 = vcmp.eq.s32.totalorder %v8192_v32, 0  ;;  %vm1923_vm0 = vcmp.eq.s32.totalorder %v8192_v32, 2 }
 0x165   : > { %v1164_v37 = vshll.u32 %v1163_v13, 30  ;;  %v331_v21 = vadd.f32 %v6224_v55, %v8200_v16  ;;  %vm1089_vm1 = vweird.f32 %v8185_v63  ;;  %v1187_v62 = vsub.s32 4, %v1163_v13 }
 0x166   : > { %v2572_v5 = vrot.slane %v386_v25, %v7074_v60  ;;  %v1209_v33 = vshrl.u32 %v1208_v38, 23  ;;  %v1212_v31 = vand.u32 8388607, %v10161_v7  ;;  %v2632_v3 = vrot.slane %v2618_v45, 7 }
 0x167   : > { %v8227_v30 = vsub.s32 %v1161_v26, %v1164_v37  ;;  %v2560_v0 = vrot.slane %v8051_v49, %v7058_v41  ;;  %v2629_v9 = vrot.slane %v8055_v11, 7  ;;  %vm1092_vm6 = vcmp.lt.s32.totalorder %v8202_v19, 2 }
 0x168   : > { %v5630_v42 = vsub.f32 %v8039_v46, %v5629_v12  ;;  %v5646_v22 = vsub.f32 %v5644_v10, %v5642_v48  ;;  %v8234_v54 = vadd.f32 %v6232_v14, %v331_v21  ;;  %vm1093_vm3 = vcmp.eq.s32.totalorder %v8202_v19, 0 }
 0x169   : > { %vm1096_vm4 = vcmp.eq.s32.totalorder %v8202_v19, 2  ;;  %v1167_v53 = vsub.s32 0, %v8227_v30  ;;  %v6258_v29 = vadd.s32 4294967169, %v1209_v33  ;;  %v1188_v2 = vsel %vm1103_vm8, %v1187_v62, %v1163_v13 }
 0x16a   : > { %v2568_v49 = vrot.slane %v386_v25, %v7058_v41  ;;  %v2631_v26 = vrot.slane %v8179_v52, 7  ;;  %v1213_v8 = vor.u32 8388608, %v1212_v31  ;;  %v1157_v46 = vadd.s32 %v8133_v57, %v8142_v59  ;;  %v8275_v31 = vld [vmem:[%s6963_s17 + $0x38] sm:$0x77] }
 0x16b   : > { %v6255_v35 = vmin.u32 %v1167_v53, %v8227_v30  ;;  %v8247_v34 = vsel %vm3229_vm14, %v2572_v5, %v2632_v3  ;;  %v3238_v45 = vsel %vm3229_vm14, %v2560_v0, %v2629_v9  ;;  %v8251_v13 = vadd.f32 %v5630_v42, %v7135_v39 }
 0x16c   : > { %v8254_v25 = vadd.f32 %v5646_v22, %v7135_v39  ;;  %v371_v43 = vadd.f32 1e-16, %v8234_v54  ;;  %v8259_v59 = vsel %vm8213_vm9, 0, %v1188_v2  ;;  %v1215_v48 = vadd.s32 1, %v6258_v29 }
 0x16d   : > { %v6688_v44 = vpop.eup %6687  ;;  %v1169_v57 = vclz %v6255_v35  ;;  %v8266_v37 = vsel %vm3229_vm14, %v2568_v49, %v2631_v26  ;;  %v8268_v21 = vshll.u32 %v1213_v8, 8  ;;  %v8279_v3 = vmul.f32 %v8275_v31, %v8275_v31 }
 0x16e   : > { %v6690_v10 = vpop.eup %6689  ;;  %v1097_v55 = vxor.u32 2147483648, %v6688_v44  ;;  %v1194_v42 = vadd.s32 3, %v8259_v59  ;;  %6691 = vrsqrt.f32 %v371_v43 }
 0x16f   : > { %v1094_v12 = vxor.u32 2147483648, %v6690_v10  ;;  %v6256_v33 = vadd.s32 4294967294, %v1169_v57 }
 0x170   : > { %v1098_v14 = vsel %vm1096_vm4, %v1097_v55, %v6690_v10  ;;  %v1925_v38 = vsel %vm1923_vm0, %v1097_v55, %v6690_v10  ;;  %v8305_v52 = vand.u32 3, %v1194_v42 }
 0x171   : > { %v1095_v62 = vsel %vm1093_vm3, %v6688_v44, %v1094_v12  ;;  %v1922_v5 = vsel %vm1920_vm15, %v6688_v44, %v1094_v12  ;;  %vm6257_vm7 = vcmp.lt.s32.totalorder %v6256_v33, 0  ;;  %vm1216_vm15 = vcmp.gt.s32.totalorder %v1215_v48, 0 }
 0x172   : > { %v1099_v0 = vsel %vm1092_vm6, %v1095_v62, %v1098_v14  ;;  %v1926_v9 = vsel %vm1919_vm12, %v1922_v5, %v1925_v38  ;;  %v1172_v32 = vsel %vm6257_vm7, 0, %v6256_v33  ;;  %v8295_v14 = vsel %vm1216_vm15, %v1215_v48, 0 }
 0x173   : > { %v1100_v22 = vsel %vm1089_vm1, nan, %v1099_v0  ;;  %v1927_v53 = vsel %vm1089_vm1, nan, %v1926_v9  ;;  %v1173_v43 = vsub.s32 32, %v1172_v32  ;;  %v1174_v12 = vshll.u32 %v8227_v30, %v1172_v32 }
 0x174   : > { %v2241_v29 = vmul.f32 2.0, %v1100_v22  ;;  %v2257_v2 = vmul.f32 %v1927_v53, %v1927_v53  ;;  %v2265_v49 = vmul.f32 %v1100_v22, %v1100_v22  ;;  %v2689_v26 = vcombine.high %v1927_v53, %v1927_v53 }
 0x175   : > { %v3256_v19 = vsel %vm3246_vm5, %v8173_v24, %v1100_v22  ;;  %v2665_v8 = vcombine.low %v1100_v22, %v1100_v22  ;;  %v2701_v44 = vrot.slane %v1927_v53, 1  ;;  %v1177_v63 = vsub.s32 4294967266, %v1172_v32 }
 0x176   : > { %v2249_v35 = vmul.f32 %v2241_v29, %v1927_v53  ;;  %v2273_v10 = vsub.f32 %v2257_v2, %v2265_v49  ;;  %v2702_v55 = vrot.slane %v2689_v26, 1  ;;  %v1175_v24 = vshrl.u32 %v1157_v46, %v1173_v43 }
 0x177   : > { %v3255_v57 = vsel %vm3246_vm5, %v3238_v45, %v2665_v8  ;;  %v1178_v33 = vadd.s32 127, %v1177_v63  ;;  %vm10250_vm12 = vcmask 1045504   ;;  %vm1200_vm1 = vcmp.eq.s32.totalorder %v8305_v52, 2 }
 0x178   : > { %v2737_v38 = vcombine.high %v2249_v35, %v2249_v35  ;;  %v2785_v62 = vcombine.high %v2273_v10, %v2273_v10  ;;  %v3273_v5 = vsel %vm3263_vm10, %v3256_v19, %v2702_v55  ;;  %v2749_v0 = vrot.slane %v2249_v35, 6  ;;  %v8300_v32 = vpop.eup %6691  ;;  %vm10252_vm0 = vmmov %vm10250_vm12 }
 0x179   : > { %v2797_v9 = vrot.slane %v2273_v10, 3  ;;  %v3272_v22 = vsel %vm3263_vm10, %v3255_v57, %v2701_v44  ;;  %v1176_v2 = vor.u32 %v1175_v24, %v1174_v12  ;;  %v2281_v30 = vmul.f32 2.0, %v2249_v35  ;;  %vm10253_vm15 = vmmov %vm10252_vm0 }
 0x17a   : > { %v2750_v53 = vrot.slane %v2737_v38, 6  ;;  %v2798_v29 = vrot.slane %v2785_v62, 3  ;;  %v1179_v49 = vshll.u32 %v1178_v33, 23  ;;  %v3289_v45 = vsel %vm3280_vm11, %v2701_v44, %v2749_v0 }
 0x17b   : > { %v2297_v26 = vmul.f32 %v2273_v10, %v2273_v10  ;;  %v2305_v48 = vmul.f32 %v2249_v35, %v2249_v35  ;;  %v1183_v19 = vcvt.s32.f32 %v1176_v2  ;;  %v3306_v46 = vsel %vm3297_vm13, %v3289_v45, %v2797_v9 }
 0x17c   : > { %v3290_v8 = vsel %vm3280_vm11, %v2702_v55, %v2750_v53  ;;  %v2289_v43 = vmul.f32 %v2281_v30, %v2273_v10  ;;  %v1180_v57 = vor.u32 4788187, %v1179_v49  ;;  %v6498_v38 = vpack.c.bf16 %v3306_v46, %v3272_v22 }
 0x17d   : > { %v3307_v63 = vsel %vm3297_vm13, %v3290_v8, %v2798_v29  ;;  %v2313_v62 = vsub.f32 %v2297_v26, %v2305_v48  ;;  %v8308_v55 = vand.u32 3, %v8259_v59  ;;  %v8311_v9 = vand.u32 31, %v8295_v14 }
 0x17e   : > { %v6496_v12 = vpack.c.bf16 %v3307_v63, %v3273_v5  ;;  %v2321_v24 = vmul.f32 2.0, %v2289_v43  ;;  %v2345_v33 = vmul.f32 %v2289_v43, %v2289_v43  ;;  %v2833_v56 = vcombine.high %v2289_v43, %v2289_v43 }
 0x17f   : > { %v1181_v44 = vand.u32 2147483647, %v1180_v57  ;;  %v2337_v0 = vmul.f32 %v2313_v62, %v2313_v62  ;;  %v2857_v35 = vcombine.high %v2313_v62, %v2313_v62  ;;  %v2869_v7 = vrot.slane %v2313_v62, 5 }
 0x180   : > { %6497 = vmatprep.subr.bf16.mxu0 %v6496_v12  ;;  %v2329_v10 = vmul.f32 %v2321_v24, %v2313_v62  ;;  %v8322_v62 = vld [vmem:[%s6963_s17 + $0x28] sm:$0x77]  ;;  %vm2023_vm6 = vcmp.eq.s32.totalorder %v8308_v55, 0  ;;  %vm1196_vm3 = vcmp.lt.s32.totalorder %v8305_v52, 2  ;;  %vm2022_vm4 = vcmp.lt.s32.totalorder %v8308_v55, 2 }
 0x181   : > { %v1184_v22 = vmul.f32 %v1183_v19, %v1181_v44  ;;  %6499 = vmatpush1.bf16.msra.mxu0 %v6498_v38  ;;  %v2353_v5 = vsub.f32 %v2337_v0, %v2345_v33  ;;  %v2870_v53 = vrot.slane %v2857_v35, 5  ;;  %v3323_v29 = vsel %vm3314_vm2, %v2289_v43, %v2869_v7  ;;  %10251 = vst [vmem:[#allocation19_spill] sm:$0xff] %v8322_v62 }
 0x182   : > { %v2361_v2 = vmul.f32 2.0, %v2329_v10  ;;  %v2385_v30 = vmul.f32 %v2329_v10, %v2329_v10  ;;  %v2905_v49 = vcombine.high %v2329_v10, %v2329_v10  ;;  %v2917_v45 = vrot.slane %v2329_v10, 2 }
 0x183   : > { %v1185_v42 = vxor.u32 2147483648, %v1184_v22  ;;  %v2377_v26 = vmul.f32 %v2353_v5, %v2353_v5  ;;  %v2953_v48 = vcombine.high %v2353_v5, %v2353_v5  ;;  %v3324_v59 = vsel %vm3314_vm2, %v2833_v56, %v2870_v53 }
 0x184   : > { %v2369_v8 = vmul.f32 %v2361_v2, %v2353_v5  ;;  %v2918_v46 = vrot.slane %v2905_v49, 2  ;;  %v2965_v63 = vrot.slane %v2353_v5, 7  ;;  %v8316_v19 = vsub.s32 32, %v8311_v9 }
 0x185   : > { %v1186_v57 = vsel %vm1103_vm8, %v1185_v42, %v1184_v22  ;;  %v2393_v7 = vsub.f32 %v2377_v26, %v2385_v30  ;;  %v2966_v43 = vrot.slane %v2953_v48, 7  ;;  %v3340_v38 = vsel %vm10250_vm12, %v3323_v29, %v2917_v45  ;;  %vm10254_vm12 = vmmov %vm10252_vm0 }
 0x186   : > { %v1189_v12 = vsel %vm8213_vm9, %v8322_v62, %v1186_v57  ;;  %v3341_v56 = vsel %vm10252_vm0, %v3324_v59, %v2918_v46  ;;  %v3001_v24 = vcombine.low %v2369_v8, %v2369_v8  ;;  %v3356_v33 = vsel %vm3229_vm14, %v2917_v45, %v2965_v63 }
 0x187   : > { %6693 = vcosq.f32 %v1189_v12  ;;  %v3025_v44 = vcombine.high %v2393_v7, %v2393_v7  ;;  %v3357_v15 = vsel %vm3229_vm14, %v2918_v46, %v2966_v43  ;;  %v3037_v0 = vrot.slane %v2393_v7, 1 }
 0x188   : > { %6695 = vsinq.f32 %v1189_v12  ;;  %v3373_v35 = vsel %vm3246_vm5, %v3357_v15, %v2369_v8  ;;  %v3372_v10 = vsel %vm3246_vm5, %v3356_v33, %v3001_v24  ;;  %v2401_v22 = vmul.f32 2.0, %v2369_v8 }
 0x189   : > { %vm2026_vm8 = vcmp.eq.s32.totalorder %v8308_v55, 2  ;;  %v3038_v40 = vrot.slane %v3025_v44, 1  ;;  %v3388_v5 = vsel %vm3263_vm10, %v3372_v10, %v3037_v0  ;;  %v2417_v53 = vmul.f32 %v2393_v7, %v2393_v7 }
 0x18a   : > { %v2425_v29 = vmul.f32 %v2369_v8, %v2369_v8  ;;  %vm1197_vm9 = vcmp.eq.s32.totalorder %v8305_v52, 0  ;;  %v6502_v2 = vpack.c.bf16 %v3388_v5, %v3340_v38  ;;  %v2409_v30 = vmul.f32 %v2401_v22, %v2393_v7 }
 0x18b   : > { %v448_v49 = vrot.slane %v8300_v32, %v7058_v41  ;;  %v3389_v45 = vsel %vm3263_vm10, %v3373_v35, %v3038_v40  ;;  %v1222_v26 = vshll.u32 %v10213_v36, %v8311_v9  ;;  %v1223_v48 = vshrl.u32 %v10214_v18, %v8316_v19 }
 0x18c   : > { %v2433_v42 = vsub.f32 %v2417_v53, %v2425_v29  ;;  %vm1193_vm7 = vweird.f32 %v8322_v62  ;;  %v6500_v59 = vpack.c.bf16 %v3389_v45, %v3341_v56  ;;  %v2441_v8 = vmul.f32 2.0, %v2409_v30 }
 0x18d   : > { %v2465_v46 = vmul.f32 %v2409_v30, %v2409_v30  ;;  %v3073_v63 = vcombine.high %v2409_v30, %v2409_v30  ;;  %v3085_v43 = vrot.slane %v2409_v30, 6  ;;  %v8348_v38 = vshrl.u32 %v8295_v14, 5 }
 0x18e   : > { %v2457_v57 = vmul.f32 %v2433_v42, %v2433_v42  ;;  %v3121_v7 = vcombine.high %v2433_v42, %v2433_v42  ;;  %6501 = vmatprep.subr.bf16.mxu0 %v6500_v59  ;;  %v2449_v12 = vmul.f32 %v2441_v8, %v2433_v42  ;;  %v8353_v44 = vrot.slane %v448_v49, %v7058_v41 }
 0x18f   : > { %v3086_v24 = vrot.slane %v3073_v63, 6  ;;  %6503 = vmatpush1.bf16.msra.mxu0 %v6502_v2  ;;  %v3133_v35 = vrot.slane %v2433_v42, 3  ;;  %v8357_v10 = vshrl.u32 %v10213_v36, %v8316_v19  ;;  %v8360_v53 = vor.u32 %v1223_v48, %v1222_v26 }
 0x190   : > { %v2473_v56 = vsub.f32 %v2457_v57, %v2465_v46  ;;  %v3134_v15 = vrot.slane %v3121_v7, 3  ;;  %v2481_v22 = vmul.f32 2.0, %v2449_v12  ;;  %v2505_v14 = vmul.f32 %v2449_v12, %v2449_v12 }
 0x191   : > { %v3405_v5 = vsel %vm3280_vm11, %v3038_v40, %v3086_v24  ;;  %v6694_v29 = vpop.eup %6693  ;;  %v3404_v49 = vsel %vm3280_vm11, %v3037_v0, %v3085_v43  ;;  %v3169_v42 = vcombine.high %v2449_v12, %v2449_v12  ;;  %v1225_v63 = vshll.u32 %v10214_v18, %v8311_v9 }
 0x192   : > { %v2497_v30 = vmul.f32 %v2473_v56, %v2473_v56  ;;  %v3193_v45 = vcombine.high %v2473_v56, %v2473_v56  ;;  %v3205_v59 = vrot.slane %v2473_v56, 5  ;;  %v6696_v2 = vpop.eup %6695  ;;  %v1201_v8 = vxor.u32 2147483648, %v6694_v29 }
 0x193   : > { %v2489_v46 = vmul.f32 %v2481_v22, %v2473_v56  ;;  %v1198_v57 = vxor.u32 2147483648, %v6696_v2  ;;  %v3421_v40 = vsel %vm3297_vm13, %v3405_v5, %v3134_v15  ;;  %v8371_v0 = vsel %vm3297_vm13, %v3404_v49, %v3133_v35 }
 0x194   : > { %v2513_v7 = vsub.f32 %v2497_v30, %v2505_v14  ;;  %v3206_v33 = vrot.slane %v3193_v45, 5  ;;  %v1202_v26 = vsel %vm1200_vm1, %v1201_v8, %v6696_v2  ;;  %v2028_v48 = vsel %vm2026_vm8, %v1201_v8, %v6696_v2 }
 0x195   : > { %v3436_v43 = vsel %vm3314_vm2, %v2449_v12, %v3205_v59  ;;  %v1199_v24 = vsel %vm1197_vm9, %v6694_v29, %v1198_v57  ;;  %v2025_v56 = vsel %vm2023_vm6, %v6694_v29, %v1198_v57  ;;  %v3456_v22 = vcombine.high %v2489_v46, %v2489_v46  ;;  %vm10255_vm9 = vmmov %vm10252_vm0 }
 0x196   : > { %v3480_v14 = vcombine.high %v2513_v7, %v2513_v7  ;;  %v1203_v15 = vsel %vm1196_vm3, %v1199_v24, %v1202_v26  ;;  %v2029_v5 = vsel %vm2022_vm4, %v2025_v56, %v2028_v48  ;;  %v3437_v30 = vsel %vm3314_vm2, %v3169_v42, %v3206_v33 }
 0x197   : > { %v1226_v35 = vshrl.u32 %v10215_v61, %v8316_v19  ;;  %v1204_v12 = vsel %vm1193_vm7, nan, %v1203_v15  ;;  %v2030_v45 = vsel %vm1193_vm7, nan, %v2029_v5  ;;  %v3492_v59 = vrot.slane %v2513_v7, 5 }
 0x198   : > { %v3493_v29 = vrot.slane %v3480_v14, 5  ;;  %v2242_v49 = vmul.f32 2.0, %v1204_v12  ;;  %v2258_v2 = vmul.f32 %v2030_v45, %v2030_v45  ;;  %v2266_v52 = vmul.f32 %v1204_v12, %v1204_v12 }
 0x199   : > { %v2690_v8 = vcombine.high %v2030_v45, %v2030_v45  ;;  %v3258_v55 = vsel %vm3246_vm5, %v8247_v34, %v1204_v12  ;;  %v2666_v57 = vcombine.low %v1204_v12, %v1204_v12  ;;  %v2703_v33 = vrot.slane %v2030_v45, 1 }
 0x19a   : > { %v3525_v42 = vsel %vm3314_vm2, %v3456_v22, %v3493_v29  ;;  %v2250_v26 = vmul.f32 %v2242_v49, %v2030_v45  ;;  %v2274_v48 = vsub.f32 %v2258_v2, %v2266_v52  ;;  %v8392_v56 = vor.u32 %v1226_v35, %v1225_v63 }
 0x19b   : > { %v2704_v24 = vrot.slane %v2690_v8, 1  ;;  %v3257_v14 = vsel %vm3246_vm5, %v8266_v37, %v2666_v57  ;;  %v3557_v7 = vrot.slane %v3525_v42, 2  ;;  %v8397_v15 = vsel %vm3314_vm2, %v2489_v46, %v3492_v59 }
 0x19c   : > { %v1228_v5 = vshll.u32 %v10215_v61, %v8311_v9  ;;  %v2738_v34 = vcombine.high %v2250_v26, %v2250_v26  ;;  %v2786_v12 = vcombine.high %v2274_v48, %v2274_v48  ;;  %v2751_v22 = vrot.slane %v2250_v26, 6 }
 0x19d   : > { %v3275_v11 = vsel %vm3263_vm10, %v3258_v55, %v2704_v24  ;;  %v2799_v45 = vrot.slane %v2274_v48, 3  ;;  %v3274_v29 = vsel %vm3263_vm10, %v3257_v14, %v2703_v33  ;;  %v2282_v63 = vmul.f32 2.0, %v2250_v26 }
 0x19e   : > { %v2298_v35 = vmul.f32 %v2274_v48, %v2274_v48  ;;  %v2752_v49 = vrot.slane %v2738_v34, 6  ;;  %v2800_v2 = vrot.slane %v2786_v12, 3  ;;  %v3291_v37 = vsel %vm3280_vm11, %v2703_v33, %v2751_v22 }
 0x19f   : > { %v2306_v52 = vmul.f32 %v2250_v26, %v2250_v26  ;;  %v3308_v46 = vsel %vm3297_vm13, %v3291_v37, %v2799_v45  ;;  %v2290_v59 = vmul.f32 %v2282_v63, %v2274_v48  ;;  %v3589_v8 = vsel %vm10253_vm15, %v3437_v30, %v3557_v7  ;;  %vm10258_vm15 = vmmov %vm10252_vm0 }
 0x1a0   : > { %v3556_v57 = vrot.slane %v8397_v15, 2  ;;  %v3292_v55 = vsel %vm3280_vm11, %v2704_v24, %v2752_v49  ;;  %v6504_v62 = vpack.c.bf16 %v3589_v8, %v3421_v40  ;;  %v1229_v14 = vshrl.u32 %v10205_v58, %v8316_v19 }
 0x1a1   : > { %v2314_v42 = vsub.f32 %v2298_v35, %v2306_v52  ;;  %v3309_v34 = vsel %vm3297_vm13, %v3292_v55, %v2800_v2  ;;  %v6510_v12 = vpack.c.bf16 %v3308_v46, %v3274_v29  ;;  %v2322_v20 = vmul.f32 2.0, %v2290_v59 }
 0x1a2   : > { %v2346_v33 = vmul.f32 %v2290_v59, %v2290_v59  ;;  %v6508_v26 = vpack.c.bf16 %v3309_v34, %v3275_v11  ;;  %6505 = vmatprep.subr.bf16.mxu0 %v6504_v62  ;;  %v2834_v63 = vcombine.high %v2290_v59, %v2290_v59  ;;  %v3588_v15 = vsel %vm10254_vm12, %v3436_v43, %v3556_v57  ;;  %vm10261_vm12 = vmmov %vm10252_vm0 }
 0x1a3   : > { %v2338_v22 = vmul.f32 %v2314_v42, %v2314_v42  ;;  %v2858_v45 = vcombine.high %v2314_v42, %v2314_v42  ;;  %v2871_v48 = vrot.slane %v2314_v42, 5  ;;  %v2330_v30 = vmul.f32 %v2322_v20, %v2314_v42 }
 0x1a4   : > { %v8414_v40 = vshll.u32 %v10205_v58, %v8311_v9  ;;  %6509 = vmatprep.subr.bf16.mxu1 %v6508_v26  ;;  %v6506_v49 = vpack.c.bf16 %v3588_v15, %v8371_v0  ;;  %v8418_v43 = vor.u32 %v1229_v14, %v1228_v5  ;;  %v1232_v0 = vshrl.u32 %v10206_v1, %v8316_v19 }
 0x1a5   : > { %v2354_v24 = vsub.f32 %v2338_v22, %v2346_v33  ;;  %v2872_v35 = vrot.slane %v2858_v45, 5  ;;  %v3325_v29 = vsel %vm3314_vm2, %v2290_v59, %v2871_v48  ;;  %6511 = vmatpush1.bf16.msra.mxu1 %v6510_v12  ;;  %v2362_v11 = vmul.f32 2.0, %v2330_v30 }
 0x1a6   : > { %v2386_v2 = vmul.f32 %v2330_v30, %v2330_v30  ;;  %v2906_v37 = vcombine.high %v2330_v30, %v2330_v30  ;;  %v2919_v62 = vrot.slane %v2330_v30, 2  ;;  %6507 = vmatpush1.bf16.msra.mxu0 %v6506_v49  ;;  %v8428_v5 = vshll.u32 %v10206_v1, %v8311_v9  ;;  %v8439_v9 = vld [vmem:[%s10114_s1] sm:$0xff] }
 0x1a7   : > { %v2378_v20 = vmul.f32 %v2354_v24, %v2354_v24  ;;  %v2954_v52 = vcombine.high %v2354_v24, %v2354_v24  ;;  %v2967_v46 = vrot.slane %v2354_v24, 7  ;;  %v2370_v8 = vmul.f32 %v2362_v11, %v2354_v24  ;;  %6314 = vmatprep.subr.msk.mxu0 %vm3246_vm5, %v3557_v7 }
 0x1a8   : > { %v2920_v55 = vrot.slane %v2906_v37, 2  ;;  %v3326_v42 = vsel %vm3314_vm2, %v2834_v63, %v2872_v35  ;;  %v3342_v12 = vsel %vm10252_vm0, %v3325_v29, %v2919_v62  ;;  %vm1237_vm8 = vcmp.lt.s32.totalorder %v8348_v38, 1 }
 0x1a9   : > { %v2394_v59 = vsub.f32 %v2378_v20, %v2386_v2  ;;  %v2968_v34 = vrot.slane %v2954_v52, 7  ;;  %v3358_v33 = vsel %vm3229_vm14, %v2919_v62, %v2967_v46  ;;  %v3002_v26 = vcombine.low %v2370_v8, %v2370_v8 }
 0x1aa   : > { %v2402_v22 = vmul.f32 2.0, %v2370_v8  ;;  %v2426_v45 = vmul.f32 %v2370_v8, %v2370_v8  ;;  %6315 = vmatpush1.msk.msra.mxu0 %vm3246_vm5, %v3556_v57  ;;  %v3343_v63 = vsel %vm10255_vm9, %v3326_v42, %v2920_v55  ;;  %vm10256_vm1 = vcmask 424960  }
 0x1ab   : > { %v3026_v14 = vcombine.high %v2394_v59, %v2394_v59  ;;  %v3359_v48 = vsel %vm3229_vm14, %v2920_v55, %v2968_v34  ;;  %v3039_v7 = vrot.slane %v2394_v59, 1  ;;  %v2418_v30 = vmul.f32 %v2394_v59, %v2394_v59  ;;  %6316 = vmatmul.mubr.msk.f32.vlgmr.msra.gmra.mrb[8].mxu0 %vm10256_vm1, %v8439_v9  ;;  %vm10257_vm6 = vmmov %vm10256_vm1 }
 0x1ac   : > { %v3375_v15 = vsel %vm3246_vm5, %v3359_v48, %v2370_v8  ;;  %v3374_v24 = vsel %vm3246_vm5, %v3358_v33, %v3002_v26  ;;  %v2410_v35 = vmul.f32 %v2402_v22, %v2394_v59  ;;  %v1235_v11 = vshrl.u32 %v10207_v23, %v8316_v19  ;;  %4027 = vmatprep.mubr.f32.mxu0 %v10222_v51  ;;  %v8451_v26 = vld [vmem:[%s10114_s1 + $0x8] sm:$0xff]  ;;  %vm10262_vm9 = vmmov %vm10256_vm1 }
 0x1ad   : > { %v3040_v29 = vrot.slane %v3026_v14, 1  ;;  %v3390_v57 = vsel %vm3263_vm10, %v3374_v24, %v3039_v7  ;;  %v2434_v49 = vsub.f32 %v2418_v30, %v2426_v45  ;;  %v1233_v22 = vor.u32 %v1232_v0, %v8414_v40 }
 0x1ae   : > { %v6514_v2 = vpack.c.bf16 %v3390_v57, %v3342_v12  ;;  %v2442_v37 = vmul.f32 2.0, %v2410_v35  ;;  %v2466_v62 = vmul.f32 %v2410_v35, %v2410_v35  ;;  %v3074_v20 = vcombine.high %v2410_v35, %v2410_v35 }
 0x1af   : > { %v3391_v52 = vsel %vm3263_vm10, %v3375_v15, %v3040_v29  ;;  %v2458_v46 = vmul.f32 %v2434_v49, %v2434_v49  ;;  %v3122_v8 = vcombine.high %v2434_v49, %v2434_v49  ;;  %v3087_v55 = vrot.slane %v2410_v35, 6  ;;  %6317 = vmatmul.mubr.msk.f32.gmra.mrb[10].mxu0 %vm10257_vm6, %v8451_v26 }
 0x1b0   : > { %v6512_v42 = vpack.c.bf16 %v3391_v52, %v3343_v63  ;;  %v2450_v59 = vmul.f32 %v2442_v37, %v2434_v49  ;;  %v3088_v34 = vrot.slane %v3074_v20, 6  ;;  %v3135_v33 = vrot.slane %v2434_v49, 3  ;;  %4175 = vmatprep.mubr.f32.mxu0 %v10222_v51 }
 0x1b1   : > { %v2474_v19 = vsub.f32 %v2458_v46, %v2466_v62  ;;  %v3406_v12 = vsel %vm3280_vm11, %v3039_v7, %v3087_v55  ;;  %vm1238_vm3 = vcmp.lt.s32.totalorder %v8348_v38, 2  ;;  %v3136_v48 = vrot.slane %v3122_v8, 3 }
 0x1b2   : > { %6513 = vmatprep.subr.bf16.mxu1 %v6512_v42  ;;  %v2482_v45 = vmul.f32 2.0, %v2450_v59  ;;  %v2506_v14 = vmul.f32 %v2450_v59, %v2450_v59  ;;  %v1236_v30 = vor.u32 %v1235_v11, %v8428_v5  ;;  %v3170_v15 = vcombine.high %v2450_v59, %v2450_v59 }
 0x1b3   : > { %6515 = vmatpush1.bf16.msra.mxu1 %v6514_v2  ;;  %v2498_v63 = vmul.f32 %v2474_v19, %v2474_v19  ;;  %v3194_v24 = vcombine.high %v2474_v19, %v2474_v19  ;;  %v3207_v35 = vrot.slane %v2474_v19, 5  ;;  %v3407_v7 = vsel %vm3280_vm11, %v3040_v29, %v3088_v34 }
 0x1b4   : > { %v2490_v57 = vmul.f32 %v2482_v45, %v2474_v19  ;;  %v3422_v40 = vsel %vm3297_vm13, %v3406_v12, %v3135_v33  ;;  %vm1240_vm4 = vcmp.lt.s32.totalorder %v8348_v38, 4  ;;  %vm1239_vm7 = vcmp.lt.s32.totalorder %v8348_v38, 3 }
 0x1b5   : > { %v2514_v0 = vsub.f32 %v2498_v63, %v2506_v14  ;;  %v3208_v49 = vrot.slane %v3194_v24, 5  ;;  %v1241_v5 = vsel %vm1237_vm8, %v8357_v10, %v8360_v53  ;;  %v3438_v11 = vsel %vm3314_vm2, %v2450_v59, %v3207_v35 }
 0x1b6   : > { %v1242_v2 = vsel %vm1240_vm4, %v8418_v43, 2102212464  ;;  %v1245_v29 = vsel %vm1237_vm8, %v8360_v53, %v8392_v56  ;;  %v1246_v37 = vsel %vm1240_vm4, %v1233_v22, 920167782  ;;  %v3457_v62 = vcombine.high %v2490_v57, %v2490_v57 }
 0x1b7   : > { %v3481_v20 = vcombine.high %v2514_v0, %v2514_v0  ;;  %v3494_v52 = vrot.slane %v2514_v0, 5  ;;  %v1243_v10 = vsel %vm1239_vm7, %v8392_v56, %v1242_v2  ;;  %v1247_v8 = vsel %vm1239_vm7, %v8418_v43, %v1246_v37 }
 0x1b8   : > { %v1244_v46 = vsel %vm1238_vm3, %v1241_v5, %v1243_v10  ;;  %v1249_v53 = vsel %vm1237_vm8, %v8392_v56, %v8418_v43  ;;  %v1250_v55 = vsel %vm1240_vm4, %v1236_v30, 1326507024  ;;  %v1248_v34 = vsel %vm1238_vm3, %v1245_v29, %v1247_v8 }
 0x1b9   : > { %v3495_v42 = vrot.slane %v3481_v20, 5  ;;  %v3526_v59 = vsel %vm3314_vm2, %v2490_v57, %v3494_v52  ;;  %v1251_v33 = vsel %vm1239_vm7, %v1233_v22, %v1250_v55  ;;  %v3439_v56 = vsel %vm3314_vm2, %v3170_v15, %v3208_v49 }
 0x1ba   : > { %v3558_v19 = vrot.slane %v3526_v59, 2  ;;  %v1252_v12 = vsel %vm1238_vm3, %v1249_v53, %v1251_v33  ;;  %v8500_v45 = vmul.u32.u64.low %v8268_v21, %v1248_v34  ;;  %v8501_v14 = vmul.u32.u64.high %v8268_v21, %v1248_v34, %v8500_v45  ;;  %vm10266_vm3 = vmmov %vm10262_vm9 }
 0x1bb   : > { %v3527_v43 = vsel %vm3314_vm2, %v3457_v62, %v3495_v42  ;;  %v8507_v30 = vmul.u32.u64.low %v8268_v21, %v1252_v12  ;;  %v8508_v63 = vmul.u32.u64.high %v8268_v21, %v1252_v12, %v8507_v30  ;;  %v3423_v24 = vsel %vm3297_vm13, %v3407_v7, %v3136_v48 }
 0x1bc   : > { %v3559_v22 = vrot.slane %v3527_v43, 2  ;;  %v3590_v35 = vsel %vm10258_vm15, %v3438_v11, %v3558_v19  ;;  %v10259_v38 = vrot.slane %v8300_v32, %v7074_v60  ;;  %v1260_v0 = vmul.u32 %v8268_v21, %v1244_v46 }
 0x1bd   : > { %v5648_v15 = vmul.f32 %v8196_v28, %v7066_v50  ;;  %v10260_v49 = vrot.slane %v6997_v17, 4  ;;  %v6225_v2 = vrot.slane %v8279_v3, 9  ;;  %v6518_v7 = vpack.c.bf16 %v3590_v35, %v3422_v40 }
 0x1be   : > { %v532_v57 = vrot.slane %v10259_v38, %v7058_v41  ;;  %v3591_v48 = vsel %vm10261_vm12, %v3439_v56, %v3559_v22  ;;  %v1263_v11 = vadd.s32 1, %v8501_v14  ;;  %v4942_v29 = vrot.slane %v8200_v16, 4 }
 0x1bf   : > { %v5661_v5 = vmul.f32 %v7066_v50, %v10260_v49  ;;  %v6516_v37 = vpack.c.bf16 %v3591_v48, %v3423_v24  ;;  %vm1262_vm0 = vc.u32 %v8508_v63, %v8500_v45  ;;  %v6394_v21 = vrot.slane %v5648_v15, 9 }
 0x1c0   : > { %v1309_v62 = vand.u32 2147483647, %v8275_v31  ;;  %v563_v17 = vcombine.low %v8353_v44, %v532_v57  ;;  %v1264_v20 = vsel %vm1262_vm0, %v1263_v11, %v8501_v14  ;;  %v6395_v52 = vrot.slane %v5648_v15, 10 }
 0x1c1   : > { %v6396_v10 = vrot.slane %v5661_v5, 9  ;;  %6517 = vmatprep.subr.bf16.mxu1 %v6516_v37  ;;  %v1265_v46 = vadd.s32 %v1264_v20, %v1260_v0  ;;  %v5653_v40 = vadd.f32 %v6394_v21, %v5648_v15  ;;  %v6397_v8 = vrot.slane %v5661_v5, 10 }
 0x1c2   : > { %v332_v53 = vadd.f32 %v6225_v2, %v8279_v3  ;;  %v5725_v55 = vmin.f32 %v8148_v6, %v8152_v47  ;;  %6519 = vmatpush1.bf16.msra.mxu1 %v6518_v7  ;;  %v6233_v59 = vrot.slane %v8279_v3, 10  ;;  %v1312_v34 = vand.u32 2139095040, %v8275_v31 }
 0x1c3   : > { %v5666_v42 = vadd.f32 %v6396_v10, %v5661_v5  ;;  %6318 = vmatprep.subr.msk.mxu1 %vm3246_vm5, %v3559_v22  ;;  %vm1207_vm8 = vcmp.lt.s32.totalorder %v8196_v28, 0  ;;  %v1266_v44 = vadd.s32 536870912, %v1265_v46  ;;  %v4944_v33 = vadd.f32 %v4942_v29, %v8200_v16 }
 0x1c4   : > { %v5657_v12 = vadd.f32 %v6395_v52, %v5653_v40  ;;  %v8539_v56 = vadd.f32 %v6233_v59, %v332_v53  ;;  %v1313_v43 = vshrl.u32 %v1312_v34, 23  ;;  %v4945_v30 = vrot.slane %v8279_v3, 4 }
 0x1c5   : > { %v5670_v14 = vadd.f32 %v6397_v8, %v5666_v42  ;;  %v5711_v24 = vmax.f32 %v8251_v13, %v8254_v25  ;;  %v8545_v35 = vmul.f32 %v8196_v28, %v563_v17  ;;  %v1267_v38 = vshrl.u32 %v1266_v44, 30 }
 0x1c6   : > { %v1316_v22 = vand.u32 8388607, %v1309_v62  ;;  %6319 = vmatpush1.msk.msra.mxu1 %vm3246_vm5, %v3558_v19  ;;  %v5658_v16 = vmul.f32 2.0, %v5657_v12  ;;  %v372_v57 = vadd.f32 1e-16, %v8539_v56  ;;  %v6262_v0 = vadd.s32 4294967169, %v1313_v43 }
 0x1c7   : > { %v4947_v15 = vadd.f32 %v4945_v30, %v8279_v3  ;;  %v5726_v49 = vmin.f32 %v8251_v13, %v8254_v25  ;;  %v1268_v5 = vshll.u32 %v1267_v38, 30  ;;  %v5671_v2 = vmul.f32 2.0, %v5670_v14  ;;  %6320 = vmatmul.mubr.msk.f32.vlgmr.msra.gmra.mrb[8].mxu1 %vm10262_vm9, %v8439_v9 }
 0x1c8   : > { %v5673_v48 = vrot.slane %v8234_v54, 4  ;;  %v1291_v7 = vsub.s32 4, %v1267_v38  ;;  %6697 = vrsqrt.f32 %v372_v57  ;;  %v1319_v11 = vadd.s32 1, %v6262_v0  ;;  %4104 = vmatprep.mubr.f32.mxu1 %v10222_v51 }
 0x1c9   : > { %v4951_v19 = vadd.f32 %v4947_v15, %v4944_v33  ;;  %v8560_v29 = vmul.f32 %v8300_v32, %v8234_v54  ;;  %v8562_v3 = vsub.s32 %v1265_v46, %v1268_v5  ;;  %v2619_v13 = vcombine.high %v8545_v35, %v8545_v35  ;;  %v3596_v32 = vld [vmem:[%s10115_s2] sm:$0xff] }
 0x1ca   : > { %v1317_v25 = vor.u32 8388608, %v1316_v22  ;;  %v5659_v37 = vsub.f32 %v8234_v54, %v5658_v16  ;;  %vm1320_vm1 = vcmp.gt.s32.totalorder %v1319_v11, 0  ;;  %v8572_v21 = vmul.f32 %v8275_v31, %v7066_v50 }
 0x1cb   : > { %v8568_v9 = vadd.f32 %v4951_v19, %v8182_v27  ;;  %v10263_v17 = vand.u32 2147483647, %v8196_v28  ;;  %v1271_v20 = vsub.s32 0, %v8562_v3  ;;  %v5675_v52 = vsub.f32 %v5673_v48, %v5671_v2  ;;  %6321 = vmatmul.mubr.msk.f32.gmra.mrb[10].mxu1 %vm10266_vm3, %v8451_v26 }
 0x1cc   : > { %v1321_v10 = vsel %vm1320_vm1, %v1319_v11, 0  ;;  %v10267_v27 = vmax.f32 %v8148_v6, %v8152_v47  ;;  %v8588_v46 = vmin.f32 %v5725_v55, %v5726_v49  ;;  %v1292_v40 = vsel %vm1207_vm8, %v1291_v7, %v1267_v38  ;;  %4252 = vmatprep.mubr.f32.mxu1 %v10222_v51 }
 0x1cd   : > { %vm8576_vm6 = vcmp.le.f32.partialorder %v10263_v17, 0.7853982  ;;  %v1323_v8 = vand.u32 31, %v1321_v10  ;;  %v1261_v53 = vadd.s32 %v8500_v45, %v8508_v63  ;;  %v6259_v42 = vmin.u32 %v1271_v20, %v8562_v3 }
 0x1ce   : > { %v8586_v54 = vmax.f32 %v10267_v27, %v5711_v24  ;;  %v2580_v26 = vrot.slane %v8560_v29, %v7074_v60  ;;  %v8598_v59 = vrot.slane %v2619_v13, 7  ;;  %v8601_v6 = vadd.f32 %v5659_v37, %v7135_v39 }
 0x1cf   : > { %v1324_v47 = vsub.s32 32, %v1323_v8  ;;  %v8603_v55 = vshll.u32 %v1317_v25, 8  ;;  %v6398_v34 = vrot.slane %v8572_v21, 9  ;;  %v1273_v44 = vclz %v6259_v42 }
 0x1d0   : > { %v8608_v33 = vsel %vm8576_vm6, 0, %v1292_v40  ;;  %v8611_v45 = vadd.f32 %v5675_v52, %v7135_v39  ;;  %v1326_v63 = vshll.u32 %v10213_v36, %v1323_v8  ;;  %v1329_v14 = vshll.u32 %v10214_v18, %v1323_v8 }
 0x1d1   : > { %v1327_v12 = vshrl.u32 %v10214_v18, %v1324_v47  ;;  %v1330_v43 = vshrl.u32 %v10215_v61, %v1324_v47  ;;  %v1332_v30 = vshll.u32 %v10215_v61, %v1323_v8  ;;  %v6260_v24 = vadd.s32 4294967294, %v1273_v44 }
 0x1d2   : > { %v1333_v38 = vshrl.u32 %v10205_v58, %v1324_v47  ;;  %v1335_v22 = vshll.u32 %v10205_v58, %v1323_v8  ;;  %v1336_v16 = vshrl.u32 %v10206_v1, %v1324_v47  ;;  %v6698_v57 = vpop.eup %6697  ;;  %v1322_v0 = vshrl.u32 %v1321_v10, 5 }
 0x1d3   : > { %v1325_v15 = vshrl.u32 %v10213_v36, %v1324_v47  ;;  %v1338_v49 = vshll.u32 %v10206_v1, %v1323_v8  ;;  %v1339_v5 = vshrl.u32 %v10207_v23, %v1324_v47  ;;  %vm6261_vm4 = vcmp.lt.s32.totalorder %v6260_v24, 0 }
 0x1d4   : > { %v456_v2 = vrot.slane %v6698_v57, %v7058_v41  ;;  %v460_v48 = vrot.slane %v6698_v57, %v7074_v60  ;;  %v1328_v7 = vor.u32 %v1327_v12, %v1326_v63  ;;  %v1276_v11 = vsel %vm6261_vm4, 0, %v6260_v24 }
 0x1d5   : > { %v1331_v19 = vor.u32 %v1330_v43, %v1329_v14  ;;  %v1334_v13 = vor.u32 %v1333_v38, %v1332_v30  ;;  %v1337_v25 = vor.u32 %v1336_v16, %v1335_v22  ;;  %v1277_v37 = vsub.s32 32, %v1276_v11 }
 0x1d6   : > { %v1278_v17 = vshll.u32 %v8562_v3, %v1276_v11  ;;  %v1281_v20 = vsub.s32 4294967266, %v1276_v11  ;;  %v536_v52 = vrot.slane %v456_v2, %v7058_v41  ;;  %v540_v10 = vrot.slane %v460_v48, %v7058_v41 }
 0x1d7   : > { %v1340_v27 = vor.u32 %v1339_v5, %v1338_v49  ;;  %vm1341_vm7 = vcmp.lt.s32.totalorder %v1322_v0, 1  ;;  %vm1343_vm15 = vcmp.lt.s32.totalorder %v1322_v0, 3  ;;  %v1279_v40 = vshrl.u32 %v1261_v53, %v1277_v37 }
 0x1d8   : > { %v1282_v8 = vadd.s32 127, %v1281_v20  ;;  %vm1342_vm12 = vcmp.lt.s32.totalorder %v1322_v0, 2  ;;  %vm1344_vm0 = vcmp.lt.s32.totalorder %v1322_v0, 4  ;;  %v564_v42 = vcombine.low %v536_v52, %v540_v10 }
 0x1d9   : > { %v1346_v47 = vsel %vm1344_vm0, %v1334_v13, 2102212464  ;;  %v1349_v44 = vsel %vm1341_vm7, %v1328_v7, %v1331_v19  ;;  %v1350_v63 = vsel %vm1344_vm0, %v1337_v25, 920167782  ;;  %v1280_v3 = vor.u32 %v1279_v40, %v1278_v17 }
 0x1da   : > { %v1283_v12 = vshll.u32 %v1282_v8, 23  ;;  %v1298_v14 = vadd.s32 3, %v8608_v33  ;;  %v1351_v43 = vsel %vm1343_vm15, %v1334_v13, %v1350_v63  ;;  %v1345_v30 = vsel %vm1341_vm7, %v1325_v15, %v1328_v7 }
 0x1db   : > { %v1347_v53 = vsel %vm1343_vm15, %v1331_v19, %v1346_v47  ;;  %v1352_v24 = vsel %vm1342_vm12, %v1349_v44, %v1351_v43  ;;  %v1353_v38 = vsel %vm1341_vm7, %v1331_v19, %v1334_v13  ;;  %v1287_v16 = vcvt.s32.f32 %v1280_v3 }
 0x1dc   : > { %v1284_v22 = vor.u32 4788187, %v1283_v12  ;;  %v8639_v49 = vmul.f32 %v8275_v31, %v564_v42  ;;  %v1354_v5 = vsel %vm1344_vm0, %v1340_v27, 1326507024  ;;  %v8643_v2 = vmul.f32 %v6698_v57, %v8539_v56 }
 0x1dd   : > { %v1355_v48 = vsel %vm1343_vm15, %v1337_v25, %v1354_v5  ;;  %v8647_v15 = vmul.u32.u64.low %v8603_v55, %v1352_v24  ;;  %v8648_v7 = vmul.u32.u64.high %v8603_v55, %v1352_v24, %v8647_v15  ;;  %v1348_v37 = vsel %vm1342_vm12, %v1345_v30, %v1347_v53  ;;  %v8693_v30 = vld [vmem:[%s6963_s17 + $0x30] sm:$0x77] }
 0x1de   : > { %v1285_v11 = vand.u32 2147483647, %v1284_v22  ;;  %v1356_v19 = vsel %vm1342_vm12, %v1353_v38, %v1355_v48  ;;  %v8654_v13 = vadd.f32 %v8568_v9, %v7586_v4  ;;  %v5682_v57 = vadd.f32 %v6398_v34, %v8572_v21  ;;  %v10268_v9 = vld [vmem:[#allocation5_spill] sm:$0xff] }
 0x1df   : > { %v8657_v17 = vmul.u32.u64.low %v8603_v55, %v1356_v19  ;;  %v8658_v20 = vmul.u32.u64.high %v8603_v55, %v1356_v19, %v8657_v17  ;;  %v6399_v25 = vrot.slane %v8572_v21, 10  ;;  %v8669_v0 = vsel %vm3229_vm14, %v2580_v26, %v8598_v59 }
 0x1e0   : > { %v1288_v52 = vmul.f32 %v1287_v16, %v1285_v11  ;;  %v2620_v4 = vcombine.high %v8639_v49, %v8639_v49  ;;  %v10269_v10 = vrot.slane %v10268_v9, 4  ;;  %v8677_v40 = vand.u32 3, %v8608_v33 }
 0x1e1   : > { %v1364_v21 = vmul.u32 %v8603_v55, %v1348_v37  ;;  %v1367_v34 = vadd.s32 1, %v8648_v7  ;;  %v5686_v8 = vadd.f32 %v6399_v25, %v5682_v57  ;;  %v5712_v26 = vmax.f32 %v8601_v6, %v8611_v45  ;;  %v3597_v57 = vld [vmem:[%s10115_s2 + $0x8] sm:$0xff]  ;;  %v8737_v25 = vld [vmem:[%s6963_s17] sm:$0x77] }
 0x1e2   : > { %v5690_v27 = vmul.f32 %v7066_v50, %v10269_v10  ;;  %v1289_v42 = vxor.u32 2147483648, %v1288_v52  ;;  %v8683_v44 = vand.u32 3, %v1298_v14  ;;  %vm1366_vm9 = vc.u32 %v8658_v20, %v8647_v15 }
 0x1e3   : > { %v2588_v33 = vrot.slane %v8643_v2, %v7074_v60  ;;  %v5687_v63 = vmul.f32 2.0, %v5686_v8  ;;  %vm1311_vm1 = vcmp.lt.s32.totalorder %v8275_v31, 0  ;;  %v1368_v3 = vsel %vm1366_vm9, %v1367_v34, %v8648_v7  ;;  %v8750_v34 = vld [vmem:[%s6963_s17 + $0x18] sm:$0x77] }
 0x1e4   : > { %v6400_v59 = vrot.slane %v5690_v27, 9  ;;  %v6401_v47 = vrot.slane %v5690_v27, 10  ;;  %v1290_v55 = vsel %vm1207_vm8, %v1289_v42, %v1288_v52  ;;  %v2636_v12 = vrot.slane %v2620_v4, 7  ;;  %v8741_v52 = vld [vmem:[%s6963_s17 + $0x8] sm:$0x77] }
 0x1e5   : > { %v1293_v14 = vsel %vm8576_vm6, %v8693_v30, %v1290_v55  ;;  %vm8700_vm3 = vcmp.le.f32.partialorder %v1309_v62, 0.7853982  ;;  %v1369_v28 = vadd.s32 %v1368_v3, %v1364_v21  ;;  %v2576_v53 = vrot.slane %v8560_v29, %v7058_v41 }
 0x1e6   : > { %v5695_v43 = vadd.f32 %v6400_v59, %v5690_v27  ;;  %v2633_v24 = vrot.slane %v8545_v35, 7  ;;  %6699 = vcosq.f32 %v1293_v14  ;;  %v5688_v38 = vsub.f32 %v8539_v56, %v5687_v63  ;;  %v8746_v27 = vld [vmem:[%s6963_s17 + $0x10] sm:$0x77]  ;;  %v8755_v59 = vld [vmem:[%s6963_s17 + $0x20] sm:$0x77] }
 0x1e7   : > { %v5702_v16 = vrot.slane %v8539_v56, 4  ;;  %6701 = vsinq.f32 %v1293_v14  ;;  %v5727_v62 = vmin.f32 %v8601_v6, %v8611_v45  ;;  %v1370_v5 = vadd.s32 536870912, %v1369_v28  ;;  %v8768_v14 = vld [vmem:[%s6963_s17 + $0x38] sm:$0x77] }
 0x1e8   : > { %v5699_v22 = vadd.f32 %v6401_v47, %v5695_v43  ;;  %vm1304_vm8 = vcmp.eq.s32.totalorder %v8683_v44, 2  ;;  %vm2129_vm6 = vcmp.eq.s32.totalorder %v8677_v40, 2  ;;  %v8717_v29 = vadd.s32 %v8647_v15, %v8658_v20 }
 0x1e9   : > { %v8720_v48 = vsel %vm3229_vm14, %v2588_v33, %v2636_v12  ;;  %v6862_v7 = vmov 0   ;;  %vm1301_vm4 = vcmp.eq.s32.totalorder %v8683_v44, 0  ;;  %vm2126_vm7 = vcmp.eq.s32.totalorder %v8677_v40, 0  ;;  %v10272_v33 = vld [vmem:[#allocation19_spill] sm:$0xff] }
 0x1ea   : > { %v5700_v56 = vmul.f32 2.0, %v5699_v22  ;;  %6649 = vset.pattern.permute.xlu0 %v6862_v7  ;;  %6650 = vset.pattern.permute.xlu1 %v6862_v7  ;;  %v1371_v11 = vshrl.u32 %v1370_v5, 30  ;;  %v8725_v37 = vsel %vm3229_vm14, %v2576_v53, %v2633_v24  ;;  %v2584_v15 = vrot.slane %v8643_v2, %v7058_v41 }
 0x1eb   : > { %v2635_v19 = vrot.slane %v8639_v49, 7  ;;  %3602 = vperm.xlu0 %6649, %v3596_v32   ;;  %vm1300_vm15 = vcmp.lt.s32.totalorder %v8683_v44, 2  ;;  %vm2125_vm12 = vcmp.lt.s32.totalorder %v8677_v40, 2  ;;  %v5689_v17 = vadd.f32 %v5688_v38, %v7135_v39 }
 0x1ec   : > { %v5704_v20 = vsub.f32 %v5702_v16, %v5700_v56  ;;  %v6332_v2 = vrot.slane %v8737_v25, 9  ;;  %v6333_v4 = vrot.slane %v8741_v52, 9  ;;  %vm1297_vm0 = vweird.f32 %v8693_v30 }
 0x1ed   : > { %v1372_v9 = vshll.u32 %v1371_v11, 30  ;;  %v1395_v10 = vsub.s32 4, %v1371_v11  ;;  %v6334_v21 = vrot.slane %v8746_v27, 9  ;;  %v6335_v8 = vrot.slane %v8750_v34, 9 }
 0x1ee   : > { %v5705_v42 = vadd.f32 %v5704_v20, %v7135_v39  ;;  %v6336_v47 = vrot.slane %v8755_v59, 9  ;;  %v6337_v63 = vrot.slane %v10272_v33, 9  ;;  %v6338_v55 = vrot.slane %v8693_v30, 9 }
 0x1ef   : > { %v8760_v3 = vsub.s32 %v1369_v28, %v1372_v9  ;;  %v1396_v12 = vsel %vm1311_vm1, %v1395_v10, %v1371_v11  ;;  %v8765_v43 = vsel %vm3229_vm14, %v2584_v15, %v2635_v19  ;;  %3607 = vperm.xlu0 %6649, %v3597_v57   ;;  %v6339_v39 = vrot.slane %v8768_v14, 9 }
 0x1f0   : > { %v1398_v53 = vsel %vm8700_vm3, 0, %v1396_v12  ;;  %v5713_v24 = vmax.f32 %v5689_v17, %v5705_v42  ;;  %v5728_v38 = vmin.f32 %v5689_v17, %v5705_v42  ;;  %v4980_v22 = vmul.f32 %v8737_v25, %v6332_v2  ;;  %v6700_v56 = vpop.eup %6699 }
 0x1f1   : > { %v1375_v28 = vsub.s32 0, %v8760_v3  ;;  %v8776_v16 = vmul.f32 %v8741_v52, %v6333_v4  ;;  %v8779_v32 = vmul.f32 %v8746_v27, %v6334_v21  ;;  %v8782_v5 = vmul.f32 %v8750_v34, %v6335_v8  ;;  %v6702_v17 = vpop.eup %6701 }
 0x1f2   : > { %v5717_v7 = vmax.f32 %v5712_v26, %v5713_v24  ;;  %v8788_v11 = vmul.f32 %v8755_v59, %v6336_v47  ;;  %v8791_v15 = vmul.f32 %v10272_v33, %v6337_v63  ;;  %v8794_v19 = vmul.f32 %v8693_v30, %v6338_v55 }
 0x1f3   : > { %v1305_v20 = vxor.u32 2147483648, %v6700_v56  ;;  %v6263_v57 = vmin.u32 %v1375_v28, %v8760_v3  ;;  %v1402_v2 = vadd.s32 3, %v1398_v53  ;;  %v8798_v4 = vmul.f32 %v8768_v14, %v6339_v39  ;;  %v10273_v39 = vld [vmem:[#allocation11_spill] sm:$0xff] }
 0x1f4   : > { %v1302_v9 = vxor.u32 2147483648, %v6702_v17  ;;  %v8800_v10 = vand.u32 3, %v1398_v53  ;;  %v5719_v26 = vmax.f32 %v8586_v54, %v5717_v7  ;;  %v5732_v21 = vmin.f32 %v5727_v62, %v5728_v38  ;;  %v10274_v53 = vld [vmem:[#allocation15_spill] sm:$0xff] }
 0x1f5   : > { %v1306_v8 = vsel %vm1304_vm8, %v1305_v20, %v6702_v17  ;;  %v2131_v42 = vsel %vm2129_vm6, %v1305_v20, %v6702_v17  ;;  %v1377_v47 = vclz %v6263_v57  ;;  %v4989_v33 = vrot.slane %v4980_v22, 4 }
 0x1f6   : > { %v1303_v63 = vsel %vm1301_vm4, %v6700_v56, %v1302_v9  ;;  %v2128_v55 = vsel %vm2126_vm7, %v6700_v56, %v1302_v9  ;;  %v4993_v54 = vrot.slane %v8776_v16, 4  ;;  %v4997_v12 = vrot.slane %v8779_v32, 4 }
 0x1f7   : > { %v1307_v6 = vsel %vm1300_vm15, %v1303_v63, %v1306_v8  ;;  %v2132_v45 = vsel %vm2125_vm12, %v2128_v55, %v2131_v42  ;;  %v6264_v62 = vadd.s32 4294967294, %v1377_v47  ;;  %v10275_v24 = vmax.f32 %v10273_v39, %v10274_v53  ;;  %v10277_v8 = vld [vmem:[#allocation16_spill] sm:$0xff] }
 0x1f8   : > { %v1308_v28 = vsel %vm1297_vm0, nan, %v1307_v6  ;;  %v2133_v56 = vsel %vm1297_vm0, nan, %v2132_v45  ;;  %v8829_v7 = vand.u32 3, %v1402_v2  ;;  %v5734_v44 = vmin.f32 %v8588_v46, %v5732_v21 }
 0x1f9   : > { %v8823_v38 = vmax.f32 %v10275_v24, %v5719_v26  ;;  %v2243_v17 = vmul.f32 2.0, %v1308_v28  ;;  %v2259_v20 = vmul.f32 %v2133_v56, %v2133_v56  ;;  %v2267_v40 = vmul.f32 %v1308_v28, %v1308_v28  ;;  %v10276_v26 = vld [vmem:[#allocation12_spill] sm:$0xff] }
 0x1fa   : > { %v2691_v57 = vcombine.high %v2133_v56, %v2133_v56  ;;  %v3260_v9 = vsel %vm3246_vm5, %v8669_v0, %v1308_v28  ;;  %vm6265_vm9 = vcmp.lt.s32.totalorder %v6264_v62, 0  ;;  %v10278_v42 = vmin.f32 %v10276_v26, %v10277_v8 }
 0x1fb   : > { %v4991_v63 = vadd.f32 %v4989_v33, %v4980_v22  ;;  %v2251_v55 = vmul.f32 %v2243_v17, %v2133_v56  ;;  %v2275_v6 = vsub.f32 %v2259_v20, %v2267_v40  ;;  %v1380_v45 = vsel %vm6265_vm9, 0, %v6264_v62 }
 0x1fc   : > { %v8837_v47 = vmin.f32 %v10278_v42, %v5734_v44  ;;  %v2706_v2 = vrot.slane %v2691_v57, 1  ;;  %v1381_v39 = vsub.s32 32, %v1380_v45  ;;  %v1382_v46 = vshll.u32 %v8760_v3, %v1380_v45 }
 0x1fd   : > { %v1385_v21 = vsub.s32 4294967266, %v1380_v45  ;;  %v2667_v53 = vcombine.low %v1308_v28, %v1308_v28  ;;  %v2739_v24 = vcombine.high %v2251_v55, %v2251_v55  ;;  %v2787_v23 = vcombine.high %v2275_v6, %v2275_v6 }
 0x1fe   : > { %v3277_v0 = vsel %vm3263_vm10, %v3260_v9, %v2706_v2  ;;  %v2705_v1 = vrot.slane %v2133_v56, 1  ;;  %v1383_v58 = vshrl.u32 %v8717_v29, %v1381_v39  ;;  %v2753_v44 = vrot.slane %v2251_v55, 6 }
 0x1ff   : > { %v1386_v26 = vadd.s32 127, %v1385_v21  ;;  %v2801_v8 = vrot.slane %v2275_v6, 3  ;;  %v2754_v22 = vrot.slane %v2739_v24, 6  ;;  %v2802_v33 = vrot.slane %v2787_v23, 3 }
 0x200   : > { %v3259_v62 = vsel %vm3246_vm5, %v8725_v37, %v2667_v53  ;;  %v2283_v17 = vmul.f32 2.0, %v2251_v55  ;;  %v1384_v20 = vor.u32 %v1383_v58, %v1382_v46  ;;  %v3293_v40 = vsel %vm3280_vm11, %v2705_v1, %v2753_v44 }
 0x201   : > { %v1387_v3 = vshll.u32 %v1386_v26, 23  ;;  %v3276_v28 = vsel %vm3263_vm10, %v3259_v62, %v2705_v1  ;;  %v3294_v57 = vsel %vm3280_vm11, %v2706_v2, %v2754_v22  ;;  %v3310_v56 = vsel %vm3297_vm13, %v3293_v40, %v2801_v8 }
 0x202   : > { %v2291_v29 = vmul.f32 %v2283_v17, %v2275_v6  ;;  %v2299_v9 = vmul.f32 %v2275_v6, %v2275_v6  ;;  %v3311_v42 = vsel %vm3297_vm13, %v3294_v57, %v2802_v33  ;;  %v1391_v23 = vcvt.s32.f32 %v1384_v20 }
 0x203   : > { %v1388_v45 = vor.u32 4788187, %v1387_v3  ;;  %v6522_v39 = vpack.c.bf16 %v3310_v56, %v3276_v28  ;;  %v6520_v21 = vpack.c.bf16 %v3311_v42, %v3277_v0  ;;  %v2307_v37 = vmul.f32 %v2251_v55, %v2251_v55 }
 0x204   : > { %v2323_v53 = vmul.f32 2.0, %v2291_v29  ;;  %v2347_v58 = vmul.f32 %v2291_v29, %v2291_v29  ;;  %v2835_v24 = vcombine.high %v2291_v29, %v2291_v29  ;;  %v4995_v26 = vadd.f32 %v4993_v54, %v8776_v16 }
 0x205   : > { %v1389_v46 = vand.u32 2147483647, %v1388_v45  ;;  %v8851_v1 = vadd.f32 %v4997_v12, %v8779_v32  ;;  %6521 = vmatprep.subr.bf16.mxu0 %v6520_v21  ;;  %v2315_v2 = vsub.f32 %v2299_v9, %v2307_v37  ;;  %v5001_v6 = vrot.slane %v8782_v5, 4 }
 0x206   : > { %v5005_v44 = vrot.slane %v8788_v11, 4  ;;  %v5009_v8 = vrot.slane %v8791_v15, 4  ;;  %6523 = vmatpush1.bf16.msra.mxu0 %v6522_v39  ;;  %v5013_v55 = vrot.slane %v8794_v19, 4  ;;  %v5017_v0 = vrot.slane %v8798_v4, 4 }
 0x207   : > { %v1392_v22 = vmul.f32 %v1391_v23, %v1389_v46  ;;  %v8858_v33 = vadd.f32 %v4995_v26, %v4991_v63  ;;  %v2331_v16 = vmul.f32 %v2323_v53, %v2315_v2  ;;  %v2339_v54 = vmul.f32 %v2315_v2, %v2315_v2 }
 0x208   : > { %v2859_v32 = vcombine.high %v2315_v2, %v2315_v2  ;;  %v2873_v12 = vrot.slane %v2315_v2, 5  ;;  %v5003_v17 = vadd.f32 %v5001_v6, %v8782_v5  ;;  %v5007_v20 = vadd.f32 %v5005_v44, %v8788_v11 }
 0x209   : > { %v1393_v62 = vxor.u32 2147483648, %v1392_v22  ;;  %v5011_v3 = vadd.f32 %v5009_v8, %v8791_v15  ;;  %v2355_v28 = vsub.f32 %v2339_v54, %v2347_v58  ;;  %v2363_v40 = vmul.f32 2.0, %v2331_v16 }
 0x20a   : > { %v2387_v57 = vmul.f32 %v2331_v16, %v2331_v16  ;;  %v2874_v56 = vrot.slane %v2859_v32, 5  ;;  %v2907_v63 = vcombine.high %v2331_v16, %v2331_v16  ;;  %v2921_v42 = vrot.slane %v2331_v16, 2 }
 0x20b   : > { %v1394_v9 = vsel %vm1311_vm1, %v1393_v62, %v1392_v22  ;;  %v3327_v45 = vsel %vm3314_vm2, %v2291_v29, %v2873_v12  ;;  %v2371_v5 = vmul.f32 %v2363_v40, %v2355_v28  ;;  %v2379_v39 = vmul.f32 %v2355_v28, %v2355_v28 }
 0x20c   : > { %v1397_v23 = vsel %vm8700_vm3, %v8768_v14, %v1394_v9  ;;  %v2955_v11 = vcombine.high %v2355_v28, %v2355_v28  ;;  %v2922_v15 = vrot.slane %v2907_v63, 2  ;;  %v3328_v21 = vsel %vm3314_vm2, %v2835_v24, %v2874_v56 }
 0x20d   : > { %6703 = vcosq.f32 %v1397_v23  ;;  %v2969_v37 = vrot.slane %v2355_v28, 7  ;;  %v2395_v53 = vsub.f32 %v2379_v39, %v2387_v57  ;;  %v3003_v58 = vcombine.low %v2371_v5, %v2371_v5 }
 0x20e   : > { %6705 = vsinq.f32 %v1397_v23  ;;  %v2970_v31 = vrot.slane %v2955_v11, 7  ;;  %vm1408_vm1 = vcmp.eq.s32.totalorder %v8829_v7, 2  ;;  %vm2232_vm8 = vcmp.eq.s32.totalorder %v8800_v10, 2 }
 0x20f   : > { %vm10279_vm6 = vcmask 1045504   ;;  %v3360_v46 = vsel %vm3229_vm14, %v2921_v42, %v2969_v37  ;;  %v2403_v26 = vmul.f32 2.0, %v2371_v5  ;;  %vm1405_vm3 = vcmp.eq.s32.totalorder %v8829_v7, 0 }
 0x210   : > { %v3345_v29 = vsel %vm10279_vm6, %v3328_v21, %v2922_v15  ;;  %vm10280_vm4 = vmmov %vm10279_vm6  ;;  %vm2229_vm7 = vcmp.eq.s32.totalorder %v8800_v10, 0  ;;  %v3027_v24 = vcombine.high %v2395_v53, %v2395_v53  ;;  %v3361_v2 = vsel %vm3229_vm14, %v2922_v15, %v2970_v31 }
 0x211   : > { %v3344_v60 = vsel %vm10280_vm4, %v3327_v45, %v2921_v42  ;;  %v3041_v6 = vrot.slane %v2395_v53, 1  ;;  %v3376_v44 = vsel %vm3246_vm5, %v3360_v46, %v3003_v58  ;;  %vm1404_vm15 = vcmp.lt.s32.totalorder %v8829_v7, 2  ;;  %vm10281_vm9 = vmmov %vm10280_vm4 }
 0x212   : > { %vm2228_vm12 = vcmp.lt.s32.totalorder %v8800_v10, 2  ;;  %v3377_v8 = vsel %vm3246_vm5, %v3361_v2, %v2371_v5  ;;  %v2411_v22 = vmul.f32 %v2403_v26, %v2395_v53  ;;  %v2419_v16 = vmul.f32 %v2395_v53, %v2395_v53 }
 0x213   : > { %v2427_v54 = vmul.f32 %v2371_v5, %v2371_v5  ;;  %vm1401_vm0 = vweird.f32 %v8768_v14  ;;  %v3042_v32 = vrot.slane %v3027_v24, 1  ;;  %v3392_v12 = vsel %vm3263_vm10, %v3376_v44, %v3041_v6 }
 0x214   : > { %v8885_v62 = vadd.f32 %v5013_v55, %v8794_v19  ;;  %v8888_v28 = vadd.f32 %v5017_v0, %v8798_v4  ;;  %v6526_v40 = vpack.c.bf16 %v3392_v12, %v3344_v60  ;;  %v2443_v56 = vmul.f32 2.0, %v2411_v22 }
 0x215   : > { %v2435_v57 = vsub.f32 %v2419_v16, %v2427_v54  ;;  %v2467_v9 = vmul.f32 %v2411_v22, %v2411_v22  ;;  %v3393_v63 = vsel %vm3263_vm10, %v3377_v8, %v3042_v32  ;;  %v3075_v42 = vcombine.high %v2411_v22, %v2411_v22 }
 0x216   : > { %v3089_v45 = vrot.slane %v2411_v22, 6  ;;  %v5021_v23 = vadd.f32 %v5003_v17, %v8851_v1  ;;  %v6524_v5 = vpack.c.bf16 %v3393_v63, %v3345_v29  ;;  %v8893_v4 = vadd.f32 %v5011_v3, %v5007_v20 }
 0x217   : > { %v2451_v39 = vmul.f32 %v2443_v56, %v2435_v57  ;;  %v2459_v11 = vmul.f32 %v2435_v57, %v2435_v57  ;;  %v3123_v15 = vcombine.high %v2435_v57, %v2435_v57  ;;  %v3090_v21 = vrot.slane %v3075_v42, 6  ;;  %v6704_v0 = vpop.eup %6703 }
 0x218   : > { %v3137_v19 = vrot.slane %v2435_v57, 3  ;;  %v3408_v55 = vsel %vm3280_vm11, %v3041_v6, %v3089_v45  ;;  %6525 = vmatprep.subr.bf16.mxu0 %v6524_v5  ;;  %v6706_v60 = vpop.eup %6705  ;;  %v1409_v46 = vxor.u32 2147483648, %v6704_v0 }
 0x219   : > { %v2475_v37 = vsub.f32 %v2459_v11, %v2467_v9  ;;  %v2483_v53 = vmul.f32 2.0, %v2451_v39  ;;  %v2507_v31 = vmul.f32 %v2451_v39, %v2451_v39  ;;  %v3138_v58 = vrot.slane %v3123_v15, 3  ;;  %6527 = vmatpush1.bf16.msra.mxu0 %v6526_v40 }
 0x21a   : > { %v3171_v1 = vcombine.high %v2451_v39, %v2451_v39  ;;  %v3409_v17 = vsel %vm3280_vm11, %v3042_v32, %v3090_v21  ;;  %v8897_v29 = vsel %vm3297_vm13, %v3408_v55, %v3137_v19  ;;  %v1406_v26 = vxor.u32 2147483648, %v6706_v60 }
 0x21b   : > { %v2491_v24 = vmul.f32 %v2483_v53, %v2475_v37  ;;  %v2499_v2 = vmul.f32 %v2475_v37, %v2475_v37  ;;  %v3195_v20 = vcombine.high %v2475_v37, %v2475_v37  ;;  %v1410_v3 = vsel %vm1408_vm1, %v1409_v46, %v6706_v60  ;;  %vm10282_vm1 = vmmov %vm10280_vm4 }
 0x21c   : > { %v2234_v6 = vsel %vm2232_vm8, %v1409_v46, %v6706_v60  ;;  %v8904_v44 = vsel %vm3297_vm13, %v3409_v17, %v3138_v58  ;;  %v3209_v8 = vrot.slane %v2475_v37, 5  ;;  %v1407_v22 = vsel %vm1405_vm3, %v6704_v0, %v1406_v26  ;;  %vm10283_vm8 = vmmov %vm10282_vm1 }
 0x21d   : > { %v2231_v16 = vsel %vm2229_vm7, %v6704_v0, %v1406_v26  ;;  %v2515_v54 = vsub.f32 %v2499_v2, %v2507_v31  ;;  %v3210_v32 = vrot.slane %v3195_v20, 5  ;;  %v1411_v12 = vsel %vm1404_vm15, %v1407_v22, %v1410_v3  ;;  %vm10284_vm6 = vmmov %vm10282_vm1 }
 0x21e   : > { %v2235_v40 = vsel %vm2228_vm12, %v2231_v16, %v2234_v6  ;;  %v3458_v57 = vcombine.high %v2491_v24, %v2491_v24  ;;  %v3440_v56 = vsel %vm3314_vm2, %v2451_v39, %v3209_v8  ;;  %v1412_v9 = vsel %vm1401_vm0, nan, %v1411_v12  ;;  %vm10287_vm7 = vmmov %vm10282_vm1 }
 0x21f   : > { %v2236_v63 = vsel %vm1401_vm0, nan, %v2235_v40  ;;  %v3441_v42 = vsel %vm3314_vm2, %v3171_v1, %v3210_v32  ;;  %v3482_v45 = vcombine.high %v2515_v54, %v2515_v54  ;;  %v2244_v5 = vmul.f32 2.0, %v1412_v9  ;;  %vm10288_vm15 = vmmov %vm10282_vm1 }
 0x220   : > { %v2260_v11 = vmul.f32 %v2236_v63, %v2236_v63  ;;  %v2268_v15 = vmul.f32 %v1412_v9, %v1412_v9  ;;  %v2692_v7 = vcombine.high %v2236_v63, %v2236_v63  ;;  %v3262_v10 = vsel %vm3246_vm5, %v8720_v48, %v1412_v9 }
 0x221   : > { %v2668_v21 = vcombine.low %v1412_v9, %v1412_v9  ;;  %v2707_v19 = vrot.slane %v2236_v63, 1  ;;  %v3497_v55 = vrot.slane %v3482_v45, 5  ;;  %v2252_v39 = vmul.f32 %v2244_v5, %v2236_v63 }
 0x222   : > { %v2276_v0 = vsub.f32 %v2260_v11, %v2268_v15  ;;  %v2708_v37 = vrot.slane %v2692_v7, 1  ;;  %v3496_v53 = vrot.slane %v2515_v54, 5  ;;  %v5023_v60 = vadd.f32 %v8888_v28, %v8885_v62 }
 0x223   : > { %v3261_v31 = vsel %vm3246_vm5, %v8765_v43, %v2668_v21  ;;  %v8925_v58 = vsel %vm3314_vm2, %v3458_v57, %v3497_v55  ;;  %v5024_v46 = vadd.f32 %v5021_v23, %v8858_v33  ;;  %v2740_v1 = vcombine.high %v2252_v39, %v2252_v39 }
 0x224   : > { %v2788_v48 = vcombine.high %v2276_v0, %v2276_v0  ;;  %v3279_v17 = vsel %vm3263_vm10, %v3262_v10, %v2708_v37  ;;  %v2755_v26 = vrot.slane %v2252_v39, 6  ;;  %v2803_v2 = vrot.slane %v2276_v0, 3 }
 0x225   : > { %v3278_v20 = vsel %vm3263_vm10, %v3261_v31, %v2707_v19  ;;  %v2284_v3 = vmul.f32 2.0, %v2252_v39  ;;  %v2300_v6 = vmul.f32 %v2276_v0, %v2276_v0  ;;  %v2756_v8 = vrot.slane %v2740_v1, 6 }
 0x226   : > { %v2804_v43 = vrot.slane %v2788_v48, 3  ;;  %v3295_v22 = vsel %vm3280_vm11, %v2707_v19, %v2755_v26  ;;  %v2308_v16 = vmul.f32 %v2252_v39, %v2252_v39  ;;  %v3561_v33 = vrot.slane %v8925_v58, 2 }
 0x227   : > { %v3312_v54 = vsel %vm3297_vm13, %v3295_v22, %v2803_v2  ;;  %v2292_v62 = vmul.f32 %v2284_v3, %v2276_v0  ;;  %v8936_v28 = vsel %vm3314_vm2, %v2491_v24, %v3496_v53  ;;  %v3296_v23 = vsel %vm3280_vm11, %v2708_v37, %v2756_v8 }
 0x228   : > { %v6534_v32 = vpack.c.bf16 %v3312_v54, %v3278_v20  ;;  %v2316_v12 = vsub.f32 %v2300_v6, %v2308_v16  ;;  %v3560_v40 = vrot.slane %v8936_v28, 2  ;;  %v3313_v57 = vsel %vm3297_vm13, %v3296_v23, %v2804_v43 }
 0x229   : > { %v2324_v9 = vmul.f32 2.0, %v2292_v62  ;;  %v2348_v63 = vmul.f32 %v2292_v62, %v2292_v62  ;;  %v2836_v45 = vcombine.high %v2292_v62, %v2292_v62  ;;  %v6532_v5 = vpack.c.bf16 %v3313_v57, %v3279_v17 }
 0x22a   : > { %v2340_v11 = vmul.f32 %v2316_v12, %v2316_v12  ;;  %v2860_v15 = vcombine.high %v2316_v12, %v2316_v12  ;;  %v2875_v7 = vrot.slane %v2316_v12, 5  ;;  %v3593_v21 = vsel %vm10281_vm9, %v3441_v42, %v3561_v33 }
 0x22b   : > { %v2332_v10 = vmul.f32 %v2324_v9, %v2316_v12  ;;  %v3592_v24 = vsel %vm10282_vm1, %v3440_v56, %v3560_v40  ;;  %v5025_v19 = vadd.f32 %v5023_v60, %v8893_v4  ;;  %6533 = vmatprep.subr.bf16.mxu1 %v6532_v5  ;;  %v6528_v37 = vpack.c.bf16 %v3593_v21, %v8904_v44 }
 0x22c   : > { %v2356_v55 = vsub.f32 %v2340_v11, %v2348_v63  ;;  %v2876_v39 = vrot.slane %v2860_v15, 5  ;;  %v3329_v0 = vsel %vm3314_vm2, %v2292_v62, %v2875_v7  ;;  %6535 = vmatpush1.bf16.msra.mxu1 %v6534_v32  ;;  %v8947_v48 = vmul.f32 0.06666667, %v8654_v13 }
 0x22d   : > { %v2364_v53 = vmul.f32 2.0, %v2332_v10  ;;  %v2388_v31 = vmul.f32 %v2332_v10, %v2332_v10  ;;  %v2908_v58 = vcombine.high %v2332_v10, %v2332_v10  ;;  %v2923_v1 = vrot.slane %v2332_v10, 2  ;;  %6529 = vmatprep.subr.bf16.mxu0 %v6528_v37 }
 0x22e   : > { %v2380_v42 = vmul.f32 %v2356_v55, %v2356_v55  ;;  %v2956_v17 = vcombine.high %v2356_v55, %v2356_v55  ;;  %v2971_v56 = vrot.slane %v2356_v55, 7  ;;  %v3330_v26 = vsel %vm3314_vm2, %v2836_v45, %v2876_v39 }
 0x22f   : > { %v2372_v4 = vmul.f32 %v2364_v53, %v2356_v55  ;;  %v2924_v60 = vrot.slane %v2908_v58, 2  ;;  %v6530_v2 = vpack.c.bf16 %v3592_v24, %v8897_v29  ;;  %v3346_v3 = vsel %vm10283_vm8, %v3329_v0, %v2923_v1  ;;  %v8967_v24 = vld [vmem:[%s10114_s1] sm:$0xff] }
 0x230   : > { %v2396_v20 = vsub.f32 %v2380_v42, %v2388_v31  ;;  %v2972_v44 = vrot.slane %v2956_v17, 7  ;;  %v3362_v6 = vsel %vm3229_vm14, %v2923_v1, %v2971_v56  ;;  %v8953_v22 = vadd.f32 %v5025_v19, %v5024_v46 }
 0x231   : > { %v3004_v8 = vcombine.low %v2372_v4, %v2372_v4  ;;  %v2404_v43 = vmul.f32 2.0, %v2372_v4  ;;  %v2428_v13 = vmul.f32 %v2372_v4, %v2372_v4  ;;  %6531 = vmatpush1.bf16.msra.mxu0 %v6530_v2  ;;  %v3347_v29 = vsel %vm10284_vm6, %v3330_v26, %v2924_v60  ;;  %v8979_v2 = vld [vmem:[%s10114_s1 + $0x8] sm:$0xff] }
 0x232   : > { %v3028_v16 = vcombine.high %v2396_v20, %v2396_v20  ;;  %v3363_v54 = vsel %vm3229_vm14, %v2924_v60, %v2972_v44  ;;  %v3043_v62 = vrot.slane %v2396_v20, 1  ;;  %v2420_v28 = vmul.f32 %v2396_v20, %v2396_v20  ;;  %6322 = vmatprep.subr.msk.mxu0 %vm3246_vm5, %v3561_v33 }
 0x233   : > { %v3379_v23 = vsel %vm3246_vm5, %v3363_v54, %v2372_v4  ;;  %v3378_v32 = vsel %vm3246_vm5, %v3362_v6, %v3004_v8  ;;  %v2412_v12 = vmul.f32 %v2404_v43, %v2396_v20  ;;  %v6340_v46 = vrot.slane %v8737_v25, 10 }
 0x234   : > { %v3044_v57 = vrot.slane %v3028_v16, 1  ;;  %v3394_v9 = vsel %vm3263_vm10, %v3378_v32, %v3043_v62  ;;  %v2436_v63 = vsub.f32 %v2420_v28, %v2428_v13  ;;  %vm10285_vm4 = vcmask 424960  }
 0x235   : > { %v6538_v45 = vpack.c.bf16 %v3394_v9, %v3346_v3  ;;  %v2444_v5 = vmul.f32 2.0, %v2412_v12  ;;  %v2468_v11 = vmul.f32 %v2412_v12, %v2412_v12  ;;  %v3076_v15 = vcombine.high %v2412_v12, %v2412_v12  ;;  %6323 = vmatpush1.msk.msra.mxu0 %vm3246_vm5, %v3560_v40  ;;  %vm10286_vm3 = vmmov %vm10285_vm4 }
 0x236   : > { %v3395_v33 = vsel %vm3263_vm10, %v3379_v23, %v3044_v57  ;;  %v2460_v7 = vmul.f32 %v2436_v63, %v2436_v63  ;;  %v3124_v10 = vcombine.high %v2436_v63, %v2436_v63  ;;  %v3091_v21 = vrot.slane %v2412_v12, 6  ;;  %6324 = vmatmul.mubr.msk.f32.vlgmr.msra.gmra.mrb[12].mxu0 %vm10285_vm4, %v8967_v24  ;;  %vm10290_vm12 = vmmov %vm10286_vm3 }
 0x237   : > { %v6536_v19 = vpack.c.bf16 %v3395_v33, %v3347_v29  ;;  %v2452_v55 = vmul.f32 %v2444_v5, %v2436_v63  ;;  %v3092_v39 = vrot.slane %v3076_v15, 6  ;;  %v3139_v0 = vrot.slane %v2436_v63, 3  ;;  %4181 = vmatprep.mubr.f32.mxu0 %v10222_v51  ;;  %vm10291_vm0 = vmmov %vm10286_vm3 }
 0x238   : > { %v2476_v40 = vsub.f32 %v2460_v7, %v2468_v11  ;;  %v3140_v37 = vrot.slane %v3124_v10, 3  ;;  %v3410_v53 = vsel %vm3280_vm11, %v3043_v62, %v3091_v21  ;;  %v6341_v31 = vrot.slane %v8741_v52, 10  ;;  %v6784_v62 = vld [vmem:[%s6963_s17 + $0x28] sm:$0x77]  ;;  %s269_s17 = sand.u32 1, %s6845_s25  }
 0x239   : > { %6537 = vmatprep.subr.bf16.mxu1 %v6536_v19  ;;  %v2484_v58 = vmul.f32 2.0, %v2452_v55  ;;  %v2508_v1 = vmul.f32 %v2452_v55, %v2452_v55  ;;  %v3172_v42 = vcombine.high %v2452_v55, %v2452_v55  ;;  %v3411_v17 = vsel %vm3280_vm11, %v3044_v57, %v3092_v39  ;;  %s6215_s21 = sshll.u32 %s269_s17, 5  ;;  %s10072_s14 = scalar_lea.sflag [#allocation3], %s269_s17 }
 0x23a   : > { %6539 = vmatpush1.bf16.msra.mxu1 %v6538_v45  ;;  %v2500_v56 = vmul.f32 %v2476_v40, %v2476_v40  ;;  %v3196_v4 = vcombine.high %v2476_v40, %v2476_v40  ;;  %v3427_v60 = vsel %vm3297_vm13, %v3411_v17, %v3140_v37  ;;  %v3211_v26 = vrot.slane %v2476_v40, 5  ;;  %6325 = vmatmul.mubr.msk.f32.gmra.mrb[14].mxu0 %vm10286_vm3, %v8979_v2  ;;  %s271_s22 = scalar_lea.vmem [#allocation2], %s6215_s21 }
 0x23b   : > { %v2492_v20 = vmul.f32 %v2484_v58, %v2476_v40  ;;  %v3426_v44 = vsel %vm3297_vm13, %v3410_v53, %v3139_v0  ;;  %v6342_v3 = vrot.slane %v8746_v27, 10  ;;  %v6343_v6 = vrot.slane %v8750_v34, 10  ;;  %s6149_s23 = sshll.u32 %s271_s22, 4  ;;  %s10065_s23 = int_to_ptr.vmem [resolvable:$true] %s6149_s23 }
 0x23c   : > { %v2516_v8 = vsub.f32 %v2500_v56, %v2508_v1  ;;  %v3212_v43 = vrot.slane %v3196_v4, 5  ;;  %v3442_v13 = vsel %vm3314_vm2, %v2452_v55, %v3211_v26  ;;  %v6344_v16 = vrot.slane %v8755_v59, 10  ;;  %s6791_s28 = scalar_lea.vmem %s10065_s23, 512  ;;  %p6798_p0 = scmp.lt.s32.totalorder %s10065_s23, %s6796_s16 }
 0x23d   : > { %v3459_v54 = vcombine.high %v2492_v20, %v2492_v20  ;;  %v6345_v28 = vrot.slane %v6784_v62, 10  ;;  %v6346_v29 = vrot.slane %v8693_v30, 10  ;;  %v6347_v23 = vrot.slane %v8768_v14, 10  ;;  %p6792_p11 = scmp.ne.s32.totalorder %s10065_s23, %s6791_s28  ;;  %p6799_p1 = scmp.lt.s32.totalorder %s6797_s18, %s6791_s28 }
 0x23e   : > { %v3443_v32 = vsel %vm3314_vm2, %v3172_v42, %v3212_v43  ;;  %v3483_v12 = vcombine.high %v2516_v8, %v2516_v8  ;;  %v3498_v57 = vrot.slane %v2516_v8, 5  ;;  %v5052_v9 = vmul.f32 %v8737_v25, %v6340_v46 }
 0x23f   : > { %v5053_v63 = vmul.f32 %v8741_v52, %v6341_v31  ;;  %v5054_v45 = vmul.f32 %v8746_v27, %v6342_v3  ;;  %v5055_v5 = vmul.f32 %v8750_v34, %v6343_v6  ;;  %v5056_v11 = vmul.f32 %v8755_v59, %v6344_v16  ;;  %p6793_p12 = pnand %p6792_p11, %p6948_p5  ;;  %p6800_p2 = por %p6799_p1, %p6798_p0 }
 0x240   : > { %v3499_v15 = vrot.slane %v3483_v12, 5  ;;  %v3530_v33 = vsel %vm3314_vm2, %v2492_v20, %v3498_v57  ;;  %v5057_v7 = vmul.f32 %v6784_v62, %v6345_v28  ;;  %v5058_v10 = vmul.f32 %v8693_v30, %v6346_v29 }
 0x241   : > { %v3562_v21 = vrot.slane %v3530_v33, 2  ;;  %v5059_v19 = vmul.f32 %v8768_v14, %v6347_v23  ;;  %v5061_v55 = vrot.slane %v5052_v9, 4  ;;  %v5065_v39 = vrot.slane %v5053_v63, 4  ;;  %p6794_p13 = pneg %p6793_p12 }
 0x242   : > { %v3531_v25 = vsel %vm3314_vm2, %v3459_v54, %v3499_v15  ;;  %v5069_v52 = vrot.slane %v5054_v45, 4  ;;  %v5073_v46 = vrot.slane %v5055_v5, 4  ;;  %v5077_v27 = vrot.slane %v5056_v11, 4 }
 0x243   : > { %v3563_v0 = vrot.slane %v3531_v25, 2  ;;  %v3594_v34 = vsel %vm10287_vm7, %v3442_v13, %v3562_v21  ;;  %v5063_v59 = vadd.f32 %v5061_v55, %v5052_v9  ;;  %v5067_v40 = vadd.f32 %v5065_v39, %v5053_v63  ;;  %p6801_p3 = pnand %p6800_p2, %p6794_p13 }
 0x244   : > { %v6542_v37 = vpack.c.bf16 %v3594_v34, %v3426_v44  ;;  %v5071_v53 = vadd.f32 %v5069_v52, %v5054_v45  ;;  %v5075_v31 = vadd.f32 %v5073_v46, %v5055_v5  ;;  %v5079_v58 = vadd.f32 %v5077_v27, %v5056_v11 }
 0x245   : > { %v3595_v30 = vsel %vm10288_vm15, %v3443_v32, %v3563_v0  ;;  %v5081_v1 = vrot.slane %v5057_v7, 4  ;;  %v5085_v14 = vrot.slane %v5058_v10, 4  ;;  %v5089_v42 = vrot.slane %v5059_v19, 4 }
 0x246   : > { %v6540_v17 = vpack.c.bf16 %v3595_v30, %v3427_v60  ;;  %v5092_v56 = vadd.f32 %v5067_v40, %v5063_v59  ;;  %v5093_v4 = vadd.f32 %v5075_v31, %v5071_v53  ;;  %v6348_v26 = vrot.slane %v8947_v48, 9 }
 0x247   : > { %v5083_v20 = vadd.f32 %v5081_v1, %v5057_v7  ;;  %v5087_v3 = vadd.f32 %v5085_v14, %v5058_v10  ;;  %v5091_v6 = vadd.f32 %v5089_v42, %v5059_v19  ;;  %v6349_v8 = vrot.slane %v8947_v48, 10 }
 0x248   : > { %6541 = vmatprep.subr.bf16.mxu1 %v6540_v17  ;;  %v5104_v44 = vadd.f32 %v6348_v26, %v8947_v48  ;;  %v9007_v43 = vmul.f32 0.06666667, %v8953_v22  ;;  %v5096_v54 = vadd.f32 %v5093_v4, %v5092_v56 }
 0x249   : > { %6543 = vmatpush1.bf16.msra.mxu1 %v6542_v37  ;;  %v5094_v13 = vadd.f32 %v5083_v20, %v5079_v58  ;;  %v5095_v16 = vadd.f32 %v5091_v6, %v5087_v3 }
 0x24a   : > { %6326 = vmatprep.subr.msk.mxu1 %vm3246_vm5, %v3563_v0  ;;  %v5108_v60 = vadd.f32 %v6349_v8, %v5104_v44  ;;  %v5110_v23 = vmul.f32 %v9007_v43, %v9007_v43 }
 0x24b   : > { %v5097_v62 = vadd.f32 %v5095_v16, %v5094_v13 }
 0x24c   : > { %v9010_v28 = vmul.f32 0.33333334, %v5108_v60  ;;  %v6350_v5 = vrot.slane %v5110_v23, 9 }
 0x24d   : > { %6327 = vmatpush1.msk.msra.mxu1 %vm3246_vm5, %v3562_v21  ;;  %v5098_v29 = vadd.f32 %v5097_v62, %v5096_v54 }
 0x24e   : > { %10289 = vst [vmem:[#allocation5_spill] sm:$0xff] %v9010_v28  ;;  %6328 = vmatmul.mubr.msk.f32.vlgmr.msra.gmra.mrb[12].mxu1 %vm10290_vm12, %v8967_v24  ;;  %v5118_v22 = vsub.f32 %v8947_v48, %v9010_v28  ;;  %v5121_v32 = vrot.slane %v9010_v28, 7  ;;  %v5130_v12 = vrot.slane %v9010_v28, 6 }
 0x24f   : > { %4258 = vmatprep.mubr.f32.mxu1 %v10222_v51  ;;  %v9022_v57 = vmul.f32 0.06666667, %v5098_v29 }
 0x250   : > { %v5123_v9 = vsub.f32 %v8947_v48, %v5121_v32  ;;  %v5132_v63 = vsub.f32 %v8947_v48, %v5130_v12  ;;  %v5119_v24 = vmul.f32 %v5118_v22, %v5118_v22 }
 0x251   : > { %v5111_v45 = vmul.f32 %v9022_v57, %v9022_v57 }
 0x252   : > { %6329 = vmatmul.mubr.msk.f32.gmra.mrb[14].mxu1 %vm10291_vm0, %v8979_v2  ;;  %v5124_v11 = vmul.f32 %v5123_v9, %v5123_v9  ;;  %v5133_v15 = vmul.f32 %v5132_v63, %v5132_v63 }
 0x253   : > { %v5112_v33 = vadd.f32 %v5111_v45, %v5110_v23  ;;  %v5736_v23 = vmax.f32 %v8823_v38, 0.0  ;;  %v10298_v38 = vld [vmem:[#allocation18_spill] sm:$0xff] }
 0x254   : > { %v6351_v7 = vrot.slane %v5124_v11, 9  ;;  %v6352_v10 = vrot.slane %v5133_v15, 10  ;;  %v10294_v15 = vld [vmem:[#allocation10_spill] sm:$0xff] }
 0x255   : > { %v5117_v51 = vadd.f32 %v6350_v5, %v5112_v33  ;;  %v5760_v33 = vrot.slane %v10294_v15, 4  ;;  %vm5739_vm6 = vcmp.eq.f32.partialorder %v5736_v23, inf  ;;  %vm5741_vm4 = vcmp.eq.f32.partialorder %v5736_v23, 0.0 }
 0x256   : > { %v5129_v21 = vadd.f32 %v6351_v7, %v5119_v24  ;;  %v10293_v24 = vld [vmem:[#allocation9_spill] sm:$0xff] }
 0x257   : > { %v5139_v19 = vmul.f32 2.0, %v5117_v51  ;;  %v5757_v11 = vrot.slane %v10293_v24, 4  ;;  %v10295_v7 = vld [vmem:[#allocation13_spill] sm:$0xff]  ;;  %v10296_v51 = vld [vmem:[#allocation14_spill] sm:$0xff] }
 0x258   : > { %v5138_v55 = vadd.f32 %v6352_v10, %v5129_v21  ;;  %v5763_v10 = vrot.slane %v10295_v7, 4 }
 0x25a   : > { %v9030_v39 = vadd.f32 %v5139_v19, %v5138_v55  ;;  %v10297_v19 = vld [vmem:[#allocation17_spill] sm:$0xff] }
 0x25b   : > { %v5769_v55 = vrot.slane %v10297_v19, 4 }
 0x25c   : > { %10292 = vst [vmem:[#allocation19_spill] sm:$0xff] %v9030_v39  ;;  %v5142_v25 = vmax.f32 %v9030_v39, 0.0  ;;  %vm5141_vm8 = vcmp.le.f32.partialorder %v9030_v39, 1e-20 }
 0x25e   : > { %v5144_v52 = vmul.f32 0.16666667, %v5142_v25  ;;  %v5772_v25 = vrot.slane %v10298_v38, 4 }
 0x260   : > { %6707 = vrsqrt.f32 %v5144_v52  ;;  %vm5147_vm9 = vcmp.eq.f32.partialorder %v5144_v52, inf  ;;  %v5150_v27 = vand.u32 2147483648, %v5144_v52  ;;  %vm5149_vm1 = vcmp.eq.f32.partialorder %v5144_v52, 0.0 }
 0x26a   : > { %v6708_v46 = vpop.eup %6707 }
 0x26b   : > { %v5146_v2 = vmul.f32 %v6708_v46, %v5144_v52  ;;  %v5778_v46 = vrot.slane %v8639_v49, 4 }
 0x26d   : > { %v5148_v0 = vsel %vm5147_vm9, %v5144_v52, %v5146_v2  ;;  %v5775_v52 = vrot.slane %v8545_v35, 4  ;;  %v5759_v2 = vadd.f32 %v5757_v11, %v10293_v24  ;;  %vm5910_vm9 = vcmask 154624  }
 0x26e   : > { %v9034_v34 = vsel %vm5149_vm1, %v5150_v27, %v5148_v0  ;;  %v5762_v0 = vadd.f32 %v5760_v33, %v10294_v15 }
 0x26f   : > { %v5152_v59 = vsel %vm5141_vm8, 1.0, %v9034_v34 }
 0x270   : > { %6709 = vrcp.f32 %v5152_v59 }
 0x271   : > { %6711 = vrsqrt.f32 %v5736_v23 }
 0x27a   : > { %v6710_v40 = vpop.eup %6709 }
 0x27b   : > { %v5157_v37 = vmul.f32 %v6710_v40, %v9022_v57  ;;  %v5159_v53 = vrot.slane %v6710_v40, 7  ;;  %v5163_v31 = vrot.slane %v6710_v40, 6  ;;  %v5156_v14 = vmul.f32 %v6710_v40, %v9007_v43 }
 0x27c   : > { %v5155_v54 = vmul.f32 %v6710_v40, %v5118_v22  ;;  %v5766_v22 = vrot.slane %v10296_v51, 4  ;;  %v5765_v40 = vadd.f32 %v5763_v10, %v10295_v7 }
 0x27d   : > { %v5161_v58 = vmul.f32 %v5159_v53, %v5123_v9  ;;  %v5162_v30 = vmul.f32 %v5159_v53, %v9007_v43  ;;  %v5183_v1 = vrot.slane %v5157_v37, 7  ;;  %v5165_v42 = vmul.f32 %v5163_v31, %v5132_v63 }
 0x27e   : > { %v5744_v53 = vmax.f32 %v8837_v47, 0.0  ;;  %v5771_v31 = vadd.f32 %v5769_v55, %v10297_v19 }
 0x27f   : > { %v5185_v17 = vmul.f32 %v5183_v1, %v5162_v30  ;;  %v6357_v56 = vrot.slane %v5162_v30, 9  ;;  %v5198_v4 = vmul.f32 %v5183_v1, %v5161_v58  ;;  %v6353_v26 = vrot.slane %v5165_v42, 9  ;;  %v6712_v1 = vpop.eup %6711 }
 0x280   : > { %v5171_v20 = vmul.f32 %v5162_v30, %v5162_v30  ;;  %v6355_v3 = vrot.slane %v5165_v42, 10  ;;  %v5777_v30 = vadd.f32 %v5775_v52, %v8545_v35  ;;  %6713 = vrsqrt.f32 %v5744_v53 }
 0x281   : > { %v6356_v6 = vrot.slane %v5185_v17, 9  ;;  %v5197_v8 = vmul.f32 %v6357_v56, %v5156_v14  ;;  %v6358_v44 = vrot.slane %v5198_v4, 9  ;;  %v5170_v13 = vmul.f32 %v6353_v26, %v5161_v58 }
 0x282   : > { %v5181_v16 = vmul.f32 %v6355_v3, %v5156_v14  ;;  %v5774_v58 = vadd.f32 %v5772_v25, %v10298_v38  ;;  %v5780_v17 = vadd.f32 %v5778_v46, %v8639_v49  ;;  %v5781_v56 = vadd.f32 %v5762_v0, %v5759_v2 }
 0x283   : > { %v5172_v60 = vsub.f32 %v5170_v13, %v5171_v20  ;;  %v5203_v29 = vsub.f32 %v5197_v8, %v6358_v44  ;;  %v5738_v20 = vmul.f32 %v6712_v1, %v5736_v23  ;;  %vm5747_vm3 = vcmp.eq.f32.partialorder %v5744_v53, inf }
 0x284   : > { %v5190_v62 = vsub.f32 %v5181_v16, %v6356_v6  ;;  %v5783_v47 = vadd.f32 %v5774_v58, %v5771_v31  ;;  %v5784_v6 = vadd.f32 %v5780_v17, %v5777_v30  ;;  %v5742_v16 = vand.u32 2147483648, %v5736_v23  ;;  %v10300_v17 = vld [vmem:[#allocation6_spill] sm:$0xff] }
 0x285   : > { %v6354_v32 = vrot.slane %v5172_v60, 9  ;;  %v5204_v63 = vmul.f32 %v5203_v29, %v5157_v37  ;;  %v5768_v37 = vadd.f32 %v5766_v22, %v10296_v51  ;;  %v5750_v11 = vand.u32 2147483648, %v5744_v53 }
 0x286   : > { %v5191_v12 = vmul.f32 %v5190_v62, %v5156_v14  ;;  %v5786_v44 = vadd.f32 %v5784_v6, %v5783_v47  ;;  %vm5749_vm7 = vcmp.eq.f32.partialorder %v5744_v53, 0.0  ;;  %v5812_v30 = vrot.slane %v9007_v43, %v7058_v41 }
 0x287   : > { %v5177_v9 = vmul.f32 %v6354_v32, %v5155_v54  ;;  %v5782_v3 = vadd.f32 %v5768_v37, %v5765_v40  ;;  %v5740_v54 = vsel %vm5739_vm6, %v5736_v23, %v5738_v20  ;;  %v5818_v20 = vrot.slane %v9022_v57, %v7058_v41 }
 0x288   : > { %v9071_v32 = vsel %vm5741_vm4, %v5742_v16, %v5740_v54  ;;  %v9105_v57 = vmul.f32 2.0, %v9034_v34 }
 0x289   : > { %v5192_v45 = vsub.f32 %v5177_v9, %v5191_v12  ;;  %v5785_v35 = vadd.f32 %v5782_v3, %v5781_v56  ;;  %10299 = vst [vmem:[#allocation11_spill] sm:$0xff] %v9071_v32  ;;  %v5797_v12 = vmul.f32 1.0666667, %v7066_v50  ;;  %v5752_v23 = vadd.f32 1e-08, %v9071_v32 }
 0x28a   : > { %v6714_v9 = vpop.eup %6713  ;;  %v9089_v56 = vsub.s32 1, %v10300_v17  ;;  %10304 = vst [vmem:[#allocation9_spill] sm:$0xff] %v9105_v57 }
 0x28b   : > { %v5205_v5 = vadd.f32 %v5204_v63, %v5192_v45  ;;  %v5787_v60 = vadd.f32 %v5786_v44, %v5785_v35  ;;  %v5798_v24 = vmul.f32 %v5797_v12, %v7066_v50 }
 0x28c   : > { %10301 = vst [vmem:[#allocation15_spill] sm:$0xff] %v9089_v56  ;;  %v5823_v35 = vrot.slane %v8947_v48, %v9089_v56  ;;  %v5828_v54 = vrot.slane %v9007_v43, %v9089_v56  ;;  %v10314_v56 = vmov 2  }
 0x28d   : > { %v9047_v21 = vmul.f32 0.5, %v5205_v5  ;;  %v5788_v62 = vmul.f32 %v5787_v60, %v5787_v60  ;;  %v5746_v5 = vmul.f32 %v6714_v9, %v5744_v53  ;;  %v5799_v22 = vsub.f32 %v8947_v48, %v5798_v24 }
 0x28e   : > { %v10312_v60 = vmov 2102212464  }
 0x28f   : > { %v6359_v27 = vclamps-f32 %v9047_v21, 1.0  ;;  %v5789_v63 = vsel %vm3314_vm2, %v5788_v62, 0.0  ;;  %v5748_v33 = vsel %vm5747_vm3, %v5744_v53, %v5746_v5  ;;  %v9081_v46 = vmax.f32 %v5799_v22, 0.0  ;;  %v9136_v5 = vpop.permute.xlu0 %3602  ;;  %v9158_v22 = vld [vmem:[%s10118_s5 + $0x8] sm:$0xff] }
 0x290   : > { %v5790_v7 = vrot.slane %v5789_v63, 4  ;;  %v5751_v51 = vsel %vm5749_vm7, %v5750_v11, %v5748_v33  ;;  %v9108_v21 = vmul.f32 3.0, %v9010_v28  ;;  %v9147_v33 = vpop.f32.mrb[0].mxu1 }
 0x291   : > { %v9058_v59 = vand.u32 2147483647, %v6359_v27  ;;  %v5755_v55 = vsub.f32 %v9071_v32, %v5751_v51  ;;  %vm5234_vm0 = vcmp.lt.f32.partialorder %v6359_v27, 0.0  ;;  %vm5803_vm1 = vcmp.eq.f32.partialorder %v9081_v46, inf }
 0x292   : > { %v5791_v52 = vadd.f32 %v5790_v7, %v5789_v63  ;;  %10305 = vst [vmem:[#allocation10_spill] sm:$0xff] %v9108_v21  ;;  %vm5805_vm6 = vcmp.eq.f32.partialorder %v9081_v46, 0.0 }
 0x293   : > { %v5210_v14 = vmul.f32 -0.0012624911, %v9058_v59  ;;  %v5224_v42 = vsub.f32 1.0, %v9058_v59 }
 0x294   : > { %v5792_v53 = vrot.slane %v5791_v52, 2 }
 0x295   : > { %v5211_v4 = vadd.f32 0.00667009, %v5210_v14  ;;  %v5225_v26 = vmax.f32 %v5224_v42, 0.0 }
 0x296   : > { %v5793_v14 = vadd.f32 %v5792_v53, %v5791_v52 }
 0x297   : > { %v5212_v8 = vmul.f32 %v5211_v4, %v9058_v59  ;;  %6715 = vrsqrt.f32 %v5225_v26  ;;  %vm5228_vm15 = vcmp.eq.f32.partialorder %v5225_v26, inf  ;;  %v5231_v0 = vand.u32 2147483648, %v5225_v26 }
 0x298   : > { %6717 = vrcp.f32 %v5752_v23  ;;  %vm5230_vm12 = vcmp.eq.f32.partialorder %v5225_v26, 0.0  ;;  %v5794_v6 = vrot.slane %v5793_v14, 1 }
 0x299   : > { %v5213_v13 = vadd.f32 -0.017088126, %v5212_v8  ;;  %6719 = vrsqrt.f32 %v9081_v46  ;;  %v5832_v8 = vsub.s32 2, %v10300_v17 }
 0x29a   : > { %v5795_v34 = vadd.f32 %v5794_v6, %v5793_v14 }
 0x29b   : > { %v5214_v49 = vmul.f32 %v5213_v13, %v9058_v59  ;;  %v5833_v62 = vrot.slane %v8947_v48, %v5832_v8  ;;  %v9152_v51 = vrot.slane %v7066_v50, %v5832_v8 }
 0x29c   : > { %v9163_v52 = vmul.f32 0.00390625, %v5795_v34 }
 0x29d   : > { %v5215_v29 = vadd.f32 0.03089188, %v5214_v49  ;;  %v5898_v49 = vld [vmem:[%s10117_s4] sm:$0xff]  ;;  %10306 = vst [vmem:[#allocation13_spill] sm:$0xff] %v9152_v51 }
 0x29e   : > { %6438 = vmatprep.mubr.msk.f32.mxu1 %vm5910_vm9, %v5898_v49  ;;  %10307 = vst [vmem:[#allocation14_spill] sm:$0xff] %v9163_v52  ;;  %v10316_v52 = vmov 1326507024  }
 0x29f   : > { %v5216_v45 = vmul.f32 %v5215_v29, %v9058_v59 }
 0x2a1   : > { %v5217_v15 = vadd.f32 -0.050174303, %v5216_v45  ;;  %v6716_v10 = vpop.eup %6715 }
 0x2a2   : > { %v5227_v25 = vmul.f32 %v6716_v10, %v5225_v26  ;;  %v6718_v42 = vpop.eup %6717 }
 0x2a3   : > { %v5218_v19 = vmul.f32 %v5217_v15, %v9058_v59  ;;  %v9099_v47 = vmul.f32 16.0, %v6718_v42  ;;  %v6720_v13 = vpop.eup %6719  ;;  %v9145_v15 = vpop.f32.mrb[0].mxu0 }
 0x2a4   : > { %v5229_v37 = vsel %vm5228_vm15, %v5225_v26, %v5227_v25  ;;  %v9095_v26 = vmul.f32 0.06666667, %v5755_v55  ;;  %v5802_v23 = vmul.f32 %v6720_v13, %v9081_v46  ;;  %v3717_v55 = vpop.f32.mrb[1].mxu0 }
 0x2a5   : > { %v5219_v38 = vadd.f32 0.08897899, %v5218_v19  ;;  %v5232_v58 = vsel %vm5230_vm12, %v5231_v0, %v5229_v37  ;;  %10303 = vst [vmem:[#allocation16_spill] sm:$0xff] %v9099_v47  ;;  %v10174_v19 = vmov 1   ;;  %v9169_v0 = vld [vmem:[%s10115_s2] sm:$0xff]  ;;  %v9172_v37 = vpop.f32.mrb[2].mxu0 }
 0x2a6   : > { %10302 = vst [vmem:[#allocation12_spill] sm:$0xff] %v9095_v26  ;;  %6651 = vset.pattern.permute.xlu0 %v10174_v19  ;;  %10308 = vst [vmem:[#allocation17_spill] sm:$0xff] %v9172_v37  ;;  %v5804_v17 = vsel %vm5803_vm1, %v9081_v46, %v5802_v23 }
 0x2a7   : > { %v5220_v2 = vmul.f32 %v5219_v38, %v9058_v59  ;;  %4651 = vperm.xlu0 %6651, %v9169_v0  }
 0x2a9   : > { %v5221_v40 = vadd.f32 -0.2145988, %v5220_v2 }
 0x2ab   : > { %v5222_v31 = vmul.f32 %v5221_v40, %v9058_v59  ;;  %v5881_v59 = vsel %vm3229_vm14, %v8947_v48, %v5812_v30  ;;  %v9134_v48 = vld [vmem:[%s10118_s5] sm:$0xff]  ;;  %v3794_v40 = vpop.f32.mrb[1].mxu1 }
 0x2ac   : > { %v5882_v27 = vsel %vm3280_vm11, %v5881_v59, %v5818_v20  ;;  %5902 = vperm.xlu1 %6650, %v9134_v48   ;;  %v9176_v30 = vpop.f32.mrb[2].mxu1  ;;  %v3723_v20 = vpop.f32.mrb[3].mxu0 }
 0x2ad   : > { %v5223_v1 = vadd.f32 1.5707963, %v5222_v31  ;;  %v5883_v45 = vsel %vm3314_vm2, %v5882_v27, %v5823_v35  ;;  %10309 = vst [vmem:[#allocation18_spill] sm:$0xff] %v9176_v30  ;;  %v3800_v8 = vpop.f32.mrb[3].mxu1  ;;  %v3869_v35 = vpop.f32.mrb[4].mxu0 }
 0x2ae   : > { %v5884_v2 = vsel %vm3246_vm5, %v5883_v45, %v5828_v54  ;;  %v10175_v54 = vmov 2   ;;  %v3946_v34 = vpop.f32.mrb[4].mxu1 }
 0x2af   : > { %v5233_v4 = vmul.f32 %v5232_v58, %v5223_v1  ;;  %v5806_v58 = vand.u32 2147483648, %v9081_v46  ;;  %v9178_v1 = vpop.permute.xlu0 %3607  ;;  %v9196_v13 = vsel %vm3297_vm13, %v5884_v2, %v5833_v62  ;;  %6654 = vset.pattern.permute.xlu0 %v10175_v54  ;;  %v6786_v62 = vld [vmem:[%s10115_s2 + $0x8] sm:$0xff] }
 0x2b0   : > { %5907 = vperm.xlu1 %6650, %v9158_v22   ;;  %v9193_v6 = vadd.f32 %v3723_v20, %v9178_v1  ;;  %10310 = vst [vmem:[#allocation6_spill] sm:$0xff] %v9196_v13  ;;  %v9200_v49 = vadd.f32 %v3800_v8, %v9178_v1  ;;  %4695 = vperm.xlu0 %6654, %v6786_v62  }
 0x2b1   : > { %v5235_v3 = vsub.f32 3.1415927, %v5233_v4  ;;  %v9208_v23 = vsel %vm5805_vm6, %v5806_v58, %v5804_v17  ;;  %v9234_v17 = vadd.f32 %v3946_v34, %v9136_v5 }
 0x2b2   : > { %10311 = vst [vmem:[#allocation20_spill] sm:$0xff] %v9208_v23 }
 0x2b3   : > { %v5236_v44 = vsel %vm5234_vm0, %v5235_v3, %v5233_v4  ;;  %v9187_v4 = vadd.f32 %v3717_v55, %v9136_v5  ;;  %v9190_v3 = vadd.f32 %v3794_v40, %v9136_v5  ;;  %v9225_v40 = vadd.f32 %v3869_v35, %v9136_v5 }
 0x2b4   : > { %v9111_v16 = vmul.f32 0.33333334, %v5236_v44  ;;  %6652 = vset.pattern.permute.xlu1 %v10174_v19  ;;  %6030 = vperm.xlu0 %6654, %v9134_v48  }
 0x2b5   : > { %v9222_v46 = vadd.f32 %v9200_v49, %v9190_v3  ;;  %4655 = vperm.xlu1 %6652, %v6786_v62  }
 0x2b6   : > { %v10173_v43 = vand.u32 2147483647, %v9111_v16  ;;  %v5242_v9 = vand.u32 2139095040, %v9111_v16  ;;  %v9139_v24 = vadd.f32 2.0943952, %v9111_v16 }
 0x2b8   : > { %v5243_v7 = vshrl.u32 %v5242_v9, 23  ;;  %v5246_v10 = vand.u32 8388607, %v10173_v43  ;;  %v10172_v38 = vand.u32 2147483647, %v9139_v24  ;;  %v5348_v25 = vand.u32 2139095040, %v9139_v24 }
 0x2b9   : > { %v9202_v9 = vpop.f32.mrb[5].mxu0  ;;  %6653 = vset.pattern.permute.xlu1 %v10314_v56 }
 0x2ba   : > { %v6360_v53 = vadd.s32 4294967169, %v5243_v7  ;;  %v5247_v31 = vor.u32 8388608, %v5246_v10  ;;  %v5349_v14 = vshrl.u32 %v5348_v25, 23  ;;  %v5352_v42 = vand.u32 8388607, %v10172_v38  ;;  %v9217_v10 = vpop.f32.mrb[5].mxu1  ;;  %4691 = vperm.xlu1 %6653, %v9169_v0  }
 0x2bb   : > { %v9215_v7 = vadd.f32 %v9193_v6, %v9187_v4  ;;  %v3875_v55 = vpop.f32.mrb[6].mxu0  ;;  %v10313_v38 = vmov 920167782  }
 0x2bc   : > { %v5249_v59 = vadd.s32 1, %v6360_v53  ;;  %v6364_v44 = vadd.s32 4294967169, %v5349_v14  ;;  %v5353_v27 = vor.u32 8388608, %v5352_v42  ;;  %v9204_v45 = vshll.u32 %v5247_v31, 8  ;;  %v9227_v53 = vpop.f32.mrb[6].mxu1  ;;  %v9229_v31 = vpop.f32.mrb[7].mxu0 }
 0x2bd   : > { %v9236_v20 = vpop.f32.mrb[7].mxu1 }
 0x2be   : > { %vm5250_vm4 = vcmp.gt.s32.totalorder %v5249_v59, 0  ;;  %v5355_v2 = vadd.s32 1, %v6364_v44  ;;  %v9231_v42 = vshll.u32 %v5353_v27, 8  ;;  %v9243_v44 = vadd.f32 %v3875_v55, %v9178_v1  ;;  %v9245_v11 = vpop.f32.mrb[8].mxu1 }
 0x2bf   : > { %v5251_v25 = vsel %vm5250_vm4, %v5249_v59, 0  ;;  %v9238_v59 = vpop.f32.mrb[8].mxu0  ;;  %v9253_v12 = vpop.f32.mrb[9].mxu1 }
 0x2c0   : > { %v5252_v58 = vshrl.u32 %v5251_v25, 5  ;;  %v5253_v14 = vand.u32 31, %v5251_v25  ;;  %vm5356_vm3 = vcmp.gt.s32.totalorder %v5355_v2, 0  ;;  %v9247_v27 = vpop.f32.mrb[9].mxu0  ;;  %v9259_v43 = vpop.f32.mrb[10].mxu1 }
 0x2c1   : > { %v9255_v29 = vpop.f32.mrb[10].mxu0  ;;  %v9268_v50 = vpop.f32.mrb[11].mxu1  ;;  %v5357_v41 = vsel %vm5356_vm3, %v5355_v2, 0 }
 0x2c2   : > { %v5254_v62 = vsub.s32 32, %v5253_v14  ;;  %v5256_v34 = vshll.u32 %v10213_v36, %v5253_v14  ;;  %v5259_v25 = vshll.u32 %v10214_v18, %v5253_v14  ;;  %v5262_v63 = vshll.u32 %v10215_v61, %v5253_v14  ;;  %v9261_v8 = vpop.f32.mrb[11].mxu0  ;;  %10315 = vst [vmem:[#allocation21_spill] sm:$0xff] %v9268_v50 }
 0x2c3   : > { %v5265_v55 = vshll.u32 %v10312_v60, %v5253_v14  ;;  %v5268_v35 = vshll.u32 %v10313_v38, %v5253_v14  ;;  %vm5271_vm7 = vcmp.lt.s32.totalorder %v5252_v58, 1  ;;  %vm5272_vm15 = vcmp.lt.s32.totalorder %v5252_v58, 2 }
 0x2c4   : > { %v5255_v19 = vshrl.u32 %v10213_v36, %v5254_v62  ;;  %v5257_v54 = vshrl.u32 %v10214_v18, %v5254_v62  ;;  %v5260_v23 = vshrl.u32 %v10215_v61, %v5254_v62  ;;  %v5263_v51 = vshrl.u32 %v10312_v60, %v5254_v62 }
 0x2c5   : > { %v5266_v14 = vshrl.u32 %v10313_v38, %v5254_v62  ;;  %v5269_v26 = vshrl.u32 %v10316_v52, %v5254_v62  ;;  %vm5273_vm12 = vcmp.lt.s32.totalorder %v5252_v58, 3  ;;  %vm5274_vm0 = vcmp.lt.s32.totalorder %v5252_v58, 4 }
 0x2c6   : > { %v5258_v13 = vor.u32 %v5257_v54, %v5256_v34  ;;  %v5261_v47 = vor.u32 %v5260_v23, %v5259_v25  ;;  %v5264_v32 = vor.u32 %v5263_v51, %v5262_v63  ;;  %v9274_v39 = vshrl.u32 %v5357_v41, 5 }
 0x2c7   : > { %v5267_v30 = vor.u32 %v5266_v14, %v5265_v55  ;;  %v5270_v37 = vor.u32 %v5269_v26, %v5268_v35  ;;  %v5359_v21 = vand.u32 31, %v5357_v41  ;;  %v10317_v23 = vmov 1  }
 0x2c8   : > { %v5275_v50 = vsel %vm5271_vm7, %v5255_v19, %v5258_v13  ;;  %v5276_v28 = vsel %vm5274_vm0, %v5264_v32, 2102212464  ;;  %v5279_v62 = vsel %vm5271_vm7, %v5258_v13, %v5261_v47  ;;  %v5283_v57 = vsel %vm5271_vm7, %v5261_v47, %v5264_v32  ;;  %6655 = vset.pattern.permute.xlu1 %v10317_v23 }
 0x2c9   : > { %v5277_v0 = vsel %vm5273_vm12, %v5261_v47, %v5276_v28  ;;  %v5280_v54 = vsel %vm5274_vm0, %v5267_v30, 920167782  ;;  %v5284_v63 = vsel %vm5274_vm0, %v5270_v37, 1326507024  ;;  %v5360_v51 = vsub.s32 32, %v5359_v21  ;;  %6020 = vperm.xlu1 %6655, %v9134_v48  }
 0x2ca   : > { %v5278_v26 = vsel %vm5272_vm15, %v5275_v50, %v5277_v0  ;;  %v5281_v41 = vsel %vm5273_vm12, %v5264_v32, %v5280_v54  ;;  %v5285_v19 = vsel %vm5273_vm12, %v5267_v30, %v5284_v63  ;;  %v5362_v2 = vshll.u32 %v10213_v36, %v5359_v21 }
 0x2cb   : > { %v5282_v13 = vsel %vm5272_vm15, %v5279_v62, %v5281_v41  ;;  %v5286_v28 = vsel %vm5272_vm15, %v5283_v57, %v5285_v19  ;;  %v5294_v47 = vmul.u32 %v9204_v45, %v5278_v26  ;;  %v5361_v37 = vshrl.u32 %v10213_v36, %v5360_v51 }
 0x2cc   : > { %v9294_v35 = vmul.u32.u64.low %v9204_v45, %v5286_v28  ;;  %v9295_v34 = vmul.u32.u64.high %v9204_v45, %v5286_v28, %v9294_v35  ;;  %v9298_v50 = vmul.u32.u64.low %v9204_v45, %v5282_v13  ;;  %v9299_v32 = vmul.u32.u64.high %v9204_v45, %v5282_v13, %v9298_v50 }
 0x2cd   : > { %v5363_v30 = vshrl.u32 %v10214_v18, %v5360_v51  ;;  %v5365_v48 = vshll.u32 %v10214_v18, %v5359_v21  ;;  %v5366_v58 = vshrl.u32 %v10215_v61, %v5360_v51  ;;  %v5368_v57 = vshll.u32 %v10215_v61, %v5359_v21  ;;  %6024 = vperm.xlu1 %6655, %v9158_v22  }
 0x2ce   : > { %v5369_v25 = vshrl.u32 %v10312_v60, %v5360_v51  ;;  %v5371_v36 = vshll.u32 %v10312_v60, %v5359_v21  ;;  %v5372_v55 = vshrl.u32 %v10313_v38, %v5360_v51  ;;  %v5374_v14 = vshll.u32 %v10313_v38, %v5359_v21 }
 0x2cf   : > { %v5364_v45 = vor.u32 %v5363_v30, %v5362_v2  ;;  %v5367_v62 = vor.u32 %v5366_v58, %v5365_v48  ;;  %v5375_v0 = vshrl.u32 %v10316_v52, %v5360_v51  ;;  %vm5377_vm1 = vcmp.lt.s32.totalorder %v9274_v39, 1 }
 0x2d0   : > { %vm5296_vm6 = vc.u32 %v9295_v34, %v9298_v50  ;;  %v5297_v18 = vadd.s32 1, %v9299_v32  ;;  %v5370_v61 = vor.u32 %v5369_v25, %v5368_v57  ;;  %v9318_v60 = vadd.f32 %v9227_v53, %v9178_v1 }
 0x2d1   : > { %v5373_v54 = vor.u32 %v5372_v55, %v5371_v36  ;;  %v5376_v21 = vor.u32 %v5375_v0, %v5374_v14  ;;  %vm5378_vm4 = vcmp.lt.s32.totalorder %v9274_v39, 2  ;;  %vm5379_vm3 = vcmp.lt.s32.totalorder %v9274_v39, 3  ;;  %6656 = vset.pattern.permute.xlu1 %v10314_v56 }
 0x2d2   : > { %v5298_v38 = vsel %vm5296_vm6, %v5297_v18, %v9299_v32  ;;  %vm5380_vm7 = vcmp.lt.s32.totalorder %v9274_v39, 4  ;;  %v5381_v52 = vsel %vm5377_vm1, %v5361_v37, %v5364_v45  ;;  %v5385_v63 = vsel %vm5377_vm1, %v5364_v45, %v5367_v62  ;;  %6034 = vperm.xlu1 %6656, %v9158_v22  }
 0x2d3   : > { %v5299_v53 = vadd.s32 %v5298_v38, %v5294_v47  ;;  %v5382_v51 = vsel %vm5380_vm7, %v5370_v61, 2102212464  ;;  %v5386_v23 = vsel %vm5380_vm7, %v5373_v54, 920167782  ;;  %v5389_v26 = vsel %vm5377_vm1, %v5367_v62, %v5370_v61 }
 0x2d4   : > { %vm5241_vm15 = vcmp.lt.s32.totalorder %v9111_v16, 0  ;;  %v5383_v41 = vsel %vm5379_vm3, %v5367_v62, %v5382_v51  ;;  %v5387_v19 = vsel %vm5379_vm3, %v5370_v61, %v5386_v23  ;;  %v5390_v2 = vsel %vm5380_vm7, %v5376_v21, 1326507024 }
 0x2d5   : > { %v10318_v56 = vrot.slane %v9215_v7, 4  ;;  %v5300_v28 = vadd.s32 536870912, %v5299_v53  ;;  %v5384_v47 = vsel %vm5378_vm4, %v5381_v52, %v5383_v41  ;;  %v5388_v22 = vsel %vm5378_vm4, %v5385_v63, %v5387_v19 }
 0x2d6   : > { %v5391_v37 = vsel %vm5379_vm3, %v5373_v54, %v5390_v2  ;;  %v9349_v32 = vmul.u32.u64.low %v9231_v42, %v5388_v22  ;;  %v9350_v30 = vmul.u32.u64.high %v9231_v42, %v5388_v22, %v9349_v32  ;;  %v10319_v36 = vand.u32 2147483647, %v9111_v16 }
 0x2d7   : > { %v4274_v13 = vadd.f32 %v10318_v56, %v9215_v7  ;;  %v5392_v35 = vsel %vm5378_vm4, %v5389_v26, %v5391_v37  ;;  %v9355_v7 = vadd.f32 %v9202_v9, %v9136_v5  ;;  %v5301_v48 = vshrl.u32 %v5300_v28, 30 }
 0x2d8   : > { %v9358_v58 = vmul.u32.u64.low %v9231_v42, %v5392_v35  ;;  %v9359_v57 = vmul.u32.u64.high %v9231_v42, %v5392_v35, %v9358_v58  ;;  %vm9363_vm12 = vcmp.le.f32.partialorder %v10319_v36, 0.7853982  ;;  %v5400_v55 = vmul.u32 %v9231_v42, %v5384_v47 }
 0x2d9   : > { %v4275_v25 = vrot.slane %v4274_v13, 2  ;;  %v10322_v14 = vrot.slane %v9222_v46, 4  ;;  %v4293_v9 = vadd.f32 %v9243_v44, %v9225_v40  ;;  %v4307_v62 = vadd.f32 %v9318_v60, %v9234_v17 }
 0x2da   : > { %v5302_v0 = vshll.u32 %v5301_v48, 30  ;;  %v5325_v18 = vsub.s32 4, %v5301_v48  ;;  %v9377_v54 = vadd.f32 %v9229_v31, %v9178_v1  ;;  %v5403_v21 = vadd.s32 1, %v9350_v30 }
 0x2db   : > { %v4288_v45 = vadd.f32 %v10322_v14, %v9222_v46  ;;  %v4276_v61 = vadd.f32 %v4275_v25, %v4274_v13  ;;  %v4294_v38 = vrot.slane %v4293_v9, 4  ;;  %v4308_v52 = vrot.slane %v4307_v62, 4 }
 0x2dc   : > { %v9380_v63 = vsub.s32 %v5299_v53, %v5302_v0  ;;  %vm5402_vm0 = vc.u32 %v9359_v57, %v9349_v32  ;;  %v9386_v46 = vadd.f32 %v9145_v15, %v9136_v5  ;;  %v9390_v51 = vadd.f32 %v9217_v10, %v9136_v5 }
 0x2dd   : > { %v4289_v42 = vrot.slane %v4288_v45, 2  ;;  %v5404_v31 = vsel %vm5402_vm0, %v5403_v21, %v9350_v30  ;;  %v4277_v23 = vrot.slane %v4276_v61, 1  ;;  %v9395_v41 = vadd.f32 %v9236_v20, %v9178_v1 }
 0x2de   : > { %v5305_v53 = vsub.s32 0, %v9380_v63  ;;  %v5326_v19 = vsel %vm5241_vm15, %v5325_v18, %v5301_v48  ;;  %vm5347_vm1 = vcmp.lt.s32.totalorder %v9139_v24, 0  ;;  %v5405_v15 = vadd.s32 %v5404_v31, %v5400_v55 }
 0x2df   : > { %v4290_v26 = vadd.f32 %v4289_v42, %v4288_v45  ;;  %v4295_v2 = vadd.f32 %v4294_v38, %v4293_v9  ;;  %v4278_v56 = vadd.f32 %v4277_v23, %v4276_v61  ;;  %v4309_v13 = vadd.f32 %v4308_v52, %v4307_v62 }
 0x2e0   : > { %v4300_v28 = vadd.f32 %v9377_v54, %v9355_v7  ;;  %v5295_v47 = vadd.s32 %v9298_v50, %v9295_v34  ;;  %v6361_v20 = vmin.u32 %v5305_v53, %v9380_v63  ;;  %v10323_v22 = vand.u32 2147483647, %v9139_v24 }
 0x2e1   : > { %v4291_v10 = vrot.slane %v4290_v26, 1  ;;  %v9414_v35 = vadd.f32 %v9147_v33, %v9136_v5  ;;  %v5406_v30 = vadd.s32 536870912, %v5405_v15  ;;  %v4379_v48 = vmul.f32 0.0625, %v4278_v56 }
 0x2e2   : > { %vm9408_vm6 = vcmp.le.f32.partialorder %v10323_v22, 0.7853982  ;;  %v4296_v25 = vrot.slane %v4295_v2, 2  ;;  %v5307_v36 = vclz %v6361_v20  ;;  %v5328_v34 = vsel %vm9363_vm12, 0, %v5326_v19 }
 0x2e3   : > { %v4292_v58 = vadd.f32 %v4291_v10, %v4290_v26  ;;  %v4310_v50 = vrot.slane %v4309_v13, 2  ;;  %v9420_v55 = vadd.f32 %v9395_v41, %v9390_v51  ;;  %v5407_v14 = vshrl.u32 %v5406_v30, 30 }
 0x2e4   : > { %v9423_v45 = vsub.f32 %v9187_v4, %v4379_v48  ;;  %v9426_v33 = vsub.f32 %v9193_v6, %v4379_v48  ;;  %v6362_v62 = vadd.s32 4294967294, %v5307_v36  ;;  %v4297_v0 = vadd.f32 %v4296_v25, %v4295_v2 }
 0x2e5   : > { %v4381_v9 = vmul.f32 0.0625, %v4292_v58  ;;  %v4311_v18 = vadd.f32 %v4310_v50, %v4309_v13  ;;  %v4301_v61 = vrot.slane %v4300_v28, 4  ;;  %v5408_v21 = vshll.u32 %v5407_v14, 30 }
 0x2e6   : > { %v5431_v42 = vsub.s32 4, %v5407_v14  ;;  %v4427_v38 = vmul.f32 %v9423_v45, %v9423_v45  ;;  %v4443_v52 = vmul.f32 %v9426_v33, %v9426_v33  ;;  %vm6363_vm4 = vcmp.lt.s32.totalorder %v6362_v62, 0 }
 0x2e7   : > { %v9433_v4 = vsub.f32 %v9190_v3, %v4381_v9  ;;  %v9436_v6 = vsub.f32 %v9200_v49, %v4381_v9  ;;  %v4298_v31 = vrot.slane %v4297_v0, 1  ;;  %v5310_v23 = vsel %vm6363_vm4, 0, %v6362_v62 }
 0x2e8   : > { %v9438_v26 = vsub.s32 %v5405_v15, %v5408_v21  ;;  %v5432_v53 = vsel %vm5347_vm1, %v5431_v42, %v5407_v14  ;;  %v4465_v19 = vadd.f32 %v4443_v52, %v4427_v38  ;;  %v5311_v2 = vsub.s32 32, %v5310_v23 }
 0x2e9   : > { %v5312_v56 = vshll.u32 %v9380_v63, %v5310_v23  ;;  %v5315_v10 = vsub.s32 4294967266, %v5310_v23  ;;  %v5434_v13 = vsel %vm9408_vm6, 0, %v5432_v53  ;;  %v4429_v49 = vmul.f32 %v9433_v4, %v9433_v4 }
 0x2ea   : > { %v5411_v3 = vsub.s32 0, %v9438_v26  ;;  %v4466_v20 = vrot.slane %v4465_v19, 4  ;;  %v4302_v22 = vadd.f32 %v4301_v61, %v4300_v28  ;;  %v5313_v15 = vshrl.u32 %v5295_v47, %v5311_v2 }
 0x2eb   : > { %v5316_v30 = vadd.s32 127, %v5315_v10  ;;  %v4445_v48 = vmul.f32 %v9436_v6, %v9436_v6  ;;  %v4299_v58 = vadd.f32 %v4298_v31, %v4297_v0  ;;  %v9450_v25 = vand.u32 3, %v5328_v34 }
 0x2ec   : > { %v5401_v63 = vadd.s32 %v9349_v32, %v9359_v57  ;;  %v6365_v36 = vmin.u32 %v5411_v3, %v9438_v26  ;;  %v9455_v50 = vand.u32 3, %v5434_v13  ;;  %v5314_v14 = vor.u32 %v5313_v15, %v5312_v56 }
 0x2ed   : > { %v5317_v9 = vshll.u32 %v5316_v30, 23  ;;  %v4467_v62 = vadd.f32 %v4466_v20, %v4465_v19  ;;  %v4479_v21 = vadd.f32 %v4445_v48, %v4429_v49  ;;  %v4382_v47 = vmul.f32 0.0625, %v4299_v58 }
 0x2ee   : > { %v5413_v28 = vclz %v6365_v36  ;;  %v4312_v61 = vrot.slane %v4311_v18, 1  ;;  %v4303_v42 = vrot.slane %v4302_v22, 2  ;;  %v5321_v52 = vcvt.s32.f32 %v5314_v14 }
 0x2ef   : > { %v5318_v38 = vor.u32 4788187, %v5317_v9  ;;  %v4468_v0 = vrot.slane %v4467_v62, 2  ;;  %v4480_v34 = vrot.slane %v4479_v21, 4  ;;  %v9458_v23 = vsub.f32 %v9225_v40, %v4382_v47 }
 0x2f0   : > { %v6366_v31 = vadd.s32 4294967294, %v5413_v28  ;;  %v9461_v32 = vsub.f32 %v9243_v44, %v4382_v47  ;;  %v4313_v57 = vadd.f32 %v4312_v61, %v4311_v18  ;;  %v4304_v56 = vadd.f32 %v4303_v42, %v4302_v22 }
 0x2f1   : > { %v5319_v53 = vand.u32 2147483647, %v5318_v38  ;;  %v4469_v2 = vadd.f32 %v4468_v0, %v4467_v62  ;;  %v4481_v19 = vadd.f32 %v4480_v34, %v4479_v21  ;;  %v4430_v10 = vmul.f32 %v9458_v23, %v9458_v23 }
 0x2f2   : > { %vm6367_vm3 = vcmp.lt.s32.totalorder %v6366_v31, 0  ;;  %v4446_v13 = vmul.f32 %v9461_v32, %v9461_v32  ;;  %v4384_v3 = vmul.f32 0.0625, %v4313_v57  ;;  %vm5337_vm7 = vcmp.eq.s32.totalorder %v9450_v25, 2 }
 0x2f3   : > { %v5322_v20 = vmul.f32 %v5321_v52, %v5319_v53  ;;  %v5416_v49 = vsel %vm6367_vm3, 0, %v6366_v31  ;;  %v4470_v40 = vrot.slane %v4469_v2, 1  ;;  %v4482_v15 = vrot.slane %v4481_v19, 2 }
 0x2f4   : > { %v5417_v30 = vsub.s32 32, %v5416_v49  ;;  %v5418_v44 = vshll.u32 %v9438_v26, %v5416_v49  ;;  %v5421_v18 = vsub.s32 4294967266, %v5416_v49  ;;  %v4486_v48 = vadd.f32 %v4446_v13, %v4430_v10 }
 0x2f5   : > { %v5323_v58 = vxor.u32 2147483648, %v5322_v20  ;;  %v4471_v36 = vadd.f32 %v4470_v40, %v4469_v2  ;;  %v4483_v22 = vadd.f32 %v4482_v15, %v4481_v19  ;;  %v9469_v14 = vsub.f32 %v9234_v17, %v4384_v3 }
 0x2f6   : > { %v5419_v9 = vshrl.u32 %v5401_v63, %v5417_v30  ;;  %v5422_v62 = vadd.s32 127, %v5421_v18  ;;  %v4487_v21 = vrot.slane %v4486_v48, 4  ;;  %v9472_v28 = vsub.f32 %v9318_v60, %v4384_v3 }
 0x2f7   : > { %v5324_v47 = vsel %vm5241_vm15, %v5323_v58, %v5322_v20  ;;  %v4571_v61 = vmul.f32 0.0625, %v4471_v36  ;;  %v4484_v42 = vrot.slane %v4483_v22, 1  ;;  %v4432_v26 = vmul.f32 %v9469_v14, %v9469_v14 }
 0x2f8   : > { %v5327_v38 = vsel %vm9363_vm12, %v9111_v16, %v5324_v47  ;;  %v5420_v17 = vor.u32 %v5419_v9, %v5418_v44  ;;  %v5423_v52 = vshll.u32 %v5422_v62, 23  ;;  %v4488_v63 = vadd.f32 %v4487_v21, %v4486_v48 }
 0x2f9   : > { %6721 = vcosq.f32 %v5327_v38  ;;  %v4587_v0 = vadd.f32 1e-05, %v4571_v61  ;;  %v4485_v34 = vadd.f32 %v4484_v42, %v4483_v22  ;;  %v4448_v60 = vmul.f32 %v9472_v28, %v9472_v28 }
 0x2fa   : > { %6723 = vsinq.f32 %v5327_v38  ;;  %v5424_v31 = vor.u32 4788187, %v5423_v52  ;;  %v5427_v57 = vcvt.s32.f32 %v5420_v17  ;;  %v4489_v53 = vrot.slane %v4488_v63, 2 }
 0x2fb   : > { %6725 = vrsqrt.f32 %v4587_v0  ;;  %v4573_v2 = vmul.f32 0.0625, %v4485_v34  ;;  %v4500_v19 = vadd.f32 %v4448_v60, %v4432_v26  ;;  %v4305_v39 = vrot.slane %v4304_v56, 1 }
 0x2fc   : > { %vm5334_vm15 = vcmp.eq.s32.totalorder %v9450_v25, 0  ;;  %v5425_v10 = vand.u32 2147483647, %v5424_v31  ;;  %v4490_v13 = vadd.f32 %v4489_v53, %v4488_v63  ;;  %v4315_v3 = vrot.slane %v9420_v55, 4 }
 0x2fd   : > { %v9488_v20 = vadd.f32 %v9238_v59, %v9136_v5  ;;  %vm5333_vm12 = vcmp.lt.s32.totalorder %v9450_v25, 2  ;;  %v4589_v49 = vadd.f32 1e-05, %v4573_v2  ;;  %v4501_v40 = vrot.slane %v4500_v19, 4 }
 0x2fe   : > { %v4306_v15 = vadd.f32 %v4305_v39, %v4304_v56  ;;  %v9493_v30 = vadd.f32 %v9245_v11, %v9136_v5  ;;  %vm5331_vm0 = vweird.f32 %v9111_v16  ;;  %v5428_v44 = vmul.f32 %v5427_v57, %v5425_v10 }
 0x2ff   : > { %v4491_v18 = vrot.slane %v4490_v13, 1  ;;  %v4316_v48 = vadd.f32 %v4315_v3, %v9420_v55  ;;  %v9499_v58 = vadd.f32 %v9247_v27, %v9136_v5  ;;  %6727 = vrsqrt.f32 %v4589_v49 }
 0x300   : > { %v4502_v59 = vadd.f32 %v4501_v40, %v4500_v19  ;;  %v4383_v36 = vmul.f32 0.0625, %v4306_v15  ;;  %v9503_v56 = vadd.f32 %v9253_v12, %v9136_v5  ;;  %v5429_v22 = vxor.u32 2147483648, %v5428_v44 }
 0x301   : > { %v4492_v11 = vadd.f32 %v4491_v18, %v4490_v13  ;;  %v4317_v9 = vrot.slane %v4316_v48, 2  ;;  %v9507_v62 = vadd.f32 %v9255_v29, %v9178_v1  ;;  %v9517_v47 = vadd.f32 %v9259_v43, %v9178_v1 }
 0x302   : > { %v4503_v21 = vrot.slane %v4502_v59, 2  ;;  %v9510_v55 = vsub.f32 %v9355_v7, %v4383_v36  ;;  %v9513_v27 = vsub.f32 %v9377_v54, %v4383_v36  ;;  %v5430_v12 = vsel %vm5347_vm1, %v5429_v22, %v5428_v44 }
 0x303   : > { %v4574_v61 = vmul.f32 0.0625, %v4492_v11  ;;  %v4318_v42 = vadd.f32 %v4317_v9, %v4316_v48  ;;  %v4321_v29 = vadd.f32 %v9507_v62, %v9488_v20  ;;  %v6722_v26 = vpop.eup %6721  ;;  %v5433_v7 = vsel %vm9408_vm6, %v9139_v24, %v5430_v12  ;;  %v10326_v48 = vld [vmem:[#allocation9_spill] sm:$0xff] }
 0x304   : > { %v4504_v38 = vadd.f32 %v4503_v21, %v4502_v59  ;;  %v4431_v54 = vmul.f32 %v9510_v55, %v9510_v55  ;;  %v4447_v43 = vmul.f32 %v9513_v27, %v9513_v27  ;;  %v6724_v17 = vpop.eup %6723  ;;  %v5338_v52 = vxor.u32 2147483648, %v6722_v26 }
 0x305   : > { %6729 = vcosq.f32 %v5433_v7  ;;  %v4590_v63 = vadd.f32 1e-05, %v4574_v61  ;;  %v4319_v0 = vrot.slane %v4318_v42, 1  ;;  %v6726_v34 = vpop.eup %6725  ;;  %v5335_v60 = vxor.u32 2147483648, %v6724_v17 }
 0x306   : > { %6731 = vsinq.f32 %v5433_v7  ;;  %v4505_v31 = vrot.slane %v4504_v38, 1  ;;  %v4493_v57 = vadd.f32 %v4447_v43, %v4431_v54  ;;  %v5339_v37 = vsel %vm5337_vm7, %v5338_v52, %v6724_v17 }
 0x307   : > { %vm5443_vm1 = vcmp.eq.s32.totalorder %v9455_v50, 2  ;;  %v9534_v53 = vmul.f32 %v6726_v34, %v9423_v45  ;;  %v9537_v2 = vmul.f32 %v6726_v34, %v9426_v33  ;;  %6733 = vrsqrt.f32 %v4590_v63 }
 0x308   : > { %v5336_v19 = vsel %vm5334_vm15, %v6722_v26, %v5335_v60  ;;  %vm5440_vm6 = vcmp.eq.s32.totalorder %v9455_v50, 0  ;;  %v4506_v39 = vadd.f32 %v4505_v31, %v4504_v38  ;;  %v4494_v10 = vrot.slane %v4493_v57, 4 }
 0x309   : > { %v4320_v13 = vadd.f32 %v4319_v0, %v4318_v42  ;;  %v5340_v3 = vsel %vm5333_vm12, %v5336_v19, %v5339_v37  ;;  %vm5439_vm4 = vcmp.lt.s32.totalorder %v9455_v50, 2  ;;  %v4322_v49 = vrot.slane %v4321_v29, 4  ;;  %v6728_v40 = vpop.eup %6727  ;;  %v10327_v42 = vld [vmem:[#allocation5_spill] sm:$0xff] }
 0x30a   : > { %v4335_v45 = vadd.f32 %v9517_v47, %v9493_v30  ;;  %v9549_v33 = vadd.f32 %v9261_v8, %v9178_v1  ;;  %v5341_v15 = vsel %vm5331_vm0, nan, %v5340_v3  ;;  %vm5437_vm3 = vweird.f32 %v9139_v24  ;;  %v9561_v8 = vpop.f32.mrb[12].mxu0 }
 0x30b   : > { %v4576_v44 = vmul.f32 0.0625, %v4506_v39  ;;  %v4495_v18 = vadd.f32 %v4494_v10, %v4493_v57  ;;  %v4385_v25 = vmul.f32 0.0625, %v4320_v13  ;;  %v5342_v59 = vmul.f32 %v5341_v15, %v10326_v48  ;;  %v9569_v61 = vpop.f32.mrb[13].mxu0 }
 0x30c   : > { %v9556_v36 = vmul.f32 %v6728_v40, %v9433_v4  ;;  %v9559_v22 = vmul.f32 %v6728_v40, %v9436_v6  ;;  %v4323_v11 = vadd.f32 %v4322_v49, %v4321_v29  ;;  %v4336_v7 = vrot.slane %v4335_v45, 4  ;;  %v10330_v40 = vld [vmem:[#allocation21_spill] sm:$0xff] }
 0x30d   : > { %v4592_v9 = vadd.f32 1e-05, %v4576_v44  ;;  %v4496_v21 = vrot.slane %v4495_v18, 2  ;;  %v9564_v16 = vsub.f32 %v9390_v51, %v4385_v25  ;;  %v9567_v12 = vsub.f32 %v9395_v41, %v4385_v25  ;;  %v10328_v41 = vld [vmem:[#allocation10_spill] sm:$0xff]  ;;  %v9584_v34 = vpop.f32.mrb[14].mxu0 }
 0x30e   : > { %v5343_v26 = vadd.f32 %v5342_v59, %v10327_v42  ;;  %v4324_v4 = vrot.slane %v4323_v11, 2  ;;  %v4328_v6 = vadd.f32 %v9549_v33, %v9499_v58  ;;  %v4337_v0 = vadd.f32 %v4336_v7, %v4335_v45  ;;  %v9586_v39 = vpop.f32.mrb[15].mxu0 }
 0x30f   : > { %6735 = vrsqrt.f32 %v4592_v9  ;;  %v4497_v29 = vadd.f32 %v4496_v21, %v4495_v18  ;;  %v4433_v38 = vmul.f32 %v9564_v16, %v9564_v16  ;;  %v4449_v51 = vmul.f32 %v9567_v12, %v9567_v12  ;;  %v6730_v54 = vpop.eup %6729 }
 0x310   : > { %v5451_v43 = vsub.f32 %v10328_v41, %v5343_v26  ;;  %v9582_v52 = vsel %vm5141_vm8, %v10327_v42, %v5343_v26  ;;  %v4325_v63 = vadd.f32 %v4324_v4, %v4323_v11  ;;  %v6732_v60 = vpop.eup %6731  ;;  %v5444_v31 = vxor.u32 2147483648, %v6730_v54 }
 0x311   : > { %v4498_v57 = vrot.slane %v4497_v29, 1  ;;  %v4507_v37 = vadd.f32 %v4449_v51, %v4433_v38  ;;  %v4329_v19 = vrot.slane %v4328_v6, 4  ;;  %v6734_v10 = vpop.eup %6733  ;;  %v5441_v13 = vxor.u32 2147483648, %v6732_v60 }
 0x312   : > { %v4326_v3 = vrot.slane %v4325_v63, 1  ;;  %v4338_v49 = vrot.slane %v4337_v0, 2  ;;  %v9590_v15 = vadd.f32 %v10330_v40, %v9178_v1  ;;  %v5445_v45 = vsel %vm5443_vm1, %v5444_v31, %v6732_v60 }
 0x313   : > { %v9595_v44 = vmul.f32 %v6734_v10, %v9458_v23  ;;  %v9598_v18 = vmul.f32 %v6734_v10, %v9461_v32  ;;  %v4499_v25 = vadd.f32 %v4498_v57, %v4497_v29  ;;  %v5442_v59 = vsel %vm5440_vm6, %v6730_v54, %v5441_v13 }
 0x314   : > { %v4508_v11 = vrot.slane %v4507_v37, 4  ;;  %v4327_v9 = vadd.f32 %v4326_v3, %v4325_v63  ;;  %v4339_v21 = vadd.f32 %v4338_v49, %v4337_v0  ;;  %v5446_v26 = vsel %vm5439_vm4, %v5442_v59, %v5445_v45 }
 0x315   : > { %v4575_v4 = vmul.f32 0.0625, %v4499_v25  ;;  %v4330_v7 = vadd.f32 %v4329_v19, %v4328_v6  ;;  %v4342_v38 = vadd.f32 %v9590_v15, %v9503_v56  ;;  %v5447_v23 = vsel %vm5437_vm3, nan, %v5446_v26 }
 0x316   : > { %v4509_v32 = vadd.f32 %v4508_v11, %v4507_v37  ;;  %v4386_v51 = vmul.f32 0.0625, %v4327_v9  ;;  %v4340_v29 = vrot.slane %v4339_v21, 1  ;;  %v5448_v41 = vmul.f32 %v5447_v23, %v10326_v48 }
 0x317   : > { %v4591_v54 = vadd.f32 1e-05, %v4575_v4  ;;  %v4331_v60 = vrot.slane %v4330_v7, 2  ;;  %v4343_v63 = vrot.slane %v4342_v38, 4 }
 0x318   : > { %v4510_v0 = vrot.slane %v4509_v32, 2  ;;  %v9610_v50 = vsub.f32 %v9488_v20, %v4386_v51  ;;  %v9613_v6 = vsub.f32 %v9507_v62, %v4386_v51  ;;  %v4341_v31 = vadd.f32 %v4340_v29, %v4339_v21 }
 0x319   : > { %v6736_v57 = vpop.eup %6735  ;;  %v5449_v24 = vadd.f32 %v5448_v41, %v10327_v42  ;;  %6737 = vrsqrt.f32 %v4591_v54  ;;  %v4332_v37 = vadd.f32 %v4331_v60, %v4330_v7  ;;  %v4344_v19 = vadd.f32 %v4343_v63, %v4342_v38 }
 0x31a   : > { %v9617_v10 = vmul.f32 %v6736_v57, %v9469_v14  ;;  %v9620_v48 = vmul.f32 %v6736_v57, %v9472_v28  ;;  %v4511_v13 = vadd.f32 %v4510_v0, %v4509_v32  ;;  %v4434_v20 = vmul.f32 %v9610_v50, %v9610_v50 }
 0x31b   : > { %v5452_v3 = vsub.f32 %v5451_v43, %v5449_v24  ;;  %v5453_v62 = vsel %vm5141_vm8, %v10327_v42, %v5449_v24  ;;  %v4450_v49 = vmul.f32 %v9613_v6, %v9613_v6  ;;  %v4388_v40 = vmul.f32 0.0625, %v4341_v31 }
 0x31c   : > { %v5456_v45 = vadd.f32 1e-08, %v5453_v62  ;;  %v5459_v14 = vsub.f32 %v5453_v62, %v9582_v52  ;;  %v4512_v25 = vrot.slane %v4511_v13, 1  ;;  %v4333_v59 = vrot.slane %v4332_v37, 1 }
 0x31d   : > { %v5454_v28 = vsel %vm5141_vm8, %v10327_v42, %v5452_v3  ;;  %v4514_v11 = vadd.f32 %v4450_v49, %v4434_v20  ;;  %v9634_v43 = vsub.f32 %v9493_v30, %v4388_v40  ;;  %v9637_v9 = vsub.f32 %v9517_v47, %v4388_v40 }
 0x31e   : > { %6739 = vrcp.f32 %v5456_v45  ;;  %v5461_v21 = vsub.f32 %v5454_v28, %v9582_v52  ;;  %v4513_v26 = vadd.f32 %v4512_v25, %v4511_v13  ;;  %v4334_v4 = vadd.f32 %v4333_v59, %v4332_v37 }
 0x31f   : > { %v4515_v7 = vrot.slane %v4514_v11, 4  ;;  %v4436_v38 = vmul.f32 %v9634_v43, %v9634_v43  ;;  %v4452_v17 = vmul.f32 %v9637_v9, %v9637_v9  ;;  %v4345_v42 = vrot.slane %v4344_v19, 2 }
 0x320   : > { %v4577_v23 = vmul.f32 0.0625, %v4513_v26  ;;  %v4387_v32 = vmul.f32 0.0625, %v4334_v4  ;;  %v9646_v30 = vadd.f32 %v9561_v8, %v9136_v5  ;;  %v9650_v47 = vadd.f32 %v9569_v61, %v9136_v5 }
 0x321   : > { %v4516_v51 = vadd.f32 %v4515_v7, %v4514_v11  ;;  %v4528_v29 = vadd.f32 %v4452_v17, %v4436_v38  ;;  %v4346_v41 = vadd.f32 %v4345_v42, %v4344_v19  ;;  %v9654_v54 = vadd.f32 %v9584_v34, %v9178_v1  ;;  %v4254_v19 = vpop.f32.mrb[12].mxu1  ;;  %v10331_v38 = vld [vmem:[#allocation17_spill] sm:$0xff]  ;;  %v10332_v42 = vld [vmem:[#allocation18_spill] sm:$0xff] }
 0x322   : > { %v4593_v60 = vadd.f32 1e-05, %v4577_v23  ;;  %v9657_v63 = vsub.f32 %v9499_v58, %v4387_v32  ;;  %v9660_v0 = vsub.f32 %v9549_v33, %v4387_v32  ;;  %v9664_v8 = vadd.f32 %v9586_v39, %v9178_v1  ;;  %v4256_v62 = vpop.f32.mrb[13].mxu1 }
 0x323   : > { %v6738_v61 = vpop.eup %6737  ;;  %v4517_v31 = vrot.slane %v4516_v51, 2  ;;  %v4529_v57 = vrot.slane %v4528_v29, 4  ;;  %v4347_v24 = vrot.slane %v4346_v41, 1  ;;  %v4349_v37 = vadd.f32 %v9654_v54, %v9646_v30 }
 0x324   : > { %v9669_v34 = vmul.f32 %v6738_v61, %v9510_v55  ;;  %v9672_v58 = vmul.f32 %v6738_v61, %v9513_v27  ;;  %6741 = vrsqrt.f32 %v4593_v60  ;;  %v4435_v33 = vmul.f32 %v9657_v63, %v9657_v63 }
 0x325   : > { %v4518_v39 = vadd.f32 %v4517_v31, %v4516_v51  ;;  %v4530_v13 = vadd.f32 %v4529_v57, %v4528_v29  ;;  %v4451_v20 = vmul.f32 %v9660_v0, %v9660_v0  ;;  %v4348_v3 = vadd.f32 %v4347_v24, %v4346_v41  ;;  %v4260_v4 = vpop.f32.mrb[14].mxu1  ;;  %v10333_v24 = vld [vmem:[#allocation7_spill] sm:$0xff] }
 0x326   : > { %v9679_v49 = vadd.f32 %v4254_v19, %v9136_v5  ;;  %v9682_v55 = vadd.f32 %v4256_v62, %v9136_v5  ;;  %v4350_v27 = vrot.slane %v4349_v37, 4  ;;  %v4356_v40 = vadd.f32 %v9664_v8, %v9650_v47  ;;  %v4262_v41 = vpop.f32.mrb[15].mxu1  ;;  %v10334_v19 = vld [vmem:[#allocation11_spill] sm:$0xff]  ;;  %v10338_v62 = vld [vmem:[#allocation6_spill] sm:$0xff] }
 0x327   : > { %v4519_v45 = vrot.slane %v4518_v39, 1  ;;  %v4531_v25 = vrot.slane %v4530_v13, 2  ;;  %v4521_v59 = vadd.f32 %v4451_v20, %v4435_v33  ;;  %v4389_v28 = vmul.f32 0.0625, %v4348_v3 }
 0x328   : > { %v6740_v11 = vpop.eup %6739  ;;  %v4351_v26 = vadd.f32 %v4350_v27, %v4349_v37  ;;  %v4357_v7 = vrot.slane %v4356_v40, 4  ;;  %v9688_v17 = vadd.f32 %v10331_v38, %v9178_v1  ;;  %v9692_v5 = vadd.f32 %v10332_v42, %v9178_v1 }
 0x329   : > { %v5460_v23 = vmul.f32 %v6740_v11, %v5459_v14  ;;  %v5462_v32 = vmul.f32 %v6740_v11, %v5461_v21  ;;  %v5463_v51 = vmul.f32 %v6740_v11, %v9582_v52  ;;  %v4520_v29 = vadd.f32 %v4519_v45, %v4518_v39  ;;  %v10336_v39 = vld [vmem:[#allocation16_spill] sm:$0xff] }
 0x32a   : > { %v4532_v60 = vadd.f32 %v4531_v25, %v4530_v13  ;;  %v4522_v61 = vrot.slane %v4521_v59, 4  ;;  %v9696_v31 = vsub.f32 %v9503_v56, %v4389_v28  ;;  %v9699_v57 = vsub.f32 %v9590_v15, %v4389_v28  ;;  %v10340_v45 = vld [vmem:[#allocation12_spill] sm:$0xff] }
 0x32b   : > { %v5839_v37 = vrot.slane %v5460_v23, %v10333_v24  ;;  %v5845_v33 = vrot.slane %v5462_v32, %v10333_v24  ;;  %v10335_v14 = vrot.slane %v10334_v19, %v10333_v24  ;;  %v4578_v52 = vmul.f32 0.0625, %v4520_v29  ;;  %v10342_v32 = vld [vmem:[#allocation14_spill] sm:$0xff] }
 0x32c   : > { %v10337_v13 = vrot.slane %v10336_v39, %v10333_v24  ;;  %v4533_v56 = vrot.slane %v4532_v60, 1  ;;  %v4523_v3 = vadd.f32 %v4522_v61, %v4521_v59  ;;  %v4437_v15 = vmul.f32 %v9696_v31, %v9696_v31  ;;  %v10343_v61 = vld [vmem:[#allocation8_spill] sm:$0xff] }
 0x32d   : > { %v5888_v21 = vsel %vm3229_vm14, %v5463_v51, %v10335_v14  ;;  %vm10339_vm8 = vcmask 1045504   ;;  %v10341_v25 = vrot.slane %v10340_v45, %v10333_v24  ;;  %v4594_v11 = vadd.f32 1e-05, %v4578_v52  ;;  %v10345_v52 = vld [vmem:[#allocation15_spill] sm:$0xff] }
 0x32e   : > { %v5889_v20 = vsel %vm3280_vm11, %v5888_v21, %v10337_v13  ;;  %v5886_v27 = vsel %vm10339_vm8, %v10338_v62, %v5839_v37  ;;  %v4453_v38 = vmul.f32 %v9699_v57, %v9699_v57  ;;  %v6742_v42 = vpop.eup %6741  ;;  %v4534_v51 = vadd.f32 %v4533_v56, %v4532_v60  ;;  %vm10347_vm14 = vmmov %vm10339_vm8  ;;  %v10348_v56 = vld [vmem:[#allocation13_spill] sm:$0xff] }
 0x32f   : > { %v5890_v28 = vsel %vm3314_vm2, %v5889_v20, %v10341_v25  ;;  %v5887_v23 = vsel %vm3263_vm10, %v5886_v27, %v5845_v33  ;;  %v4524_v29 = vrot.slane %v4523_v3, 2  ;;  %v10344_v37 = vrot.slane %v10343_v61, %v10333_v24 }
 0x330   : > { %v5891_v59 = vsel %vm3246_vm5, %v5890_v28, %v10342_v32  ;;  %v9729_v14 = vmul.f32 %v6742_v42, %v9564_v16  ;;  %v9732_v21 = vmul.f32 %v6742_v42, %v9567_v12  ;;  %6743 = vrsqrt.f32 %v4594_v11 }
 0x331   : > { %v5892_v19 = vsel %vm3297_vm13, %v5891_v59, %v10344_v37  ;;  %v10346_v33 = vrot.slane %v10343_v61, %v10345_v52  ;;  %v4580_v13 = vmul.f32 0.0625, %v4534_v51  ;;  %v4525_v60 = vadd.f32 %v4524_v29, %v4523_v3  ;;  %v10349_v59 = vld [vmem:[#allocation20_spill] sm:$0xff]  ;;  %v5899_v61 = vld [vmem:[%s10117_s4 + $0x8] sm:$0xff] }
 0x332   : > { %v4535_v20 = vadd.f32 %v4453_v38, %v4437_v15  ;;  %v4352_v62 = vrot.slane %v4351_v26, 2  ;;  %v9741_v27 = vadd.f32 %v4260_v4, %v9178_v1  ;;  %v4358_v16 = vadd.f32 %v4357_v7, %v4356_v40 }
 0x333   : > { %v5893_v39 = vsel %vm10347_vm14, %v5892_v19, %v10346_v33  ;;  %v4596_v12 = vadd.f32 1e-05, %v4580_v13  ;;  %v4526_v25 = vrot.slane %v4525_v60, 1  ;;  %v9746_v3 = vadd.f32 %v4262_v41, %v9178_v1 }
 0x334   : > { %v5894_v24 = vsel %vm3263_vm10, %v5893_v39, %v10348_v56  ;;  %v4536_v28 = vrot.slane %v4535_v20, 4  ;;  %v4353_v11 = vadd.f32 %v4352_v62, %v4351_v26  ;;  %v4363_v42 = vadd.f32 %v9741_v27, %v9679_v49 }
 0x335   : > { %v6548_v45 = vpack.c.bf16 %v5894_v24, %v5887_v23  ;;  %v4359_v32 = vrot.slane %v4358_v16, 2  ;;  %6745 = vrsqrt.f32 %v4596_v12  ;;  %v4527_v15 = vadd.f32 %v4526_v25, %v4525_v60 }
 0x336   : > { %v4537_v38 = vadd.f32 %v4536_v28, %v4535_v20  ;;  %v4265_v4 = vadd.f32 %v9688_v17, %v9386_v46  ;;  %v4354_v40 = vrot.slane %v4353_v11, 1  ;;  %v4364_v7 = vrot.slane %v4363_v42, 4 }
 0x337   : > { %6549 = vmatprep.subr.bf16.mxu1 %v6548_v45  ;;  %v4360_v23 = vadd.f32 %v4359_v32, %v4358_v16  ;;  %v4370_v26 = vadd.f32 %v9746_v3, %v9682_v55  ;;  %v4579_v51 = vmul.f32 0.0625, %v4527_v15  ;;  %v4279_v29 = vadd.f32 %v9692_v5, %v9414_v35 }
 0x338   : > { %6551 = vmatpush3.bf16.msra.mxu1 %v6548_v45  ;;  %v4538_v1 = vrot.slane %v4537_v38, 2  ;;  %v4266_v41 = vrot.slane %v4265_v4, 4  ;;  %v4355_v37 = vadd.f32 %v4354_v40, %v4353_v11  ;;  %v4365_v19 = vadd.f32 %v4364_v7, %v4363_v42 }
 0x339   : > { %6436 = vmatprep.subr.msk.mxu1 %vm3314_vm2, %v10349_v59  ;;  %v4361_v52 = vrot.slane %v4360_v23, 1  ;;  %v4371_v33 = vrot.slane %v4370_v26, 4  ;;  %v4595_v39 = vadd.f32 1e-05, %v4579_v51  ;;  %v4280_v20 = vrot.slane %v4279_v29, 4 }
 0x33a   : > { %v4539_v13 = vadd.f32 %v4538_v1, %v4537_v38  ;;  %v4267_v60 = vadd.f32 %v4266_v41, %v4265_v4  ;;  %v6744_v56 = vpop.eup %6743  ;;  %v4390_v24 = vmul.f32 0.0625, %v4355_v37  ;;  %v4366_v62 = vrot.slane %v4365_v19, 2 }
 0x33b   : > { %v4362_v16 = vadd.f32 %v4361_v52, %v4360_v23  ;;  %v4372_v45 = vadd.f32 %v4371_v33, %v4370_v26  ;;  %v9763_v12 = vmul.f32 %v6744_v56, %v9610_v50  ;;  %v9766_v25 = vmul.f32 %v6744_v56, %v9613_v6 }
 0x33c   : > { %6437 = vmatpush3.msk.msra.mxu1 %vm3314_vm2, %v10349_v59  ;;  %6747 = vrsqrt.f32 %v4595_v39  ;;  %v4540_v28 = vrot.slane %v4539_v13, 1  ;;  %v9769_v11 = vsub.f32 %v9646_v30, %v4390_v24  ;;  %v9772_v42 = vsub.f32 %v9654_v54, %v4390_v24 }
 0x33d   : > { %6439 = vmatmul.mubr.msk.f32.vlgmr.msra.gmra.mrb[16].mxu1 %vm5910_vm9, %v5899_v61  ;;  %v4367_v32 = vadd.f32 %v4366_v62, %v4365_v19  ;;  %v4391_v15 = vmul.f32 0.0625, %v4362_v16  ;;  %v4373_v4 = vrot.slane %v4372_v45, 2  ;;  %v4268_v40 = vrot.slane %v4267_v60, 2  ;;  %v9790_v19 = vpop.permute.xlu0 %4651 }
 0x33e   : > { %v4541_v38 = vadd.f32 %v4540_v28, %v4539_v13  ;;  %v4281_v7 = vadd.f32 %v4280_v20, %v4279_v29  ;;  %v4438_v50 = vmul.f32 %v9769_v11, %v9769_v11  ;;  %v4454_v6 = vmul.f32 %v9772_v42, %v9772_v42 }
 0x33f   : > { %v4368_v23 = vrot.slane %v4367_v32, 1  ;;  %v9779_v26 = vsub.f32 %v9650_v47, %v4391_v15  ;;  %v6746_v30 = vpop.eup %6745  ;;  %v9782_v54 = vsub.f32 %v9664_v8, %v4391_v15  ;;  %v4374_v51 = vadd.f32 %v4373_v4, %v4372_v45 }
 0x340   : > { %v4581_v59 = vmul.f32 0.0625, %v4541_v38  ;;  %v4269_v1 = vadd.f32 %v4268_v40, %v4267_v60  ;;  %v9785_v41 = vmul.f32 %v6746_v30, %v9634_v43  ;;  %v9788_v29 = vmul.f32 %v6746_v30, %v9637_v9  ;;  %v9806_v38 = vpop.permute.xlu1 %5902 }
 0x341   : > { %v4542_v61 = vadd.f32 %v4454_v6, %v4438_v50  ;;  %v4369_v37 = vadd.f32 %v4368_v23, %v4367_v32  ;;  %v4439_v47 = vmul.f32 %v9779_v26, %v9779_v26  ;;  %v4455_v8 = vmul.f32 %v9782_v54, %v9782_v54 }
 0x342   : > { %v4597_v52 = vadd.f32 1e-05, %v4581_v59  ;;  %v4375_v33 = vrot.slane %v4374_v51, 1  ;;  %v4270_v60 = vrot.slane %v4269_v1, 1  ;;  %v4282_v43 = vrot.slane %v4281_v7, 2 }
 0x343   : > { %v4543_v39 = vrot.slane %v4542_v61, 4  ;;  %v4392_v13 = vmul.f32 0.0625, %v4369_v37  ;;  %v4549_v20 = vadd.f32 %v4455_v8, %v4439_v47  ;;  %v9798_v56 = vmul.f32 %v9790_v19, %v9534_v53 }
 0x344   : > { %6749 = vrsqrt.f32 %v4597_v52  ;;  %v4376_v9 = vadd.f32 %v4375_v33, %v4374_v51  ;;  %v4271_v45 = vadd.f32 %v4270_v60, %v4269_v1  ;;  %v4283_v4 = vadd.f32 %v4282_v43, %v4281_v7 }
 0x345   : > { %v4544_v24 = vadd.f32 %v4543_v39, %v4542_v61  ;;  %v9801_v62 = vsub.f32 %v9679_v49, %v4392_v13  ;;  %v9804_v16 = vsub.f32 %v9741_v27, %v4392_v13  ;;  %v4550_v32 = vrot.slane %v4549_v20, 4  ;;  %v9840_v39 = vpop.permute.xlu1 %5907 }
 0x346   : > { %v6748_v28 = vpop.eup %6747  ;;  %v4393_v15 = vmul.f32 0.0625, %v4376_v9  ;;  %v9810_v40 = vmul.f32 %v9790_v19, %v9556_v36  ;;  %v4284_v59 = vrot.slane %v4283_v4, 1  ;;  %v9844_v13 = vmul.f32 %v9790_v19, %v9669_v34 }
 0x347   : > { %v4627_v53 = vmul.f32 %v6748_v28, %v9657_v63  ;;  %v9814_v50 = vmul.f32 %v6748_v28, %v9660_v0  ;;  %v4545_v49 = vrot.slane %v4544_v24, 2  ;;  %v4440_v27 = vmul.f32 %v9801_v62, %v9801_v62 }
 0x348   : > { %v4456_v6 = vmul.f32 %v9804_v16, %v9804_v16  ;;  %v4551_v23 = vadd.f32 %v4550_v32, %v4549_v20  ;;  %v9821_v30 = vsub.f32 %v9682_v55, %v4393_v15  ;;  %v9824_v7 = vsub.f32 %v9746_v3, %v4393_v15 }
 0x349   : > { %v4546_v36 = vadd.f32 %v4545_v49, %v4544_v24  ;;  %v4378_v63 = vmul.f32 0.0625, %v4271_v45  ;;  %v9828_v0 = vmul.f32 %v9790_v19, %v9595_v44  ;;  %v4285_v52 = vadd.f32 %v4284_v59, %v4283_v4 }
 0x34a   : > { %v4556_v51 = vadd.f32 %v4456_v6, %v4440_v27  ;;  %v4552_v1 = vrot.slane %v4551_v23, 2  ;;  %v4441_v61 = vmul.f32 %v9821_v30, %v9821_v30  ;;  %v4457_v37 = vmul.f32 %v9824_v7, %v9824_v7 }
 0x34b   : > { %v4547_v55 = vrot.slane %v4546_v36, 1  ;;  %v9835_v3 = vsub.f32 %v9386_v46, %v4378_v63  ;;  %v9838_v47 = vsub.f32 %v9688_v17, %v4378_v63  ;;  %v4380_v43 = vmul.f32 0.0625, %v4285_v52 }
 0x34c   : > { %v4557_v8 = vrot.slane %v4556_v51, 4  ;;  %v4553_v33 = vadd.f32 %v4552_v1, %v4551_v23  ;;  %v4563_v44 = vadd.f32 %v4457_v37, %v4441_v61  ;;  %v4664_v28 = vmul.f32 %v9790_v19, %v9617_v10  ;;  %v9864_v1 = vpop.permute.xlu1 %4655 }
 0x34d   : > { %v4548_v60 = vadd.f32 %v4547_v55, %v4546_v36  ;;  %v4426_v20 = vmul.f32 %v9835_v3, %v9835_v3  ;;  %v4442_v46 = vmul.f32 %v9838_v47, %v9838_v47  ;;  %v9855_v4 = vsub.f32 %v9414_v35, %v4380_v43 }
 0x34e   : > { %v6750_v9 = vpop.eup %6749  ;;  %v4558_v17 = vadd.f32 %v4557_v8, %v4556_v51  ;;  %v4554_v24 = vrot.slane %v4553_v33, 1  ;;  %v4564_v45 = vrot.slane %v4563_v44, 4  ;;  %v9858_v23 = vsub.f32 %v9692_v5, %v4380_v43 }
 0x34f   : > { %v4629_v32 = vmul.f32 %v6750_v9, %v9696_v31  ;;  %v4645_v34 = vmul.f32 %v6750_v9, %v9699_v57  ;;  %v4582_v15 = vmul.f32 0.0625, %v4548_v60  ;;  %v4428_v59 = vmul.f32 %v9855_v4, %v9855_v4 }
 0x350   : > { %v4559_v49 = vrot.slane %v4558_v17, 2  ;;  %v4555_v27 = vadd.f32 %v4554_v24, %v4553_v33  ;;  %v4565_v6 = vadd.f32 %v4564_v45, %v4563_v44  ;;  %v4458_v63 = vadd.f32 %v4442_v46, %v4426_v20 }
 0x351   : > { %v4598_v36 = vadd.f32 1e-05, %v4582_v15  ;;  %v4665_v10 = vmul.f32 %v9790_v19, %v9729_v14  ;;  %v4444_v35 = vmul.f32 %v9858_v23, %v9858_v23  ;;  %v4666_v5 = vmul.f32 %v9790_v19, %v9763_v12 }
 0x352   : > { %v4560_v31 = vadd.f32 %v4559_v49, %v4558_v17  ;;  %v4583_v57 = vmul.f32 0.0625, %v4555_v27  ;;  %v4566_v51 = vrot.slane %v4565_v6, 2  ;;  %v4459_v61 = vrot.slane %v4458_v63, 4 }
 0x353   : > { %6751 = vrsqrt.f32 %v4598_v36  ;;  %v4667_v37 = vmul.f32 %v9790_v19, %v4627_v53  ;;  %v4472_v33 = vadd.f32 %v4444_v35, %v4428_v59  ;;  %v4668_v44 = vmul.f32 %v9790_v19, %v9785_v41 }
 0x354   : > { %v4561_v55 = vrot.slane %v4560_v31, 1  ;;  %v4599_v52 = vadd.f32 1e-05, %v4583_v57  ;;  %v4567_v8 = vadd.f32 %v4566_v51, %v4565_v6  ;;  %v4460_v14 = vadd.f32 %v4459_v61, %v4458_v63 }
 0x355   : > { %v4669_v60 = vmul.f32 %v9790_v19, %v4629_v32  ;;  %v4675_v43 = vmul.f32 %v9864_v1, %v9537_v2  ;;  %v4473_v9 = vrot.slane %v4472_v33, 4  ;;  %v4677_v53 = vmul.f32 %v9864_v1, %v9559_v22  ;;  %v9882_v32 = vpop.permute.xlu1 %4691 }
 0x356   : > { %v4562_v20 = vadd.f32 %v4561_v55, %v4560_v31  ;;  %6753 = vrsqrt.f32 %v4599_v52  ;;  %v4568_v46 = vrot.slane %v4567_v8, 1  ;;  %v4461_v12 = vrot.slane %v4460_v14, 2  ;;  %v9919_v55 = vpop.permute.xlu0 %4695 }
 0x357   : > { %v4678_v17 = vmul.f32 %v9864_v1, %v9598_v18  ;;  %v4679_v24 = vmul.f32 %v9864_v1, %v9672_v58  ;;  %v4474_v15 = vadd.f32 %v4473_v9, %v4472_v33  ;;  %v4680_v2 = vmul.f32 %v9864_v1, %v9620_v48 }
 0x358   : > { %v4584_v41 = vmul.f32 0.0625, %v4562_v20  ;;  %v4569_v45 = vadd.f32 %v4568_v46, %v4567_v8  ;;  %v4462_v49 = vadd.f32 %v4461_v12, %v4460_v14  ;;  %v4681_v27 = vmul.f32 %v9864_v1, %v9732_v21 }
 0x359   : > { %v4682_v22 = vmul.f32 %v9864_v1, %v9766_v25  ;;  %v4683_v18 = vmul.f32 %v9864_v1, %v9814_v50  ;;  %v4475_v36 = vrot.slane %v4474_v15, 2  ;;  %v4684_v59 = vmul.f32 %v9864_v1, %v9788_v29 }
 0x35a   : > { %v4600_v6 = vadd.f32 1e-05, %v4584_v41  ;;  %v4585_v58 = vmul.f32 0.0625, %v4569_v45  ;;  %v4463_v63 = vrot.slane %v4462_v49, 1  ;;  %v4685_v31 = vmul.f32 %v9864_v1, %v4645_v34 }
 0x35b   : > { %v9897_v48 = vadd.f32 %v9882_v32, %v9798_v56  ;;  %v9901_v21 = vadd.f32 %v9882_v32, %v9810_v40  ;;  %v4476_v50 = vadd.f32 %v4475_v36, %v4474_v15  ;;  %v9905_v57 = vadd.f32 %v9882_v32, %v9828_v0 }
 0x35c   : > { %6755 = vrsqrt.f32 %v4600_v6  ;;  %v4601_v25 = vadd.f32 1e-05, %v4585_v58  ;;  %v4464_v29 = vadd.f32 %v4463_v63, %v4462_v49  ;;  %v9909_v34 = vadd.f32 %v9882_v32, %v9844_v13 }
 0x35d   : > { %v6752_v51 = vpop.eup %6751  ;;  %v9912_v56 = vadd.f32 %v9882_v32, %v4664_v28  ;;  %v9915_v35 = vadd.f32 %v9882_v32, %v4665_v10  ;;  %v4477_v0 = vrot.slane %v4476_v50, 1  ;;  %v9922_v8 = vadd.f32 %v9882_v32, %v4666_v5 }
 0x35e   : > { %v4630_v40 = vmul.f32 %v6752_v51, %v9769_v11  ;;  %v4646_v61 = vmul.f32 %v6752_v51, %v9772_v42  ;;  %6757 = vrsqrt.f32 %v4601_v25  ;;  %v4570_v52 = vmul.f32 0.0625, %v4464_v29 }
 0x35f   : > { %v9925_v13 = vadd.f32 %v9882_v32, %v4667_v37  ;;  %v9928_v28 = vadd.f32 %v9882_v32, %v4668_v44  ;;  %v4478_v33 = vadd.f32 %v4477_v0, %v4476_v50  ;;  %v9933_v14 = vadd.f32 %v9882_v32, %v4669_v60 }
 0x360   : > { %v6754_v10 = vpop.eup %6753  ;;  %v4670_v11 = vmul.f32 %v9790_v19, %v4630_v40  ;;  %v4686_v42 = vmul.f32 %v9864_v1, %v4646_v61  ;;  %v4586_v46 = vadd.f32 1e-05, %v4570_v52  ;;  %v9938_v37 = vadd.f32 %v9919_v55, %v4675_v43 }
 0x361   : > { %v4631_v20 = vmul.f32 %v6754_v10, %v9779_v26  ;;  %v4647_v5 = vmul.f32 %v6754_v10, %v9782_v54  ;;  %v4572_v9 = vmul.f32 0.0625, %v4478_v33  ;;  %v9944_v12 = vadd.f32 %v9919_v55, %v4677_v53 }
 0x362   : > { %v9941_v44 = vadd.f32 %v9882_v32, %v4670_v11  ;;  %v9947_v41 = vadd.f32 %v9919_v55, %v4678_v17  ;;  %6759 = vrsqrt.f32 %v4586_v46  ;;  %v9952_v54 = vadd.f32 %v9919_v55, %v4679_v24 }
 0x363   : > { %v4671_v60 = vmul.f32 %v9790_v19, %v4631_v20  ;;  %v4687_v26 = vmul.f32 %v9864_v1, %v4647_v5  ;;  %v4588_v43 = vadd.f32 1e-05, %v4572_v9  ;;  %v9955_v45 = vadd.f32 %v9919_v55, %v4680_v2 }
 0x364   : > { %v9958_v15 = vadd.f32 %v9919_v55, %v4681_v27  ;;  %v9961_v53 = vadd.f32 %v9919_v55, %v4682_v22  ;;  %v9967_v49 = vadd.f32 %v9919_v55, %v4683_v18  ;;  %v9970_v6 = vadd.f32 %v9919_v55, %v4684_v59 }
 0x365   : > { %v9964_v17 = vadd.f32 %v9882_v32, %v4671_v60  ;;  %v9973_v24 = vadd.f32 %v9919_v55, %v4685_v31  ;;  %6761 = vrsqrt.f32 %v4588_v43  ;;  %v9976_v27 = vadd.f32 %v9919_v55, %v4686_v42 }
 0x366   : > { %v6756_v2 = vpop.eup %6755  ;;  %v9979_v22 = vadd.f32 %v9919_v55, %v4687_v26  ;;  %v4731_v58 = vmax.f32 %v9897_v48, 0.0  ;;  %v4733_v59 = vmax.f32 %v9901_v21, 0.0  ;;  %v4734_v63 = vmax.f32 %v9905_v57, 0.0  ;;  %v4792_v21 = vld [vmem:[%s10116_s3] sm:$0xff] }
 0x367   : > { %v4632_v36 = vmul.f32 %v6756_v2, %v9801_v62  ;;  %v4648_v18 = vmul.f32 %v6756_v2, %v9804_v16  ;;  %v4735_v25 = vmax.f32 %v9909_v34, 0.0  ;;  %v4736_v50 = vmax.f32 %v9912_v56, 0.0 }
 0x368   : > { %v6758_v31 = vpop.eup %6757  ;;  %v4737_v51 = vmax.f32 %v9915_v35, 0.0  ;;  %v4738_v29 = vmax.f32 %v9922_v8, 0.0  ;;  %v4739_v0 = vmax.f32 %v9925_v13, 0.0  ;;  %v4740_v57 = vmax.f32 %v9928_v28, 0.0 }
 0x369   : > { %v4633_v40 = vmul.f32 %v6758_v31, %v9821_v30  ;;  %v4649_v61 = vmul.f32 %v6758_v31, %v9824_v7  ;;  %v4672_v62 = vmul.f32 %v9790_v19, %v4632_v36  ;;  %v4688_v16 = vmul.f32 %v9864_v1, %v4648_v18 }
 0x36a   : > { %v4741_v34 = vmax.f32 %v9933_v14, 0.0  ;;  %v4742_v56 = vmax.f32 %v9941_v44, 0.0  ;;  %v4743_v8 = vmax.f32 %v9964_v17, 0.0  ;;  %v4747_v10 = vmax.f32 %v9938_v37, 0.0 }
 0x36b   : > { %v4673_v35 = vmul.f32 %v9790_v19, %v4633_v40  ;;  %v4689_v52 = vmul.f32 %v9864_v1, %v4649_v61  ;;  %v4712_v30 = vadd.f32 %v9882_v32, %v4672_v62  ;;  %v4728_v7 = vadd.f32 %v9919_v55, %v4688_v16 }
 0x36c   : > { %v4749_v13 = vmax.f32 %v9944_v12, 0.0  ;;  %v4750_v28 = vmax.f32 %v9947_v41, 0.0  ;;  %v6760_v33 = vpop.eup %6759  ;;  %v4751_v20 = vmax.f32 %v9952_v54, 0.0  ;;  %v4752_v9 = vmax.f32 %v9955_v45, 0.0 }
 0x36d   : > { %v4713_v11 = vadd.f32 %v9882_v32, %v4673_v35  ;;  %v4729_v42 = vadd.f32 %v9919_v55, %v4689_v52  ;;  %v4744_v14 = vmax.f32 %v4712_v30, 0.0  ;;  %v4618_v5 = vmul.f32 %v6760_v33, %v9835_v3 }
 0x36e   : > { %v4634_v46 = vmul.f32 %v6760_v33, %v9838_v47  ;;  %v4753_v37 = vmax.f32 %v9958_v15, 0.0  ;;  %v4754_v12 = vmax.f32 %v9961_v53, 0.0  ;;  %v4755_v41 = vmax.f32 %v9967_v49, 0.0 }
 0x36f   : > { %v4745_v44 = vmax.f32 %v4713_v11, 0.0  ;;  %v4756_v60 = vmax.f32 %v9970_v6, 0.0  ;;  %v6762_v26 = vpop.eup %6761  ;;  %v4658_v43 = vmul.f32 %v9790_v19, %v4618_v5  ;;  %v4757_v3 = vmax.f32 %v9973_v24, 0.0 }
 0x370   : > { %v4674_v54 = vmul.f32 %v9864_v1, %v4634_v46  ;;  %v4758_v47 = vmax.f32 %v9976_v27, 0.0  ;;  %v4620_v45 = vmul.f32 %v6762_v26, %v9855_v4  ;;  %v4636_v15 = vmul.f32 %v6762_v26, %v9858_v23  ;;  %v6787_v46 = vld [vmem:[%s10115_s2 + $0x8] sm:$0xff] }
 0x371   : > { %v4759_v17 = vmax.f32 %v9979_v22, 0.0  ;;  %v4760_v53 = vmax.f32 %v4728_v7, 0.0  ;;  %v4698_v49 = vadd.f32 %v9882_v32, %v4658_v43  ;;  %v4761_v2 = vmax.f32 %v4729_v42, 0.0 }
 0x372   : > { %v4714_v6 = vadd.f32 %v9919_v55, %v4674_v54  ;;  %v4766_v36 = vadd.f32 %v4735_v25, %v4734_v63  ;;  %v4660_v18 = vmul.f32 %v9790_v19, %v4620_v45  ;;  %v4676_v31 = vmul.f32 %v9864_v1, %v4636_v15 }
 0x373   : > { %v4767_v24 = vadd.f32 %v4751_v20, %v4750_v28  ;;  %v4768_v40 = vadd.f32 %v4737_v51, %v4736_v50  ;;  %v4730_v27 = vmax.f32 %v4698_v49, 0.0  ;;  %v4769_v4 = vadd.f32 %v4753_v37, %v4752_v9  ;;  %v6788_v9 = vld [vmem:[%s10115_s2] sm:$0xff] }
 0x374   : > { %v4746_v61 = vmax.f32 %v4714_v6, 0.0  ;;  %v4770_v62 = vadd.f32 %v4739_v0, %v4738_v29  ;;  %v4700_v23 = vadd.f32 %v9882_v32, %v4660_v18  ;;  %v4716_v22 = vadd.f32 %v9919_v55, %v4676_v31  ;;  %v6789_v37 = vld [vmem:[%s10118_s5] sm:$0xff] }
 0x375   : > { %v4771_v16 = vadd.f32 %v4755_v41, %v4754_v12  ;;  %v4772_v35 = vadd.f32 %v4741_v34, %v4740_v57  ;;  %v4762_v52 = vadd.f32 %v4731_v58, %v4730_v27  ;;  %v4773_v25 = vadd.f32 %v4757_v3, %v4756_v60 }
 0x376   : > { %v4763_v63 = vadd.f32 %v4747_v10, %v4746_v61  ;;  %v4774_v19 = vadd.f32 %v4743_v8, %v4742_v56  ;;  %v4732_v30 = vmax.f32 %v4700_v23, 0.0  ;;  %v4748_v1 = vmax.f32 %v4716_v22, 0.0 }
 0x377   : > { %v4775_v7 = vadd.f32 %v4759_v17, %v4758_v47  ;;  %v4776_v50 = vadd.f32 %v4745_v44, %v4744_v14  ;;  %v4777_v51 = vadd.f32 %v4761_v2, %v4760_v53  ;;  %v4780_v28 = vadd.f32 %v4768_v40, %v4766_v36  ;;  %v6790_v44 = vld [vmem:[%s10118_s5 + $0x8] sm:$0xff] }
 0x378   : > { %v4781_v33 = vadd.f32 %v4769_v4, %v4767_v24  ;;  %v4782_v29 = vadd.f32 %v4772_v35, %v4770_v62  ;;  %v4764_v32 = vadd.f32 %v4733_v59, %v4732_v30  ;;  %v4765_v55 = vadd.f32 %v4749_v13, %v4748_v1  ;;  %v4793_v59 = vld [vmem:[%s10116_s3 + $0x8] sm:$0xff]  ;;  %v6041_v13 = vld [vmem:[%s10119_s6] sm:$0xff]  ;;  %v6021_v62 = vpop.permute.xlu1 %6020 }
 0x379   : > { %v4783_v0 = vadd.f32 %v4773_v25, %v4771_v16  ;;  %v4784_v57 = vadd.f32 %v4776_v50, %v4774_v19  ;;  %v4785_v34 = vadd.f32 %v4777_v51, %v4775_v7  ;;  %vm4802_vm5 = vcmask 130048   ;;  %v6031_v19 = vpop.permute.xlu0 %6030 }
 0x37a   : > { %v4778_v48 = vadd.f32 %v4764_v32, %v4762_v52  ;;  %v4779_v58 = vadd.f32 %v4765_v55, %v4763_v63  ;;  %6429 = vmatprep.mubr.msk.f32.mxu0 %vm4802_vm5, %v4792_v21  ;;  %v6865_v5 = vmov 3  }
 0x37b   : > { %v4788_v10 = vadd.f32 %v4784_v57, %v4782_v29  ;;  %v4789_v11 = vadd.f32 %v4785_v34, %v4783_v0  ;;  %6658 = vset.pattern.permute.xlu1 %v6865_v5  ;;  %6657 = vset.pattern.permute.xlu0 %v6865_v5 }
 0x37c   : > { %v4786_v56 = vadd.f32 %v4780_v28, %v4778_v48  ;;  %v4787_v8 = vadd.f32 %v4781_v33, %v4779_v58  ;;  %4799 = vperm.xlu1 %6658, %v6787_v46   ;;  %4795 = vperm.xlu0 %6657, %v6788_v9   ;;  %v6025_v23 = vpop.permute.xlu1 %6024  ;;  %v6042_v28 = vld [vmem:[%s10119_s6 + $0x8] sm:$0xff] }
 0x37e   : > { %v4790_v42 = vadd.f32 %v4788_v10, %v4786_v56  ;;  %v4791_v20 = vadd.f32 %v4789_v11, %v4787_v8 }
 0x380   : > { %v6544_v14 = vpack.c.bf16 %v4791_v20, %v4790_v42  ;;  %6044 = vperm.xlu1 %6658, %v6789_v37   ;;  %6048 = vperm.xlu0 %6657, %v6790_v44   ;;  %v6035_v52 = vpop.permute.xlu1 %6034 }
 0x382   : > { %6545 = vmatprep.subr.bf16.mxu0 %v6544_v14 }
 0x383   : > { %6547 = vmatpush3.bf16.msra.mxu0 %v6544_v14 }
 0x386   : > { %6430 = vmatmul.mubr.msk.f32.vlgmr.msra.gmra.mrb[16].mxu0 %vm4802_vm5, %v4793_v59 }
 0x387   : > { %6445 = vmatprep.mubr.msk.f32.mxu0 %vm4802_vm5, %v6041_v13 }
 0x3fb   : > { %v4800_v33 = vpop.permute.xlu1 %4799  ;;  %v4796_v32 = vpop.permute.xlu0 %4795 }
 0x3ff   : > { %v6049_v34 = vpop.permute.xlu0 %6048  ;;  %v6045_v58 = vpop.permute.xlu1 %6044 }
 0x410   : > { %v6440_v12 = vpop.f32.mrb[16].mxu1 }
 0x411   : > { %v5992_v41 = vadd.f32 %v6440_v12, %v9840_v39  ;;  %v5986_v60 = vpop.f32.mrb[17].mxu1 }
 0x412   : > { %v5987_v26 = vadd.f32 %v5986_v60, %v9806_v38 }
 0x414   : > { %v5995_v43 = vadd.f32 %v5992_v41, %v5987_v26 }
 0x416   : > { %v5996_v54 = vrot.slane %v5995_v43, 4 }
 0x418   : > { %v5997_v3 = vadd.f32 %v5996_v54, %v5995_v43 }
 0x41a   : > { %v5998_v47 = vrot.slane %v5997_v3, 2 }
 0x41c   : > { %v5999_v45 = vadd.f32 %v5998_v47, %v5997_v3 }
 0x41e   : > { %v6000_v15 = vrot.slane %v5999_v45, 1 }
 0x420   : > { %v6001_v17 = vadd.f32 %v6000_v15, %v5999_v45 }
 0x422   : > { %v6002_v53 = vmul.f32 0.0625, %v6001_v17 }
 0x424   : > { %v6003_v49 = vsub.f32 %v5987_v26, %v6002_v53  ;;  %v6004_v6 = vsub.f32 %v5992_v41, %v6002_v53 }
 0x426   : > { %v6005_v2 = vmul.f32 %v6003_v49, %v6003_v49  ;;  %v6006_v36 = vmul.f32 %v6004_v6, %v6004_v6 }
 0x428   : > { %v6007_v18 = vadd.f32 %v6006_v36, %v6005_v2 }
 0x42a   : > { %v6008_v31 = vrot.slane %v6007_v18, 4 }
 0x42c   : > { %v6009_v24 = vadd.f32 %v6008_v31, %v6007_v18 }
 0x42e   : > { %v6010_v40 = vrot.slane %v6009_v24, 2 }
 0x430   : > { %v6011_v39 = vadd.f32 %v6010_v40, %v6009_v24 }
 0x432   : > { %v6012_v27 = vrot.slane %v6011_v39, 1 }
 0x434   : > { %v6013_v61 = vadd.f32 %v6012_v27, %v6011_v39 }
 0x436   : > { %v6014_v38 = vmul.f32 0.0625, %v6013_v61 }
 0x438   : > { %v6015_v4 = vadd.f32 1e-05, %v6014_v38 }
 0x43a   : > { %6763 = vrsqrt.f32 %v6015_v4 }
 0x444   : > { %v6764_v22 = vpop.eup %6763 }
 0x445   : > { %v6017_v16 = vmul.f32 %v6764_v22, %v6003_v49  ;;  %v6018_v35 = vmul.f32 %v6764_v22, %v6004_v6 }
 0x447   : > { %v6027_v63 = vmul.f32 %v6021_v62, %v6017_v16  ;;  %v6028_v25 = vmul.f32 %v6025_v23, %v6018_v35 }
 0x449   : > { %v6037_v30 = vadd.f32 %v6031_v19, %v6027_v63  ;;  %v6038_v1 = vadd.f32 %v6035_v52, %v6028_v25 }
 0x44b   : > { %v6039_v7 = vmax.f32 %v6037_v30, 0.0  ;;  %v6040_v50 = vmax.f32 %v6038_v1, 0.0 }
 0x44d   : > { %v6552_v51 = vpack.c.bf16 %v6040_v50, %v6039_v7 }
 0x44f   : > { %6553 = vmatprep.subr.bf16.mxu0 %v6552_v51 }
 0x450   : > { %6555 = vmatpush3.bf16.msra.mxu0 %v6552_v51 }
 0x453   : > { %6446 = vmatmul.mubr.msk.f32.vlgmr.msra.gmra.mrb[18].mxu0 %vm4802_vm5, %v6042_v28 }
 0x459   : > { %v6431_v29 = vpop.f32.mrb[16].mxu0 }
 0x45a   : > { %v4881_v55 = vadd.f32 %v6431_v29, %v4800_v33  ;;  %v4875_v0 = vpop.f32.mrb[17].mxu0 }
 0x45b   : > { %v4876_v57 = vadd.f32 %v4875_v0, %v4796_v32 }
 0x45c   : > { %6133 = vst [vmem:[%s271_s22 + $0x8] sm:$0xff] %v4881_v55 }
 0x45d   : > { %6132 = vst [vmem:[%s271_s22] sm:$0xff] %v4876_v57 }
 0x526   : > { %v6447_v48 = vpop.f32.mrb[18].mxu0 }
 0x527   : > { %v6129_v10 = vadd.f32 %v6447_v48, %v6049_v34  ;;  %v6123_v11 = vpop.f32.mrb[19].mxu0 }
 0x528   : > { %v6124_v56 = vadd.f32 %v6123_v11, %v6045_v58 }
 0x529   : > { %6135 = vst [vmem:[%s271_s22 + $0x18] sm:$0xff] %v6129_v10 }
 0x52a   : > { %6134 = vst [vmem:[%s271_s22 + $0x10] sm:$0xff] %v6124_v56 }
 0x52b   : > { %6804 = shalt.err (!%p6801_p3)
}
 0x52c   : > { %s6805_s19 = scalar_lea.hbm %s10070_s13, 512  ;;  %s6809_s21 = scalar_lea.hbm %s10120_s7, 1024 }
 0x52d   : > { %p6806_p4 = scmp.ne.s32.totalorder %s10070_s13, %s6805_s19  ;;  %p6810_p9 = scmp.lt.u32.totalorder %s10070_s13, %s10120_s7 }
 0x52e   : > { %p6811_p10 = scmp.lt.u32.totalorder %s6809_s21, %s6805_s19  ;;  %p6813_p12 = scmp.lt.u32.totalorder %s6805_s19, %s10070_s13 }
 0x52f   : > { %p6807_p7 = pnand %p6806_p4, %p6948_p5 }
 0x530   : > { %p6812_p11 = por %p6811_p10, %p6810_p9 }
 0x531   : > { %p6808_p8 = pneg %p6807_p7 }
 0x532   : > { %p6814_p13 = por %p6813_p12, %p6812_p11 }
 0x534   : > { %p6815_p0 = pnand %p6814_p13, %p6808_p8 }
 0x536   : > { %6818 = shalt.err (!%p6815_p0)
}
 0x537   : > { %s6867_s8 = smov 128   ;;  %s6868_s9 = smov 256  }
 0x538   : > { %s6869_s28 = smov 8  }
 0x539   : > { %6596 = dma.vmem_to_hbm [thread:$0]  (%p6948_p5), %s10065_s23, 512, %s10070_s13, %s10072_s14, %s6867_s8, %s6868_s9, %s6869_s28  }
 0x53a PF: > { %p6602_p1 = scmp.ge.s32.totalorder %s6853_s27, 2  ;;  %s6164_s15 = sand.u32 1, %s6841_s24  }
 0x53b   : > { %s6165_s16 = scalar_lea.sflag [#allocation3], %s6164_s15 }
 0x53c   : > { %p6599_p2 = pnand %p6602_p1, %p6952_p6 }
 0x53e   : > { %6836 = dma.done.wait (!%p6599_p2), %s6165_s16, 512  }
 0x53f   : > { %6838 = vsyncadd (!%p6599_p2), %s6165_s16, 4294966784  ;;  %p17_p3 = scmp.ge.s32.totalorder %s6935_s30, 4   ;;  %s10350_s24 = smov %s6845_s25 }
 0x540   : > { %s10351_s25 = smov %s6849_s26  ;;  %s10352_s26 = smov %s6946_s10 }
 0x541   : > { %s10353_s27 = smov %s6935_s30  ;;  %19 = sbr.rel (!%p17_p3) target bundleno = 3 (0x3), region = 83 }
 0x548   :  { %6170 = vsyncpa [#allocation3], 1 }
 0x549   :  { %6172 = vsyncpa [#allocation3 + $0x1], 1 }

</bundles_post_ra>
